<compile_context>
chip_gen: v5e
topology: v5e:2x2
jax: 0.10.0
libtpu: 0.0.40
codegen_flags: <defaults>
</compile_context>

<pallas_src>
from functools import partial

import jax
import jax.numpy as jnp
from jax.experimental import pallas as pl
from jax.experimental.pallas import tpu as pltpu

EPS = 1e-5


# ----------------------------------------------------------------------------
# Fused kernel: one grid step == B_TILE samples, everything stays on-chip.
#
# Per-sample conv1 row layout (256 rows): row = plane*64 + i7*8 + j7 where
# plane = 2*row_parity + col_parity of the 14x14 conv1 output position
# (2*i7+rp, 2*j7+cp); i7==7 / j7==7 slots are zero and act as conv2's padding.
# ----------------------------------------------------------------------------
def _mycnn_kernel(p1_ref, w1_ref, sh1_ref, w2_ref, sh2_ref, wf_ref, bf_ref,
                  o_ref, flat_ref):
    B = p1_ref.shape[0]
    K = p1_ref.shape[2]

    # ---- conv1 + bn1 + relu : ONE bf16 GEMM over the whole batch tile -----
    a = p1_ref[...].reshape(B * 256, K)                       # free reshape
    acc1 = jnp.dot(a, w1_ref[...], preferred_element_type=jnp.float32)
    y1 = jnp.maximum(acc1.reshape(B, 256, 6) + sh1_ref[...][None], 0.0)

    # ---- conv2 + bn2 + relu : 9 independent tap GEMMs, tree-summed --------
    parts = []
    t = 0
    for ky in range(3):
        for kx in range(3):
            plane = (0 if ky == 1 else 2) + (0 if kx == 1 else 1)
            shift = (8 if ky == 0 else 0) + (1 if kx == 0 else 0)
            off = 64 * plane - shift                          # static slice
            tap = y1[:, off:off + 64, :].reshape(B * 64, 6)   # f32
            parts.append(jnp.dot(tap, w2_ref[t],
                                 preferred_element_type=jnp.float32))
            t += 1
    while len(parts) > 1:                                     # tree reduce
        nxt = [parts[i] + parts[i + 1] for i in range(0, len(parts) - 1, 2)]
        if len(parts) % 2:
            nxt.append(parts[-1])
        parts = nxt
    y2 = jnp.maximum(parts[0] + sh2_ref[...], 0.0)            # (B*64, 16) f32

    # ---- flatten into VMEM scratch (supported lane-slice stores only) -----
    # Padded spatial slots carry zero weights in wf, so no masking needed.
    y2_3d = y2.reshape(B, 64, 16)                             # free reshape
    for r in range(64):
        flat_ref[:, r * 16:(r + 1) * 16] = y2_3d[:, r, :]

    # ---- linear2(linear1(.)) folded offline: one lane-dense MXU GEMM ------
    o_ref[...] = jnp.dot(flat_ref[...], wf_ref[...],
                         preferred_element_type=jnp.float32) + bf_ref[...]


# ----------------------------------------------------------------------------
# One-time parameter preprocessing (hoisted out of the forward pass).
# ----------------------------------------------------------------------------
def prepare_params(p, eps=EPS):
    D = p["lin2_w"].shape[0]
    Dp = max(128, -(-D // 128) * 128)                         # lane-dense out

    # conv1 + bn1 folded (inference mode), tap-major (t*C + ci) GEMM layout
    s1 = p["bn1_gamma"] / jnp.sqrt(p["bn1_var"] + eps)
    w1 = jnp.transpose(p["conv1_w"], (2, 3, 1, 0)).reshape(-1, 6)
    w1 = (w1 * s1[None, :]).astype(jnp.bfloat16)
    sh1_vec = (p["conv1_b"] - p["bn1_mean"]) * s1 + p["bn1_beta"]
    rr = jnp.arange(256)
    valid = ((rr // 8) % 8 != 7) & (rr % 8 != 7)              # pad slots -> 0
    sh1 = jnp.where(valid[:, None], sh1_vec[None, :], 0.0).astype(jnp.float32)

    # conv2 + bn2 folded, tap-major (ky, kx) layout, kept f32 (no per-tap cast)
    s2 = p["bn2_gamma"] / jnp.sqrt(p["bn2_var"] + eps)
    w2 = (jnp.transpose(p["conv2_w"], (2, 3, 1, 0)) * s2).reshape(9, 6, 16)
    w2 = w2.astype(jnp.float32)
    sh2 = ((p["conv2_b"] - p["bn2_mean"]) * s2 + p["bn2_beta"]).reshape(1, 16)
    sh2 = sh2.astype(jnp.float32)

    # linear2 o linear1 folded into one affine map (no nonlinearity between
    # them in the module); fold the NCHW-flatten permutation + padded 8x8
    # spatial slots into zero rows; lane-pad the output dim to Dp.
    Wc = p["lin1_w"].T @ p["lin2_w"].T                        # (784, D)
    bc = p["lin1_b"] @ p["lin2_w"].T + p["lin2_b"]            # (D,)
    Wc = Wc.reshape(16, 7, 7, D)                              # (c, i2, j2, D)
    Wc = jnp.transpose(Wc, (1, 2, 0, 3))                      # (i2, j2, c, D)
    Wc = jnp.pad(Wc, ((0, 1), (0, 1), (0, 0), (0, 0)))        # (8, 8, 16, D)
    wf = jnp.pad(Wc.reshape(1024, D), ((0, 0), (0, Dp - D))).astype(jnp.float32)
    bf = jnp.pad(bc, (0, Dp - D)).reshape(1, Dp).astype(jnp.float32)

    return dict(w1=w1, sh1=sh1, w2=w2, sh2=sh2, wf=wf, bf=bf)


# ----------------------------------------------------------------------------
# Per-forward glue: conv1 im2col patches in the kernel's parity-plane layout.
# ----------------------------------------------------------------------------
def make_patches(x_nchw, n_pad):
    """NCHW image -> (n_pad, 256, 9*Cin) bf16 conv1 patch matrix.

    Rows = 4 parity planes (even/odd output row x even/odd output col) of 8x8
    slots; the i7==7 / j7==7 slots are zero (they become conv2's padding)."""
    N, C, H, W = x_nchw.shape
    Ho = (H + 2 - 3) // 2 + 1
    Wo = (W + 2 - 3) // 2 + 1
    assert Ho == 14 and Wo == 14, "layout specialized to 28x28 inputs (784 flat)"
    x = jnp.transpose(x_nchw, (0, 2, 3, 1)).astype(jnp.bfloat16)   # NHWC bf16
    xp = jnp.pad(x, ((0, 0), (1, 1), (1, 1), (0, 0)))
    taps = [xp[:, ky:ky + 2 * Ho:2, kx:kx + 2 * Wo:2, :]
            for ky in range(3) for kx in range(3)]
    pt = jnp.concatenate(taps, axis=-1)                       # (N, 14, 14, 9C)
    K = 9 * C
    pt = pt.reshape(N, 7, 2, 7, 2, K)                         # (N, i7, rp, j7, cp, K)
    pt = jnp.transpose(pt, (0, 2, 4, 1, 3, 5))                # (N, rp, cp, i7, j7, K)
    pt = jnp.pad(pt, ((0, n_pad - N), (0, 0), (0, 0), (0, 1), (0, 1), (0, 0)))
    return pt.reshape(n_pad, 256, K)


# ----------------------------------------------------------------------------
# Forward pass: one fused pallas_call over a batch-parallel grid.
# ----------------------------------------------------------------------------
@partial(jax.jit, static_argnames=("out_dim", "b_tile"))
def mycnn_forward(x_nchw, kp, out_dim, b_tile=8):
    N = x_nchw.shape[0]
    Dp = kp["wf"].shape[1]
    n_pad = -(-N // b_tile) * b_tile
    patches = make_patches(x_nchw, n_pad)
    K = patches.shape[2]

    out = pl.pallas_call(
        _mycnn_kernel,
        out_shape=jax.ShapeDtypeStruct((n_pad, Dp), jnp.float32),
        grid=(n_pad // b_tile,),
        in_specs=[
            pl.BlockSpec((b_tile, 256, K), lambda n: (n, 0, 0)),
            pl.BlockSpec(kp["w1"].shape, lambda n: (0, 0)),
            pl.BlockSpec(kp["sh1"].shape, lambda n: (0, 0)),
            pl.BlockSpec(kp["w2"].shape, lambda n: (0, 0, 0)),
            pl.BlockSpec(kp["sh2"].shape, lambda n: (0, 0)),
            pl.BlockSpec(kp["wf"].shape, lambda n: (0, 0)),
            pl.BlockSpec(kp["bf"].shape, lambda n: (0, 0)),
        ],
        out_specs=pl.BlockSpec((b_tile, Dp), lambda n: (n, 0)),
        scratch_shapes=[pltpu.VMEM((b_tile, 1024), jnp.float32)],
        compiler_params=pltpu.CompilerParams(
            dimension_semantics=("parallel",),
            vmem_limit_bytes=32 * 1024 * 1024),
    )(patches, kp["w1"], kp["sh1"], kp["w2"], kp["sh2"], kp["wf"], kp["bf"])

    return out[:N, :out_dim]


# ----------------------------------------------------------------------------
# Plain-JAX reference (f32) for a sanity check, and parameter init.
# ----------------------------------------------------------------------------
def mycnn_reference(x, p, eps=EPS):
    def conv_bn_relu(h, w, b, g, beta, mean, var):
        y = jax.lax.conv_general_dilated(
            h, w, window_strides=(2, 2), padding=((1, 1), (1, 1)),
            dimension_numbers=("NCHW", "OIHW", "NCHW"))
        y = y + b[None, :, None, None]
        y = g[None, :, None, None] * (y - mean[None, :, None, None]) \
            / jnp.sqrt(var[None, :, None, None] + eps) + beta[None, :, None, None]
        return jnp.maximum(y, 0.0)

    y = conv_bn_relu(x, p["conv1_w"], p["conv1_b"], p["bn1_gamma"],
                     p["bn1_beta"], p["bn1_mean"], p["bn1_var"])
    y = conv_bn_relu(y, p["conv2_w"], p["conv2_b"], p["bn2_gamma"],
                     p["bn2_beta"], p["bn2_mean"], p["bn2_var"])
    flat = y.reshape(y.shape[0], -1)
    z1 = flat @ p["lin1_w"].T + p["lin1_b"]
    return z1 @ p["lin2_w"].T + p["lin2_b"]


def init_params(key, in_ch, out_dim):
    ks = jax.random.split(key, 16)
    return {
        # PyTorch layouts: conv (Cout, Cin, kh, kw); linear (out, in)
        "conv1_w": 0.2 * jax.random.normal(ks[0], (6, in_ch, 3, 3), jnp.float32),
        "conv1_b": 0.1 * jax.random.normal(ks[1], (6,), jnp.float32),
        "bn1_gamma": 1.0 + 0.1 * jax.random.normal(ks[2], (6,), jnp.float32),
        "bn1_beta": 0.1 * jax.random.normal(ks[3], (6,), jnp.float32),
        "bn1_mean": 0.1 * jax.random.normal(ks[4], (6,), jnp.float32),
        "bn1_var": 1.0 + 0.1 * jax.random.uniform(ks[5], (6,), jnp.float32),
        "conv2_w": 0.2 * jax.random.normal(ks[6], (16, 6, 3, 3), jnp.float32),
        "conv2_b": 0.1 * jax.random.normal(ks[7], (16,), jnp.float32),
        "bn2_gamma": 1.0 + 0.1 * jax.random.normal(ks[8], (16,), jnp.float32),
        "bn2_beta": 0.1 * jax.random.normal(ks[9], (16,), jnp.float32),
        "bn2_mean": 0.1 * jax.random.normal(ks[10], (16,), jnp.float32),
        "bn2_var": 1.0 + 0.1 * jax.random.uniform(ks[11], (16,), jnp.float32),
        "lin1_w": 0.05 * jax.random.normal(ks[12], (32, 784), jnp.float32),
        "lin1_b": 0.05 * jax.random.normal(ks[13], (32,), jnp.float32),
        "lin2_w": 0.1 * jax.random.normal(ks[14], (out_dim, 32), jnp.float32),
        "lin2_b": 0.1 * jax.random.normal(ks[15], (out_dim,), jnp.float32),
    }


if __name__ == "__main__":
    # input_shape = (1, 28, 28) so the flattened conv stack gives 16*7*7 = 784,
    # matching linear1 = nn.Linear(784, 32).
    N, C, H, W = 2, 1, 28, 28
    out_dim = 10

    key = jax.random.PRNGKey(0)
    k_x, k_p = jax.random.split(key)
    x = jax.random.normal(k_x, (N, C, H, W), jnp.float32)
    params = init_params(k_p, C, out_dim)

    kernel_params = prepare_params(params)          # one-time, hoisted
    out = mycnn_forward(x, kernel_params, out_dim=out_dim)
    out = jax.block_until_ready(out)

    assert out.shape == (N, out_dim), out.shape
    assert bool(jnp.all(jnp.isfinite(out)))

    # Sanity check against a plain-JAX reference (loose tol: bf16 conv1 inputs).
    ref = mycnn_reference(x, params)
    max_err = float(jnp.max(jnp.abs(out - ref)))
    assert max_err < 0.15, f"max abs error vs reference: {max_err}"

    print("KERNEL_OK")
</pallas_src>

<mosaic_0001>
module attributes {stable_mosaic.version = 11 : i64} {
  func.func @_mycnn_kernel(%arg0: i32, %arg1: memref<8x256x9xbf16, #tpu.memory_space<vmem>>, %arg2: memref<9x6xbf16, #tpu.memory_space<vmem>>, %arg3: memref<256x6xf32, #tpu.memory_space<vmem>>, %arg4: memref<9x6x16xf32, #tpu.memory_space<vmem>>, %arg5: memref<1x16xf32, #tpu.memory_space<vmem>>, %arg6: memref<1024x128xf32, #tpu.memory_space<vmem>>, %arg7: memref<1x128xf32, #tpu.memory_space<vmem>>, %arg8: memref<8x128xf32, #tpu.memory_space<vmem>>, %arg9: memref<8x1024xf32, #tpu.memory_space<vmem>>) attributes {dimension_semantics = [#tpu.dimension_semantics<parallel>], iteration_bounds = array<i64: 1>, scalar_prefetch = 0 : i64, scratch_operands = 1 : i64, tpu.core_type = #tpu.core_type<tc>, window_params = [{transform_indices = @transform_0, window_bounds = array<i64: 8, 256, 9>}, {pipeline_mode = #tpu.pipeline_mode<synchronous>, transform_indices = @transform_1, window_bounds = array<i64: 9, 6>}, {pipeline_mode = #tpu.pipeline_mode<synchronous>, transform_indices = @transform_2, window_bounds = array<i64: 256, 6>}, {pipeline_mode = #tpu.pipeline_mode<synchronous>, transform_indices = @transform_3, window_bounds = array<i64: 9, 6, 16>}, {pipeline_mode = #tpu.pipeline_mode<synchronous>, transform_indices = @transform_4, window_bounds = array<i64: 1, 16>}, {pipeline_mode = #tpu.pipeline_mode<synchronous>, transform_indices = @transform_5, window_bounds = array<i64: 1024, 128>}, {pipeline_mode = #tpu.pipeline_mode<synchronous>, transform_indices = @transform_6, window_bounds = array<i64: 1, 128>}, {transform_indices = @transform_7, window_bounds = array<i64: 8, 128>}]} {
    %c0 = arith.constant 0 : index
    %c0_0 = arith.constant 0 : index
    %c0_1 = arith.constant 0 : index
    %0 = vector.load %arg1[%c0, %c0_0, %c0_1] : memref<8x256x9xbf16, #tpu.memory_space<vmem>>, vector<8x256x9xbf16>
    %1 = vector.shape_cast %0 : vector<8x256x9xbf16> to vector<2048x9xbf16>
    %c0_2 = arith.constant 0 : index
    %c0_3 = arith.constant 0 : index
    %2 = vector.load %arg2[%c0_2, %c0_3] : memref<9x6xbf16, #tpu.memory_space<vmem>>, vector<9x6xbf16>
    %cst = arith.constant dense<0.000000e+00> : vector<2048x6xf32>
    %3 = tpu.matmul %1, %2, %cst {dimension_numbers = #tpu.dot_dimension_numbers<[1], [0], [0], [1], [0, 0, 1, 1], [], []>} : vector<2048x9xbf16>, vector<9x6xbf16>, vector<2048x6xf32> -> vector<2048x6xf32>
    %4 = vector.shape_cast %3 : vector<2048x6xf32> to vector<8x256x6xf32>
    %c0_4 = arith.constant 0 : index
    %c0_5 = arith.constant 0 : index
    %5 = vector.load %arg3[%c0_4, %c0_5] : memref<256x6xf32, #tpu.memory_space<vmem>>, vector<256x6xf32>
    %6 = vector.shape_cast %5 : vector<256x6xf32> to vector<1x256x6xf32>
    %7 = vector.broadcast %6 : vector<1x256x6xf32> to vector<8x256x6xf32>
    %8 = arith.addf %4, %7 : vector<8x256x6xf32>
    %cst_6 = arith.constant 0.000000e+00 : f32
    %9 = vector.broadcast %cst_6 : f32 to vector<8x256x6xf32>
    %10 = arith.maximumf %8, %9 : vector<8x256x6xf32>
    %11 = vector.extract_strided_slice %10 {offsets = [0, 183, 0], sizes = [8, 64, 6], strides = [1, 1, 1]} : vector<8x256x6xf32> to vector<8x64x6xf32>
    %12 = vector.shape_cast %11 : vector<8x64x6xf32> to vector<512x6xf32>
    %c0_7 = arith.constant 0 : index
    %c0_8 = arith.constant 0 : index
    %c0_9 = arith.constant 0 : index
    %13 = vector.load %arg4[%c0_7, %c0_8, %c0_9] : memref<9x6x16xf32, #tpu.memory_space<vmem>>, vector<1x6x16xf32>
    %14 = vector.shape_cast %13 : vector<1x6x16xf32> to vector<6x16xf32>
    %cst_10 = arith.constant dense<0.000000e+00> : vector<512x16xf32>
    %15 = tpu.matmul %12, %14, %cst_10 {dimension_numbers = #tpu.dot_dimension_numbers<[1], [0], [0], [1], [0, 0, 1, 1], [], []>} : vector<512x6xf32>, vector<6x16xf32>, vector<512x16xf32> -> vector<512x16xf32>
    %16 = vector.extract_strided_slice %10 {offsets = [0, 120, 0], sizes = [8, 64, 6], strides = [1, 1, 1]} : vector<8x256x6xf32> to vector<8x64x6xf32>
    %17 = vector.shape_cast %16 : vector<8x64x6xf32> to vector<512x6xf32>
    %c1 = arith.constant 1 : index
    %c0_11 = arith.constant 0 : index
    %c0_12 = arith.constant 0 : index
    %18 = vector.load %arg4[%c1, %c0_11, %c0_12] : memref<9x6x16xf32, #tpu.memory_space<vmem>>, vector<1x6x16xf32>
    %19 = vector.shape_cast %18 : vector<1x6x16xf32> to vector<6x16xf32>
    %cst_13 = arith.constant dense<0.000000e+00> : vector<512x16xf32>
    %20 = tpu.matmul %17, %19, %cst_13 {dimension_numbers = #tpu.dot_dimension_numbers<[1], [0], [0], [1], [0, 0, 1, 1], [], []>} : vector<512x6xf32>, vector<6x16xf32>, vector<512x16xf32> -> vector<512x16xf32>
    %21 = vector.extract_strided_slice %10 {offsets = [0, 184, 0], sizes = [8, 64, 6], strides = [1, 1, 1]} : vector<8x256x6xf32> to vector<8x64x6xf32>
    %22 = vector.shape_cast %21 : vector<8x64x6xf32> to vector<512x6xf32>
    %c2 = arith.constant 2 : index
    %c0_14 = arith.constant 0 : index
    %c0_15 = arith.constant 0 : index
    %23 = vector.load %arg4[%c2, %c0_14, %c0_15] : memref<9x6x16xf32, #tpu.memory_space<vmem>>, vector<1x6x16xf32>
    %24 = vector.shape_cast %23 : vector<1x6x16xf32> to vector<6x16xf32>
    %cst_16 = arith.constant dense<0.000000e+00> : vector<512x16xf32>
    %25 = tpu.matmul %22, %24, %cst_16 {dimension_numbers = #tpu.dot_dimension_numbers<[1], [0], [0], [1], [0, 0, 1, 1], [], []>} : vector<512x6xf32>, vector<6x16xf32>, vector<512x16xf32> -> vector<512x16xf32>
    %26 = vector.extract_strided_slice %10 {offsets = [0, 63, 0], sizes = [8, 64, 6], strides = [1, 1, 1]} : vector<8x256x6xf32> to vector<8x64x6xf32>
    %27 = vector.shape_cast %26 : vector<8x64x6xf32> to vector<512x6xf32>
    %c3 = arith.constant 3 : index
    %c0_17 = arith.constant 0 : index
    %c0_18 = arith.constant 0 : index
    %28 = vector.load %arg4[%c3, %c0_17, %c0_18] : memref<9x6x16xf32, #tpu.memory_space<vmem>>, vector<1x6x16xf32>
    %29 = vector.shape_cast %28 : vector<1x6x16xf32> to vector<6x16xf32>
    %cst_19 = arith.constant dense<0.000000e+00> : vector<512x16xf32>
    %30 = tpu.matmul %27, %29, %cst_19 {dimension_numbers = #tpu.dot_dimension_numbers<[1], [0], [0], [1], [0, 0, 1, 1], [], []>} : vector<512x6xf32>, vector<6x16xf32>, vector<512x16xf32> -> vector<512x16xf32>
    %31 = vector.extract_strided_slice %10 {offsets = [0, 0, 0], sizes = [8, 64, 6], strides = [1, 1, 1]} : vector<8x256x6xf32> to vector<8x64x6xf32>
    %32 = vector.shape_cast %31 : vector<8x64x6xf32> to vector<512x6xf32>
    %c4 = arith.constant 4 : index
    %c0_20 = arith.constant 0 : index
    %c0_21 = arith.constant 0 : index
    %33 = vector.load %arg4[%c4, %c0_20, %c0_21] : memref<9x6x16xf32, #tpu.memory_space<vmem>>, vector<1x6x16xf32>
    %34 = vector.shape_cast %33 : vector<1x6x16xf32> to vector<6x16xf32>
    %cst_22 = arith.constant dense<0.000000e+00> : vector<512x16xf32>
    %35 = tpu.matmul %32, %34, %cst_22 {dimension_numbers = #tpu.dot_dimension_numbers<[1], [0], [0], [1], [0, 0, 1, 1], [], []>} : vector<512x6xf32>, vector<6x16xf32>, vector<512x16xf32> -> vector<512x16xf32>
    %36 = vector.extract_strided_slice %10 {offsets = [0, 64, 0], sizes = [8, 64, 6], strides = [1, 1, 1]} : vector<8x256x6xf32> to vector<8x64x6xf32>
    %37 = vector.shape_cast %36 : vector<8x64x6xf32> to vector<512x6xf32>
    %c5 = arith.constant 5 : index
    %c0_23 = arith.constant 0 : index
    %c0_24 = arith.constant 0 : index
    %38 = vector.load %arg4[%c5, %c0_23, %c0_24] : memref<9x6x16xf32, #tpu.memory_space<vmem>>, vector<1x6x16xf32>
    %39 = vector.shape_cast %38 : vector<1x6x16xf32> to vector<6x16xf32>
    %cst_25 = arith.constant dense<0.000000e+00> : vector<512x16xf32>
    %40 = tpu.matmul %37, %39, %cst_25 {dimension_numbers = #tpu.dot_dimension_numbers<[1], [0], [0], [1], [0, 0, 1, 1], [], []>} : vector<512x6xf32>, vector<6x16xf32>, vector<512x16xf32> -> vector<512x16xf32>
    %41 = vector.extract_strided_slice %10 {offsets = [0, 191, 0], sizes = [8, 64, 6], strides = [1, 1, 1]} : vector<8x256x6xf32> to vector<8x64x6xf32>
    %42 = vector.shape_cast %41 : vector<8x64x6xf32> to vector<512x6xf32>
    %c6 = arith.constant 6 : index
    %c0_26 = arith.constant 0 : index
    %c0_27 = arith.constant 0 : index
    %43 = vector.load %arg4[%c6, %c0_26, %c0_27] : memref<9x6x16xf32, #tpu.memory_space<vmem>>, vector<1x6x16xf32>
    %44 = vector.shape_cast %43 : vector<1x6x16xf32> to vector<6x16xf32>
    %cst_28 = arith.constant dense<0.000000e+00> : vector<512x16xf32>
    %45 = tpu.matmul %42, %44, %cst_28 {dimension_numbers = #tpu.dot_dimension_numbers<[1], [0], [0], [1], [0, 0, 1, 1], [], []>} : vector<512x6xf32>, vector<6x16xf32>, vector<512x16xf32> -> vector<512x16xf32>
    %46 = vector.extract_strided_slice %10 {offsets = [0, 128, 0], sizes = [8, 64, 6], strides = [1, 1, 1]} : vector<8x256x6xf32> to vector<8x64x6xf32>
    %47 = vector.shape_cast %46 : vector<8x64x6xf32> to vector<512x6xf32>
    %c7 = arith.constant 7 : index
    %c0_29 = arith.constant 0 : index
    %c0_30 = arith.constant 0 : index
    %48 = vector.load %arg4[%c7, %c0_29, %c0_30] : memref<9x6x16xf32, #tpu.memory_space<vmem>>, vector<1x6x16xf32>
    %49 = vector.shape_cast %48 : vector<1x6x16xf32> to vector<6x16xf32>
    %cst_31 = arith.constant dense<0.000000e+00> : vector<512x16xf32>
    %50 = tpu.matmul %47, %49, %cst_31 {dimension_numbers = #tpu.dot_dimension_numbers<[1], [0], [0], [1], [0, 0, 1, 1], [], []>} : vector<512x6xf32>, vector<6x16xf32>, vector<512x16xf32> -> vector<512x16xf32>
    %51 = vector.extract_strided_slice %10 {offsets = [0, 192, 0], sizes = [8, 64, 6], strides = [1, 1, 1]} : vector<8x256x6xf32> to vector<8x64x6xf32>
    %52 = vector.shape_cast %51 : vector<8x64x6xf32> to vector<512x6xf32>
    %c8 = arith.constant 8 : index
    %c0_32 = arith.constant 0 : index
    %c0_33 = arith.constant 0 : index
    %53 = vector.load %arg4[%c8, %c0_32, %c0_33] : memref<9x6x16xf32, #tpu.memory_space<vmem>>, vector<1x6x16xf32>
    %54 = vector.shape_cast %53 : vector<1x6x16xf32> to vector<6x16xf32>
    %cst_34 = arith.constant dense<0.000000e+00> : vector<512x16xf32>
    %55 = tpu.matmul %52, %54, %cst_34 {dimension_numbers = #tpu.dot_dimension_numbers<[1], [0], [0], [1], [0, 0, 1, 1], [], []>} : vector<512x6xf32>, vector<6x16xf32>, vector<512x16xf32> -> vector<512x16xf32>
    %56 = arith.addf %15, %20 : vector<512x16xf32>
    %57 = arith.addf %25, %30 : vector<512x16xf32>
    %58 = arith.addf %35, %40 : vector<512x16xf32>
    %59 = arith.addf %45, %50 : vector<512x16xf32>
    %60 = arith.addf %56, %57 : vector<512x16xf32>
    %61 = arith.addf %58, %59 : vector<512x16xf32>
    %62 = arith.addf %60, %61 : vector<512x16xf32>
    %63 = arith.addf %62, %55 : vector<512x16xf32>
    %c0_35 = arith.constant 0 : index
    %c0_36 = arith.constant 0 : index
    %64 = vector.load %arg5[%c0_35, %c0_36] : memref<1x16xf32, #tpu.memory_space<vmem>>, vector<1x16xf32>
    %65 = vector.broadcast %64 : vector<1x16xf32> to vector<512x16xf32>
    %66 = arith.addf %63, %65 : vector<512x16xf32>
    %cst_37 = arith.constant 0.000000e+00 : f32
    %67 = vector.broadcast %cst_37 : f32 to vector<512x16xf32>
    %68 = arith.maximumf %66, %67 : vector<512x16xf32>
    %69 = vector.shape_cast %68 : vector<512x16xf32> to vector<8x64x16xf32>
    %70 = vector.extract_strided_slice %69 {offsets = [0, 0, 0], sizes = [8, 1, 16], strides = [1, 1, 1]} : vector<8x64x16xf32> to vector<8x1x16xf32>
    %71 = vector.shape_cast %70 : vector<8x1x16xf32> to vector<8x16xf32>
    %c0_38 = arith.constant 0 : index
    %c0_39 = arith.constant 0 : index
    %72 = vector.load %arg9[%c0_38, %c0_39] : memref<8x1024xf32, #tpu.memory_space<vmem>>, vector<8x16xf32>
    tpu.vector_store %arg9[%c0_38, %c0_39], %71 {strides = array<i32>} : memref<8x1024xf32, #tpu.memory_space<vmem>>, vector<8x16xf32>,
    %73 = vector.extract_strided_slice %69 {offsets = [0, 1, 0], sizes = [8, 1, 16], strides = [1, 1, 1]} : vector<8x64x16xf32> to vector<8x1x16xf32>
    %74 = vector.shape_cast %73 : vector<8x1x16xf32> to vector<8x16xf32>
    %c0_40 = arith.constant 0 : index
    %c16 = arith.constant 16 : index
    %75 = vector.load %arg9[%c0_40, %c16] : memref<8x1024xf32, #tpu.memory_space<vmem>>, vector<8x16xf32>
    tpu.vector_store %arg9[%c0_40, %c16], %74 {strides = array<i32>} : memref<8x1024xf32, #tpu.memory_space<vmem>>, vector<8x16xf32>,
    %76 = vector.extract_strided_slice %69 {offsets = [0, 2, 0], sizes = [8, 1, 16], strides = [1, 1, 1]} : vector<8x64x16xf32> to vector<8x1x16xf32>
    %77 = vector.shape_cast %76 : vector<8x1x16xf32> to vector<8x16xf32>
    %c0_41 = arith.constant 0 : index
    %c32 = arith.constant 32 : index
    %78 = vector.load %arg9[%c0_41, %c32] : memref<8x1024xf32, #tpu.memory_space<vmem>>, vector<8x16xf32>
    tpu.vector_store %arg9[%c0_41, %c32], %77 {strides = array<i32>} : memref<8x1024xf32, #tpu.memory_space<vmem>>, vector<8x16xf32>,
    %79 = vector.extract_strided_slice %69 {offsets = [0, 3, 0], sizes = [8, 1, 16], strides = [1, 1, 1]} : vector<8x64x16xf32> to vector<8x1x16xf32>
    %80 = vector.shape_cast %79 : vector<8x1x16xf32> to vector<8x16xf32>
    %c0_42 = arith.constant 0 : index
    %c48 = arith.constant 48 : index
    %81 = vector.load %arg9[%c0_42, %c48] : memref<8x1024xf32, #tpu.memory_space<vmem>>, vector<8x16xf32>
    tpu.vector_store %arg9[%c0_42, %c48], %80 {strides = array<i32>} : memref<8x1024xf32, #tpu.memory_space<vmem>>, vector<8x16xf32>,
    %82 = vector.extract_strided_slice %69 {offsets = [0, 4, 0], sizes = [8, 1, 16], strides = [1, 1, 1]} : vector<8x64x16xf32> to vector<8x1x16xf32>
    %83 = vector.shape_cast %82 : vector<8x1x16xf32> to vector<8x16xf32>
    %c0_43 = arith.constant 0 : index
    %c64 = arith.constant 64 : index
    %84 = vector.load %arg9[%c0_43, %c64] : memref<8x1024xf32, #tpu.memory_space<vmem>>, vector<8x16xf32>
    tpu.vector_store %arg9[%c0_43, %c64], %83 {strides = array<i32>} : memref<8x1024xf32, #tpu.memory_space<vmem>>, vector<8x16xf32>,
    %85 = vector.extract_strided_slice %69 {offsets = [0, 5, 0], sizes = [8, 1, 16], strides = [1, 1, 1]} : vector<8x64x16xf32> to vector<8x1x16xf32>
    %86 = vector.shape_cast %85 : vector<8x1x16xf32> to vector<8x16xf32>
    %c0_44 = arith.constant 0 : index
    %c80 = arith.constant 80 : index
    %87 = vector.load %arg9[%c0_44, %c80] : memref<8x1024xf32, #tpu.memory_space<vmem>>, vector<8x16xf32>
    tpu.vector_store %arg9[%c0_44, %c80], %86 {strides = array<i32>} : memref<8x1024xf32, #tpu.memory_space<vmem>>, vector<8x16xf32>,
    %88 = vector.extract_strided_slice %69 {offsets = [0, 6, 0], sizes = [8, 1, 16], strides = [1, 1, 1]} : vector<8x64x16xf32> to vector<8x1x16xf32>
    %89 = vector.shape_cast %88 : vector<8x1x16xf32> to vector<8x16xf32>
    %c0_45 = arith.constant 0 : index
    %c96 = arith.constant 96 : index
    %90 = vector.load %arg9[%c0_45, %c96] : memref<8x1024xf32, #tpu.memory_space<vmem>>, vector<8x16xf32>
    tpu.vector_store %arg9[%c0_45, %c96], %89 {strides = array<i32>} : memref<8x1024xf32, #tpu.memory_space<vmem>>, vector<8x16xf32>,
    %91 = vector.extract_strided_slice %69 {offsets = [0, 7, 0], sizes = [8, 1, 16], strides = [1, 1, 1]} : vector<8x64x16xf32> to vector<8x1x16xf32>
    %92 = vector.shape_cast %91 : vector<8x1x16xf32> to vector<8x16xf32>
    %c0_46 = arith.constant 0 : index
    %c112 = arith.constant 112 : index
    %93 = vector.load %arg9[%c0_46, %c112] : memref<8x1024xf32, #tpu.memory_space<vmem>>, vector<8x16xf32>
    tpu.vector_store %arg9[%c0_46, %c112], %92 {strides = array<i32>} : memref<8x1024xf32, #tpu.memory_space<vmem>>, vector<8x16xf32>,
    %94 = vector.extract_strided_slice %69 {offsets = [0, 8, 0], sizes = [8, 1, 16], strides = [1, 1, 1]} : vector<8x64x16xf32> to vector<8x1x16xf32>
    %95 = vector.shape_cast %94 : vector<8x1x16xf32> to vector<8x16xf32>
    %c0_47 = arith.constant 0 : index
    %c128 = arith.constant 128 : index
    %96 = vector.load %arg9[%c0_47, %c128] : memref<8x1024xf32, #tpu.memory_space<vmem>>, vector<8x16xf32>
    tpu.vector_store %arg9[%c0_47, %c128], %95 {strides = array<i32>} : memref<8x1024xf32, #tpu.memory_space<vmem>>, vector<8x16xf32>,
    %97 = vector.extract_strided_slice %69 {offsets = [0, 9, 0], sizes = [8, 1, 16], strides = [1, 1, 1]} : vector<8x64x16xf32> to vector<8x1x16xf32>
    %98 = vector.shape_cast %97 : vector<8x1x16xf32> to vector<8x16xf32>
    %c0_48 = arith.constant 0 : index
    %c144 = arith.constant 144 : index
    %99 = vector.load %arg9[%c0_48, %c144] : memref<8x1024xf32, #tpu.memory_space<vmem>>, vector<8x16xf32>
    tpu.vector_store %arg9[%c0_48, %c144], %98 {strides = array<i32>} : memref<8x1024xf32, #tpu.memory_space<vmem>>, vector<8x16xf32>,
    %100 = vector.extract_strided_slice %69 {offsets = [0, 10, 0], sizes = [8, 1, 16], strides = [1, 1, 1]} : vector<8x64x16xf32> to vector<8x1x16xf32>
    %101 = vector.shape_cast %100 : vector<8x1x16xf32> to vector<8x16xf32>
    %c0_49 = arith.constant 0 : index
    %c160 = arith.constant 160 : index
    %102 = vector.load %arg9[%c0_49, %c160] : memref<8x1024xf32, #tpu.memory_space<vmem>>, vector<8x16xf32>
    tpu.vector_store %arg9[%c0_49, %c160], %101 {strides = array<i32>} : memref<8x1024xf32, #tpu.memory_space<vmem>>, vector<8x16xf32>,
    %103 = vector.extract_strided_slice %69 {offsets = [0, 11, 0], sizes = [8, 1, 16], strides = [1, 1, 1]} : vector<8x64x16xf32> to vector<8x1x16xf32>
    %104 = vector.shape_cast %103 : vector<8x1x16xf32> to vector<8x16xf32>
    %c0_50 = arith.constant 0 : index
    %c176 = arith.constant 176 : index
    %105 = vector.load %arg9[%c0_50, %c176] : memref<8x1024xf32, #tpu.memory_space<vmem>>, vector<8x16xf32>
    tpu.vector_store %arg9[%c0_50, %c176], %104 {strides = array<i32>} : memref<8x1024xf32, #tpu.memory_space<vmem>>, vector<8x16xf32>,
    %106 = vector.extract_strided_slice %69 {offsets = [0, 12, 0], sizes = [8, 1, 16], strides = [1, 1, 1]} : vector<8x64x16xf32> to vector<8x1x16xf32>
    %107 = vector.shape_cast %106 : vector<8x1x16xf32> to vector<8x16xf32>
    %c0_51 = arith.constant 0 : index
    %c192 = arith.constant 192 : index
    %108 = vector.load %arg9[%c0_51, %c192] : memref<8x1024xf32, #tpu.memory_space<vmem>>, vector<8x16xf32>
    tpu.vector_store %arg9[%c0_51, %c192], %107 {strides = array<i32>} : memref<8x1024xf32, #tpu.memory_space<vmem>>, vector<8x16xf32>,
    %109 = vector.extract_strided_slice %69 {offsets = [0, 13, 0], sizes = [8, 1, 16], strides = [1, 1, 1]} : vector<8x64x16xf32> to vector<8x1x16xf32>
    %110 = vector.shape_cast %109 : vector<8x1x16xf32> to vector<8x16xf32>
    %c0_52 = arith.constant 0 : index
    %c208 = arith.constant 208 : index
    %111 = vector.load %arg9[%c0_52, %c208] : memref<8x1024xf32, #tpu.memory_space<vmem>>, vector<8x16xf32>
    tpu.vector_store %arg9[%c0_52, %c208], %110 {strides = array<i32>} : memref<8x1024xf32, #tpu.memory_space<vmem>>, vector<8x16xf32>,
    %112 = vector.extract_strided_slice %69 {offsets = [0, 14, 0], sizes = [8, 1, 16], strides = [1, 1, 1]} : vector<8x64x16xf32> to vector<8x1x16xf32>
    %113 = vector.shape_cast %112 : vector<8x1x16xf32> to vector<8x16xf32>
    %c0_53 = arith.constant 0 : index
    %c224 = arith.constant 224 : index
    %114 = vector.load %arg9[%c0_53, %c224] : memref<8x1024xf32, #tpu.memory_space<vmem>>, vector<8x16xf32>
    tpu.vector_store %arg9[%c0_53, %c224], %113 {strides = array<i32>} : memref<8x1024xf32, #tpu.memory_space<vmem>>, vector<8x16xf32>,
    %115 = vector.extract_strided_slice %69 {offsets = [0, 15, 0], sizes = [8, 1, 16], strides = [1, 1, 1]} : vector<8x64x16xf32> to vector<8x1x16xf32>
    %116 = vector.shape_cast %115 : vector<8x1x16xf32> to vector<8x16xf32>
    %c0_54 = arith.constant 0 : index
    %c240 = arith.constant 240 : index
    %117 = vector.load %arg9[%c0_54, %c240] : memref<8x1024xf32, #tpu.memory_space<vmem>>, vector<8x16xf32>
    tpu.vector_store %arg9[%c0_54, %c240], %116 {strides = array<i32>} : memref<8x1024xf32, #tpu.memory_space<vmem>>, vector<8x16xf32>,
    %118 = vector.extract_strided_slice %69 {offsets = [0, 16, 0], sizes = [8, 1, 16], strides = [1, 1, 1]} : vector<8x64x16xf32> to vector<8x1x16xf32>
    %119 = vector.shape_cast %118 : vector<8x1x16xf32> to vector<8x16xf32>
    %c0_55 = arith.constant 0 : index
    %c256 = arith.constant 256 : index
    %120 = vector.load %arg9[%c0_55, %c256] : memref<8x1024xf32, #tpu.memory_space<vmem>>, vector<8x16xf32>
    tpu.vector_store %arg9[%c0_55, %c256], %119 {strides = array<i32>} : memref<8x1024xf32, #tpu.memory_space<vmem>>, vector<8x16xf32>,
    %121 = vector.extract_strided_slice %69 {offsets = [0, 17, 0], sizes = [8, 1, 16], strides = [1, 1, 1]} : vector<8x64x16xf32> to vector<8x1x16xf32>
    %122 = vector.shape_cast %121 : vector<8x1x16xf32> to vector<8x16xf32>
    %c0_56 = arith.constant 0 : index
    %c272 = arith.constant 272 : index
    %123 = vector.load %arg9[%c0_56, %c272] : memref<8x1024xf32, #tpu.memory_space<vmem>>, vector<8x16xf32>
    tpu.vector_store %arg9[%c0_56, %c272], %122 {strides = array<i32>} : memref<8x1024xf32, #tpu.memory_space<vmem>>, vector<8x16xf32>,
    %124 = vector.extract_strided_slice %69 {offsets = [0, 18, 0], sizes = [8, 1, 16], strides = [1, 1, 1]} : vector<8x64x16xf32> to vector<8x1x16xf32>
    %125 = vector.shape_cast %124 : vector<8x1x16xf32> to vector<8x16xf32>
    %c0_57 = arith.constant 0 : index
    %c288 = arith.constant 288 : index
    %126 = vector.load %arg9[%c0_57, %c288] : memref<8x1024xf32, #tpu.memory_space<vmem>>, vector<8x16xf32>
    tpu.vector_store %arg9[%c0_57, %c288], %125 {strides = array<i32>} : memref<8x1024xf32, #tpu.memory_space<vmem>>, vector<8x16xf32>,
    %127 = vector.extract_strided_slice %69 {offsets = [0, 19, 0], sizes = [8, 1, 16], strides = [1, 1, 1]} : vector<8x64x16xf32> to vector<8x1x16xf32>
    %128 = vector.shape_cast %127 : vector<8x1x16xf32> to vector<8x16xf32>
    %c0_58 = arith.constant 0 : index
    %c304 = arith.constant 304 : index
    %129 = vector.load %arg9[%c0_58, %c304] : memref<8x1024xf32, #tpu.memory_space<vmem>>, vector<8x16xf32>
    tpu.vector_store %arg9[%c0_58, %c304], %128 {strides = array<i32>} : memref<8x1024xf32, #tpu.memory_space<vmem>>, vector<8x16xf32>,
    %130 = vector.extract_strided_slice %69 {offsets = [0, 20, 0], sizes = [8, 1, 16], strides = [1, 1, 1]} : vector<8x64x16xf32> to vector<8x1x16xf32>
    %131 = vector.shape_cast %130 : vector<8x1x16xf32> to vector<8x16xf32>
    %c0_59 = arith.constant 0 : index
    %c320 = arith.constant 320 : index
    %132 = vector.load %arg9[%c0_59, %c320] : memref<8x1024xf32, #tpu.memory_space<vmem>>, vector<8x16xf32>
    tpu.vector_store %arg9[%c0_59, %c320], %131 {strides = array<i32>} : memref<8x1024xf32, #tpu.memory_space<vmem>>, vector<8x16xf32>,
    %133 = vector.extract_strided_slice %69 {offsets = [0, 21, 0], sizes = [8, 1, 16], strides = [1, 1, 1]} : vector<8x64x16xf32> to vector<8x1x16xf32>
    %134 = vector.shape_cast %133 : vector<8x1x16xf32> to vector<8x16xf32>
    %c0_60 = arith.constant 0 : index
    %c336 = arith.constant 336 : index
    %135 = vector.load %arg9[%c0_60, %c336] : memref<8x1024xf32, #tpu.memory_space<vmem>>, vector<8x16xf32>
    tpu.vector_store %arg9[%c0_60, %c336], %134 {strides = array<i32>} : memref<8x1024xf32, #tpu.memory_space<vmem>>, vector<8x16xf32>,
    %136 = vector.extract_strided_slice %69 {offsets = [0, 22, 0], sizes = [8, 1, 16], strides = [1, 1, 1]} : vector<8x64x16xf32> to vector<8x1x16xf32>
    %137 = vector.shape_cast %136 : vector<8x1x16xf32> to vector<8x16xf32>
    %c0_61 = arith.constant 0 : index
    %c352 = arith.constant 352 : index
    %138 = vector.load %arg9[%c0_61, %c352] : memref<8x1024xf32, #tpu.memory_space<vmem>>, vector<8x16xf32>
    tpu.vector_store %arg9[%c0_61, %c352], %137 {strides = array<i32>} : memref<8x1024xf32, #tpu.memory_space<vmem>>, vector<8x16xf32>,
    %139 = vector.extract_strided_slice %69 {offsets = [0, 23, 0], sizes = [8, 1, 16], strides = [1, 1, 1]} : vector<8x64x16xf32> to vector<8x1x16xf32>
    %140 = vector.shape_cast %139 : vector<8x1x16xf32> to vector<8x16xf32>
    %c0_62 = arith.constant 0 : index
    %c368 = arith.constant 368 : index
    %141 = vector.load %arg9[%c0_62, %c368] : memref<8x1024xf32, #tpu.memory_space<vmem>>, vector<8x16xf32>
    tpu.vector_store %arg9[%c0_62, %c368], %140 {strides = array<i32>} : memref<8x1024xf32, #tpu.memory_space<vmem>>, vector<8x16xf32>,
    %142 = vector.extract_strided_slice %69 {offsets = [0, 24, 0], sizes = [8, 1, 16], strides = [1, 1, 1]} : vector<8x64x16xf32> to vector<8x1x16xf32>
    %143 = vector.shape_cast %142 : vector<8x1x16xf32> to vector<8x16xf32>
    %c0_63 = arith.constant 0 : index
    %c384 = arith.constant 384 : index
    %144 = vector.load %arg9[%c0_63, %c384] : memref<8x1024xf32, #tpu.memory_space<vmem>>, vector<8x16xf32>
    tpu.vector_store %arg9[%c0_63, %c384], %143 {strides = array<i32>} : memref<8x1024xf32, #tpu.memory_space<vmem>>, vector<8x16xf32>,
    %145 = vector.extract_strided_slice %69 {offsets = [0, 25, 0], sizes = [8, 1, 16], strides = [1, 1, 1]} : vector<8x64x16xf32> to vector<8x1x16xf32>
    %146 = vector.shape_cast %145 : vector<8x1x16xf32> to vector<8x16xf32>
    %c0_64 = arith.constant 0 : index
    %c400 = arith.constant 400 : index
    %147 = vector.load %arg9[%c0_64, %c400] : memref<8x1024xf32, #tpu.memory_space<vmem>>, vector<8x16xf32>
    tpu.vector_store %arg9[%c0_64, %c400], %146 {strides = array<i32>} : memref<8x1024xf32, #tpu.memory_space<vmem>>, vector<8x16xf32>,
    %148 = vector.extract_strided_slice %69 {offsets = [0, 26, 0], sizes = [8, 1, 16], strides = [1, 1, 1]} : vector<8x64x16xf32> to vector<8x1x16xf32>
    %149 = vector.shape_cast %148 : vector<8x1x16xf32> to vector<8x16xf32>
    %c0_65 = arith.constant 0 : index
    %c416 = arith.constant 416 : index
    %150 = vector.load %arg9[%c0_65, %c416] : memref<8x1024xf32, #tpu.memory_space<vmem>>, vector<8x16xf32>
    tpu.vector_store %arg9[%c0_65, %c416], %149 {strides = array<i32>} : memref<8x1024xf32, #tpu.memory_space<vmem>>, vector<8x16xf32>,
    %151 = vector.extract_strided_slice %69 {offsets = [0, 27, 0], sizes = [8, 1, 16], strides = [1, 1, 1]} : vector<8x64x16xf32> to vector<8x1x16xf32>
    %152 = vector.shape_cast %151 : vector<8x1x16xf32> to vector<8x16xf32>
    %c0_66 = arith.constant 0 : index
    %c432 = arith.constant 432 : index
    %153 = vector.load %arg9[%c0_66, %c432] : memref<8x1024xf32, #tpu.memory_space<vmem>>, vector<8x16xf32>
    tpu.vector_store %arg9[%c0_66, %c432], %152 {strides = array<i32>} : memref<8x1024xf32, #tpu.memory_space<vmem>>, vector<8x16xf32>,
    %154 = vector.extract_strided_slice %69 {offsets = [0, 28, 0], sizes = [8, 1, 16], strides = [1, 1, 1]} : vector<8x64x16xf32> to vector<8x1x16xf32>
    %155 = vector.shape_cast %154 : vector<8x1x16xf32> to vector<8x16xf32>
    %c0_67 = arith.constant 0 : index
    %c448 = arith.constant 448 : index
    %156 = vector.load %arg9[%c0_67, %c448] : memref<8x1024xf32, #tpu.memory_space<vmem>>, vector<8x16xf32>
    tpu.vector_store %arg9[%c0_67, %c448], %155 {strides = array<i32>} : memref<8x1024xf32, #tpu.memory_space<vmem>>, vector<8x16xf32>,
    %157 = vector.extract_strided_slice %69 {offsets = [0, 29, 0], sizes = [8, 1, 16], strides = [1, 1, 1]} : vector<8x64x16xf32> to vector<8x1x16xf32>
    %158 = vector.shape_cast %157 : vector<8x1x16xf32> to vector<8x16xf32>
    %c0_68 = arith.constant 0 : index
    %c464 = arith.constant 464 : index
    %159 = vector.load %arg9[%c0_68, %c464] : memref<8x1024xf32, #tpu.memory_space<vmem>>, vector<8x16xf32>
    tpu.vector_store %arg9[%c0_68, %c464], %158 {strides = array<i32>} : memref<8x1024xf32, #tpu.memory_space<vmem>>, vector<8x16xf32>,
    %160 = vector.extract_strided_slice %69 {offsets = [0, 30, 0], sizes = [8, 1, 16], strides = [1, 1, 1]} : vector<8x64x16xf32> to vector<8x1x16xf32>
    %161 = vector.shape_cast %160 : vector<8x1x16xf32> to vector<8x16xf32>
    %c0_69 = arith.constant 0 : index
    %c480 = arith.constant 480 : index
    %162 = vector.load %arg9[%c0_69, %c480] : memref<8x1024xf32, #tpu.memory_space<vmem>>, vector<8x16xf32>
    tpu.vector_store %arg9[%c0_69, %c480], %161 {strides = array<i32>} : memref<8x1024xf32, #tpu.memory_space<vmem>>, vector<8x16xf32>,
    %163 = vector.extract_strided_slice %69 {offsets = [0, 31, 0], sizes = [8, 1, 16], strides = [1, 1, 1]} : vector<8x64x16xf32> to vector<8x1x16xf32>
    %164 = vector.shape_cast %163 : vector<8x1x16xf32> to vector<8x16xf32>
    %c0_70 = arith.constant 0 : index
    %c496 = arith.constant 496 : index
    %165 = vector.load %arg9[%c0_70, %c496] : memref<8x1024xf32, #tpu.memory_space<vmem>>, vector<8x16xf32>
    tpu.vector_store %arg9[%c0_70, %c496], %164 {strides = array<i32>} : memref<8x1024xf32, #tpu.memory_space<vmem>>, vector<8x16xf32>,
    %166 = vector.extract_strided_slice %69 {offsets = [0, 32, 0], sizes = [8, 1, 16], strides = [1, 1, 1]} : vector<8x64x16xf32> to vector<8x1x16xf32>
    %167 = vector.shape_cast %166 : vector<8x1x16xf32> to vector<8x16xf32>
    %c0_71 = arith.constant 0 : index
    %c512 = arith.constant 512 : index
    %168 = vector.load %arg9[%c0_71, %c512] : memref<8x1024xf32, #tpu.memory_space<vmem>>, vector<8x16xf32>
    tpu.vector_store %arg9[%c0_71, %c512], %167 {strides = array<i32>} : memref<8x1024xf32, #tpu.memory_space<vmem>>, vector<8x16xf32>,
    %169 = vector.extract_strided_slice %69 {offsets = [0, 33, 0], sizes = [8, 1, 16], strides = [1, 1, 1]} : vector<8x64x16xf32> to vector<8x1x16xf32>
    %170 = vector.shape_cast %169 : vector<8x1x16xf32> to vector<8x16xf32>
    %c0_72 = arith.constant 0 : index
    %c528 = arith.constant 528 : index
    %171 = vector.load %arg9[%c0_72, %c528] : memref<8x1024xf32, #tpu.memory_space<vmem>>, vector<8x16xf32>
    tpu.vector_store %arg9[%c0_72, %c528], %170 {strides = array<i32>} : memref<8x1024xf32, #tpu.memory_space<vmem>>, vector<8x16xf32>,
    %172 = vector.extract_strided_slice %69 {offsets = [0, 34, 0], sizes = [8, 1, 16], strides = [1, 1, 1]} : vector<8x64x16xf32> to vector<8x1x16xf32>
    %173 = vector.shape_cast %172 : vector<8x1x16xf32> to vector<8x16xf32>
    %c0_73 = arith.constant 0 : index
    %c544 = arith.constant 544 : index
    %174 = vector.load %arg9[%c0_73, %c544] : memref<8x1024xf32, #tpu.memory_space<vmem>>, vector<8x16xf32>
    tpu.vector_store %arg9[%c0_73, %c544], %173 {strides = array<i32>} : memref<8x1024xf32, #tpu.memory_space<vmem>>, vector<8x16xf32>,
    %175 = vector.extract_strided_slice %69 {offsets = [0, 35, 0], sizes = [8, 1, 16], strides = [1, 1, 1]} : vector<8x64x16xf32> to vector<8x1x16xf32>
    %176 = vector.shape_cast %175 : vector<8x1x16xf32> to vector<8x16xf32>
    %c0_74 = arith.constant 0 : index
    %c560 = arith.constant 560 : index
    %177 = vector.load %arg9[%c0_74, %c560] : memref<8x1024xf32, #tpu.memory_space<vmem>>, vector<8x16xf32>
    tpu.vector_store %arg9[%c0_74, %c560], %176 {strides = array<i32>} : memref<8x1024xf32, #tpu.memory_space<vmem>>, vector<8x16xf32>,
    %178 = vector.extract_strided_slice %69 {offsets = [0, 36, 0], sizes = [8, 1, 16], strides = [1, 1, 1]} : vector<8x64x16xf32> to vector<8x1x16xf32>
    %179 = vector.shape_cast %178 : vector<8x1x16xf32> to vector<8x16xf32>
    %c0_75 = arith.constant 0 : index
    %c576 = arith.constant 576 : index
    %180 = vector.load %arg9[%c0_75, %c576] : memref<8x1024xf32, #tpu.memory_space<vmem>>, vector<8x16xf32>
    tpu.vector_store %arg9[%c0_75, %c576], %179 {strides = array<i32>} : memref<8x1024xf32, #tpu.memory_space<vmem>>, vector<8x16xf32>,
    %181 = vector.extract_strided_slice %69 {offsets = [0, 37, 0], sizes = [8, 1, 16], strides = [1, 1, 1]} : vector<8x64x16xf32> to vector<8x1x16xf32>
    %182 = vector.shape_cast %181 : vector<8x1x16xf32> to vector<8x16xf32>
    %c0_76 = arith.constant 0 : index
    %c592 = arith.constant 592 : index
    %183 = vector.load %arg9[%c0_76, %c592] : memref<8x1024xf32, #tpu.memory_space<vmem>>, vector<8x16xf32>
    tpu.vector_store %arg9[%c0_76, %c592], %182 {strides = array<i32>} : memref<8x1024xf32, #tpu.memory_space<vmem>>, vector<8x16xf32>,
    %184 = vector.extract_strided_slice %69 {offsets = [0, 38, 0], sizes = [8, 1, 16], strides = [1, 1, 1]} : vector<8x64x16xf32> to vector<8x1x16xf32>
    %185 = vector.shape_cast %184 : vector<8x1x16xf32> to vector<8x16xf32>
    %c0_77 = arith.constant 0 : index
    %c608 = arith.constant 608 : index
    %186 = vector.load %arg9[%c0_77, %c608] : memref<8x1024xf32, #tpu.memory_space<vmem>>, vector<8x16xf32>
    tpu.vector_store %arg9[%c0_77, %c608], %185 {strides = array<i32>} : memref<8x1024xf32, #tpu.memory_space<vmem>>, vector<8x16xf32>,
    %187 = vector.extract_strided_slice %69 {offsets = [0, 39, 0], sizes = [8, 1, 16], strides = [1, 1, 1]} : vector<8x64x16xf32> to vector<8x1x16xf32>
    %188 = vector.shape_cast %187 : vector<8x1x16xf32> to vector<8x16xf32>
    %c0_78 = arith.constant 0 : index
    %c624 = arith.constant 624 : index
    %189 = vector.load %arg9[%c0_78, %c624] : memref<8x1024xf32, #tpu.memory_space<vmem>>, vector<8x16xf32>
    tpu.vector_store %arg9[%c0_78, %c624], %188 {strides = array<i32>} : memref<8x1024xf32, #tpu.memory_space<vmem>>, vector<8x16xf32>,
    %190 = vector.extract_strided_slice %69 {offsets = [0, 40, 0], sizes = [8, 1, 16], strides = [1, 1, 1]} : vector<8x64x16xf32> to vector<8x1x16xf32>
    %191 = vector.shape_cast %190 : vector<8x1x16xf32> to vector<8x16xf32>
    %c0_79 = arith.constant 0 : index
    %c640 = arith.constant 640 : index
    %192 = vector.load %arg9[%c0_79, %c640] : memref<8x1024xf32, #tpu.memory_space<vmem>>, vector<8x16xf32>
    tpu.vector_store %arg9[%c0_79, %c640], %191 {strides = array<i32>} : memref<8x1024xf32, #tpu.memory_space<vmem>>, vector<8x16xf32>,
    %193 = vector.extract_strided_slice %69 {offsets = [0, 41, 0], sizes = [8, 1, 16], strides = [1, 1, 1]} : vector<8x64x16xf32> to vector<8x1x16xf32>
    %194 = vector.shape_cast %193 : vector<8x1x16xf32> to vector<8x16xf32>
    %c0_80 = arith.constant 0 : index
    %c656 = arith.constant 656 : index
    %195 = vector.load %arg9[%c0_80, %c656] : memref<8x1024xf32, #tpu.memory_space<vmem>>, vector<8x16xf32>
    tpu.vector_store %arg9[%c0_80, %c656], %194 {strides = array<i32>} : memref<8x1024xf32, #tpu.memory_space<vmem>>, vector<8x16xf32>,
    %196 = vector.extract_strided_slice %69 {offsets = [0, 42, 0], sizes = [8, 1, 16], strides = [1, 1, 1]} : vector<8x64x16xf32> to vector<8x1x16xf32>
    %197 = vector.shape_cast %196 : vector<8x1x16xf32> to vector<8x16xf32>
    %c0_81 = arith.constant 0 : index
    %c672 = arith.constant 672 : index
    %198 = vector.load %arg9[%c0_81, %c672] : memref<8x1024xf32, #tpu.memory_space<vmem>>, vector<8x16xf32>
    tpu.vector_store %arg9[%c0_81, %c672], %197 {strides = array<i32>} : memref<8x1024xf32, #tpu.memory_space<vmem>>, vector<8x16xf32>,
    %199 = vector.extract_strided_slice %69 {offsets = [0, 43, 0], sizes = [8, 1, 16], strides = [1, 1, 1]} : vector<8x64x16xf32> to vector<8x1x16xf32>
    %200 = vector.shape_cast %199 : vector<8x1x16xf32> to vector<8x16xf32>
    %c0_82 = arith.constant 0 : index
    %c688 = arith.constant 688 : index
    %201 = vector.load %arg9[%c0_82, %c688] : memref<8x1024xf32, #tpu.memory_space<vmem>>, vector<8x16xf32>
    tpu.vector_store %arg9[%c0_82, %c688], %200 {strides = array<i32>} : memref<8x1024xf32, #tpu.memory_space<vmem>>, vector<8x16xf32>,
    %202 = vector.extract_strided_slice %69 {offsets = [0, 44, 0], sizes = [8, 1, 16], strides = [1, 1, 1]} : vector<8x64x16xf32> to vector<8x1x16xf32>
    %203 = vector.shape_cast %202 : vector<8x1x16xf32> to vector<8x16xf32>
    %c0_83 = arith.constant 0 : index
    %c704 = arith.constant 704 : index
    %204 = vector.load %arg9[%c0_83, %c704] : memref<8x1024xf32, #tpu.memory_space<vmem>>, vector<8x16xf32>
    tpu.vector_store %arg9[%c0_83, %c704], %203 {strides = array<i32>} : memref<8x1024xf32, #tpu.memory_space<vmem>>, vector<8x16xf32>,
    %205 = vector.extract_strided_slice %69 {offsets = [0, 45, 0], sizes = [8, 1, 16], strides = [1, 1, 1]} : vector<8x64x16xf32> to vector<8x1x16xf32>
    %206 = vector.shape_cast %205 : vector<8x1x16xf32> to vector<8x16xf32>
    %c0_84 = arith.constant 0 : index
    %c720 = arith.constant 720 : index
    %207 = vector.load %arg9[%c0_84, %c720] : memref<8x1024xf32, #tpu.memory_space<vmem>>, vector<8x16xf32>
    tpu.vector_store %arg9[%c0_84, %c720], %206 {strides = array<i32>} : memref<8x1024xf32, #tpu.memory_space<vmem>>, vector<8x16xf32>,
    %208 = vector.extract_strided_slice %69 {offsets = [0, 46, 0], sizes = [8, 1, 16], strides = [1, 1, 1]} : vector<8x64x16xf32> to vector<8x1x16xf32>
    %209 = vector.shape_cast %208 : vector<8x1x16xf32> to vector<8x16xf32>
    %c0_85 = arith.constant 0 : index
    %c736 = arith.constant 736 : index
    %210 = vector.load %arg9[%c0_85, %c736] : memref<8x1024xf32, #tpu.memory_space<vmem>>, vector<8x16xf32>
    tpu.vector_store %arg9[%c0_85, %c736], %209 {strides = array<i32>} : memref<8x1024xf32, #tpu.memory_space<vmem>>, vector<8x16xf32>,
    %211 = vector.extract_strided_slice %69 {offsets = [0, 47, 0], sizes = [8, 1, 16], strides = [1, 1, 1]} : vector<8x64x16xf32> to vector<8x1x16xf32>
    %212 = vector.shape_cast %211 : vector<8x1x16xf32> to vector<8x16xf32>
    %c0_86 = arith.constant 0 : index
    %c752 = arith.constant 752 : index
    %213 = vector.load %arg9[%c0_86, %c752] : memref<8x1024xf32, #tpu.memory_space<vmem>>, vector<8x16xf32>
    tpu.vector_store %arg9[%c0_86, %c752], %212 {strides = array<i32>} : memref<8x1024xf32, #tpu.memory_space<vmem>>, vector<8x16xf32>,
    %214 = vector.extract_strided_slice %69 {offsets = [0, 48, 0], sizes = [8, 1, 16], strides = [1, 1, 1]} : vector<8x64x16xf32> to vector<8x1x16xf32>
    %215 = vector.shape_cast %214 : vector<8x1x16xf32> to vector<8x16xf32>
    %c0_87 = arith.constant 0 : index
    %c768 = arith.constant 768 : index
    %216 = vector.load %arg9[%c0_87, %c768] : memref<8x1024xf32, #tpu.memory_space<vmem>>, vector<8x16xf32>
    tpu.vector_store %arg9[%c0_87, %c768], %215 {strides = array<i32>} : memref<8x1024xf32, #tpu.memory_space<vmem>>, vector<8x16xf32>,
    %217 = vector.extract_strided_slice %69 {offsets = [0, 49, 0], sizes = [8, 1, 16], strides = [1, 1, 1]} : vector<8x64x16xf32> to vector<8x1x16xf32>
    %218 = vector.shape_cast %217 : vector<8x1x16xf32> to vector<8x16xf32>
    %c0_88 = arith.constant 0 : index
    %c784 = arith.constant 784 : index
    %219 = vector.load %arg9[%c0_88, %c784] : memref<8x1024xf32, #tpu.memory_space<vmem>>, vector<8x16xf32>
    tpu.vector_store %arg9[%c0_88, %c784], %218 {strides = array<i32>} : memref<8x1024xf32, #tpu.memory_space<vmem>>, vector<8x16xf32>,
    %220 = vector.extract_strided_slice %69 {offsets = [0, 50, 0], sizes = [8, 1, 16], strides = [1, 1, 1]} : vector<8x64x16xf32> to vector<8x1x16xf32>
    %221 = vector.shape_cast %220 : vector<8x1x16xf32> to vector<8x16xf32>
    %c0_89 = arith.constant 0 : index
    %c800 = arith.constant 800 : index
    %222 = vector.load %arg9[%c0_89, %c800] : memref<8x1024xf32, #tpu.memory_space<vmem>>, vector<8x16xf32>
    tpu.vector_store %arg9[%c0_89, %c800], %221 {strides = array<i32>} : memref<8x1024xf32, #tpu.memory_space<vmem>>, vector<8x16xf32>,
    %223 = vector.extract_strided_slice %69 {offsets = [0, 51, 0], sizes = [8, 1, 16], strides = [1, 1, 1]} : vector<8x64x16xf32> to vector<8x1x16xf32>
    %224 = vector.shape_cast %223 : vector<8x1x16xf32> to vector<8x16xf32>
    %c0_90 = arith.constant 0 : index
    %c816 = arith.constant 816 : index
    %225 = vector.load %arg9[%c0_90, %c816] : memref<8x1024xf32, #tpu.memory_space<vmem>>, vector<8x16xf32>
    tpu.vector_store %arg9[%c0_90, %c816], %224 {strides = array<i32>} : memref<8x1024xf32, #tpu.memory_space<vmem>>, vector<8x16xf32>,
    %226 = vector.extract_strided_slice %69 {offsets = [0, 52, 0], sizes = [8, 1, 16], strides = [1, 1, 1]} : vector<8x64x16xf32> to vector<8x1x16xf32>
    %227 = vector.shape_cast %226 : vector<8x1x16xf32> to vector<8x16xf32>
    %c0_91 = arith.constant 0 : index
    %c832 = arith.constant 832 : index
    %228 = vector.load %arg9[%c0_91, %c832] : memref<8x1024xf32, #tpu.memory_space<vmem>>, vector<8x16xf32>
    tpu.vector_store %arg9[%c0_91, %c832], %227 {strides = array<i32>} : memref<8x1024xf32, #tpu.memory_space<vmem>>, vector<8x16xf32>,
    %229 = vector.extract_strided_slice %69 {offsets = [0, 53, 0], sizes = [8, 1, 16], strides = [1, 1, 1]} : vector<8x64x16xf32> to vector<8x1x16xf32>
    %230 = vector.shape_cast %229 : vector<8x1x16xf32> to vector<8x16xf32>
    %c0_92 = arith.constant 0 : index
    %c848 = arith.constant 848 : index
    %231 = vector.load %arg9[%c0_92, %c848] : memref<8x1024xf32, #tpu.memory_space<vmem>>, vector<8x16xf32>
    tpu.vector_store %arg9[%c0_92, %c848], %230 {strides = array<i32>} : memref<8x1024xf32, #tpu.memory_space<vmem>>, vector<8x16xf32>,
    %232 = vector.extract_strided_slice %69 {offsets = [0, 54, 0], sizes = [8, 1, 16], strides = [1, 1, 1]} : vector<8x64x16xf32> to vector<8x1x16xf32>
    %233 = vector.shape_cast %232 : vector<8x1x16xf32> to vector<8x16xf32>
    %c0_93 = arith.constant 0 : index
    %c864 = arith.constant 864 : index
    %234 = vector.load %arg9[%c0_93, %c864] : memref<8x1024xf32, #tpu.memory_space<vmem>>, vector<8x16xf32>
    tpu.vector_store %arg9[%c0_93, %c864], %233 {strides = array<i32>} : memref<8x1024xf32, #tpu.memory_space<vmem>>, vector<8x16xf32>,
    %235 = vector.extract_strided_slice %69 {offsets = [0, 55, 0], sizes = [8, 1, 16], strides = [1, 1, 1]} : vector<8x64x16xf32> to vector<8x1x16xf32>
    %236 = vector.shape_cast %235 : vector<8x1x16xf32> to vector<8x16xf32>
    %c0_94 = arith.constant 0 : index
    %c880 = arith.constant 880 : index
    %237 = vector.load %arg9[%c0_94, %c880] : memref<8x1024xf32, #tpu.memory_space<vmem>>, vector<8x16xf32>
    tpu.vector_store %arg9[%c0_94, %c880], %236 {strides = array<i32>} : memref<8x1024xf32, #tpu.memory_space<vmem>>, vector<8x16xf32>,
    %238 = vector.extract_strided_slice %69 {offsets = [0, 56, 0], sizes = [8, 1, 16], strides = [1, 1, 1]} : vector<8x64x16xf32> to vector<8x1x16xf32>
    %239 = vector.shape_cast %238 : vector<8x1x16xf32> to vector<8x16xf32>
    %c0_95 = arith.constant 0 : index
    %c896 = arith.constant 896 : index
    %240 = vector.load %arg9[%c0_95, %c896] : memref<8x1024xf32, #tpu.memory_space<vmem>>, vector<8x16xf32>
    tpu.vector_store %arg9[%c0_95, %c896], %239 {strides = array<i32>} : memref<8x1024xf32, #tpu.memory_space<vmem>>, vector<8x16xf32>,
    %241 = vector.extract_strided_slice %69 {offsets = [0, 57, 0], sizes = [8, 1, 16], strides = [1, 1, 1]} : vector<8x64x16xf32> to vector<8x1x16xf32>
    %242 = vector.shape_cast %241 : vector<8x1x16xf32> to vector<8x16xf32>
    %c0_96 = arith.constant 0 : index
    %c912 = arith.constant 912 : index
    %243 = vector.load %arg9[%c0_96, %c912] : memref<8x1024xf32, #tpu.memory_space<vmem>>, vector<8x16xf32>
    tpu.vector_store %arg9[%c0_96, %c912], %242 {strides = array<i32>} : memref<8x1024xf32, #tpu.memory_space<vmem>>, vector<8x16xf32>,
    %244 = vector.extract_strided_slice %69 {offsets = [0, 58, 0], sizes = [8, 1, 16], strides = [1, 1, 1]} : vector<8x64x16xf32> to vector<8x1x16xf32>
    %245 = vector.shape_cast %244 : vector<8x1x16xf32> to vector<8x16xf32>
    %c0_97 = arith.constant 0 : index
    %c928 = arith.constant 928 : index
    %246 = vector.load %arg9[%c0_97, %c928] : memref<8x1024xf32, #tpu.memory_space<vmem>>, vector<8x16xf32>
    tpu.vector_store %arg9[%c0_97, %c928], %245 {strides = array<i32>} : memref<8x1024xf32, #tpu.memory_space<vmem>>, vector<8x16xf32>,
    %247 = vector.extract_strided_slice %69 {offsets = [0, 59, 0], sizes = [8, 1, 16], strides = [1, 1, 1]} : vector<8x64x16xf32> to vector<8x1x16xf32>
    %248 = vector.shape_cast %247 : vector<8x1x16xf32> to vector<8x16xf32>
    %c0_98 = arith.constant 0 : index
    %c944 = arith.constant 944 : index
    %249 = vector.load %arg9[%c0_98, %c944] : memref<8x1024xf32, #tpu.memory_space<vmem>>, vector<8x16xf32>
    tpu.vector_store %arg9[%c0_98, %c944], %248 {strides = array<i32>} : memref<8x1024xf32, #tpu.memory_space<vmem>>, vector<8x16xf32>,
    %250 = vector.extract_strided_slice %69 {offsets = [0, 60, 0], sizes = [8, 1, 16], strides = [1, 1, 1]} : vector<8x64x16xf32> to vector<8x1x16xf32>
    %251 = vector.shape_cast %250 : vector<8x1x16xf32> to vector<8x16xf32>
    %c0_99 = arith.constant 0 : index
    %c960 = arith.constant 960 : index
    %252 = vector.load %arg9[%c0_99, %c960] : memref<8x1024xf32, #tpu.memory_space<vmem>>, vector<8x16xf32>
    tpu.vector_store %arg9[%c0_99, %c960], %251 {strides = array<i32>} : memref<8x1024xf32, #tpu.memory_space<vmem>>, vector<8x16xf32>,
    %253 = vector.extract_strided_slice %69 {offsets = [0, 61, 0], sizes = [8, 1, 16], strides = [1, 1, 1]} : vector<8x64x16xf32> to vector<8x1x16xf32>
    %254 = vector.shape_cast %253 : vector<8x1x16xf32> to vector<8x16xf32>
    %c0_100 = arith.constant 0 : index
    %c976 = arith.constant 976 : index
    %255 = vector.load %arg9[%c0_100, %c976] : memref<8x1024xf32, #tpu.memory_space<vmem>>, vector<8x16xf32>
    tpu.vector_store %arg9[%c0_100, %c976], %254 {strides = array<i32>} : memref<8x1024xf32, #tpu.memory_space<vmem>>, vector<8x16xf32>,
    %256 = vector.extract_strided_slice %69 {offsets = [0, 62, 0], sizes = [8, 1, 16], strides = [1, 1, 1]} : vector<8x64x16xf32> to vector<8x1x16xf32>
    %257 = vector.shape_cast %256 : vector<8x1x16xf32> to vector<8x16xf32>
    %c0_101 = arith.constant 0 : index
    %c992 = arith.constant 992 : index
    %258 = vector.load %arg9[%c0_101, %c992] : memref<8x1024xf32, #tpu.memory_space<vmem>>, vector<8x16xf32>
    tpu.vector_store %arg9[%c0_101, %c992], %257 {strides = array<i32>} : memref<8x1024xf32, #tpu.memory_space<vmem>>, vector<8x16xf32>,
    %259 = vector.extract_strided_slice %69 {offsets = [0, 63, 0], sizes = [8, 1, 16], strides = [1, 1, 1]} : vector<8x64x16xf32> to vector<8x1x16xf32>
    %260 = vector.shape_cast %259 : vector<8x1x16xf32> to vector<8x16xf32>
    %c0_102 = arith.constant 0 : index
    %c1008 = arith.constant 1008 : index
    %261 = vector.load %arg9[%c0_102, %c1008] : memref<8x1024xf32, #tpu.memory_space<vmem>>, vector<8x16xf32>
    tpu.vector_store %arg9[%c0_102, %c1008], %260 {strides = array<i32>} : memref<8x1024xf32, #tpu.memory_space<vmem>>, vector<8x16xf32>,
    %c0_103 = arith.constant 0 : index
    %c0_104 = arith.constant 0 : index
    %262 = vector.load %arg9[%c0_103, %c0_104] : memref<8x1024xf32, #tpu.memory_space<vmem>>, vector<8x1024xf32>
    %c0_105 = arith.constant 0 : index
    %c0_106 = arith.constant 0 : index
    %263 = vector.load %arg6[%c0_105, %c0_106] : memref<1024x128xf32, #tpu.memory_space<vmem>>, vector<1024x128xf32>
    %cst_107 = arith.constant dense<0.000000e+00> : vector<8x128xf32>
    %264 = tpu.matmul %262, %263, %cst_107 {dimension_numbers = #tpu.dot_dimension_numbers<[1], [0], [0], [1], [0, 0, 1, 1], [], []>} : vector<8x1024xf32>, vector<1024x128xf32>, vector<8x128xf32> -> vector<8x128xf32>
    %c0_108 = arith.constant 0 : index
    %c0_109 = arith.constant 0 : index
    %265 = vector.load %arg7[%c0_108, %c0_109] : memref<1x128xf32, #tpu.memory_space<vmem>>, vector<1x128xf32>
    %266 = vector.broadcast %265 : vector<1x128xf32> to vector<8x128xf32>
    %267 = arith.addf %264, %266 : vector<8x128xf32>
    %c0_110 = arith.constant 0 : index
    %c0_111 = arith.constant 0 : index
    %268 = vector.load %arg8[%c0_110, %c0_111] : memref<8x128xf32, #tpu.memory_space<vmem>>, vector<8x128xf32>
    tpu.vector_store %arg8[%c0_110, %c0_111], %267 {strides = array<i32>} : memref<8x128xf32, #tpu.memory_space<vmem>>, vector<8x128xf32>,
    return
  }
  func.func @transform_0(%arg0: i32) -> (i32, i32, i32) {
    %c0_i32 = arith.constant 0 : i32
    %c0_i32_0 = arith.constant 0 : i32
    %c0_i32_1 = arith.constant 0 : i32
    return %arg0, %c0_i32, %c0_i32_0 : i32, i32, i32
  }
  func.func @transform_1(%arg0: i32) -> (i32, i32) {
    %c0_i32 = arith.constant 0 : i32
    %c0_i32_0 = arith.constant 0 : i32
    %c0_i32_1 = arith.constant 0 : i32
    return %c0_i32, %c0_i32_0 : i32, i32
  }
  func.func @transform_2(%arg0: i32) -> (i32, i32) {
    %c0_i32 = arith.constant 0 : i32
    %c0_i32_0 = arith.constant 0 : i32
    %c0_i32_1 = arith.constant 0 : i32
    return %c0_i32, %c0_i32_0 : i32, i32
  }
  func.func @transform_3(%arg0: i32) -> (i32, i32, i32) {
    %c0_i32 = arith.constant 0 : i32
    %c0_i32_0 = arith.constant 0 : i32
    %c0_i32_1 = arith.constant 0 : i32
    %c0_i32_2 = arith.constant 0 : i32
    return %c0_i32, %c0_i32_0, %c0_i32_1 : i32, i32, i32
  }
  func.func @transform_4(%arg0: i32) -> (i32, i32) {
    %c0_i32 = arith.constant 0 : i32
    %c0_i32_0 = arith.constant 0 : i32
    %c0_i32_1 = arith.constant 0 : i32
    return %c0_i32, %c0_i32_0 : i32, i32
  }
  func.func @transform_5(%arg0: i32) -> (i32, i32) {
    %c0_i32 = arith.constant 0 : i32
    %c0_i32_0 = arith.constant 0 : i32
    %c0_i32_1 = arith.constant 0 : i32
    return %c0_i32, %c0_i32_0 : i32, i32
  }
  func.func @transform_6(%arg0: i32) -> (i32, i32) {
    %c0_i32 = arith.constant 0 : i32
    %c0_i32_0 = arith.constant 0 : i32
    %c0_i32_1 = arith.constant 0 : i32
    return %c0_i32, %c0_i32_0 : i32, i32
  }
  func.func @transform_7(%arg0: i32) -> (i32, i32) {
    %c0_i32 = arith.constant 0 : i32
    %c0_i32_0 = arith.constant 0 : i32
    return %arg0, %c0_i32 : i32, i32
  }
}

</mosaic_0001>

<bundles_post_ra>
// kernel: mycnn_forward.1
= control target key start
LH: loop header
LB: loop body
LE: loop exit
PB: predicated region body
PF: predicated region fallthrough
CT: control target
= control target key end

     0   :  { %vm1315_vm0 = vcmask 1043456   ;;  %vm1316_vm1 = vcmask 1044480   ;;  %v9096_v2 = vmov 65535   ;;  %vm930_vm2 = vcmask 72704   ;;  %s9097_s8 = smov 112   ;;  %s9099_s9 = smov 16   ;;  %s16707_s1 = inlined_call_operand.vmem [shape: bf16[9,6], index: 1, kind: input, shape index: {}]   ;;  %s16708_s0 = inlined_call_operand.vmem [shape: bf16[8,256,9], index: 0, kind: input, shape index: {}]   ;;  %s16709_s3 = inlined_call_operand.vmem [shape: f32[9,6,16], index: 3, kind: input, shape index: {}]   ;;  %s16710_s2 = inlined_call_operand.vmem [shape: f32[256,6], index: 2, kind: input, shape index: {}]   ;;  %s16711_s4 = inlined_call_operand.vmem [shape: f32[1,16], index: 4, kind: input, shape index: {}]   ;;  %s16712_s5 = inlined_call_operand.vmem [shape: f32[1024,128], index: 5, kind: input, shape index: {}]   ;;  %s16713_s6 = inlined_call_operand.vmem [shape: f32[1,128], index: 6, kind: input, shape index: {}]   ;;  %s16714_s7 = inlined_call_operand.vmem [shape: f32[8,128], index: 7, kind: output, shape index: {}]  }
   0x1   :  { %v8193_v0 = vld [vmem:[%s16707_s1] sm:$0xf]  ;;  %v9044_v1 = vld [vmem:[%s16707_s1] sm:$0x10]  ;;  %v1317_v3 = vsel %vm1315_vm0, 4294967295, %v9096_v2  ;;  %v8917_v8 = vld [vmem:[%s16708_s0 + $0x8] sm:$0xff] }
   0x2   :  { %v8194_v4 = vor.u32 %v9044_v1, %v8193_v0  ;;  %v1318_v5 = vsel %vm1316_vm1, %v1317_v3, 0  ;;  %v8916_v7 = vld [vmem:[%s16708_s0] sm:$0xff]  ;;  %v9023_v9 = vld [vmem:[%s16708_s0 + $0x358] sm:$0xff]  ;;  %v8918_v11 = vld [vmem:[%s16708_s0 + $0x10] sm:$0xff]  ;;  %vm2912_vm3 = vcmask 1045504   ;;  %vm2727_vm4 = vcmask 48128  }
   0x3   :  { %v9035_v10 = vld [vmem:[%s16708_s0 + $0x3b8] sm:$0xff]  ;;  %v9024_v12 = vld [vmem:[%s16708_s0 + $0x360] sm:$0xff]  ;;  %v9025_v15 = vld [vmem:[%s16708_s0 + $0x368] sm:$0xff]  ;;  %vm2587_vm5 = vcmask 1040384   ;;  %vm6168_vm6 = vcmask 1041409   ;;  %vm6171_vm7 = vcmask 1042434  }
   0x4   :  { %v1320_v6 = vand.u32 %v8194_v4, %v1318_v5  ;;  %v9036_v13 = vld [vmem:[%s16708_s0 + $0x3c0] sm:$0xff]  ;;  %v8919_v14 = vld [vmem:[%s16708_s0 + $0x18] sm:$0xff]  ;;  %v9037_v16 = vld [vmem:[%s16708_s0 + $0x3c8] sm:$0xff]  ;;  %vm6174_vm8 = vcmask 1043459   ;;  %vm6177_vm9 = vcmask 1044484   ;;  %vm6180_vm10 = vcmask 1045509  }
   0x5   :  { %v8920_v17 = vld [vmem:[%s16708_s0 + $0x20] sm:$0xff]  ;;  %v9026_v18 = vld [vmem:[%s16708_s0 + $0x370] sm:$0xff]  ;;  %v8921_v20 = vld [vmem:[%s16708_s0 + $0x28] sm:$0xff]  ;;  %vm6183_vm11 = vcmask 1046534   ;;  %vm6186_vm12 = vcmask 1047559   ;;  %vm6189_vm13 = vcmask 130048  }
   0x6   :  { %1329 = vmatpush.bf16.msra.mxu0 %v1320_v6  ;;  %9045 = vmatpush.bf16.msra.mxu1 %v1320_v6  ;;  %v9038_v19 = vld [vmem:[%s16708_s0 + $0x3d0] sm:$0xff]  ;;  %v9027_v21 = vld [vmem:[%s16708_s0 + $0x378] sm:$0xff]  ;;  %v9028_v24 = vld [vmem:[%s16708_s0 + $0x380] sm:$0xff]  ;;  %s9098_s1 = smov 32   ;;  %s9101_s12 = smov 96   ;;  %vm6208_vm14 = vcmask 261248  }
   0x7   :  { %9046 = vmatpush.bf16.msra.mxu3 %v1320_v6  ;;  %v9039_v22 = vld [vmem:[%s16708_s0 + $0x3d8] sm:$0xff]  ;;  %v8922_v23 = vld [vmem:[%s16708_s0 + $0x30] sm:$0xff]  ;;  %v9040_v25 = vld [vmem:[%s16708_s0 + $0x3e0] sm:$0xff]  ;;  %s9102_s13 = smov 48   ;;  %s9103_s14 = smov 80   ;;  %vm6227_vm15 = vcmask 392448  }
   0x8   :  { %v8923_v26 = vld [vmem:[%s16708_s0 + $0x38] sm:$0xff]  ;;  %v9029_v27 = vld [vmem:[%s16708_s0 + $0x388] sm:$0xff]  ;;  %v8924_v29 = vld [vmem:[%s16708_s0 + $0x40] sm:$0xff]  ;;  %vm6246_vm0 = vcmask 523648   ;;  %vm6265_vm1 = vcmask 654848  }
   0x9   :  { %8195 = vmatmul.msk.bf16.vlgmr.msra.gmra.mxu0 %vm930_vm2, %v8916_v7  ;;  %8302 = vmatmul.msk.bf16.vlgmr.msra.gmra.mxu1 %vm930_vm2, %v9023_v9  ;;  %v9041_v28 = vld [vmem:[%s16708_s0 + $0x3e8] sm:$0xff]  ;;  %v9030_v32 = vld [vmem:[%s16708_s0 + $0x390] sm:$0xff]  ;;  %v9031_v37 = vld [vmem:[%s16708_s0 + $0x398] sm:$0xff] }
   0xa   :  { %8314 = vmatmul.msk.bf16.vlgmr.msra.gmra.mxu3 %vm930_vm2, %v9035_v10  ;;  %v9042_v33 = vld [vmem:[%s16708_s0 + $0x3f0] sm:$0xff]  ;;  %v8925_v34 = vld [vmem:[%s16708_s0 + $0x48] sm:$0xff]  ;;  %v9043_v38 = vld [vmem:[%s16708_s0 + $0x3f8] sm:$0xff] }
   0xb   :  { %v8926_v39 = vld [vmem:[%s16708_s0 + $0x50] sm:$0xff]  ;;  %v8457_v42 = vld [vmem:[%s16709_s3 + $0x28] sm:$0x3f]  ;;  %v9032_v43 = vld [vmem:[%s16708_s0 + $0x3a0] sm:$0xff] }
   0xc   :  { %9048 = vmatpush.msk.msrb.mxu3 %vm2912_vm3, %v8457_v42  ;;  %v8927_v44 = vld [vmem:[%s16708_s0 + $0x58] sm:$0xff]  ;;  %v9033_v47 = vld [vmem:[%s16708_s0 + $0x3a8] sm:$0xff]  ;;  %v8928_v48 = vld [vmem:[%s16708_s0 + $0x60] sm:$0xff] }
   0xd   :  { %v9307_v50 = vld [vmem:[%s16710_s2 + $0x48] sm:$0xff]  ;;  %v9034_v54 = vld [vmem:[%s16708_s0 + $0x3b0] sm:$0xff]  ;;  %v9331_v62 = vld [vmem:[%s16710_s2 + $0x58] sm:$0xff] }
   0xe   :  { %v9318_v55 = vld [vmem:[%s16710_s2 + $0x50] sm:$0xff]  ;;  %v8929_v56 = vld [vmem:[%s16708_s0 + $0x68] sm:$0xff]  ;;  %v9347_v5 = vld [vmem:[%s16710_s2 + $0x60] sm:$0xff] }
   0xf   :  { %v8323_v3 = vld [vmem:[%s16709_s3 + $0x8] sm:$0x3f]  ;;  %v8930_v6 = vld [vmem:[%s16708_s0 + $0x70] sm:$0xff] }
  0x10   :  { %8324 = vmatpush.msk.msrb.mxu1 %vm2912_vm3, %v8323_v3  ;;  %9047 = vmatpush.msk.msra.mxu2 %vm2912_vm3, %v8323_v3 }
  0x19   :  { %8196 = vmatmul.msk.bf16.gmra.mxu0 %vm930_vm2, %v8917_v8  ;;  %8303 = vmatmul.msk.bf16.gmra.mxu1 %vm930_vm2, %v9024_v12  ;;  %v9361_v12 = vld [vmem:[%s16710_s2 + $0x68] sm:$0xff] }
  0x1a   :  { %8315 = vmatmul.msk.bf16.gmra.mxu3 %vm930_vm2, %v9036_v13 }
  0x29   :  { %8197 = vmatmul.msk.bf16.gmra.mxu0 %vm930_vm2, %v8918_v11  ;;  %8304 = vmatmul.msk.bf16.gmra.mxu1 %vm930_vm2, %v9025_v15 }
  0x2a   :  { %8316 = vmatmul.msk.bf16.gmra.mxu3 %vm930_vm2, %v9037_v16 }
  0x39   :  { %8198 = vmatmul.msk.bf16.gmra.mxu0 %vm930_vm2, %v8919_v14  ;;  %8305 = vmatmul.msk.bf16.gmra.mxu1 %vm930_vm2, %v9026_v18  ;;  %v9371_v18 = vld [vmem:[%s16710_s2 + $0x70] sm:$0xff] }
  0x3a   :  { %8317 = vmatmul.msk.bf16.gmra.mxu3 %vm930_vm2, %v9038_v19 }
  0x49   :  { %8199 = vmatmul.msk.bf16.gmra.mxu0 %vm930_vm2, %v8920_v17  ;;  %8306 = vmatmul.msk.bf16.gmra.mxu1 %vm930_vm2, %v9027_v21 }
  0x4a   :  { %8318 = vmatmul.msk.bf16.gmra.mxu3 %vm930_vm2, %v9039_v22 }
  0x59   :  { %8200 = vmatmul.msk.bf16.gmra.mxu0 %vm930_vm2, %v8921_v20  ;;  %8307 = vmatmul.msk.bf16.gmra.mxu1 %vm930_vm2, %v9028_v24  ;;  %v8931_v20 = vld [vmem:[%s16708_s0 + $0x78] sm:$0xff] }
  0x5a   :  { %8319 = vmatmul.msk.bf16.gmra.mxu3 %vm930_vm2, %v9040_v25 }
  0x69   :  { %8201 = vmatmul.msk.bf16.gmra.mxu0 %vm930_vm2, %v8922_v23  ;;  %8308 = vmatmul.msk.bf16.gmra.mxu1 %vm930_vm2, %v9029_v27 }
  0x6a   :  { %8320 = vmatmul.msk.bf16.gmra.mxu3 %vm930_vm2, %v9041_v28 }
  0x79   :  { %8202 = vmatmul.msk.bf16.gmra.mxu0 %vm930_vm2, %v8923_v26  ;;  %8309 = vmatmul.msk.bf16.gmra.mxu1 %vm930_vm2, %v9030_v32  ;;  %v9387_v26 = vld [vmem:[%s16710_s2 + $0x78] sm:$0xff] }
  0x7a   :  { %8321 = vmatmul.msk.bf16.gmra.mxu3 %vm930_vm2, %v9042_v33 }
  0x86   :  { %v9241_v30 = vpop.f32.mrf.mxu0  ;;  %v9373_v19 = vpop.f32.mrf.mxu1 }
  0x87   :  { %16964 = vst [vmem:[#allocation3_spill] sm:$0xff] %v9241_v30 }
  0x89   :  { %8203 = vmatmul.msk.bf16.gmra.mxu0 %vm930_vm2, %v8924_v29  ;;  %8310 = vmatmul.msk.bf16.gmra.mxu1 %vm930_vm2, %v9031_v37 }
  0x8a   :  { %8322 = vmatmul.msk.bf16.gmra.mxu3 %vm930_vm2, %v9043_v38  ;;  %v9402_v38 = vld [vmem:[%s16710_s2 + $0x80] sm:$0xff] }
  0x8e   :  { %v9244_v31 = vpop.f32.mrf.mxu0  ;;  %v9392_v29 = vpop.f32.mrf.mxu1 }
  0x8f   :  { %16965 = vst [vmem:[#allocation4_spill] sm:$0xff] %v9244_v31 }
  0x90   :  { %16977 = vst [vmem:[#allocation16_spill] sm:$0xff] %v9392_v29 }
  0x96   :  { %v9257_v35 = vpop.f32.mrf.mxu0 }
  0x97   :  { %16966 = vst [vmem:[#allocation5_spill] sm:$0xff] %v9257_v35 }
  0x99   :  { %8204 = vmatmul.msk.bf16.gmra.mxu0 %vm930_vm2, %v8925_v34  ;;  %8311 = vmatmul.msk.bf16.gmra.mxu1 %vm930_vm2, %v9032_v43  ;;  %v9395_v34 = vpop.f32.mrf.mxu3 }
  0x9e   :  { %v9260_v36 = vpop.f32.mrf.mxu0 }
  0x9f   :  { %16967 = vst [vmem:[#allocation6_spill] sm:$0xff] %v9260_v36 }
  0xa6   :  { %v9273_v40 = vpop.f32.mrf.mxu0 }
  0xa7   :  { %16968 = vst [vmem:[#allocation7_spill] sm:$0xff] %v9273_v40 }
  0xa9   :  { %8205 = vmatmul.msk.bf16.gmra.mxu0 %vm930_vm2, %v8926_v39  ;;  %8312 = vmatmul.msk.bf16.gmra.mxu1 %vm930_vm2, %v9033_v47  ;;  %v8932_v39 = vld [vmem:[%s16708_s0 + $0x80] sm:$0xff]  ;;  %v9413_v47 = vpop.f32.mrf.mxu1 }
  0xaa   :  { %16979 = vst [vmem:[#allocation18_spill] sm:$0xff] %v9413_v47 }
  0xae   :  { %v9276_v41 = vpop.f32.mrf.mxu0 }
  0xaf   :  { %16969 = vst [vmem:[#allocation8_spill] sm:$0xff] %v9276_v41 }
  0xb6   :  { %v9289_v45 = vpop.f32.mrf.mxu0 }
  0xb7   :  { %16970 = vst [vmem:[#allocation9_spill] sm:$0xff] %v9289_v45 }
  0xb9   :  { %8206 = vmatmul.msk.bf16.gmra.mxu0 %vm930_vm2, %v8927_v44  ;;  %8313 = vmatmul.msk.bf16.gmra.mxu1 %vm930_vm2, %v9034_v54 }
  0xbe   :  { %v9292_v46 = vpop.f32.mrf.mxu0 }
  0xc6   :  { %v9301_v49 = vpop.f32.mrf.mxu0 }
  0xc9   :  { %8207 = vmatmul.msk.bf16.gmra.mxu0 %vm930_vm2, %v8928_v48 }
  0xce   :  { %v1353_v51 = vpop.f32.mrf.mxu0 }
  0xcf   :  { %v2012_v52 = vadd.f32 %v9307_v50, %v1353_v51  ;;  %v9423_v51 = vld [vmem:[%s16710_s2 + $0x88] sm:$0xff] }
  0xd1   :  { %v2268_v53 = vmax.f32 %v2012_v52, 0.0 }
  0xd3   :  { %8460 = vmatmul.msk.f32.vlgmr.msrb.gmra.mxu3 %vm2727_vm4, %v2268_v53  ;;  %v9325_v60 = vrot.slane %v2268_v53, 7 }
  0xd5   :  { %16971 = vst [vmem:[#allocation10_spill] sm:$0xff] %v9325_v60 }
  0xd6   :  { %v1356_v57 = vpop.f32.mrf.mxu0 }
  0xd7   :  { %v2013_v58 = vadd.f32 %v9318_v55, %v1356_v57  ;;  %v9437_v57 = vld [vmem:[%s16710_s2 + $0x90] sm:$0xff] }
  0xd9   :  { %v2269_v59 = vmax.f32 %v2013_v58, 0.0  ;;  %8208 = vmatmul.msk.bf16.gmra.mxu0 %vm930_vm2, %v8929_v56  ;;  %v9429_v56 = vpop.f32.mrf.mxu1  ;;  %v8933_v58 = vld [vmem:[%s16708_s0 + $0x88] sm:$0xff] }
  0xda   :  { %16980 = vst [vmem:[#allocation19_spill] sm:$0xff] %v9429_v56 }
  0xdb   :  { %v3196_v61 = vrot.slane %v2269_v59, 7  ;;  %8461 = vmatmul.msk.f32.gmra.mxu3 %vm2727_vm4, %v2269_v59 }
  0xdd   :  { %v9335_v63 = vsel %vm2587_vm5, %v9325_v60, %v3196_v61 }
  0xde   :  { %16972 = vst [vmem:[#allocation11_spill] sm:$0xff] %v9335_v63  ;;  %v1358_v0 = vpop.f32.mrf.mxu0 }
  0xdf   :  { %v2014_v1 = vadd.f32 %v9331_v62, %v1358_v0 }
  0xe1   :  { %v2270_v2 = vmax.f32 %v2014_v1, 0.0  ;;  %v9453_v1 = vld [vmem:[%s16710_s2 + $0x98] sm:$0xff] }
  0xe3   :  { %v3198_v4 = vrot.slane %v2270_v2, 7  ;;  %8462 = vmatmul.msk.f32.gmra.mxu3 %vm2727_vm4, %v2270_v2  ;;  %v9455_v2 = vpop.f32.mrf.mxu1 }
  0xe4   :  { %16981 = vst [vmem:[#allocation20_spill] sm:$0xff] %v9455_v2 }
  0xe5   :  { %v9353_v7 = vsel %vm2587_vm5, %v3196_v61, %v3198_v4 }
  0xe6   :  { %16973 = vst [vmem:[#allocation12_spill] sm:$0xff] %v9353_v7  ;;  %v1361_v8 = vpop.f32.mrf.mxu0 }
  0xe7   :  { %v2015_v9 = vadd.f32 %v9347_v5, %v1361_v8  ;;  %v9467_v8 = vld [vmem:[%s16710_s2 + $0xa0] sm:$0xff] }
  0xe9   :  { %v2271_v10 = vmax.f32 %v2015_v9, 0.0  ;;  %8209 = vmatmul.msk.bf16.gmra.mxu0 %vm930_vm2, %v8930_v6  ;;  %v8934_v9 = vld [vmem:[%s16708_s0 + $0x90] sm:$0xff] }
  0xeb   :  { %v3200_v11 = vrot.slane %v2271_v10, 7  ;;  %8463 = vmatmul.msk.f32.gmra.mxu3 %vm2727_vm4, %v2271_v10 }
  0xed   :  { %v9364_v13 = vsel %vm2587_vm5, %v3198_v4, %v3200_v11 }
  0xee   :  { %16974 = vst [vmem:[#allocation13_spill] sm:$0xff] %v9364_v13  ;;  %v1363_v14 = vpop.f32.mrf.mxu0  ;;  %v8956_v13 = vld [vmem:[%s16708_s0 + $0x140] sm:$0xff] }
  0xef   :  { %v2016_v15 = vadd.f32 %v9361_v12, %v1363_v14 }
  0xf1   :  { %v2272_v16 = vmax.f32 %v2016_v15, 0.0 }
  0xf3   :  { %v3202_v17 = vrot.slane %v2272_v16, 7  ;;  %8464 = vmatmul.msk.f32.gmra.mxu3 %vm2727_vm4, %v2272_v16  ;;  %v9485_v16 = vld [vmem:[%s16710_s2 + $0xa8] sm:$0xff] }
  0xf5   :  { %v9379_v21 = vsel %vm2587_vm5, %v3200_v11, %v3202_v17  ;;  %v9472_v11 = vpop.f32.mrf.mxu1 }
  0xf6   :  { %16975 = vst [vmem:[#allocation14_spill] sm:$0xff] %v9379_v21  ;;  %v1366_v22 = vpop.f32.mrf.mxu0 }
  0xf7   :  { %v2017_v23 = vadd.f32 %v9371_v18, %v1366_v22  ;;  %16982 = vst [vmem:[#allocation21_spill] sm:$0xff] %v9472_v11 }
  0xf9   :  { %v2273_v24 = vmax.f32 %v2017_v23, 0.0  ;;  %8210 = vmatmul.msk.bf16.gmra.mxu0 %vm930_vm2, %v8931_v20 }
  0xfb   :  { %v3204_v25 = vrot.slane %v2273_v24, 7  ;;  %8465 = vmatmul.msk.f32.gmra.mxu3 %vm2727_vm4, %v2273_v24  ;;  %v9499_v24 = vld [vmem:[%s16710_s2 + $0xb0] sm:$0xff] }
  0xfd   :  { %v9390_v27 = vsel %vm2587_vm5, %v3202_v17, %v3204_v25  ;;  %v9490_v22 = vpop.f32.mrf.mxu1 }
  0xfe   :  { %16976 = vst [vmem:[#allocation15_spill] sm:$0xff] %v9390_v27  ;;  %v1368_v28 = vpop.f32.mrf.mxu0  ;;  %v8955_v27 = vld [vmem:[%s16708_s0 + $0x138] sm:$0xff] }
  0xff   :  { %v2018_v32 = vadd.f32 %v9387_v26, %v1368_v28  ;;  %16983 = vst [vmem:[#allocation22_spill] sm:$0xff] %v9490_v22 }
 0x101   :  { %v2274_v33 = vmax.f32 %v2018_v32, 0.0 }
 0x103   :  { %8325 = vmatmul.msk.f32.vlgmr.msrb.gmra.mxu1 %vm2727_vm4, %v2274_v33  ;;  %8466 = vmatmul.msk.f32.gmra.mxu3 %vm2727_vm4, %v2274_v33  ;;  %v3206_v37 = vrot.slane %v2274_v33, 7 }
 0x105   :  { %v9408_v42 = vsel %vm2587_vm5, %v3204_v25, %v3206_v37  ;;  %v8935_v25 = vld [vmem:[%s16708_s0 + $0x98] sm:$0xff]  ;;  %v9508_v37 = vpop.f32.mrf.mxu1 }
 0x106   :  { %16978 = vst [vmem:[#allocation17_spill] sm:$0xff] %v9408_v42  ;;  %v1371_v43 = vpop.f32.mrf.mxu0  ;;  %v8954_v42 = vld [vmem:[%s16708_s0 + $0x130] sm:$0xff] }
 0x107   :  { %v9411_v44 = vadd.f32 %v9402_v38, %v1371_v43  ;;  %16984 = vst [vmem:[#allocation23_spill] sm:$0xff] %v9508_v37  ;;  %v8936_v43 = vld [vmem:[%s16708_s0 + $0xa0] sm:$0xff] }
 0x109   :  { %v16720_v48 = vmax.f32 %v9411_v44, 0.0  ;;  %8211 = vmatmul.msk.bf16.gmra.mxu0 %vm930_vm2, %v8932_v39 }
 0x10b   :  { %8326 = vmatmul.msk.f32.gmra.mxu1 %vm2727_vm4, %v16720_v48  ;;  %v8943_v48 = vld [vmem:[%s16708_s0 + $0xd8] sm:$0xff] }
 0x10d   :  { %v9634_v29 = vpop.f32.mrf.mxu1 }
 0x10e   :  { %v1373_v52 = vpop.f32.mrf.mxu0  ;;  %16999 = vst [vmem:[#allocation38_spill] sm:$0xff] %v9634_v29 }
 0x10f   :  { %v9426_v53 = vadd.f32 %v9423_v51, %v1373_v52 }
 0x111   :  { %v16719_v54 = vmax.f32 %v9426_v53, 0.0 }
 0x113   :  { %8327 = vmatmul.msk.f32.gmra.mxu1 %vm2727_vm4, %v16719_v54 }
 0x115   :  { %v9650_v29 = vpop.f32.mrf.mxu1 }
 0x116   :  { %v1376_v59 = vpop.f32.mrf.mxu0  ;;  %17002 = vst [vmem:[#allocation41_spill] sm:$0xff] %v9650_v29 }
 0x117   :  { %v9443_v61 = vadd.f32 %v9437_v57, %v1376_v59  ;;  %v8937_v59 = vld [vmem:[%s16708_s0 + $0xa8] sm:$0xff] }
 0x119   :  { %v16718_v0 = vmax.f32 %v9443_v61, 0.0  ;;  %8212 = vmatmul.msk.bf16.gmra.mxu0 %vm930_vm2, %v8933_v58 }
 0x11b   :  { %8328 = vmatmul.msk.f32.gmra.mxu1 %vm2727_vm4, %v16718_v0  ;;  %v8942_v0 = vld [vmem:[%s16708_s0 + $0xd0] sm:$0xff] }
 0x11e   :  { %v1378_v3 = vpop.f32.mrf.mxu0 }
 0x11f   :  { %v9458_v4 = vadd.f32 %v9453_v1, %v1378_v3 }
 0x121   :  { %v16717_v6 = vmax.f32 %v9458_v4, 0.0 }
 0x123   :  { %8329 = vmatmul.msk.f32.gmra.mxu1 %vm2727_vm4, %v16717_v6 }
 0x126   :  { %v1381_v10 = vpop.f32.mrf.mxu0 }
 0x127   :  { %v9475_v14 = vadd.f32 %v9467_v8, %v1381_v10  ;;  %v8938_v10 = vld [vmem:[%s16708_s0 + $0xb0] sm:$0xff] }
 0x129   :  { %v16716_v15 = vmax.f32 %v9475_v14, 0.0  ;;  %8213 = vmatmul.msk.bf16.gmra.mxu0 %vm930_vm2, %v8934_v9 }
 0x12b   :  { %8330 = vmatmul.msk.f32.gmra.mxu1 %vm2727_vm4, %v16716_v15  ;;  %v8941_v15 = vld [vmem:[%s16708_s0 + $0xc8] sm:$0xff] }
 0x12e   :  { %v1383_v17 = vpop.f32.mrf.mxu0 }
 0x12f   :  { %v9488_v20 = vadd.f32 %v9485_v16, %v1383_v17 }
 0x131   :  { %v16715_v23 = vmax.f32 %v9488_v20, 0.0 }
 0x133   :  { %8331 = vmatmul.msk.f32.gmra.mxu1 %vm2727_vm4, %v16715_v23 }
 0x136   :  { %v1386_v28 = vpop.f32.mrf.mxu0 }
 0x137   :  { %v2025_v32 = vadd.f32 %v9499_v24, %v1386_v28  ;;  %v8939_v28 = vld [vmem:[%s16708_s0 + $0xb8] sm:$0xff] }
 0x139   :  { %v9505_v33 = vmax.f32 %v2025_v32, 0.0  ;;  %8214 = vmatmul.msk.bf16.gmra.mxu0 %vm930_vm2, %v8935_v25 }
 0x13b   :  { %8332 = vmatmul.msk.f32.gmra.mxu1 %vm2727_vm4, %v9505_v33 }
 0x13e   :  { %v9512_v39 = vpop.f32.mrf.mxu0 }
 0x146   :  { %v9517_v52 = vpop.f32.mrf.mxu0 }
 0x149   :  { %8215 = vmatmul.msk.bf16.gmra.mxu0 %vm930_vm2, %v8936_v43 }
 0x14e   :  { %v9520_v58 = vpop.f32.mrf.mxu0 }
 0x156   :  { %v9525_v3 = vpop.f32.mrf.mxu0 }
 0x159   :  { %8216 = vmatmul.msk.bf16.gmra.mxu0 %vm930_vm2, %v8937_v59  ;;  %v8940_v59 = vld [vmem:[%s16708_s0 + $0xc0] sm:$0xff] }
 0x15e   :  { %v9528_v9 = vpop.f32.mrf.mxu0 }
 0x166   :  { %v9533_v17 = vpop.f32.mrf.mxu0 }
 0x169   :  { %8217 = vmatmul.msk.bf16.gmra.mxu0 %vm930_vm2, %v8938_v10 }
 0x16e   :  { %v9536_v25 = vpop.f32.mrf.mxu0 }
 0x176   :  { %v9541_v32 = vpop.f32.mrf.mxu0 }
 0x179   :  { %8218 = vmatmul.msk.bf16.gmra.mxu0 %vm930_vm2, %v8939_v28 }
 0x17e   :  { %v9544_v43 = vpop.f32.mrf.mxu0 }
 0x17f   :  { %16985 = vst [vmem:[#allocation24_spill] sm:$0xff] %v9544_v43 }
 0x186   :  { %v9549_v23 = vpop.f32.mrf.mxu0 }
 0x187   :  { %16986 = vst [vmem:[#allocation25_spill] sm:$0xff] %v9549_v23 }
 0x189   :  { %8219 = vmatmul.msk.bf16.gmra.mxu0 %vm930_vm2, %v8940_v59 }
 0x18e   :  { %v9552_v10 = vpop.f32.mrf.mxu0 }
 0x18f   :  { %16987 = vst [vmem:[#allocation26_spill] sm:$0xff] %v9552_v10 }
 0x196   :  { %v9557_v6 = vpop.f32.mrf.mxu0 }
 0x197   :  { %16988 = vst [vmem:[#allocation27_spill] sm:$0xff] %v9557_v6 }
 0x199   :  { %8220 = vmatmul.msk.bf16.gmra.mxu0 %vm930_vm2, %v8941_v15  ;;  %v9576_v15 = vpop.f32.mrf.mxu3 }
 0x19e   :  { %v9560_v28 = vpop.f32.mrf.mxu0 }
 0x19f   :  { %16989 = vst [vmem:[#allocation28_spill] sm:$0xff] %v9560_v28 }
 0x1a1   :  { %v9588_v6 = vpop.f32.mrf.mxu3 }
 0x1a6   :  { %v9565_v54 = vpop.f32.mrf.mxu0 }
 0x1a7   :  { %16990 = vst [vmem:[#allocation29_spill] sm:$0xff] %v9565_v54  ;;  %v8944_v54 = vld [vmem:[%s16708_s0 + $0xe0] sm:$0xff] }
 0x1a9   :  { %8221 = vmatmul.msk.bf16.gmra.mxu0 %vm930_vm2, %v8942_v0  ;;  %v9586_v0 = vld [vmem:[%s16710_s2 + $0x40] sm:$0xff]  ;;  %v9594_v41 = vpop.f32.mrf.mxu3 }
 0x1ae   :  { %v9568_v59 = vpop.f32.mrf.mxu0 }
 0x1af   :  { %16991 = vst [vmem:[#allocation30_spill] sm:$0xff] %v9568_v59 }
 0x1b6   :  { %v9573_v10 = vpop.f32.mrf.mxu0 }
 0x1b7   :  { %16992 = vst [vmem:[#allocation31_spill] sm:$0xff] %v9573_v10 }
 0x1b9   :  { %8222 = vmatmul.msk.bf16.gmra.mxu0 %vm930_vm2, %v8943_v48 }
 0x1be   :  { %v9578_v28 = vpop.f32.mrf.mxu0 }
 0x1bf   :  { %16993 = vst [vmem:[#allocation32_spill] sm:$0xff] %v9578_v28 }
 0x1c6   :  { %v1431_v59 = vpop.f32.mrf.mxu0 }
 0x1c7   :  { %v2043_v10 = vadd.f32 %v9586_v0, %v1431_v59  ;;  %v8945_v59 = vld [vmem:[%s16708_s0 + $0xe8] sm:$0xff] }
 0x1c9   :  { %v2299_v23 = vmax.f32 %v2043_v10, 0.0  ;;  %8223 = vmatmul.msk.bf16.gmra.mxu0 %vm930_vm2, %v8944_v54 }
 0x1cb   :  { %8467 = vmatmul.msk.f32.gmra.mxu3 %vm2727_vm4, %v2299_v23  ;;  %v9596_v36 = vrot.slane %v2299_v23, 7 }
 0x1cd   :  { %16994 = vst [vmem:[#allocation33_spill] sm:$0xff] %v9596_v36 }
 0x1ce   :  { %v1433_v48 = vpop.f32.mrf.mxu0 }
 0x1cf   :  { %v2044_v45 = vadd.f32 %v9307_v50, %v1433_v48 }
 0x1d1   :  { %v2300_v40 = vmax.f32 %v2044_v45, 0.0  ;;  %v9608_v45 = vpop.f32.mrf.mxu3 }
 0x1d3   :  { %v3211_v35 = vrot.slane %v2300_v40, 7  ;;  %8468 = vmatmul.msk.f32.gmra.mxu3 %vm2727_vm4, %v2300_v40 }
 0x1d5   :  { %v9604_v54 = vsel %vm2587_vm5, %v9596_v36, %v3211_v35 }
 0x1d6   :  { %16995 = vst [vmem:[#allocation34_spill] sm:$0xff] %v9604_v54  ;;  %v1436_v10 = vpop.f32.mrf.mxu0 }
 0x1d7   :  { %v2045_v31 = vadd.f32 %v9318_v55, %v1436_v10 }
 0x1d9   :  { %v2301_v48 = vmax.f32 %v2045_v31, 0.0  ;;  %8224 = vmatmul.msk.bf16.gmra.mxu0 %vm930_vm2, %v8945_v59  ;;  %v9616_v11 = vpop.f32.mrf.mxu3  ;;  %v8946_v31 = vld [vmem:[%s16708_s0 + $0xf0] sm:$0xff] }
 0x1db   :  { %v3213_v23 = vrot.slane %v2301_v48, 7  ;;  %8469 = vmatmul.msk.f32.gmra.mxu3 %vm2727_vm4, %v2301_v48 }
 0x1dd   :  { %v9612_v40 = vsel %vm2587_vm5, %v3211_v35, %v3213_v23 }
 0x1de   :  { %16996 = vst [vmem:[#allocation35_spill] sm:$0xff] %v9612_v40  ;;  %v1438_v30 = vpop.f32.mrf.mxu0 }
 0x1df   :  { %v2046_v43 = vadd.f32 %v9331_v62, %v1438_v30 }
 0x1e1   :  { %v2302_v37 = vmax.f32 %v2046_v43, 0.0  ;;  %v9630_v2 = vpop.f32.mrf.mxu3 }
 0x1e3   :  { %v3215_v22 = vrot.slane %v2302_v37, 7  ;;  %8470 = vmatmul.msk.f32.gmra.mxu3 %vm2727_vm4, %v2302_v37 }
 0x1e5   :  { %v9622_v59 = vsel %vm2587_vm5, %v3213_v23, %v3215_v22 }
 0x1e6   :  { %16997 = vst [vmem:[#allocation36_spill] sm:$0xff] %v9622_v59  ;;  %v1441_v10 = vpop.f32.mrf.mxu0 }
 0x1e7   :  { %v2047_v35 = vadd.f32 %v9347_v5, %v1441_v10 }
 0x1e9   :  { %v2303_v48 = vmax.f32 %v2047_v35, 0.0  ;;  %8225 = vmatmul.msk.bf16.gmra.mxu0 %vm930_vm2, %v8946_v31  ;;  %v8947_v31 = vld [vmem:[%s16708_s0 + $0xf8] sm:$0xff] }
 0x1eb   :  { %v3217_v30 = vrot.slane %v2303_v48, 7  ;;  %8471 = vmatmul.msk.f32.gmra.mxu3 %vm2727_vm4, %v2303_v48  ;;  %v9643_v48 = vpop.f32.mrf.mxu3 }
 0x1ed   :  { %v9628_v37 = vsel %vm2587_vm5, %v3215_v22, %v3217_v30 }
 0x1ee   :  { %16998 = vst [vmem:[#allocation37_spill] sm:$0xff] %v9628_v37  ;;  %v1443_v43 = vpop.f32.mrf.mxu0 }
 0x1ef   :  { %v2048_v56 = vadd.f32 %v9361_v12, %v1443_v43 }
 0x1f1   :  { %v2304_v47 = vmax.f32 %v2048_v56, 0.0 }
 0x1f3   :  { %v3219_v23 = vrot.slane %v2304_v47, 7  ;;  %8472 = vmatmul.msk.f32.gmra.mxu3 %vm2727_vm4, %v2304_v47  ;;  %v9653_v59 = vpop.f32.mrf.mxu3 }
 0x1f5   :  { %v9640_v10 = vsel %vm2587_vm5, %v3217_v30, %v3219_v23 }
 0x1f6   :  { %17000 = vst [vmem:[#allocation39_spill] sm:$0xff] %v9640_v10  ;;  %v1446_v22 = vpop.f32.mrf.mxu0 }
 0x1f7   :  { %v2049_v35 = vadd.f32 %v9371_v18, %v1446_v22 }
 0x1f9   :  { %v2305_v37 = vmax.f32 %v2049_v35, 0.0  ;;  %8226 = vmatmul.msk.bf16.gmra.mxu0 %vm930_vm2, %v8947_v31 }
 0x1fb   :  { %v3221_v56 = vrot.slane %v2305_v37, 7  ;;  %8473 = vmatmul.msk.f32.gmra.mxu3 %vm2727_vm4, %v2305_v37  ;;  %v8948_v37 = vld [vmem:[%s16708_s0 + $0x100] sm:$0xff] }
 0x1fd   :  { %v9648_v47 = vsel %vm2587_vm5, %v3219_v23, %v3221_v56 }
 0x1fe   :  { %17001 = vst [vmem:[#allocation40_spill] sm:$0xff] %v9648_v47  ;;  %v1448_v43 = vpop.f32.mrf.mxu0 }
 0x1ff   :  { %v2050_v30 = vadd.f32 %v9387_v26, %v1448_v43  ;;  %v9666_v43 = vpop.f32.mrf.mxu1 }
 0x200   :  { %17004 = vst [vmem:[#allocation43_spill] sm:$0xff] %v9666_v43 }
 0x201   :  { %v2306_v10 = vmax.f32 %v2050_v30, 0.0 }
 0x203   :  { %v3223_v22 = vrot.slane %v2306_v10, 7  ;;  %8333 = vmatmul.msk.f32.gmra.mxu1 %vm2727_vm4, %v2306_v10  ;;  %8474 = vmatmul.msk.f32.gmra.mxu3 %vm2727_vm4, %v2306_v10 }
 0x205   :  { %v9661_v23 = vsel %vm2587_vm5, %v3221_v56, %v3223_v22 }
 0x206   :  { %17003 = vst [vmem:[#allocation42_spill] sm:$0xff] %v9661_v23  ;;  %v1451_v31 = vpop.f32.mrf.mxu0 }
 0x207   :  { %v9664_v35 = vadd.f32 %v9402_v38, %v1451_v31  ;;  %v9677_v22 = vpop.f32.mrf.mxu1 }
 0x208   :  { %17005 = vst [vmem:[#allocation44_spill] sm:$0xff] %v9677_v22 }
 0x209   :  { %v16721_v30 = vmax.f32 %v9664_v35, 0.0  ;;  %8227 = vmatmul.msk.bf16.gmra.mxu0 %vm930_vm2, %v8948_v37  ;;  %v8949_v37 = vld [vmem:[%s16708_s0 + $0x108] sm:$0xff] }
 0x20b   :  { %8334 = vmatmul.msk.f32.gmra.mxu1 %vm2727_vm4, %v16721_v30 }
 0x20e   :  { %v1453_v10 = vpop.f32.mrf.mxu0 }
 0x20f   :  { %v9674_v29 = vadd.f32 %v9423_v51, %v1453_v10  ;;  %v9693_v10 = vpop.f32.mrf.mxu1 }
 0x210   :  { %17006 = vst [vmem:[#allocation45_spill] sm:$0xff] %v9693_v10 }
 0x211   :  { %v16722_v56 = vmax.f32 %v9674_v29, 0.0 }
 0x213   :  { %8335 = vmatmul.msk.f32.gmra.mxu1 %vm2727_vm4, %v16722_v56 }
 0x216   :  { %v1456_v31 = vpop.f32.mrf.mxu0 }
 0x217   :  { %v9686_v43 = vadd.f32 %v9437_v57, %v1456_v31  ;;  %v9705_v47 = vpop.f32.mrf.mxu1 }
 0x218   :  { %17008 = vst [vmem:[#allocation47_spill] sm:$0xff] %v9705_v47 }
 0x219   :  { %v16723_v30 = vmax.f32 %v9686_v43, 0.0  ;;  %8228 = vmatmul.msk.bf16.gmra.mxu0 %vm930_vm2, %v8949_v37  ;;  %v8950_v37 = vld [vmem:[%s16708_s0 + $0x110] sm:$0xff] }
 0x21b   :  { %8336 = vmatmul.msk.f32.gmra.mxu1 %vm2727_vm4, %v16723_v30 }
 0x21e   :  { %v1458_v22 = vpop.f32.mrf.mxu0 }
 0x21f   :  { %v9696_v56 = vadd.f32 %v9453_v1, %v1458_v22  ;;  %v9718_v40 = vpop.f32.mrf.mxu1 }
 0x220   :  { %17011 = vst [vmem:[#allocation50_spill] sm:$0xff] %v9718_v40 }
 0x221   :  { %17007 = vst [vmem:[#allocation46_spill] sm:$0xff] %v9696_v56  ;;  %v16724_v23 = vmax.f32 %v9696_v56, 0.0 }
 0x223   :  { %8337 = vmatmul.msk.f32.gmra.mxu1 %vm2727_vm4, %v16724_v23 }
 0x226   :  { %v1461_v31 = vpop.f32.mrf.mxu0 }
 0x227   :  { %v9708_v30 = vadd.f32 %v9467_v8, %v1461_v31 }
 0x229   :  { %17009 = vst [vmem:[#allocation48_spill] sm:$0xff] %v9708_v30  ;;  %v16725_v10 = vmax.f32 %v9708_v30, 0.0  ;;  %8229 = vmatmul.msk.bf16.gmra.mxu0 %vm930_vm2, %v8950_v37  ;;  %v8951_v37 = vld [vmem:[%s16708_s0 + $0x118] sm:$0xff] }
 0x22b   :  { %8338 = vmatmul.msk.f32.gmra.mxu1 %vm2727_vm4, %v16725_v10 }
 0x22e   :  { %v1463_v22 = vpop.f32.mrf.mxu0 }
 0x22f   :  { %v9716_v23 = vadd.f32 %v9485_v16, %v1463_v22  ;;  %v9731_v22 = vpop.f32.mrf.mxu1 }
 0x230   :  { %17013 = vst [vmem:[#allocation52_spill] sm:$0xff] %v9731_v22 }
 0x231   :  { %17010 = vst [vmem:[#allocation49_spill] sm:$0xff] %v9716_v23  ;;  %v16726_v54 = vmax.f32 %v9716_v23, 0.0 }
 0x233   :  { %8339 = vmatmul.msk.f32.gmra.mxu1 %vm2727_vm4, %v16726_v54  ;;  %v8952_v54 = vld [vmem:[%s16708_s0 + $0x120] sm:$0xff] }
 0x236   :  { %v1466_v31 = vpop.f32.mrf.mxu0 }
 0x237   :  { %v2057_v47 = vadd.f32 %v9499_v24, %v1466_v31 }
 0x239   :  { %v9728_v10 = vmax.f32 %v2057_v47, 0.0  ;;  %8230 = vmatmul.msk.bf16.gmra.mxu0 %vm930_vm2, %v8951_v37  ;;  %v8953_v47 = vld [vmem:[%s16708_s0 + $0x128] sm:$0xff] }
 0x23b   :  { %17012 = vst [vmem:[#allocation51_spill] sm:$0xff] %v9728_v10  ;;  %8340 = vmatmul.msk.f32.gmra.mxu1 %vm2727_vm4, %v9728_v10 }
 0x23e   :  { %v9735_v40 = vpop.f32.mrf.mxu0 }
 0x23f   :  { %17014 = vst [vmem:[#allocation53_spill] sm:$0xff] %v9735_v40 }
 0x246   :  { %v9740_v36 = vpop.f32.mrf.mxu0 }
 0x247   :  { %17015 = vst [vmem:[#allocation54_spill] sm:$0xff] %v9740_v36 }
 0x249   :  { %8231 = vmatmul.msk.bf16.gmra.mxu0 %vm930_vm2, %v8952_v54 }
 0x24e   :  { %v9743_v31 = vpop.f32.mrf.mxu0 }
 0x24f   :  { %17016 = vst [vmem:[#allocation55_spill] sm:$0xff] %v9743_v31 }
 0x256   :  { %v9748_v37 = vpop.f32.mrf.mxu0 }
 0x257   :  { %17017 = vst [vmem:[#allocation56_spill] sm:$0xff] %v9748_v37 }
 0x259   :  { %8232 = vmatmul.msk.bf16.gmra.mxu0 %vm930_vm2, %v8953_v47 }
 0x25e   :  { %v9751_v22 = vpop.f32.mrf.mxu0 }
 0x25f   :  { %17018 = vst [vmem:[#allocation57_spill] sm:$0xff] %v9751_v22 }
 0x266   :  { %v9756_v28 = vpop.f32.mrf.mxu0 }
 0x267   :  { %17019 = vst [vmem:[#allocation58_spill] sm:$0xff] %v9756_v28 }
 0x269   :  { %8233 = vmatmul.msk.bf16.gmra.mxu0 %vm930_vm2, %v8954_v42 }
 0x26e   :  { %v9759_v54 = vpop.f32.mrf.mxu0 }
 0x26f   :  { %17020 = vst [vmem:[#allocation59_spill] sm:$0xff] %v9759_v54  ;;  %v8957_v54 = vld [vmem:[%s16708_s0 + $0x148] sm:$0xff] }
 0x276   :  { %v9764_v21 = vpop.f32.mrf.mxu0 }
 0x277   :  { %17021 = vst [vmem:[#allocation60_spill] sm:$0xff] %v9764_v21 }
 0x279   :  { %8234 = vmatmul.msk.bf16.gmra.mxu0 %vm930_vm2, %v8955_v27 }
 0x27e   :  { %v9767_v47 = vpop.f32.mrf.mxu0 }
 0x27f   :  { %17022 = vst [vmem:[#allocation61_spill] sm:$0xff] %v9767_v47  ;;  %v8958_v47 = vld [vmem:[%s16708_s0 + $0x150] sm:$0xff] }
 0x286   :  { %v9772_v22 = vpop.f32.mrf.mxu0 }
 0x287   :  { %17023 = vst [vmem:[#allocation62_spill] sm:$0xff] %v9772_v22 }
 0x289   :  { %8235 = vmatmul.msk.bf16.gmra.mxu0 %vm930_vm2, %v8956_v13 }
 0x28e   :  { %v9775_v42 = vpop.f32.mrf.mxu0 }
 0x28f   :  { %17024 = vst [vmem:[#allocation63_spill] sm:$0xff] %v9775_v42  ;;  %v8959_v42 = vld [vmem:[%s16708_s0 + $0x158] sm:$0xff] }
 0x296   :  { %v9780_v28 = vpop.f32.mrf.mxu0 }
 0x297   :  { %17025 = vst [vmem:[#allocation64_spill] sm:$0xff] %v9780_v28 }
 0x299   :  { %8236 = vmatmul.msk.bf16.gmra.mxu0 %vm930_vm2, %v8957_v54  ;;  %v9799_v54 = vpop.f32.mrf.mxu3 }
 0x29a   :  { %17030 = vst [vmem:[#allocation69_spill] sm:$0xff] %v9799_v54 }
 0x29e   :  { %v9783_v27 = vpop.f32.mrf.mxu0 }
 0x29f   :  { %17026 = vst [vmem:[#allocation65_spill] sm:$0xff] %v9783_v27 }
 0x2a6   :  { %v9788_v21 = vpop.f32.mrf.mxu0 }
 0x2a7   :  { %17027 = vst [vmem:[#allocation66_spill] sm:$0xff] %v9788_v21  ;;  %v8960_v21 = vld [vmem:[%s16708_s0 + $0x160] sm:$0xff] }
 0x2a9   :  { %8237 = vmatmul.msk.bf16.gmra.mxu0 %vm930_vm2, %v8958_v47  ;;  %v9806_v47 = vpop.f32.mrf.mxu3 }
 0x2aa   :  { %17032 = vst [vmem:[#allocation71_spill] sm:$0xff] %v9806_v47 }
 0x2ae   :  { %v9791_v13 = vpop.f32.mrf.mxu0 }
 0x2af   :  { %17028 = vst [vmem:[#allocation67_spill] sm:$0xff] %v9791_v13 }
 0x2b1   :  { %v9812_v54 = vpop.f32.mrf.mxu3 }
 0x2b2   :  { %17033 = vst [vmem:[#allocation72_spill] sm:$0xff] %v9812_v54 }
 0x2b6   :  { %v9796_v22 = vpop.f32.mrf.mxu0 }
 0x2b7   :  { %17029 = vst [vmem:[#allocation68_spill] sm:$0xff] %v9796_v22 }
 0x2b9   :  { %8238 = vmatmul.msk.bf16.gmra.mxu0 %vm930_vm2, %v8959_v42 }
 0x2be   :  { %v9801_v27 = vpop.f32.mrf.mxu0 }
 0x2bf   :  { %17031 = vst [vmem:[#allocation70_spill] sm:$0xff] %v9801_v27 }
 0x2c6   :  { %v1511_v28 = vpop.f32.mrf.mxu0 }
 0x2c7   :  { %v2075_v13 = vadd.f32 %v9586_v0, %v1511_v28  ;;  %v8961_v28 = vld [vmem:[%s16708_s0 + $0x168] sm:$0xff] }
 0x2c9   :  { %v2331_v7 = vmax.f32 %v2075_v13, 0.0  ;;  %8239 = vmatmul.msk.bf16.gmra.mxu0 %vm930_vm2, %v8960_v21 }
 0x2cb   :  { %8475 = vmatmul.msk.f32.gmra.mxu3 %vm2727_vm4, %v2331_v7  ;;  %v9814_v37 = vrot.slane %v2331_v7, 7 }
 0x2cd   :  { %17034 = vst [vmem:[#allocation73_spill] sm:$0xff] %v9814_v37 }
 0x2ce   :  { %v1513_v22 = vpop.f32.mrf.mxu0 }
 0x2cf   :  { %v2076_v42 = vadd.f32 %v9307_v50, %v1513_v22 }
 0x2d1   :  { %v2332_v27 = vmax.f32 %v2076_v42, 0.0  ;;  %v9826_v42 = vpop.f32.mrf.mxu3 }
 0x2d2   :  { %17036 = vst [vmem:[#allocation75_spill] sm:$0xff] %v9826_v42 }
 0x2d3   :  { %v3228_v23 = vrot.slane %v2332_v27, 7  ;;  %8476 = vmatmul.msk.f32.gmra.mxu3 %vm2727_vm4, %v2332_v27 }
 0x2d5   :  { %v9822_v21 = vsel %vm2587_vm5, %v9814_v37, %v3228_v23 }
 0x2d6   :  { %17035 = vst [vmem:[#allocation74_spill] sm:$0xff] %v9822_v21  ;;  %v1516_v13 = vpop.f32.mrf.mxu0 }
 0x2d7   :  { %v2077_v47 = vadd.f32 %v9318_v55, %v1516_v13 }
 0x2d9   :  { %v2333_v22 = vmax.f32 %v2077_v47, 0.0  ;;  %8240 = vmatmul.msk.bf16.gmra.mxu0 %vm930_vm2, %v8961_v28  ;;  %v9834_v21 = vpop.f32.mrf.mxu3  ;;  %v8962_v47 = vld [vmem:[%s16708_s0 + $0x170] sm:$0xff] }
 0x2da   :  { %17038 = vst [vmem:[#allocation77_spill] sm:$0xff] %v9834_v21 }
 0x2db   :  { %v3230_v7 = vrot.slane %v2333_v22, 7  ;;  %8477 = vmatmul.msk.f32.gmra.mxu3 %vm2727_vm4, %v2333_v22 }
 0x2dd   :  { %v9830_v27 = vsel %vm2587_vm5, %v3228_v23, %v3230_v7 }
 0x2de   :  { %17037 = vst [vmem:[#allocation76_spill] sm:$0xff] %v9830_v27  ;;  %v1518_v54 = vpop.f32.mrf.mxu0 }
 0x2df   :  { %v2078_v63 = vadd.f32 %v9331_v62, %v1518_v54 }
 0x2e1   :  { %v2334_v31 = vmax.f32 %v2078_v63, 0.0  ;;  %v9848_v21 = vpop.f32.mrf.mxu3 }
 0x2e2   :  { %17041 = vst [vmem:[#allocation80_spill] sm:$0xff] %v9848_v21 }
 0x2e3   :  { %v3232_v37 = vrot.slane %v2334_v31, 7  ;;  %8478 = vmatmul.msk.f32.gmra.mxu3 %vm2727_vm4, %v2334_v31 }
 0x2e5   :  { %v9840_v28 = vsel %vm2587_vm5, %v3230_v7, %v3232_v37 }
 0x2e6   :  { %17039 = vst [vmem:[#allocation78_spill] sm:$0xff] %v9840_v28  ;;  %v1521_v13 = vpop.f32.mrf.mxu0  ;;  %v9852_v28 = vpop.f32.mrf.mxu1 }
 0x2e7   :  { %v2079_v23 = vadd.f32 %v9347_v5, %v1521_v13  ;;  %17042 = vst [vmem:[#allocation81_spill] sm:$0xff] %v9852_v28 }
 0x2e9   :  { %v2335_v22 = vmax.f32 %v2079_v23, 0.0  ;;  %8241 = vmatmul.msk.bf16.gmra.mxu0 %vm930_vm2, %v8962_v47  ;;  %v8963_v47 = vld [vmem:[%s16708_s0 + $0x178] sm:$0xff] }
 0x2eb   :  { %v3234_v54 = vrot.slane %v2335_v22, 7  ;;  %8479 = vmatmul.msk.f32.gmra.mxu3 %vm2727_vm4, %v2335_v22  ;;  %v9861_v22 = vpop.f32.mrf.mxu3 }
 0x2ec   :  { %17044 = vst [vmem:[#allocation83_spill] sm:$0xff] %v9861_v22 }
 0x2ed   :  { %v9846_v63 = vsel %vm2587_vm5, %v3232_v37, %v3234_v54 }
 0x2ee   :  { %17040 = vst [vmem:[#allocation79_spill] sm:$0xff] %v9846_v63  ;;  %v1523_v31 = vpop.f32.mrf.mxu0  ;;  %v9868_v28 = vpop.f32.mrf.mxu1 }
 0x2ef   :  { %v2080_v42 = vadd.f32 %v9361_v12, %v1523_v31  ;;  %17046 = vst [vmem:[#allocation85_spill] sm:$0xff] %v9868_v28 }
 0x2f1   :  { %v2336_v27 = vmax.f32 %v2080_v42, 0.0 }
 0x2f3   :  { %v3236_v7 = vrot.slane %v2336_v27, 7  ;;  %8480 = vmatmul.msk.f32.gmra.mxu3 %vm2727_vm4, %v2336_v27  ;;  %v9871_v63 = vpop.f32.mrf.mxu3 }
 0x2f4   :  { %17047 = vst [vmem:[#allocation86_spill] sm:$0xff] %v9871_v63 }
 0x2f5   :  { %v9858_v13 = vsel %vm2587_vm5, %v3234_v54, %v3236_v7 }
 0x2f6   :  { %17043 = vst [vmem:[#allocation82_spill] sm:$0xff] %v9858_v13  ;;  %v1526_v37 = vpop.f32.mrf.mxu0 }
 0x2f7   :  { %v2081_v23 = vadd.f32 %v9371_v18, %v1526_v37 }
 0x2f9   :  { %v2337_v21 = vmax.f32 %v2081_v23, 0.0  ;;  %8242 = vmatmul.msk.bf16.gmra.mxu0 %vm930_vm2, %v8963_v47 }
 0x2fb   :  { %v3238_v42 = vrot.slane %v2337_v21, 7  ;;  %8481 = vmatmul.msk.f32.gmra.mxu3 %vm2727_vm4, %v2337_v21  ;;  %v8964_v21 = vld [vmem:[%s16708_s0 + $0x180] sm:$0xff] }
 0x2fd   :  { %v9866_v27 = vsel %vm2587_vm5, %v3236_v7, %v3238_v42 }
 0x2fe   :  { %17045 = vst [vmem:[#allocation84_spill] sm:$0xff] %v9866_v27  ;;  %v1528_v31 = vpop.f32.mrf.mxu0 }
 0x2ff   :  { %v2082_v54 = vadd.f32 %v9387_v26, %v1528_v31  ;;  %v9884_v31 = vpop.f32.mrf.mxu1 }
 0x301   :  { %v2338_v13 = vmax.f32 %v2082_v54, 0.0 }
 0x303   :  { %v3240_v37 = vrot.slane %v2338_v13, 7  ;;  %8341 = vmatmul.msk.f32.gmra.mxu1 %vm2727_vm4, %v2338_v13  ;;  %8482 = vmatmul.msk.f32.gmra.mxu3 %vm2727_vm4, %v2338_v13 }
 0x305   :  { %v9879_v7 = vsel %vm2587_vm5, %v3238_v42, %v3240_v37 }
 0x306   :  { %17048 = vst [vmem:[#allocation87_spill] sm:$0xff] %v9879_v7  ;;  %v1531_v47 = vpop.f32.mrf.mxu0 }
 0x307   :  { %v9882_v23 = vadd.f32 %v9402_v38, %v1531_v47  ;;  %v9895_v37 = vpop.f32.mrf.mxu1 }
 0x309   :  { %17049 = vst [vmem:[#allocation88_spill] sm:$0xff] %v9882_v23  ;;  %v16730_v54 = vmax.f32 %v9882_v23, 0.0  ;;  %8243 = vmatmul.msk.bf16.gmra.mxu0 %vm930_vm2, %v8964_v21  ;;  %v8965_v21 = vld [vmem:[%s16708_s0 + $0x188] sm:$0xff] }
 0x30b   :  { %8342 = vmatmul.msk.f32.gmra.mxu1 %vm2727_vm4, %v16730_v54 }
 0x30e   :  { %v1533_v13 = vpop.f32.mrf.mxu0 }
 0x30f   :  { %v9892_v28 = vadd.f32 %v9423_v51, %v1533_v13  ;;  %v9911_v13 = vpop.f32.mrf.mxu1 }
 0x311   :  { %17050 = vst [vmem:[#allocation89_spill] sm:$0xff] %v9892_v28  ;;  %v16731_v42 = vmax.f32 %v9892_v28, 0.0 }
 0x313   :  { %8343 = vmatmul.msk.f32.gmra.mxu1 %vm2727_vm4, %v16731_v42 }
 0x316   :  { %v1536_v47 = vpop.f32.mrf.mxu0 }
 0x317   :  { %v9904_v63 = vadd.f32 %v9437_v57, %v1536_v47  ;;  %v9923_v27 = vpop.f32.mrf.mxu1 }
 0x319   :  { %17051 = vst [vmem:[#allocation90_spill] sm:$0xff] %v9904_v63  ;;  %v16732_v54 = vmax.f32 %v9904_v63, 0.0  ;;  %8244 = vmatmul.msk.bf16.gmra.mxu0 %vm930_vm2, %v8965_v21  ;;  %v8966_v21 = vld [vmem:[%s16708_s0 + $0x190] sm:$0xff] }
 0x31b   :  { %8344 = vmatmul.msk.f32.gmra.mxu1 %vm2727_vm4, %v16732_v54 }
 0x31e   :  { %v1538_v22 = vpop.f32.mrf.mxu0 }
 0x31f   :  { %v9914_v42 = vadd.f32 %v9453_v1, %v1538_v22 }
 0x321   :  { %17052 = vst [vmem:[#allocation91_spill] sm:$0xff] %v9914_v42  ;;  %v16734_v7 = vmax.f32 %v9914_v42, 0.0  ;;  %v9936_v42 = vpop.f32.mrf.mxu1 }
 0x323   :  { %8345 = vmatmul.msk.f32.gmra.mxu1 %vm2727_vm4, %v16734_v7 }
 0x326   :  { %v1541_v47 = vpop.f32.mrf.mxu0 }
 0x327   :  { %v9926_v54 = vadd.f32 %v9467_v8, %v1541_v47 }
 0x329   :  { %17053 = vst [vmem:[#allocation92_spill] sm:$0xff] %v9926_v54  ;;  %v16738_v63 = vmax.f32 %v9926_v54, 0.0  ;;  %8245 = vmatmul.msk.bf16.gmra.mxu0 %vm930_vm2, %v8966_v21  ;;  %v8967_v21 = vld [vmem:[%s16708_s0 + $0x198] sm:$0xff] }
 0x32b   :  { %8346 = vmatmul.msk.f32.gmra.mxu1 %vm2727_vm4, %v16738_v63 }
 0x32e   :  { %v1543_v22 = vpop.f32.mrf.mxu0 }
 0x32f   :  { %v9934_v7 = vadd.f32 %v9485_v16, %v1543_v22  ;;  %v9949_v22 = vpop.f32.mrf.mxu1 }
 0x331   :  { %17054 = vst [vmem:[#allocation93_spill] sm:$0xff] %v9934_v7  ;;  %v16740_v28 = vmax.f32 %v9934_v7, 0.0 }
 0x333   :  { %8347 = vmatmul.msk.f32.gmra.mxu1 %vm2727_vm4, %v16740_v28  ;;  %v8968_v28 = vld [vmem:[%s16708_s0 + $0x1a0] sm:$0xff] }
 0x336   :  { %v1546_v47 = vpop.f32.mrf.mxu0 }
 0x337   :  { %v2089_v54 = vadd.f32 %v9499_v24, %v1546_v47 }
 0x339   :  { %v9946_v63 = vmax.f32 %v2089_v54, 0.0  ;;  %8246 = vmatmul.msk.bf16.gmra.mxu0 %vm930_vm2, %v8967_v21  ;;  %v8969_v54 = vld [vmem:[%s16708_s0 + $0x1a8] sm:$0xff] }
 0x33b   :  { %17055 = vst [vmem:[#allocation94_spill] sm:$0xff] %v9946_v63  ;;  %8348 = vmatmul.msk.f32.gmra.mxu1 %vm2727_vm4, %v9946_v63 }
 0x33e   :  { %v9953_v23 = vpop.f32.mrf.mxu0 }
 0x33f   :  { %17056 = vst [vmem:[#allocation95_spill] sm:$0xff] %v9953_v23  ;;  %v8970_v23 = vld [vmem:[%s16708_s0 + $0x1b0] sm:$0xff] }
 0x346   :  { %v9958_v7 = vpop.f32.mrf.mxu0 }
 0x347   :  { %17057 = vst [vmem:[#allocation96_spill] sm:$0xff] %v9958_v7 }
 0x349   :  { %8247 = vmatmul.msk.bf16.gmra.mxu0 %vm930_vm2, %v8968_v28 }
 0x34e   :  { %v9961_v47 = vpop.f32.mrf.mxu0 }
 0x34f   :  { %17058 = vst [vmem:[#allocation97_spill] sm:$0xff] %v9961_v47  ;;  %v8971_v47 = vld [vmem:[%s16708_s0 + $0x1b8] sm:$0xff] }
 0x356   :  { %v9966_v21 = vpop.f32.mrf.mxu0 }
 0x357   :  { %17059 = vst [vmem:[#allocation98_spill] sm:$0xff] %v9966_v21 }
 0x359   :  { %8248 = vmatmul.msk.bf16.gmra.mxu0 %vm930_vm2, %v8969_v54 }
 0x35e   :  { %v9969_v63 = vpop.f32.mrf.mxu0 }
 0x35f   :  { %17060 = vst [vmem:[#allocation99_spill] sm:$0xff] %v9969_v63  ;;  %v8972_v63 = vld [vmem:[%s16708_s0 + $0x1c0] sm:$0xff] }
 0x366   :  { %v9974_v30 = vpop.f32.mrf.mxu0 }
 0x367   :  { %17061 = vst [vmem:[#allocation100_spill] sm:$0xff] %v9974_v30 }
 0x369   :  { %8249 = vmatmul.msk.bf16.gmra.mxu0 %vm930_vm2, %v8970_v23 }
 0x36e   :  { %v9977_v28 = vpop.f32.mrf.mxu0 }
 0x36f   :  { %17062 = vst [vmem:[#allocation101_spill] sm:$0xff] %v9977_v28  ;;  %v8973_v28 = vld [vmem:[%s16708_s0 + $0x1c8] sm:$0xff] }
 0x376   :  { %v9982_v7 = vpop.f32.mrf.mxu0 }
 0x377   :  { %17063 = vst [vmem:[#allocation102_spill] sm:$0xff] %v9982_v7 }
 0x379   :  { %8250 = vmatmul.msk.bf16.gmra.mxu0 %vm930_vm2, %v8971_v47 }
 0x37e   :  { %v9985_v54 = vpop.f32.mrf.mxu0 }
 0x37f   :  { %17064 = vst [vmem:[#allocation103_spill] sm:$0xff] %v9985_v54  ;;  %v8974_v54 = vld [vmem:[%s16708_s0 + $0x1d0] sm:$0xff] }
 0x386   :  { %v9990_v21 = vpop.f32.mrf.mxu0 }
 0x387   :  { %17065 = vst [vmem:[#allocation104_spill] sm:$0xff] %v9990_v21 }
 0x389   :  { %8251 = vmatmul.msk.bf16.gmra.mxu0 %vm930_vm2, %v8972_v63 }
 0x38e   :  { %v9993_v23 = vpop.f32.mrf.mxu0 }
 0x38f   :  { %17066 = vst [vmem:[#allocation105_spill] sm:$0xff] %v9993_v23  ;;  %v8975_v23 = vld [vmem:[%s16708_s0 + $0x1d8] sm:$0xff] }
 0x396   :  { %v9998_v30 = vpop.f32.mrf.mxu0 }
 0x397   :  { %17067 = vst [vmem:[#allocation106_spill] sm:$0xff] %v9998_v30 }
 0x399   :  { %8252 = vmatmul.msk.bf16.gmra.mxu0 %vm930_vm2, %v8973_v28  ;;  %v10017_v28 = vpop.f32.mrf.mxu3 }
 0x39a   :  { %17072 = vst [vmem:[#allocation111_spill] sm:$0xff] %v10017_v28 }
 0x39e   :  { %v10001_v47 = vpop.f32.mrf.mxu0 }
 0x39f   :  { %17068 = vst [vmem:[#allocation107_spill] sm:$0xff] %v10001_v47 }
 0x3a6   :  { %v10006_v7 = vpop.f32.mrf.mxu0 }
 0x3a7   :  { %17069 = vst [vmem:[#allocation108_spill] sm:$0xff] %v10006_v7  ;;  %v8976_v7 = vld [vmem:[%s16708_s0 + $0x1e0] sm:$0xff] }
 0x3a9   :  { %8253 = vmatmul.msk.bf16.gmra.mxu0 %vm930_vm2, %v8974_v54  ;;  %v10024_v54 = vpop.f32.mrf.mxu3 }
 0x3aa   :  { %17074 = vst [vmem:[#allocation113_spill] sm:$0xff] %v10024_v54 }
 0x3ae   :  { %v10009_v63 = vpop.f32.mrf.mxu0 }
 0x3af   :  { %17070 = vst [vmem:[#allocation109_spill] sm:$0xff] %v10009_v63 }
 0x3b1   :  { %v10030_v28 = vpop.f32.mrf.mxu3 }
 0x3b2   :  { %17075 = vst [vmem:[#allocation114_spill] sm:$0xff] %v10030_v28 }
 0x3b6   :  { %v10014_v21 = vpop.f32.mrf.mxu0 }
 0x3b7   :  { %17071 = vst [vmem:[#allocation110_spill] sm:$0xff] %v10014_v21 }
 0x3b9   :  { %8254 = vmatmul.msk.bf16.gmra.mxu0 %vm930_vm2, %v8975_v23 }
 0x3be   :  { %v10019_v47 = vpop.f32.mrf.mxu0 }
 0x3bf   :  { %17073 = vst [vmem:[#allocation112_spill] sm:$0xff] %v10019_v47 }
 0x3c6   :  { %v1591_v30 = vpop.f32.mrf.mxu0 }
 0x3c7   :  { %v2107_v63 = vadd.f32 %v9586_v0, %v1591_v30  ;;  %v8977_v30 = vld [vmem:[%s16708_s0 + $0x1e8] sm:$0xff] }
 0x3c9   :  { %v2363_v60 = vmax.f32 %v2107_v63, 0.0  ;;  %8255 = vmatmul.msk.bf16.gmra.mxu0 %vm930_vm2, %v8976_v7 }
 0x3cb   :  { %8483 = vmatmul.msk.f32.gmra.mxu3 %vm2727_vm4, %v2363_v60  ;;  %v10032_v10 = vrot.slane %v2363_v60, 7 }
 0x3cd   :  { %17076 = vst [vmem:[#allocation115_spill] sm:$0xff] %v10032_v10 }
 0x3ce   :  { %v1593_v21 = vpop.f32.mrf.mxu0 }
 0x3cf   :  { %v2108_v23 = vadd.f32 %v9307_v50, %v1593_v21  ;;  %v10044_v21 = vpop.f32.mrf.mxu3 }
 0x3d0   :  { %17078 = vst [vmem:[#allocation117_spill] sm:$0xff] %v10044_v21  ;;  %v10070_v21 = vpop.f32.mrf.mxu1 }
 0x3d1   :  { %v2364_v47 = vmax.f32 %v2108_v23, 0.0  ;;  %17084 = vst [vmem:[#allocation123_spill] sm:$0xff] %v10070_v21 }
 0x3d3   :  { %v3245_v36 = vrot.slane %v2364_v47, 7  ;;  %8484 = vmatmul.msk.f32.gmra.mxu3 %vm2727_vm4, %v2364_v47 }
 0x3d5   :  { %v10040_v7 = vsel %vm2587_vm5, %v10032_v10, %v3245_v36 }
 0x3d6   :  { %17077 = vst [vmem:[#allocation116_spill] sm:$0xff] %v10040_v7  ;;  %v1596_v63 = vpop.f32.mrf.mxu0 }
 0x3d7   :  { %v2109_v54 = vadd.f32 %v9318_v55, %v1596_v63  ;;  %v10052_v7 = vpop.f32.mrf.mxu3  ;;  %v8978_v55 = vld [vmem:[%s16708_s0 + $0x1f0] sm:$0xff] }
 0x3d8   :  { %17080 = vst [vmem:[#allocation119_spill] sm:$0xff] %v10052_v7 }
 0x3d9   :  { %v2365_v50 = vmax.f32 %v2109_v54, 0.0  ;;  %8256 = vmatmul.msk.bf16.gmra.mxu0 %vm930_vm2, %v8977_v30 }
 0x3db   :  { %v3247_v60 = vrot.slane %v2365_v50, 7  ;;  %8485 = vmatmul.msk.f32.gmra.mxu3 %vm2727_vm4, %v2365_v50 }
 0x3dd   :  { %v10048_v47 = vsel %vm2587_vm5, %v3245_v36, %v3247_v60 }
 0x3de   :  { %17079 = vst [vmem:[#allocation118_spill] sm:$0xff] %v10048_v47  ;;  %v1598_v23 = vpop.f32.mrf.mxu0 }
 0x3df   :  { %v2110_v28 = vadd.f32 %v9331_v62, %v1598_v23  ;;  %v10066_v50 = vpop.f32.mrf.mxu3 }
 0x3e0   :  { %17083 = vst [vmem:[#allocation122_spill] sm:$0xff] %v10066_v50 }
 0x3e1   :  { %v2366_v56 = vmax.f32 %v2110_v28, 0.0 }
 0x3e3   :  { %v3249_v10 = vrot.slane %v2366_v56, 7  ;;  %8486 = vmatmul.msk.f32.gmra.mxu3 %vm2727_vm4, %v2366_v56 }
 0x3e5   :  { %v10058_v54 = vsel %vm2587_vm5, %v3247_v60, %v3249_v10 }
 0x3e6   :  { %17081 = vst [vmem:[#allocation120_spill] sm:$0xff] %v10058_v54  ;;  %v1601_v30 = vpop.f32.mrf.mxu0 }
 0x3e7   :  { %v2111_v36 = vadd.f32 %v9347_v5, %v1601_v30  ;;  %v8979_v5 = vld [vmem:[%s16708_s0 + $0x1f8] sm:$0xff] }
 0x3e9   :  { %v2367_v63 = vmax.f32 %v2111_v36, 0.0  ;;  %8257 = vmatmul.msk.bf16.gmra.mxu0 %vm930_vm2, %v8978_v55  ;;  %v10079_v36 = vpop.f32.mrf.mxu3 }
 0x3ea   :  { %17086 = vst [vmem:[#allocation125_spill] sm:$0xff] %v10079_v36 }
 0x3eb   :  { %v3251_v62 = vrot.slane %v2367_v63, 7  ;;  %8487 = vmatmul.msk.f32.gmra.mxu3 %vm2727_vm4, %v2367_v63 }
 0x3ed   :  { %v10064_v56 = vsel %vm2587_vm5, %v3249_v10, %v3251_v62 }
 0x3ee   :  { %17082 = vst [vmem:[#allocation121_spill] sm:$0xff] %v10064_v56  ;;  %v1603_v28 = vpop.f32.mrf.mxu0 }
 0x3ef   :  { %v2112_v23 = vadd.f32 %v9361_v12, %v1603_v28 }
 0x3f1   :  { %v2368_v7 = vmax.f32 %v2112_v23, 0.0  ;;  %v10086_v23 = vpop.f32.mrf.mxu1  ;;  %v10089_v21 = vpop.f32.mrf.mxu3 }
 0x3f2   :  { %17088 = vst [vmem:[#allocation127_spill] sm:$0xff] %v10086_v23 }
 0x3f3   :  { %v3253_v60 = vrot.slane %v2368_v7, 7  ;;  %8488 = vmatmul.msk.f32.gmra.mxu3 %vm2727_vm4, %v2368_v7  ;;  %17089 = vst [vmem:[#allocation128_spill] sm:$0xff] %v10089_v21 }
 0x3f5   :  { %v10076_v55 = vsel %vm2587_vm5, %v3251_v62, %v3253_v60 }
 0x3f6   :  { %17085 = vst [vmem:[#allocation124_spill] sm:$0xff] %v10076_v55  ;;  %v1606_v10 = vpop.f32.mrf.mxu0 }
 0x3f7   :  { %v2113_v30 = vadd.f32 %v9371_v18, %v1606_v10 }
 0x3f9   :  { %v2369_v63 = vmax.f32 %v2113_v30, 0.0  ;;  %8258 = vmatmul.msk.bf16.gmra.mxu0 %vm930_vm2, %v8979_v5  ;;  %v8980_v5 = vld [vmem:[%s16708_s0 + $0x200] sm:$0xff] }
 0x3fb   :  { %v3255_v12 = vrot.slane %v2369_v63, 7  ;;  %8489 = vmatmul.msk.f32.gmra.mxu3 %vm2727_vm4, %v2369_v63 }
 0x3fd   :  { %v10084_v7 = vsel %vm2587_vm5, %v3253_v60, %v3255_v12 }
 0x3fe   :  { %17087 = vst [vmem:[#allocation126_spill] sm:$0xff] %v10084_v7  ;;  %v1608_v28 = vpop.f32.mrf.mxu0 }
 0x3ff   :  { %v2114_v62 = vadd.f32 %v9387_v26, %v1608_v28  ;;  %v10102_v26 = vpop.f32.mrf.mxu1 }
 0x400   :  { %17092 = vst [vmem:[#allocation131_spill] sm:$0xff] %v10102_v26  ;;  %v8988_v26 = vld [vmem:[%s16708_s0 + $0x240] sm:$0xff] }
 0x401   :  { %v2370_v50 = vmax.f32 %v2114_v62, 0.0 }
 0x403   :  { %v3257_v18 = vrot.slane %v2370_v50, 7  ;;  %8349 = vmatmul.msk.f32.gmra.mxu1 %vm2727_vm4, %v2370_v50  ;;  %8490 = vmatmul.msk.f32.gmra.mxu3 %vm2727_vm4, %v2370_v50 }
 0x405   :  { %v10097_v60 = vsel %vm2587_vm5, %v3255_v12, %v3257_v18 }
 0x406   :  { %17090 = vst [vmem:[#allocation129_spill] sm:$0xff] %v10097_v60  ;;  %v1611_v10 = vpop.f32.mrf.mxu0  ;;  %v8989_v60 = vld [vmem:[%s16708_s0 + $0x248] sm:$0xff] }
 0x407   :  { %v10100_v30 = vadd.f32 %v9402_v38, %v1611_v10  ;;  %v10113_v62 = vpop.f32.mrf.mxu1  ;;  %v8981_v38 = vld [vmem:[%s16708_s0 + $0x208] sm:$0xff] }
 0x408   :  { %17094 = vst [vmem:[#allocation133_spill] sm:$0xff] %v10113_v62 }
 0x409   :  { %17091 = vst [vmem:[#allocation130_spill] sm:$0xff] %v10100_v30  ;;  %v16751_v63 = vmax.f32 %v10100_v30, 0.0  ;;  %8259 = vmatmul.msk.bf16.gmra.mxu0 %vm930_vm2, %v8980_v5 }
 0x40b   :  { %8350 = vmatmul.msk.f32.gmra.mxu1 %vm2727_vm4, %v16751_v63 }
 0x40e   :  { %v1613_v50 = vpop.f32.mrf.mxu0 }
 0x40f   :  { %v10110_v28 = vadd.f32 %v9423_v51, %v1613_v50  ;;  %v10129_v51 = vpop.f32.mrf.mxu1 }
 0x410   :  { %17096 = vst [vmem:[#allocation135_spill] sm:$0xff] %v10129_v51  ;;  %v8987_v51 = vld [vmem:[%s16708_s0 + $0x238] sm:$0xff] }
 0x411   :  { %17093 = vst [vmem:[#allocation132_spill] sm:$0xff] %v10110_v28  ;;  %v16750_v12 = vmax.f32 %v10110_v28, 0.0 }
 0x413   :  { %8351 = vmatmul.msk.f32.gmra.mxu1 %vm2727_vm4, %v16750_v12 }
 0x416   :  { %v1616_v18 = vpop.f32.mrf.mxu0 }
 0x417   :  { %v10122_v5 = vadd.f32 %v9437_v57, %v1616_v18  ;;  %v8982_v57 = vld [vmem:[%s16708_s0 + $0x210] sm:$0xff]  ;;  %v10141_v18 = vpop.f32.mrf.mxu1 }
 0x418   :  { %17098 = vst [vmem:[#allocation137_spill] sm:$0xff] %v10141_v18 }
 0x419   :  { %17095 = vst [vmem:[#allocation134_spill] sm:$0xff] %v10122_v5  ;;  %v16752_v10 = vmax.f32 %v10122_v5, 0.0  ;;  %8260 = vmatmul.msk.bf16.gmra.mxu0 %vm930_vm2, %v8981_v38 }
 0x41b   :  { %8352 = vmatmul.msk.f32.gmra.mxu1 %vm2727_vm4, %v16752_v10 }
 0x41e   :  { %v1618_v50 = vpop.f32.mrf.mxu0 }
 0x41f   :  { %v10132_v12 = vadd.f32 %v9453_v1, %v1618_v50 }
 0x421   :  { %17097 = vst [vmem:[#allocation136_spill] sm:$0xff] %v10132_v12  ;;  %v16753_v63 = vmax.f32 %v10132_v12, 0.0 }
 0x423   :  { %8353 = vmatmul.msk.f32.gmra.mxu1 %vm2727_vm4, %v16753_v63  ;;  %v10154_v63 = vpop.f32.mrf.mxu1 }
 0x424   :  { %17101 = vst [vmem:[#allocation140_spill] sm:$0xff] %v10154_v63 }
 0x426   :  { %v1621_v38 = vpop.f32.mrf.mxu0 }
 0x427   :  { %v10144_v10 = vadd.f32 %v9467_v8, %v1621_v38  ;;  %v8983_v8 = vld [vmem:[%s16708_s0 + $0x218] sm:$0xff] }
 0x429   :  { %17099 = vst [vmem:[#allocation138_spill] sm:$0xff] %v10144_v10  ;;  %v16754_v21 = vmax.f32 %v10144_v10, 0.0  ;;  %8261 = vmatmul.msk.bf16.gmra.mxu0 %vm930_vm2, %v8982_v57 }
 0x42b   :  { %8354 = vmatmul.msk.f32.gmra.mxu1 %vm2727_vm4, %v16754_v21 }
 0x42e   :  { %v1623_v1 = vpop.f32.mrf.mxu0 }
 0x42f   :  { %v10152_v50 = vadd.f32 %v9485_v16, %v1623_v1  ;;  %v10167_v16 = vpop.f32.mrf.mxu1 }
 0x430   :  { %17103 = vst [vmem:[#allocation142_spill] sm:$0xff] %v10167_v16  ;;  %v8986_v16 = vld [vmem:[%s16708_s0 + $0x230] sm:$0xff] }
 0x431   :  { %17100 = vst [vmem:[#allocation139_spill] sm:$0xff] %v10152_v50  ;;  %v16755_v36 = vmax.f32 %v10152_v50, 0.0 }
 0x433   :  { %8355 = vmatmul.msk.f32.gmra.mxu1 %vm2727_vm4, %v16755_v36  ;;  %v8984_v36 = vld [vmem:[%s16708_s0 + $0x220] sm:$0xff] }
 0x436   :  { %v1626_v57 = vpop.f32.mrf.mxu0 }
 0x437   :  { %v2121_v38 = vadd.f32 %v9499_v24, %v1626_v57 }
 0x439   :  { %v10164_v21 = vmax.f32 %v2121_v38, 0.0  ;;  %8262 = vmatmul.msk.bf16.gmra.mxu0 %vm930_vm2, %v8983_v8  ;;  %v8985_v8 = vld [vmem:[%s16708_s0 + $0x228] sm:$0xff] }
 0x43b   :  { %17102 = vst [vmem:[#allocation141_spill] sm:$0xff] %v10164_v21  ;;  %8356 = vmatmul.msk.f32.gmra.mxu1 %vm2727_vm4, %v10164_v21 }
 0x43e   :  { %v10171_v1 = vpop.f32.mrf.mxu0 }
 0x43f   :  { %17104 = vst [vmem:[#allocation143_spill] sm:$0xff] %v10171_v1 }
 0x446   :  { %v10176_v63 = vpop.f32.mrf.mxu0 }
 0x447   :  { %17105 = vst [vmem:[#allocation144_spill] sm:$0xff] %v10176_v63 }
 0x449   :  { %8263 = vmatmul.msk.bf16.gmra.mxu0 %vm930_vm2, %v8984_v36 }
 0x44e   :  { %v10179_v24 = vpop.f32.mrf.mxu0 }
 0x44f   :  { %17106 = vst [vmem:[#allocation145_spill] sm:$0xff] %v10179_v24 }
 0x456   :  { %v10184_v57 = vpop.f32.mrf.mxu0 }
 0x457   :  { %17107 = vst [vmem:[#allocation146_spill] sm:$0xff] %v10184_v57  ;;  %v10339_v57 = vld [vmem:[%s16710_s2 + $0x78] sm:$0xff] }
 0x459   :  { %8264 = vmatmul.msk.bf16.gmra.mxu0 %vm930_vm2, %v8985_v8 }
 0x45e   :  { %v10187_v38 = vpop.f32.mrf.mxu0 }
 0x45f   :  { %17108 = vst [vmem:[#allocation147_spill] sm:$0xff] %v10187_v38 }
 0x466   :  { %v10192_v18 = vpop.f32.mrf.mxu0 }
 0x467   :  { %17109 = vst [vmem:[#allocation148_spill] sm:$0xff] %v10192_v18 }
 0x469   :  { %8265 = vmatmul.msk.bf16.gmra.mxu0 %vm930_vm2, %v8986_v16 }
 0x46e   :  { %v10195_v36 = vpop.f32.mrf.mxu0 }
 0x46f   :  { %17110 = vst [vmem:[#allocation149_spill] sm:$0xff] %v10195_v36 }
 0x476   :  { %v10200_v62 = vpop.f32.mrf.mxu0 }
 0x477   :  { %17111 = vst [vmem:[#allocation150_spill] sm:$0xff] %v10200_v62 }
 0x479   :  { %8266 = vmatmul.msk.bf16.gmra.mxu0 %vm930_vm2, %v8987_v51 }
 0x47e   :  { %v10203_v8 = vpop.f32.mrf.mxu0 }
 0x47f   :  { %17112 = vst [vmem:[#allocation151_spill] sm:$0xff] %v10203_v8  ;;  %v8990_v8 = vld [vmem:[%s16708_s0 + $0x250] sm:$0xff] }
 0x486   :  { %v10208_v23 = vpop.f32.mrf.mxu0 }
 0x487   :  { %17113 = vst [vmem:[#allocation152_spill] sm:$0xff] %v10208_v23 }
 0x489   :  { %8267 = vmatmul.msk.bf16.gmra.mxu0 %vm930_vm2, %v8988_v26 }
 0x48e   :  { %v10211_v16 = vpop.f32.mrf.mxu0 }
 0x48f   :  { %17114 = vst [vmem:[#allocation153_spill] sm:$0xff] %v10211_v16  ;;  %v8991_v16 = vld [vmem:[%s16708_s0 + $0x258] sm:$0xff] }
 0x496   :  { %v10216_v7 = vpop.f32.mrf.mxu0 }
 0x497   :  { %17115 = vst [vmem:[#allocation154_spill] sm:$0xff] %v10216_v7 }
 0x499   :  { %8268 = vmatmul.msk.bf16.gmra.mxu0 %vm930_vm2, %v8989_v60  ;;  %v10235_v60 = vpop.f32.mrf.mxu3 }
 0x49a   :  { %17120 = vst [vmem:[#allocation159_spill] sm:$0xff] %v10235_v60 }
 0x49e   :  { %v10219_v51 = vpop.f32.mrf.mxu0 }
 0x49f   :  { %17116 = vst [vmem:[#allocation155_spill] sm:$0xff] %v10219_v51 }
 0x4a6   :  { %v10224_v55 = vpop.f32.mrf.mxu0 }
 0x4a7   :  { %17117 = vst [vmem:[#allocation156_spill] sm:$0xff] %v10224_v55  ;;  %v8992_v55 = vld [vmem:[%s16708_s0 + $0x260] sm:$0xff] }
 0x4a9   :  { %8269 = vmatmul.msk.bf16.gmra.mxu0 %vm930_vm2, %v8990_v8  ;;  %v10242_v8 = vpop.f32.mrf.mxu3 }
 0x4aa   :  { %17122 = vst [vmem:[#allocation161_spill] sm:$0xff] %v10242_v8 }
 0x4ae   :  { %v10227_v26 = vpop.f32.mrf.mxu0 }
 0x4af   :  { %17118 = vst [vmem:[#allocation157_spill] sm:$0xff] %v10227_v26 }
 0x4b6   :  { %v10232_v23 = vpop.f32.mrf.mxu0 }
 0x4b7   :  { %17119 = vst [vmem:[#allocation158_spill] sm:$0xff] %v10232_v23 }
 0x4b9   :  { %8270 = vmatmul.msk.bf16.gmra.mxu0 %vm930_vm2, %v8991_v16  ;;  %v10250_v16 = vld [vmem:[%s16710_s2 + $0x48] sm:$0xff] }
 0x4be   :  { %v10237_v51 = vpop.f32.mrf.mxu0 }
 0x4bf   :  { %17121 = vst [vmem:[#allocation160_spill] sm:$0xff] %v10237_v51  ;;  %v10253_v51 = vpop.f32.mrf.mxu3 }
 0x4c0   :  { %17123 = vst [vmem:[#allocation162_spill] sm:$0xff] %v10253_v51 }
 0x4c6   :  { %v1671_v7 = vpop.f32.mrf.mxu0 }
 0x4c7   :  { %v2139_v26 = vadd.f32 %v9586_v0, %v1671_v7  ;;  %v8993_v0 = vld [vmem:[%s16708_s0 + $0x268] sm:$0xff] }
 0x4c9   :  { %v2395_v56 = vmax.f32 %v2139_v26, 0.0  ;;  %8271 = vmatmul.msk.bf16.gmra.mxu0 %vm930_vm2, %v8992_v55 }
 0x4cb   :  { %8491 = vmatmul.msk.f32.gmra.mxu3 %vm2727_vm4, %v2395_v56  ;;  %v10255_v47 = vrot.slane %v2395_v56, 7 }
 0x4cd   :  { %17124 = vst [vmem:[#allocation163_spill] sm:$0xff] %v10255_v47 }
 0x4ce   :  { %v1673_v23 = vpop.f32.mrf.mxu0 }
 0x4cf   :  { %v2140_v60 = vadd.f32 %v10250_v16, %v1673_v23  ;;  %v10268_v23 = vld [vmem:[%s16710_s2 + $0x50] sm:$0xff] }
 0x4d1   :  { %v2396_v54 = vmax.f32 %v2140_v60, 0.0 }
 0x4d3   :  { %v3262_v8 = vrot.slane %v2396_v54, 7  ;;  %8492 = vmatmul.msk.f32.gmra.mxu3 %vm2727_vm4, %v2396_v54  ;;  %v10272_v54 = vpop.f32.mrf.mxu3 }
 0x4d4   :  { %17126 = vst [vmem:[#allocation165_spill] sm:$0xff] %v10272_v54 }
 0x4d5   :  { %v10263_v55 = vsel %vm2587_vm5, %v10255_v47, %v3262_v8  ;;  %v10281_v47 = vld [vmem:[%s16710_s2 + $0x58] sm:$0xff] }
 0x4d6   :  { %17125 = vst [vmem:[#allocation164_spill] sm:$0xff] %v10263_v55  ;;  %v1676_v7 = vpop.f32.mrf.mxu0 }
 0x4d7   :  { %v2141_v56 = vadd.f32 %v10268_v23, %v1676_v7 }
 0x4d9   :  { %v2397_v26 = vmax.f32 %v2141_v56, 0.0  ;;  %8272 = vmatmul.msk.bf16.gmra.mxu0 %vm930_vm2, %v8993_v0 }
 0x4db   :  { %v3264_v60 = vrot.slane %v2397_v26, 7  ;;  %8493 = vmatmul.msk.f32.gmra.mxu3 %vm2727_vm4, %v2397_v26  ;;  %v10285_v0 = vpop.f32.mrf.mxu3  ;;  %v8994_v26 = vld [vmem:[%s16708_s0 + $0x270] sm:$0xff] }
 0x4dc   :  { %17128 = vst [vmem:[#allocation167_spill] sm:$0xff] %v10285_v0 }
 0x4dd   :  { %v10276_v51 = vsel %vm2587_vm5, %v3262_v8, %v3264_v60 }
 0x4de   :  { %17127 = vst [vmem:[#allocation166_spill] sm:$0xff] %v10276_v51  ;;  %v1678_v55 = vpop.f32.mrf.mxu0  ;;  %v10296_v51 = vld [vmem:[%s16710_s2 + $0x60] sm:$0xff] }
 0x4df   :  { %v2142_v62 = vadd.f32 %v10281_v47, %v1678_v55 }
 0x4e1   :  { %v2398_v7 = vmax.f32 %v2142_v62, 0.0 }
 0x4e3   :  { %v3266_v56 = vrot.slane %v2398_v7, 7  ;;  %8494 = vmatmul.msk.f32.gmra.mxu3 %vm2727_vm4, %v2398_v7 }
 0x4e5   :  { %v10291_v8 = vsel %vm2587_vm5, %v3264_v60, %v3266_v56  ;;  %v10304_v60 = vpop.f32.mrf.mxu3 }
 0x4e6   :  { %17129 = vst [vmem:[#allocation168_spill] sm:$0xff] %v10291_v8  ;;  %v1681_v54 = vpop.f32.mrf.mxu0  ;;  %v10309_v8 = vld [vmem:[%s16710_s2 + $0x68] sm:$0xff] }
 0x4e7   :  { %v2143_v62 = vadd.f32 %v10296_v51, %v1681_v54  ;;  %17131 = vst [vmem:[#allocation170_spill] sm:$0xff] %v10304_v60 }
 0x4e9   :  { %v2399_v55 = vmax.f32 %v2143_v62, 0.0  ;;  %8273 = vmatmul.msk.bf16.gmra.mxu0 %vm930_vm2, %v8994_v26  ;;  %v10313_v26 = vpop.f32.mrf.mxu1 }
 0x4ea   :  { %17132 = vst [vmem:[#allocation171_spill] sm:$0xff] %v10313_v26 }
 0x4eb   :  { %v3268_v7 = vrot.slane %v2399_v55, 7  ;;  %8495 = vmatmul.msk.f32.gmra.mxu3 %vm2727_vm4, %v2399_v55 }
 0x4ed   :  { %v10302_v0 = vsel %vm2587_vm5, %v3266_v56, %v3268_v7  ;;  %v8995_v56 = vld [vmem:[%s16708_s0 + $0x278] sm:$0xff] }
 0x4ee   :  { %17130 = vst [vmem:[#allocation169_spill] sm:$0xff] %v10302_v0  ;;  %v1683_v36 = vpop.f32.mrf.mxu0  ;;  %v10324_v0 = vld [vmem:[%s16710_s2 + $0x70] sm:$0xff] }
 0x4ef   :  { %v2144_v18 = vadd.f32 %v10309_v8, %v1683_v36  ;;  %v10327_v36 = vpop.f32.mrf.mxu3 }
 0x4f0   :  { %17134 = vst [vmem:[#allocation173_spill] sm:$0xff] %v10327_v36 }
 0x4f1   :  { %v2400_v54 = vmax.f32 %v2144_v18, 0.0 }
 0x4f3   :  { %v3270_v62 = vrot.slane %v2400_v54, 7  ;;  %8496 = vmatmul.msk.f32.gmra.mxu3 %vm2727_vm4, %v2400_v54 }
 0x4f5   :  { %v10319_v55 = vsel %vm2587_vm5, %v3268_v7, %v3270_v62 }
 0x4f6   :  { %17133 = vst [vmem:[#allocation172_spill] sm:$0xff] %v10319_v55  ;;  %v1686_v60 = vpop.f32.mrf.mxu0  ;;  %v10334_v55 = vpop.f32.mrf.mxu1 }
 0x4f7   :  { %v2145_v18 = vadd.f32 %v10324_v0, %v1686_v60  ;;  %17136 = vst [vmem:[#allocation175_spill] sm:$0xff] %v10334_v55 }
 0x4f9   :  { %v2401_v54 = vmax.f32 %v2145_v18, 0.0  ;;  %8274 = vmatmul.msk.bf16.gmra.mxu0 %vm930_vm2, %v8995_v56  ;;  %v10342_v18 = vpop.f32.mrf.mxu3 }
 0x4fa   :  { %17137 = vst [vmem:[#allocation176_spill] sm:$0xff] %v10342_v18 }
 0x4fb   :  { %v3272_v26 = vrot.slane %v2401_v54, 7  ;;  %8497 = vmatmul.msk.f32.gmra.mxu3 %vm2727_vm4, %v2401_v54 }
 0x4fd   :  { %v10332_v38 = vsel %vm2587_vm5, %v3270_v62, %v3272_v26  ;;  %v8996_v62 = vld [vmem:[%s16708_s0 + $0x280] sm:$0xff] }
 0x4fe   :  { %17135 = vst [vmem:[#allocation174_spill] sm:$0xff] %v10332_v38  ;;  %v1688_v7 = vpop.f32.mrf.mxu0  ;;  %v10360_v18 = vpop.f32.mrf.mxu1  ;;  %v10387_v38 = vld [vmem:[%s16710_s2 + $0x90] sm:$0xff] }
 0x4ff   :  { %v2146_v60 = vadd.f32 %v10339_v57, %v1688_v7  ;;  %v10355_v7 = vld [vmem:[%s16710_s2 + $0x80] sm:$0xff]  ;;  %17140 = vst [vmem:[#allocation179_spill] sm:$0xff] %v10360_v18 }
 0x501   :  { %v2402_v36 = vmax.f32 %v2146_v60, 0.0 }
 0x503   :  { %v3274_v56 = vrot.slane %v2402_v36, 7  ;;  %8357 = vmatmul.msk.f32.gmra.mxu1 %vm2727_vm4, %v2402_v36  ;;  %8498 = vmatmul.msk.f32.gmra.mxu3 %vm2727_vm4, %v2402_v36 }
 0x505   :  { %v10350_v54 = vsel %vm2587_vm5, %v3272_v26, %v3274_v56  ;;  %v10370_v56 = vld [vmem:[%s16710_s2 + $0x88] sm:$0xff] }
 0x506   :  { %17138 = vst [vmem:[#allocation177_spill] sm:$0xff] %v10350_v54  ;;  %v1691_v55 = vpop.f32.mrf.mxu0  ;;  %v10376_v18 = vpop.f32.mrf.mxu1 }
 0x507   :  { %v10358_v60 = vadd.f32 %v10355_v7, %v1691_v55  ;;  %17142 = vst [vmem:[#allocation181_spill] sm:$0xff] %v10376_v18 }
 0x509   :  { %17139 = vst [vmem:[#allocation178_spill] sm:$0xff] %v10358_v60  ;;  %v16757_v36 = vmax.f32 %v10358_v60, 0.0  ;;  %8275 = vmatmul.msk.bf16.gmra.mxu0 %vm930_vm2, %v8996_v62  ;;  %v8997_v62 = vld [vmem:[%s16708_s0 + $0x288] sm:$0xff] }
 0x50b   :  { %8358 = vmatmul.msk.f32.gmra.mxu1 %vm2727_vm4, %v16757_v36 }
 0x50e   :  { %v1693_v26 = vpop.f32.mrf.mxu0 }
 0x50f   :  { %v10373_v54 = vadd.f32 %v10370_v56, %v1693_v26 }
 0x511   :  { %17141 = vst [vmem:[#allocation180_spill] sm:$0xff] %v10373_v54  ;;  %v16759_v55 = vmax.f32 %v10373_v54, 0.0  ;;  %v10402_v54 = vld [vmem:[%s16710_s2 + $0x98] sm:$0xff] }
 0x513   :  { %8359 = vmatmul.msk.f32.gmra.mxu1 %vm2727_vm4, %v16759_v55  ;;  %v10397_v55 = vpop.f32.mrf.mxu1 }
 0x514   :  { %17144 = vst [vmem:[#allocation183_spill] sm:$0xff] %v10397_v55 }
 0x516   :  { %v1696_v36 = vpop.f32.mrf.mxu0 }
 0x517   :  { %v10390_v26 = vadd.f32 %v10387_v38, %v1696_v36 }
 0x519   :  { %17143 = vst [vmem:[#allocation182_spill] sm:$0xff] %v10390_v26  ;;  %v16762_v60 = vmax.f32 %v10390_v26, 0.0  ;;  %8276 = vmatmul.msk.bf16.gmra.mxu0 %vm930_vm2, %v8997_v62  ;;  %v8998_v62 = vld [vmem:[%s16708_s0 + $0x290] sm:$0xff]  ;;  %v10419_v26 = vld [vmem:[%s16710_s2 + $0xa0] sm:$0xff] }
 0x51b   :  { %8360 = vmatmul.msk.f32.gmra.mxu1 %vm2727_vm4, %v16762_v60  ;;  %v10414_v55 = vpop.f32.mrf.mxu1 }
 0x51c   :  { %17146 = vst [vmem:[#allocation185_spill] sm:$0xff] %v10414_v55  ;;  %v10432_v55 = vld [vmem:[%s16710_s2 + $0xa8] sm:$0xff] }
 0x51e   :  { %v1698_v18 = vpop.f32.mrf.mxu0 }
 0x51f   :  { %v10405_v50 = vadd.f32 %v10402_v54, %v1698_v18 }
 0x521   :  { %17145 = vst [vmem:[#allocation184_spill] sm:$0xff] %v10405_v50  ;;  %v16764_v36 = vmax.f32 %v10405_v50, 0.0 }
 0x523   :  { %8361 = vmatmul.msk.f32.gmra.mxu1 %vm2727_vm4, %v16764_v36  ;;  %v10437_v10 = vpop.f32.mrf.mxu1 }
 0x524   :  { %17149 = vst [vmem:[#allocation188_spill] sm:$0xff] %v10437_v10 }
 0x526   :  { %v1701_v60 = vpop.f32.mrf.mxu0 }
 0x527   :  { %v10422_v18 = vadd.f32 %v10419_v26, %v1701_v60 }
 0x529   :  { %17147 = vst [vmem:[#allocation186_spill] sm:$0xff] %v10422_v18  ;;  %v16767_v24 = vmax.f32 %v10422_v18, 0.0  ;;  %8277 = vmatmul.msk.bf16.gmra.mxu0 %vm930_vm2, %v8998_v62  ;;  %v8999_v62 = vld [vmem:[%s16708_s0 + $0x298] sm:$0xff]  ;;  %v10449_v18 = vld [vmem:[%s16710_s2 + $0xb0] sm:$0xff] }
 0x52b   :  { %8362 = vmatmul.msk.f32.gmra.mxu1 %vm2727_vm4, %v16767_v24  ;;  %v10455_v10 = vpop.f32.mrf.mxu1 }
 0x52c   :  { %17151 = vst [vmem:[#allocation190_spill] sm:$0xff] %v10455_v10 }
 0x52e   :  { %v1703_v36 = vpop.f32.mrf.mxu0 }
 0x52f   :  { %v10435_v50 = vadd.f32 %v10432_v55, %v1703_v36 }
 0x531   :  { %17148 = vst [vmem:[#allocation187_spill] sm:$0xff] %v10435_v50  ;;  %v16771_v60 = vmax.f32 %v10435_v50, 0.0  ;;  %v9000_v50 = vld [vmem:[%s16708_s0 + $0x2a0] sm:$0xff] }
 0x533   :  { %8363 = vmatmul.msk.f32.gmra.mxu1 %vm2727_vm4, %v16771_v60 }
 0x536   :  { %v1706_v24 = vpop.f32.mrf.mxu0 }
 0x537   :  { %v2153_v36 = vadd.f32 %v10449_v18, %v1706_v24 }
 0x539   :  { %v10452_v21 = vmax.f32 %v2153_v36, 0.0  ;;  %8278 = vmatmul.msk.bf16.gmra.mxu0 %vm930_vm2, %v8999_v62  ;;  %v9001_v62 = vld [vmem:[%s16708_s0 + $0x2a8] sm:$0xff] }
 0x53b   :  { %17150 = vst [vmem:[#allocation189_spill] sm:$0xff] %v10452_v21  ;;  %8364 = vmatmul.msk.f32.gmra.mxu1 %vm2727_vm4, %v10452_v21  ;;  %v9002_v21 = vld [vmem:[%s16708_s0 + $0x2b0] sm:$0xff] }
 0x53e   :  { %v10459_v60 = vpop.f32.mrf.mxu0 }
 0x53f   :  { %17152 = vst [vmem:[#allocation191_spill] sm:$0xff] %v10459_v60 }
 0x546   :  { %v10464_v63 = vpop.f32.mrf.mxu0 }
 0x547   :  { %17153 = vst [vmem:[#allocation192_spill] sm:$0xff] %v10464_v63 }
 0x549   :  { %8279 = vmatmul.msk.bf16.gmra.mxu0 %vm930_vm2, %v9000_v50 }
 0x54e   :  { %v10467_v24 = vpop.f32.mrf.mxu0 }
 0x54f   :  { %17154 = vst [vmem:[#allocation193_spill] sm:$0xff] %v10467_v24  ;;  %v9003_v24 = vld [vmem:[%s16708_s0 + $0x2b8] sm:$0xff] }
 0x556   :  { %v10472_v36 = vpop.f32.mrf.mxu0 }
 0x557   :  { %17155 = vst [vmem:[#allocation194_spill] sm:$0xff] %v10472_v36 }
 0x559   :  { %8280 = vmatmul.msk.bf16.gmra.mxu0 %vm930_vm2, %v9001_v62 }
 0x55e   :  { %v10475_v10 = vpop.f32.mrf.mxu0 }
 0x55f   :  { %17156 = vst [vmem:[#allocation195_spill] sm:$0xff] %v10475_v10  ;;  %v9004_v10 = vld [vmem:[%s16708_s0 + $0x2c0] sm:$0xff] }
 0x566   :  { %v10480_v60 = vpop.f32.mrf.mxu0 }
 0x567   :  { %17157 = vst [vmem:[#allocation196_spill] sm:$0xff] %v10480_v60 }
 0x569   :  { %8281 = vmatmul.msk.bf16.gmra.mxu0 %vm930_vm2, %v9002_v21 }
 0x56e   :  { %v10483_v50 = vpop.f32.mrf.mxu0 }
 0x56f   :  { %17158 = vst [vmem:[#allocation197_spill] sm:$0xff] %v10483_v50  ;;  %v9005_v50 = vld [vmem:[%s16708_s0 + $0x2c8] sm:$0xff] }
 0x576   :  { %v10488_v63 = vpop.f32.mrf.mxu0 }
 0x577   :  { %17159 = vst [vmem:[#allocation198_spill] sm:$0xff] %v10488_v63 }
 0x579   :  { %8282 = vmatmul.msk.bf16.gmra.mxu0 %vm930_vm2, %v9003_v24 }
 0x57e   :  { %v10491_v62 = vpop.f32.mrf.mxu0 }
 0x57f   :  { %17160 = vst [vmem:[#allocation199_spill] sm:$0xff] %v10491_v62  ;;  %v9006_v62 = vld [vmem:[%s16708_s0 + $0x2d0] sm:$0xff] }
 0x586   :  { %v10496_v36 = vpop.f32.mrf.mxu0 }
 0x587   :  { %17161 = vst [vmem:[#allocation200_spill] sm:$0xff] %v10496_v36 }
 0x589   :  { %8283 = vmatmul.msk.bf16.gmra.mxu0 %vm930_vm2, %v9004_v10 }
 0x58e   :  { %v10499_v21 = vpop.f32.mrf.mxu0 }
 0x58f   :  { %17162 = vst [vmem:[#allocation201_spill] sm:$0xff] %v10499_v21  ;;  %v9007_v21 = vld [vmem:[%s16708_s0 + $0x2d8] sm:$0xff] }
 0x596   :  { %v10504_v60 = vpop.f32.mrf.mxu0 }
 0x597   :  { %17163 = vst [vmem:[#allocation202_spill] sm:$0xff] %v10504_v60 }
 0x599   :  { %8284 = vmatmul.msk.bf16.gmra.mxu0 %vm930_vm2, %v9005_v50  ;;  %v10523_v50 = vpop.f32.mrf.mxu3 }
 0x59a   :  { %17168 = vst [vmem:[#allocation207_spill] sm:$0xff] %v10523_v50 }
 0x59e   :  { %v10507_v24 = vpop.f32.mrf.mxu0 }
 0x59f   :  { %17164 = vst [vmem:[#allocation203_spill] sm:$0xff] %v10507_v24 }
 0x5a6   :  { %v10512_v63 = vpop.f32.mrf.mxu0 }
 0x5a7   :  { %17165 = vst [vmem:[#allocation204_spill] sm:$0xff] %v10512_v63  ;;  %v9008_v63 = vld [vmem:[%s16708_s0 + $0x2e0] sm:$0xff] }
 0x5a9   :  { %8285 = vmatmul.msk.bf16.gmra.mxu0 %vm930_vm2, %v9006_v62  ;;  %v10530_v62 = vpop.f32.mrf.mxu3 }
 0x5aa   :  { %17170 = vst [vmem:[#allocation209_spill] sm:$0xff] %v10530_v62 }
 0x5ae   :  { %v10515_v10 = vpop.f32.mrf.mxu0 }
 0x5af   :  { %17166 = vst [vmem:[#allocation205_spill] sm:$0xff] %v10515_v10  ;;  %v10535_v10 = vld [vmem:[%s16710_s2 + $0x40] sm:$0xff] }
 0x5b6   :  { %v10520_v36 = vpop.f32.mrf.mxu0 }
 0x5b7   :  { %17167 = vst [vmem:[#allocation206_spill] sm:$0xff] %v10520_v36 }
 0x5b9   :  { %8286 = vmatmul.msk.bf16.gmra.mxu0 %vm930_vm2, %v9007_v21 }
 0x5be   :  { %v10525_v24 = vpop.f32.mrf.mxu0 }
 0x5bf   :  { %17169 = vst [vmem:[#allocation208_spill] sm:$0xff] %v10525_v24  ;;  %v10541_v24 = vpop.f32.mrf.mxu3 }
 0x5c0   :  { %17171 = vst [vmem:[#allocation210_spill] sm:$0xff] %v10541_v24 }
 0x5c6   :  { %v1751_v60 = vpop.f32.mrf.mxu0 }
 0x5c7   :  { %v2171_v36 = vadd.f32 %v10535_v10, %v1751_v60  ;;  %v9009_v60 = vld [vmem:[%s16708_s0 + $0x2e8] sm:$0xff] }
 0x5c9   :  { %v2427_v12 = vmax.f32 %v2171_v36, 0.0  ;;  %8287 = vmatmul.msk.bf16.gmra.mxu0 %vm930_vm2, %v9008_v63 }
 0x5cb   :  { %8499 = vmatmul.msk.f32.gmra.mxu3 %vm2727_vm4, %v2427_v12  ;;  %v10543_v5 = vrot.slane %v2427_v12, 7 }
 0x5cd   :  { %17172 = vst [vmem:[#allocation211_spill] sm:$0xff] %v10543_v5 }
 0x5ce   :  { %v1753_v21 = vpop.f32.mrf.mxu0 }
 0x5cf   :  { %v2172_v50 = vadd.f32 %v10250_v16, %v1753_v21 }
 0x5d1   :  { %v2428_v1 = vmax.f32 %v2172_v50, 0.0  ;;  %v10555_v50 = vpop.f32.mrf.mxu3 }
 0x5d2   :  { %17174 = vst [vmem:[#allocation213_spill] sm:$0xff] %v10555_v50 }
 0x5d3   :  { %v3279_v62 = vrot.slane %v2428_v1, 7  ;;  %8500 = vmatmul.msk.f32.gmra.mxu3 %vm2727_vm4, %v2428_v1 }
 0x5d5   :  { %v10551_v63 = vsel %vm2587_vm5, %v10543_v5, %v3279_v62 }
 0x5d6   :  { %17173 = vst [vmem:[#allocation212_spill] sm:$0xff] %v10551_v63  ;;  %v1756_v36 = vpop.f32.mrf.mxu0 }
 0x5d7   :  { %v2173_v28 = vadd.f32 %v10268_v23, %v1756_v36 }
 0x5d9   :  { %v2429_v21 = vmax.f32 %v2173_v28, 0.0  ;;  %8288 = vmatmul.msk.bf16.gmra.mxu0 %vm930_vm2, %v9009_v60  ;;  %v10563_v63 = vpop.f32.mrf.mxu3  ;;  %v9010_v28 = vld [vmem:[%s16708_s0 + $0x2f0] sm:$0xff] }
 0x5da   :  { %17176 = vst [vmem:[#allocation215_spill] sm:$0xff] %v10563_v63 }
 0x5db   :  { %v3281_v12 = vrot.slane %v2429_v21, 7  ;;  %8501 = vmatmul.msk.f32.gmra.mxu3 %vm2727_vm4, %v2429_v21 }
 0x5dd   :  { %v10559_v1 = vsel %vm2587_vm5, %v3279_v62, %v3281_v12 }
 0x5de   :  { %17175 = vst [vmem:[#allocation214_spill] sm:$0xff] %v10559_v1  ;;  %v1758_v24 = vpop.f32.mrf.mxu0 }
 0x5df   :  { %v2174_v30 = vadd.f32 %v10281_v47, %v1758_v24 }
 0x5e1   :  { %v2430_v40 = vmax.f32 %v2174_v30, 0.0  ;;  %v10577_v63 = vpop.f32.mrf.mxu3 }
 0x5e2   :  { %17179 = vst [vmem:[#allocation218_spill] sm:$0xff] %v10577_v63 }
 0x5e3   :  { %v3283_v5 = vrot.slane %v2430_v40, 7  ;;  %8502 = vmatmul.msk.f32.gmra.mxu3 %vm2727_vm4, %v2430_v40 }
 0x5e5   :  { %v10569_v60 = vsel %vm2587_vm5, %v3281_v12, %v3283_v5 }
 0x5e6   :  { %17177 = vst [vmem:[#allocation216_spill] sm:$0xff] %v10569_v60  ;;  %v1761_v36 = vpop.f32.mrf.mxu0  ;;  %v10581_v60 = vpop.f32.mrf.mxu1 }
 0x5e7   :  { %v2175_v62 = vadd.f32 %v10296_v51, %v1761_v36  ;;  %17180 = vst [vmem:[#allocation219_spill] sm:$0xff] %v10581_v60 }
 0x5e9   :  { %v2431_v21 = vmax.f32 %v2175_v62, 0.0  ;;  %8289 = vmatmul.msk.bf16.gmra.mxu0 %vm930_vm2, %v9010_v28  ;;  %v9011_v28 = vld [vmem:[%s16708_s0 + $0x2f8] sm:$0xff] }
 0x5eb   :  { %v3285_v24 = vrot.slane %v2431_v21, 7  ;;  %8503 = vmatmul.msk.f32.gmra.mxu3 %vm2727_vm4, %v2431_v21  ;;  %v10590_v21 = vpop.f32.mrf.mxu3 }
 0x5ec   :  { %17182 = vst [vmem:[#allocation221_spill] sm:$0xff] %v10590_v21 }
 0x5ed   :  { %v10575_v40 = vsel %vm2587_vm5, %v3283_v5, %v3285_v24 }
 0x5ee   :  { %17178 = vst [vmem:[#allocation217_spill] sm:$0xff] %v10575_v40  ;;  %v1763_v30 = vpop.f32.mrf.mxu0  ;;  %v10597_v60 = vpop.f32.mrf.mxu1 }
 0x5ef   :  { %v2176_v50 = vadd.f32 %v10309_v8, %v1763_v30  ;;  %17184 = vst [vmem:[#allocation223_spill] sm:$0xff] %v10597_v60 }
 0x5f1   :  { %v2432_v1 = vmax.f32 %v2176_v50, 0.0 }
 0x5f3   :  { %v3287_v12 = vrot.slane %v2432_v1, 7  ;;  %8504 = vmatmul.msk.f32.gmra.mxu3 %vm2727_vm4, %v2432_v1  ;;  %v10600_v40 = vpop.f32.mrf.mxu3 }
 0x5f4   :  { %17185 = vst [vmem:[#allocation224_spill] sm:$0xff] %v10600_v40 }
 0x5f5   :  { %v10587_v36 = vsel %vm2587_vm5, %v3285_v24, %v3287_v12 }
 0x5f6   :  { %17181 = vst [vmem:[#allocation220_spill] sm:$0xff] %v10587_v36  ;;  %v1766_v5 = vpop.f32.mrf.mxu0 }
 0x5f7   :  { %v2177_v62 = vadd.f32 %v10324_v0, %v1766_v5 }
 0x5f9   :  { %v2433_v63 = vmax.f32 %v2177_v62, 0.0  ;;  %8290 = vmatmul.msk.bf16.gmra.mxu0 %vm930_vm2, %v9011_v28 }
 0x5fb   :  { %v3289_v50 = vrot.slane %v2433_v63, 7  ;;  %8505 = vmatmul.msk.f32.gmra.mxu3 %vm2727_vm4, %v2433_v63  ;;  %v9012_v63 = vld [vmem:[%s16708_s0 + $0x300] sm:$0xff] }
 0x5fd   :  { %v10595_v1 = vsel %vm2587_vm5, %v3287_v12, %v3289_v50 }
 0x5fe   :  { %17183 = vst [vmem:[#allocation222_spill] sm:$0xff] %v10595_v1  ;;  %v1768_v30 = vpop.f32.mrf.mxu0 }
 0x5ff   :  { %v2178_v24 = vadd.f32 %v10339_v57, %v1768_v30  ;;  %v10613_v30 = vpop.f32.mrf.mxu1 }
 0x600   :  { %17188 = vst [vmem:[#allocation227_spill] sm:$0xff] %v10613_v30 }
 0x601   :  { %v2434_v36 = vmax.f32 %v2178_v24, 0.0 }
 0x603   :  { %v3291_v5 = vrot.slane %v2434_v36, 7  ;;  %8365 = vmatmul.msk.f32.gmra.mxu1 %vm2727_vm4, %v2434_v36  ;;  %8506 = vmatmul.msk.f32.gmra.mxu3 %vm2727_vm4, %v2434_v36 }
 0x605   :  { %v10608_v12 = vsel %vm2587_vm5, %v3289_v50, %v3291_v5 }
 0x606   :  { %17186 = vst [vmem:[#allocation225_spill] sm:$0xff] %v10608_v12  ;;  %v1771_v28 = vpop.f32.mrf.mxu0 }
 0x607   :  { %v10611_v62 = vadd.f32 %v10355_v7, %v1771_v28  ;;  %v10624_v5 = vpop.f32.mrf.mxu1 }
 0x608   :  { %17190 = vst [vmem:[#allocation229_spill] sm:$0xff] %v10624_v5 }
 0x609   :  { %17187 = vst [vmem:[#allocation226_spill] sm:$0xff] %v10611_v62  ;;  %v16780_v24 = vmax.f32 %v10611_v62, 0.0  ;;  %8291 = vmatmul.msk.bf16.gmra.mxu0 %vm930_vm2, %v9012_v63  ;;  %v9013_v63 = vld [vmem:[%s16708_s0 + $0x308] sm:$0xff] }
 0x60b   :  { %8366 = vmatmul.msk.f32.gmra.mxu1 %vm2727_vm4, %v16780_v24 }
 0x60e   :  { %v1773_v36 = vpop.f32.mrf.mxu0 }
 0x60f   :  { %v10621_v40 = vadd.f32 %v10370_v56, %v1773_v36  ;;  %v10640_v36 = vpop.f32.mrf.mxu1 }
 0x610   :  { %17192 = vst [vmem:[#allocation231_spill] sm:$0xff] %v10640_v36 }
 0x611   :  { %17189 = vst [vmem:[#allocation228_spill] sm:$0xff] %v10621_v40  ;;  %v16781_v50 = vmax.f32 %v10621_v40, 0.0 }
 0x613   :  { %8367 = vmatmul.msk.f32.gmra.mxu1 %vm2727_vm4, %v16781_v50 }
 0x616   :  { %v1776_v28 = vpop.f32.mrf.mxu0 }
 0x617   :  { %v10633_v21 = vadd.f32 %v10387_v38, %v1776_v28  ;;  %v10652_v60 = vpop.f32.mrf.mxu1 }
 0x618   :  { %17194 = vst [vmem:[#allocation233_spill] sm:$0xff] %v10652_v60 }
 0x619   :  { %17191 = vst [vmem:[#allocation230_spill] sm:$0xff] %v10633_v21  ;;  %v16782_v24 = vmax.f32 %v10633_v21, 0.0  ;;  %8292 = vmatmul.msk.bf16.gmra.mxu0 %vm930_vm2, %v9013_v63  ;;  %v9014_v63 = vld [vmem:[%s16708_s0 + $0x310] sm:$0xff] }
 0x61b   :  { %8368 = vmatmul.msk.f32.gmra.mxu1 %vm2727_vm4, %v16782_v24 }
 0x61e   :  { %v1778_v5 = vpop.f32.mrf.mxu0 }
 0x61f   :  { %v10643_v50 = vadd.f32 %v10402_v54, %v1778_v5  ;;  %v10665_v12 = vpop.f32.mrf.mxu1 }
 0x620   :  { %17197 = vst [vmem:[#allocation236_spill] sm:$0xff] %v10665_v12 }
 0x621   :  { %17193 = vst [vmem:[#allocation232_spill] sm:$0xff] %v10643_v50  ;;  %v16783_v30 = vmax.f32 %v10643_v50, 0.0 }
 0x623   :  { %8369 = vmatmul.msk.f32.gmra.mxu1 %vm2727_vm4, %v16783_v30 }
 0x626   :  { %v1781_v28 = vpop.f32.mrf.mxu0 }
 0x627   :  { %v10655_v24 = vadd.f32 %v10419_v26, %v1781_v28 }
 0x629   :  { %17195 = vst [vmem:[#allocation234_spill] sm:$0xff] %v10655_v24  ;;  %v16784_v36 = vmax.f32 %v10655_v24, 0.0  ;;  %8293 = vmatmul.msk.bf16.gmra.mxu0 %vm930_vm2, %v9014_v63  ;;  %v9015_v63 = vld [vmem:[%s16708_s0 + $0x318] sm:$0xff]  ;;  %v10700_v24 = vpop.f32.mrf.mxu3 }
 0x62a   :  { %17205 = vst [vmem:[#allocation244_spill] sm:$0xff] %v10700_v24 }
 0x62b   :  { %8370 = vmatmul.msk.f32.gmra.mxu1 %vm2727_vm4, %v16784_v36 }
 0x62e   :  { %v1783_v5 = vpop.f32.mrf.mxu0 }
 0x62f   :  { %v10663_v30 = vadd.f32 %v10432_v55, %v1783_v5  ;;  %v10678_v5 = vpop.f32.mrf.mxu1 }
 0x630   :  { %17199 = vst [vmem:[#allocation238_spill] sm:$0xff] %v10678_v5 }
 0x631   :  { %17196 = vst [vmem:[#allocation235_spill] sm:$0xff] %v10663_v30  ;;  %v16785_v1 = vmax.f32 %v10663_v30, 0.0 }
 0x633   :  { %8371 = vmatmul.msk.f32.gmra.mxu1 %vm2727_vm4, %v16785_v1  ;;  %v9016_v1 = vld [vmem:[%s16708_s0 + $0x320] sm:$0xff] }
 0x636   :  { %v1786_v28 = vpop.f32.mrf.mxu0 }
 0x637   :  { %v2185_v60 = vadd.f32 %v10449_v18, %v1786_v28 }
 0x639   :  { %v10675_v36 = vmax.f32 %v2185_v60, 0.0  ;;  %8294 = vmatmul.msk.bf16.gmra.mxu0 %vm930_vm2, %v9015_v63  ;;  %v9017_v60 = vld [vmem:[%s16708_s0 + $0x328] sm:$0xff] }
 0x63b   :  { %17198 = vst [vmem:[#allocation237_spill] sm:$0xff] %v10675_v36  ;;  %8372 = vmatmul.msk.f32.gmra.mxu1 %vm2727_vm4, %v10675_v36  ;;  %v9018_v36 = vld [vmem:[%s16708_s0 + $0x330] sm:$0xff] }
 0x63e   :  { %v10682_v12 = vpop.f32.mrf.mxu0 }
 0x63f   :  { %17200 = vst [vmem:[#allocation239_spill] sm:$0xff] %v10682_v12 }
 0x646   :  { %v10687_v30 = vpop.f32.mrf.mxu0 }
 0x647   :  { %17201 = vst [vmem:[#allocation240_spill] sm:$0xff] %v10687_v30 }
 0x649   :  { %8295 = vmatmul.msk.bf16.gmra.mxu0 %vm930_vm2, %v9016_v1  ;;  %v10708_v1 = vpop.f32.mrf.mxu3 }
 0x64a   :  { %17207 = vst [vmem:[#allocation246_spill] sm:$0xff] %v10708_v1 }
 0x64e   :  { %v10690_v28 = vpop.f32.mrf.mxu0 }
 0x64f   :  { %17202 = vst [vmem:[#allocation241_spill] sm:$0xff] %v10690_v28 }
 0x656   :  { %v10695_v63 = vpop.f32.mrf.mxu0 }
 0x657   :  { %17203 = vst [vmem:[#allocation242_spill] sm:$0xff] %v10695_v63 }
 0x659   :  { %8296 = vmatmul.msk.bf16.gmra.mxu0 %vm930_vm2, %v9017_v60  ;;  %v9019_v60 = vld [vmem:[%s16708_s0 + $0x338] sm:$0xff] }
 0x65e   :  { %v10698_v5 = vpop.f32.mrf.mxu0 }
 0x65f   :  { %17204 = vst [vmem:[#allocation243_spill] sm:$0xff] %v10698_v5  ;;  %v10717_v5 = vpop.f32.mrf.mxu3 }
 0x660   :  { %17210 = vst [vmem:[#allocation249_spill] sm:$0xff] %v10717_v5  ;;  %v10739_v5 = vpop.f32.mrf.mxu1 }
 0x661   :  { %17217 = vst [vmem:[#allocation256_spill] sm:$0xff] %v10739_v5 }
 0x666   :  { %v10705_v30 = vpop.f32.mrf.mxu0 }
 0x667   :  { %17206 = vst [vmem:[#allocation245_spill] sm:$0xff] %v10705_v30  ;;  %v10722_v50 = vpop.f32.mrf.mxu3 }
 0x668   :  { %17212 = vst [vmem:[#allocation251_spill] sm:$0xff] %v10722_v50 }
 0x669   :  { %8297 = vmatmul.msk.bf16.gmra.mxu0 %vm930_vm2, %v9018_v36  ;;  %v9020_v36 = vld [vmem:[%s16708_s0 + $0x340] sm:$0xff] }
 0x66e   :  { %v10710_v28 = vpop.f32.mrf.mxu0 }
 0x66f   :  { %17208 = vst [vmem:[#allocation247_spill] sm:$0xff] %v10710_v28  ;;  %v10730_v28 = vpop.f32.mrf.mxu3 }
 0x670   :  { %17214 = vst [vmem:[#allocation253_spill] sm:$0xff] %v10730_v28 }
 0x676   :  { %v10715_v63 = vpop.f32.mrf.mxu0 }
 0x677   :  { %17209 = vst [vmem:[#allocation248_spill] sm:$0xff] %v10715_v63  ;;  %v10734_v63 = vpop.f32.mrf.mxu3 }
 0x678   :  { %17216 = vst [vmem:[#allocation255_spill] sm:$0xff] %v10734_v63 }
 0x679   :  { %8298 = vmatmul.msk.bf16.gmra.mxu0 %vm930_vm2, %v9019_v60  ;;  %v9021_v60 = vld [vmem:[%s16708_s0 + $0x348] sm:$0xff] }
 0x67e   :  { %v10720_v24 = vpop.f32.mrf.mxu0 }
 0x67f   :  { %17211 = vst [vmem:[#allocation250_spill] sm:$0xff] %v10720_v24 }
 0x686   :  { %v10727_v1 = vpop.f32.mrf.mxu0 }
 0x687   :  { %17213 = vst [vmem:[#allocation252_spill] sm:$0xff] %v10727_v1  ;;  %v10746_v1 = vpop.f32.mrf.mxu3 }
 0x688   :  { %17220 = vst [vmem:[#allocation259_spill] sm:$0xff] %v10746_v1 }
 0x689   :  { %8299 = vmatmul.msk.bf16.gmra.mxu0 %vm930_vm2, %v9020_v36  ;;  %v10748_v36 = vpop.f32.mrf.mxu1 }
 0x68a   :  { %17221 = vst [vmem:[#allocation260_spill] sm:$0xff] %v10748_v36 }
 0x68e   :  { %v10732_v30 = vpop.f32.mrf.mxu0 }
 0x68f   :  { %17215 = vst [vmem:[#allocation254_spill] sm:$0xff] %v10732_v30  ;;  %v9022_v30 = vld [vmem:[%s16708_s0 + $0x350] sm:$0xff]  ;;  %v10755_v28 = vpop.f32.mrf.mxu3  ;;  %s9100_s0 = smov 64  }
 0x690   :  { %17223 = vst [vmem:[#allocation262_spill] sm:$0xff] %v10755_v28 }
 0x691   :  { %v10758_v5 = vpop.f32.mrf.mxu1 }
 0x692   :  { %17224 = vst [vmem:[#allocation263_spill] sm:$0xff] %v10758_v5 }
 0x696   :  { %v10741_v50 = vpop.f32.mrf.mxu0 }
 0x697   :  { %17218 = vst [vmem:[#allocation257_spill] sm:$0xff] %v10741_v50 }
 0x699   :  { %8300 = vmatmul.msk.bf16.gmra.mxu0 %vm930_vm2, %v9021_v60  ;;  %v10762_v60 = vpop.f32.mrf.mxu3 }
 0x69a   :  { %17226 = vst [vmem:[#allocation265_spill] sm:$0xff] %v10762_v60 }
 0x69e   :  { %v10744_v24 = vpop.f32.mrf.mxu0 }
 0x69f   :  { %17219 = vst [vmem:[#allocation258_spill] sm:$0xff] %v10744_v24  ;;  %v10764_v24 = vpop.f32.mrf.mxu1 }
 0x6a0   :  { %17227 = vst [vmem:[#allocation266_spill] sm:$0xff] %v10764_v24 }
 0x6a1   :  { %v10768_v36 = vpop.f32.mrf.mxu3 }
 0x6a2   :  { %17229 = vst [vmem:[#allocation268_spill] sm:$0xff] %v10768_v36 }
 0x6a6   :  { %v10753_v63 = vpop.f32.mrf.mxu0 }
 0x6a7   :  { %17222 = vst [vmem:[#allocation261_spill] sm:$0xff] %v10753_v63  ;;  %v10770_v12 = vpop.f32.mrf.mxu1 }
 0x6a8   :  { %17230 = vst [vmem:[#allocation269_spill] sm:$0xff] %v10770_v12 }
 0x6a9   :  { %8301 = vmatmul.msk.bf16.gmra.mxu0 %vm930_vm2, %v9022_v30  ;;  %v10774_v63 = vpop.f32.mrf.mxu3  ;;  %vm6284_vm2 = vcmask 786048  }
 0x6aa   :  { %17232 = vst [vmem:[#allocation271_spill] sm:$0xff] %v10774_v63 }
 0x6ae   :  { %v10760_v50 = vpop.f32.mrf.mxu0 }
 0x6af   :  { %17225 = vst [vmem:[#allocation264_spill] sm:$0xff] %v10760_v50  ;;  %v10777_v5 = vpop.f32.mrf.mxu1 }
 0x6b0   :  { %17233 = vst [vmem:[#allocation272_spill] sm:$0xff] %v10777_v5 }
 0x6b1   :  { %v10780_v24 = vpop.f32.mrf.mxu3 }
 0x6b2   :  { %17234 = vst [vmem:[#allocation273_spill] sm:$0xff] %v10780_v24 }
 0x6b6   :  { %v10766_v1 = vpop.f32.mrf.mxu0 }
 0x6b7   :  { %17228 = vst [vmem:[#allocation267_spill] sm:$0xff] %v10766_v1  ;;  %v10783_v40 = vpop.f32.mrf.mxu1 }
 0x6b8   :  { %17235 = vst [vmem:[#allocation274_spill] sm:$0xff] %v10783_v40 }
 0x6b9   :  { %v10793_v5 = vpop.f32.mrf.mxu3 }
 0x6ba   :  { %17238 = vst [vmem:[#allocation277_spill] sm:$0xff] %v10793_v5 }
 0x6be   :  { %v10772_v21 = vpop.f32.mrf.mxu0 }
 0x6bf   :  { %17231 = vst [vmem:[#allocation270_spill] sm:$0xff] %v10772_v21 }
 0x6c6   :  { %v1831_v28 = vpop.f32.mrf.mxu0 }
 0x6c7   :  { %v2203_v30 = vadd.f32 %v10535_v10, %v1831_v28 }
 0x6c9   :  { %v2459_v50 = vmax.f32 %v2203_v30, 0.0 }
 0x6cb   :  { %8507 = vmatmul.msk.f32.gmra.mxu3 %vm2727_vm4, %v2459_v50  ;;  %v10785_v12 = vrot.slane %v2459_v50, 7 }
 0x6cd   :  { %17236 = vst [vmem:[#allocation275_spill] sm:$0xff] %v10785_v12 }
 0x6ce   :  { %v1833_v60 = vpop.f32.mrf.mxu0 }
 0x6cf   :  { %v2204_v1 = vadd.f32 %v10250_v16, %v1833_v60 }
 0x6d1   :  { %v2460_v36 = vmax.f32 %v2204_v1, 0.0  ;;  %v10796_v1 = vpop.f32.mrf.mxu1 }
 0x6d2   :  { %17239 = vst [vmem:[#allocation278_spill] sm:$0xff] %v10796_v1 }
 0x6d3   :  { %v3296_v21 = vrot.slane %v2460_v36, 7  ;;  %8508 = vmatmul.msk.f32.gmra.mxu3 %vm2727_vm4, %v2460_v36 }
 0x6d5   :  { %v10790_v28 = vsel %vm2587_vm5, %v10785_v12, %v3296_v21  ;;  %v10802_v12 = vpop.f32.mrf.mxu3 }
 0x6d6   :  { %17237 = vst [vmem:[#allocation276_spill] sm:$0xff] %v10790_v28  ;;  %v1836_v30 = vpop.f32.mrf.mxu0 }
 0x6d7   :  { %v2205_v63 = vadd.f32 %v10268_v23, %v1836_v30  ;;  %17241 = vst [vmem:[#allocation280_spill] sm:$0xff] %v10802_v12 }
 0x6d9   :  { %v2461_v24 = vmax.f32 %v2205_v63, 0.0  ;;  %v10805_v30 = vpop.f32.mrf.mxu1 }
 0x6da   :  { %17242 = vst [vmem:[#allocation281_spill] sm:$0xff] %v10805_v30 }
 0x6db   :  { %v3298_v62 = vrot.slane %v2461_v24, 7  ;;  %8509 = vmatmul.msk.f32.gmra.mxu3 %vm2727_vm4, %v2461_v24 }
 0x6dd   :  { %v10799_v50 = vsel %vm2587_vm5, %v3296_v21, %v3298_v62 }
 0x6de   :  { %17240 = vst [vmem:[#allocation279_spill] sm:$0xff] %v10799_v50  ;;  %v1838_v60 = vpop.f32.mrf.mxu0  ;;  %v10812_v50 = vpop.f32.mrf.mxu3 }
 0x6df   :  { %v2206_v36 = vadd.f32 %v10281_v47, %v1838_v60  ;;  %17244 = vst [vmem:[#allocation283_spill] sm:$0xff] %v10812_v50 }
 0x6e1   :  { %v2462_v40 = vmax.f32 %v2206_v36, 0.0  ;;  %v10817_v36 = vpop.f32.mrf.mxu1 }
 0x6e2   :  { %17246 = vst [vmem:[#allocation285_spill] sm:$0xff] %v10817_v36 }
 0x6e3   :  { %v3300_v28 = vrot.slane %v2462_v40, 7  ;;  %8510 = vmatmul.msk.f32.gmra.mxu3 %vm2727_vm4, %v2462_v40 }
 0x6e5   :  { %v10808_v63 = vsel %vm2587_vm5, %v3298_v62, %v3300_v28 }
 0x6e6   :  { %17243 = vst [vmem:[#allocation282_spill] sm:$0xff] %v10808_v63  ;;  %v1841_v24 = vpop.f32.mrf.mxu0  ;;  %v10825_v63 = vpop.f32.mrf.mxu3 }
 0x6e7   :  { %v2207_v5 = vadd.f32 %v10296_v51, %v1841_v24  ;;  %17248 = vst [vmem:[#allocation287_spill] sm:$0xff] %v10825_v63 }
 0x6e9   :  { %v2463_v1 = vmax.f32 %v2207_v5, 0.0  ;;  %v10827_v50 = vpop.f32.mrf.mxu1 }
 0x6ea   :  { %17249 = vst [vmem:[#allocation288_spill] sm:$0xff] %v10827_v50 }
 0x6eb   :  { %v3302_v21 = vrot.slane %v2463_v1, 7  ;;  %8511 = vmatmul.msk.f32.gmra.mxu3 %vm2727_vm4, %v2463_v1 }
 0x6ed   :  { %v10815_v60 = vsel %vm2587_vm5, %v3300_v28, %v3302_v21 }
 0x6ee   :  { %17245 = vst [vmem:[#allocation284_spill] sm:$0xff] %v10815_v60  ;;  %v1843_v40 = vpop.f32.mrf.mxu0  ;;  %v10834_v36 = vpop.f32.mrf.mxu3 }
 0x6ef   :  { %v2208_v12 = vadd.f32 %v10309_v8, %v1843_v40  ;;  %17250 = vst [vmem:[#allocation289_spill] sm:$0xff] %v10834_v36 }
 0x6f1   :  { %v2464_v30 = vmax.f32 %v2208_v12, 0.0 }
 0x6f3   :  { %v3304_v62 = vrot.slane %v2464_v30, 7  ;;  %8512 = vmatmul.msk.f32.gmra.mxu3 %vm2727_vm4, %v2464_v30 }
 0x6f5   :  { %v10822_v24 = vsel %vm2587_vm5, %v3302_v21, %v3304_v62 }
 0x6f6   :  { %17247 = vst [vmem:[#allocation286_spill] sm:$0xff] %v10822_v24  ;;  %v1846_v5 = vpop.f32.mrf.mxu0  ;;  %v10836_v24 = vpop.f32.mrf.mxu1 }
 0x6f7   :  { %v2209_v1 = vadd.f32 %v10324_v0, %v1846_v5  ;;  %17251 = vst [vmem:[#allocation290_spill] sm:$0xff] %v10836_v24  ;;  %v10840_v5 = vadd.f32 %v10535_v10, %v9884_v31  ;;  %v8524_v31 = vld [vmem:[%s16709_s3 + $0x38] sm:$0x3f]  ;;  %v10855_v36 = vpop.f32.mrf.mxu3 }
 0x6f8   :  { %17252 = vst [vmem:[#allocation291_spill] sm:$0xff] %v10855_v36  ;;  %8525 = vmatpush.msk.msra.mxu1 %vm2912_vm3, %v8524_v31 }
 0x6f9   :  { %v2465_v28 = vmax.f32 %v2209_v1, 0.0 }
 0x6fb   :  { %v3306_v60 = vrot.slane %v2465_v28, 7  ;;  %8513 = vmatmul.msk.f32.gmra.mxu3 %vm2727_vm4, %v2465_v28  ;;  %v16796_v28 = vmax.f32 %v10840_v5, 0.0 }
 0x6fd   :  { %v10831_v40 = vsel %vm2587_vm5, %v3304_v62, %v3306_v60 }
 0x6fe   :  { %v1848_v12 = vpop.f32.mrf.mxu0 }
 0x6ff   :  { %v2210_v30 = vadd.f32 %v10339_v57, %v1848_v12 }
 0x701   :  { %v2466_v21 = vmax.f32 %v2210_v30, 0.0 }
 0x703   :  { %v3308_v63 = vrot.slane %v2466_v21, 7  ;;  %8373 = vmatmul.msk.f32.gmra.mxu1 %vm2727_vm4, %v2466_v21  ;;  %8514 = vmatmul.msk.f32.gmra.mxu3 %vm2727_vm4, %v2466_v21  ;;  %v10871_v21 = vpop.f32.mrf.mxu1 }
 0x704   :  { %17253 = vst [vmem:[#allocation292_spill] sm:$0xff] %v10871_v21 }
 0x705   :  { %v10845_v62 = vsel %vm2587_vm5, %v3306_v60, %v3308_v63  ;;  %v10860_v63 = vadd.f32 %v10250_v16, %v9895_v37  ;;  %v8390_v60 = vld [vmem:[%s16709_s3 + $0x18] sm:$0x3f] }
 0x706   :  { %v1851_v1 = vpop.f32.mrf.mxu0  ;;  %8391 = vmatpush.msk.msrb.mxu2 %vm2912_vm3, %v8390_v60  ;;  %v10889_v60 = vpop.f32.mrf.mxu3 }
 0x707   :  { %v10849_v12 = vadd.f32 %v10355_v7, %v1851_v1  ;;  %v16797_v37 = vmax.f32 %v10860_v63, 0.0  ;;  %17254 = vst [vmem:[#allocation293_spill] sm:$0xff] %v10889_v60 }
 0x709   :  { %v16795_v30 = vmax.f32 %v10849_v12, 0.0 }
 0x70b   :  { %8374 = vmatmul.msk.f32.gmra.mxu1 %vm2727_vm4, %v16795_v30  ;;  %8515 = vmatmul.msk.f32.gmra.mxu3 %vm2727_vm4, %v16796_v28  ;;  %v10881_v30 = vadd.f32 %v10268_v23, %v9911_v13  ;;  %v10891_v28 = vpop.f32.mrf.mxu1  ;;  %v10900_v23 = vadd.f32 %v10281_v47, %v9923_v27  ;;  %v10919_v47 = vadd.f32 %v10296_v51, %v9936_v42 }
 0x70c   :  { %17255 = vst [vmem:[#allocation294_spill] sm:$0xff] %v10891_v28 }
 0x70d   :  { %v16799_v36 = vmax.f32 %v10881_v30, 0.0 }
 0x70e   :  { %v1853_v1 = vpop.f32.mrf.mxu0 }
 0x70f   :  { %v10876_v16 = vadd.f32 %v10370_v56, %v1853_v1 }
 0x711   :  { %v16798_v31 = vmax.f32 %v10876_v16, 0.0 }
 0x713   :  { %8375 = vmatmul.msk.f32.gmra.mxu1 %vm2727_vm4, %v16798_v31  ;;  %8516 = vmatmul.msk.f32.gmra.mxu3 %vm2727_vm4, %v16797_v37  ;;  %v10908_v37 = vpop.f32.mrf.mxu3  ;;  %v10914_v28 = vpop.f32.mrf.mxu1 }
 0x714   :  { %17256 = vst [vmem:[#allocation295_spill] sm:$0xff] %v10908_v37 }
 0x715   :  { %17257 = vst [vmem:[#allocation296_spill] sm:$0xff] %v10914_v28 }
 0x716   :  { %v1856_v1 = vpop.f32.mrf.mxu0 }
 0x717   :  { %v10895_v21 = vadd.f32 %v10387_v38, %v1856_v1  ;;  %v16802_v1 = vmax.f32 %v10900_v23, 0.0 }
 0x719   :  { %v16800_v13 = vmax.f32 %v10895_v21, 0.0 }
 0x71b   :  { %8376 = vmatmul.msk.f32.gmra.mxu1 %vm2727_vm4, %v16800_v13  ;;  %8517 = vmatmul.msk.f32.gmra.mxu3 %vm2727_vm4, %v16799_v36  ;;  %v16804_v13 = vmax.f32 %v10919_v47, 0.0  ;;  %v10935_v51 = vpop.f32.mrf.mxu3  ;;  %v10938_v37 = vpop.f32.mrf.mxu1 }
 0x71c   :  { %17258 = vst [vmem:[#allocation297_spill] sm:$0xff] %v10935_v51 }
 0x71d   :  { %17259 = vst [vmem:[#allocation298_spill] sm:$0xff] %v10938_v37 }
 0x71e   :  { %v1858_v31 = vpop.f32.mrf.mxu0 }
 0x71f   :  { %v10912_v60 = vadd.f32 %v10402_v54, %v1858_v31  ;;  %v2724_v31 = vld [vmem:[%s16709_s3] sm:$0x3f] }
 0x720   :  { %8656 = vmatpush.msk.msra.mxu3 %vm2912_vm3, %v2724_v31  ;;  %v9074_v31 = vld [vmem:[%s16709_s3 + $0x28] sm:$0x3f] }
 0x721   :  { %v16801_v27 = vmax.f32 %v10912_v60, 0.0 }
 0x723   :  { %8377 = vmatmul.msk.f32.gmra.mxu1 %vm2727_vm4, %v16801_v27  ;;  %8518 = vmatmul.msk.f32.gmra.mxu3 %vm2727_vm4, %v16802_v1  ;;  %v10942_v1 = vadd.f32 %v10309_v8, %v9949_v22  ;;  %v10962_v37 = vpop.f32.mrf.mxu3 }
 0x724   :  { %17261 = vst [vmem:[#allocation299_spill] sm:$0xff] %v10962_v37 }
 0x725   :  { %v16805_v8 = vmax.f32 %v10942_v1, 0.0 }
 0x726   :  { %v1861_v36 = vpop.f32.mrf.mxu0 }
 0x727   :  { %v10933_v42 = vadd.f32 %v10419_v26, %v1861_v36  ;;  %v17260_v36 = vmax.f32 %v9411_v44, 0.0  ;;  %v2217_v44 = vadd.f32 %v10449_v18, %v9373_v19 }
 0x729   :  { %v16803_v27 = vmax.f32 %v10933_v42, 0.0 }
 0x72b   :  { %8378 = vmatmul.msk.f32.vlgmr.msra.gmra.mxu2 %vm2727_vm4, %v16803_v27  ;;  %8519 = vmatmul.msk.f32.gmra.mxu3 %vm2727_vm4, %v16804_v13  ;;  %v10964_v13 = vpop.f32.mrf.mxu1 }
 0x72c   :  { %8526 = vmatmul.msk.f32.vlgmr.msra.gmra.mxu1 %vm2727_vm4, %v17260_v36  ;;  %8458 = vmatpush.msk.msra.mxu2 %vm2912_vm3, %v9074_v31  ;;  %17262 = vst [vmem:[#allocation300_spill] sm:$0xff] %v10964_v13  ;;  %v10970_v36 = vadd.f32 %v10324_v0, %v9395_v34  ;;  %v17263_v31 = vmax.f32 %v9426_v53, 0.0  ;;  %v10987_v34 = vld [vmem:[%s16710_s2 + $0xb8] sm:$0xff]  ;;  %v10994_v0 = vpop.f32.mrf.mxu3 }
 0x72d   :  { %17264 = vst [vmem:[#allocation301_spill] sm:$0xff] %v10994_v0 }
 0x72e   :  { %v1863_v22 = vpop.f32.mrf.mxu0  ;;  %v16807_v19 = vmax.f32 %v10970_v36, 0.0 }
 0x72f   :  { %v10959_v51 = vadd.f32 %v10432_v55, %v1863_v22  ;;  %v10981_v22 = vmax.f32 %v2217_v44, 0.0  ;;  %v17266_v44 = vmax.f32 %v9443_v61, 0.0  ;;  %v11016_v61 = vadd.f32 %v10355_v7, %v9588_v6 }
 0x730   :  { %v2588_v7 = vrot.slane %v9505_v33, 7 }
 0x731   :  { %v16806_v27 = vmax.f32 %v10959_v51, 0.0  ;;  %v16808_v6 = vmax.f32 %v11016_v61, 0.0 }
 0x733   :  { %8379 = vmatmul.msk.f32.gmra.mxu2 %vm2727_vm4, %v16806_v27  ;;  %8520 = vmatmul.msk.f32.gmra.mxu3 %vm2727_vm4, %v16805_v8  ;;  %v10996_v53 = vpop.f32.mrf.mxu1  ;;  %v2026_v8 = vadd.f32 %v10987_v34, %v9512_v39  ;;  %v17267_v39 = vmax.f32 %v9458_v4, 0.0  ;;  %v11040_v4 = vld [vmem:[%s16710_s2 + $0xc8] sm:$0xff] }
 0x734   :  { %8527 = vmatmul.msk.f32.gmra.mxu1 %vm2727_vm4, %v17263_v31  ;;  %17265 = vst [vmem:[#allocation302_spill] sm:$0xff] %v10996_v53  ;;  %v2242_v31 = vadd.f32 %v10339_v57, %v9576_v15 }
 0x735   :  { %v11007_v37 = vmax.f32 %v2026_v8, 0.0  ;;  %v11028_v8 = vpop.f32.mrf.mxu3 }
 0x736   :  { %v11005_v27 = vmax.f32 %v2242_v31, 0.0  ;;  %17268 = vst [vmem:[#allocation303_spill] sm:$0xff] %v11028_v8 }
 0x737   :  { %v2589_v15 = vrot.slane %v11007_v37, 7 }
 0x739   :  { %v2590_v0 = vsel %vm2587_vm5, %v2588_v7, %v2589_v15  ;;  %v2028_v7 = vadd.f32 %v11040_v4, %v9520_v58  ;;  %v17273_v58 = vmax.f32 %v9488_v20, 0.0  ;;  %v11099_v20 = vld [vmem:[%s16710_s2 + $0xd8] sm:$0xff] }
 0x73b   :  { %8380 = vmatmul.msk.f32.gmra.mxu2 %vm2727_vm4, %v10981_v22  ;;  %8521 = vmatmul.msk.f32.gmra.mxu3 %vm2727_vm4, %v16807_v19  ;;  %v11012_v19 = vld [vmem:[%s16710_s2 + $0xc0] sm:$0xff] }
 0x73c   :  { %8528 = vmatmul.msk.f32.gmra.mxu1 %vm2727_vm4, %v17266_v44  ;;  %v2027_v57 = vadd.f32 %v11012_v19, %v9517_v52  ;;  %v11030_v44 = vpop.f32.mrf.mxu1  ;;  %v17270_v52 = vmax.f32 %v9475_v14, 0.0 }
 0x73d   :  { %17269 = vst [vmem:[#allocation304_spill] sm:$0xff] %v11030_v44 }
 0x73e   :  { %v11034_v31 = vmax.f32 %v2027_v57, 0.0 }
 0x740   :  { %v2591_v57 = vrot.slane %v11034_v31, 7 }
 0x742   :  { %v11064_v14 = vsel %vm2587_vm5, %v2589_v15, %v2591_v57 }
 0x743   :  { %8381 = vmatmul.msk.f32.gmra.mxu2 %vm2727_vm4, %v11005_v27  ;;  %8522 = vmatmul.msk.f32.gmra.mxu3 %vm2727_vm4, %v11005_v27 }
 0x744   :  { %8529 = vmatmul.msk.f32.gmra.mxu1 %vm2727_vm4, %v17267_v39  ;;  %v11051_v39 = vadd.f32 %v10370_v56, %v9594_v41  ;;  %v11058_v44 = vpop.f32.mrf.mxu1  ;;  %v11069_v41 = vld [vmem:[%s16710_s2 + $0xd0] sm:$0xff]  ;;  %v11073_v56 = vadd.f32 %v10387_v38, %v9608_v45 }
 0x745   :  { %17272 = vst [vmem:[#allocation306_spill] sm:$0xff] %v11058_v44 }
 0x746   :  { %v16810_v45 = vmax.f32 %v11073_v56, 0.0 }
 0x74b   :  { %8382 = vmatmul.msk.f32.gmra.mxu2 %vm2727_vm4, %v16808_v6  ;;  %8657 = vmatmul.msk.f32.vlgmr.msra.gmra.mxu3 %vm2727_vm4, %v2590_v0  ;;  %v16809_v6 = vmax.f32 %v11051_v39, 0.0  ;;  %v11061_v0 = vmax.f32 %v2028_v7, 0.0 }
 0x74c   :  { %8530 = vmatmul.msk.f32.gmra.mxu1 %vm2727_vm4, %v17270_v52  ;;  %v2029_v52 = vadd.f32 %v11069_v41, %v9525_v3  ;;  %v11110_v3 = vadd.f32 %v10402_v54, %v9616_v11  ;;  %v11130_v11 = vadd.f32 %v10419_v26, %v9630_v2 }
 0x74d   :  { %v2593_v15 = vrot.slane %v11061_v0, 7 }
 0x74e   :  { %v11056_v8 = vpop.f32.mrf.mxu3  ;;  %v11089_v38 = vmax.f32 %v2029_v52, 0.0  ;;  %v16812_v2 = vmax.f32 %v11130_v11, 0.0 }
 0x74f   :  { %17271 = vst [vmem:[#allocation305_spill] sm:$0xff] %v11056_v8  ;;  %v11091_v8 = vpop.f32.mrf.mxu1 }
 0x750   :  { %17275 = vst [vmem:[#allocation308_spill] sm:$0xff] %v11091_v8 }
 0x753   :  { %8383 = vmatmul.msk.f32.gmra.mxu2 %vm2727_vm4, %v16809_v6  ;;  %8658 = vmatmul.msk.f32.gmra.mxu3 %vm2727_vm4, %v11064_v14  ;;  %v11094_v6 = vsel %vm2587_vm5, %v2591_v57, %v2593_v15  ;;  %v2595_v57 = vrot.slane %v11089_v38, 7 }
 0x754   :  { %8531 = vmatmul.msk.f32.gmra.mxu1 %vm2727_vm4, %v17273_v58  ;;  %v2030_v58 = vadd.f32 %v11099_v20, %v9528_v9 }
 0x755   :  { %v11121_v53 = vsel %vm2587_vm5, %v2593_v15, %v2595_v57 }
 0x756   :  { %v11086_v7 = vpop.f32.mrf.mxu3 }
 0x757   :  { %17274 = vst [vmem:[#allocation307_spill] sm:$0xff] %v11086_v7  ;;  %v16811_v7 = vmax.f32 %v11110_v3, 0.0  ;;  %v11137_v9 = vpop.f32.mrf.mxu1 }
 0x758   :  { %17277 = vst [vmem:[#allocation310_spill] sm:$0xff] %v11137_v9 }
 0x75b   :  { %8384 = vmatmul.msk.f32.gmra.mxu2 %vm2727_vm4, %v16810_v45  ;;  %8659 = vmatmul.msk.f32.gmra.mxu3 %vm2727_vm4, %v11094_v6  ;;  %v11118_v45 = vmax.f32 %v2030_v58, 0.0 }
 0x75c   :  { %8532 = vmatmul.msk.f32.gmra.mxu1 %vm2727_vm4, %v9505_v33  ;;  %v11126_v33 = vld [vmem:[%s16710_s2 + $0xe0] sm:$0xff] }
 0x75d   :  { %v2597_v54 = vrot.slane %v11118_v45, 7  ;;  %v2031_v15 = vadd.f32 %v11126_v33, %v9533_v17  ;;  %v17279_v17 = vmax.f32 %v9664_v35, 0.0 }
 0x75e   :  { %v11115_v52 = vpop.f32.mrf.mxu3 }
 0x75f   :  { %17276 = vst [vmem:[#allocation309_spill] sm:$0xff] %v11115_v52  ;;  %v11147_v26 = vmax.f32 %v2031_v15, 0.0  ;;  %v11155_v52 = vld [vmem:[%s16710_s2 + $0xe8] sm:$0xff]  ;;  %v11172_v13 = vpop.f32.mrf.mxu1 }
 0x760   :  { %17280 = vst [vmem:[#allocation312_spill] sm:$0xff] %v11172_v13 }
 0x761   :  { %v2599_v15 = vrot.slane %v11147_v26, 7 }
 0x763   :  { %8385 = vmatmul.msk.f32.gmra.mxu2 %vm2727_vm4, %v16811_v7  ;;  %8660 = vmatmul.msk.f32.gmra.mxu3 %vm2727_vm4, %v11121_v53  ;;  %v11150_v7 = vsel %vm2587_vm5, %v2595_v57, %v2597_v54  ;;  %v11167_v57 = vadd.f32 %v10432_v55, %v9643_v48  ;;  %v11180_v35 = vsel %vm2587_vm5, %v2597_v54, %v2599_v15  ;;  %v11185_v48 = vld [vmem:[%s16710_s2 + $0xf0] sm:$0xff]  ;;  %v11200_v54 = vld [vmem:[%s16710_s2 + $0x38] sm:$0xff] }
 0x764   :  { %8533 = vmatmul.msk.f32.gmra.mxu1 %vm2727_vm4, %v11007_v37  ;;  %v2249_v55 = vadd.f32 %v10449_v18, %v9653_v59  ;;  %v2033_v18 = vadd.f32 %v11185_v48, %v9541_v32 }
 0x766   :  { %v11144_v58 = vpop.f32.mrf.mxu3  ;;  %v11220_v50 = vmax.f32 %v2033_v18, 0.0  ;;  %v17288_v18 = vld [vmem:[#allocation53_spill] sm:$0xff] }
 0x767   :  { %17278 = vst [vmem:[#allocation311_spill] sm:$0xff] %v11144_v58  ;;  %v2032_v58 = vadd.f32 %v11155_v52, %v9536_v25  ;;  %v17282_v25 = vmax.f32 %v9674_v29, 0.0  ;;  %v11215_v29 = vadd.f32 %v11200_v54, %v9292_v46  ;;  %v17287_v46 = vmax.f32 %v9686_v43, 0.0 }
 0x769   :  { %v11177_v24 = vmax.f32 %v2032_v58, 0.0  ;;  %v11204_v58 = vadd.f32 %v10535_v10, %v9301_v49  ;;  %17285 = vst [vmem:[#allocation316_spill] sm:$0xff] %v11215_v29  ;;  %v16815_v32 = vmax.f32 %v11215_v29, 0.0 }
 0x76b   :  { %8386 = vmatmul.msk.f32.gmra.mxu2 %vm2727_vm4, %v16812_v2  ;;  %8661 = vmatmul.msk.f32.gmra.mxu3 %vm2727_vm4, %v11150_v7  ;;  %v16813_v2 = vmax.f32 %v11167_v57, 0.0  ;;  %17283 = vst [vmem:[#allocation314_spill] sm:$0xff] %v11204_v58  ;;  %v2601_v59 = vrot.slane %v11177_v24, 7 }
 0x76c   :  { %8534 = vmatmul.msk.f32.gmra.mxu1 %vm2727_vm4, %v17279_v17 }
 0x76d   :  { %v11223_v49 = vsel %vm2587_vm5, %v2599_v15, %v2601_v59  ;;  %v2058_v15 = vadd.f32 %v10987_v34, %v17288_v18  ;;  %v17292_v18 = vld [vmem:[#allocation46_spill] sm:$0xff] }
 0x76e   :  { %v11174_v28 = vpop.f32.mrf.mxu3 }
 0x76f   :  { %17281 = vst [vmem:[#allocation313_spill] sm:$0xff] %v11174_v28  ;;  %v16814_v28 = vmax.f32 %v11204_v58, 0.0  ;;  %v11244_v9 = vmax.f32 %v2058_v15, 0.0  ;;  %v17294_v15 = vld [vmem:[#allocation54_spill] sm:$0xff] }
 0x771   :  { %v3192_v10 = vrot.slane %v16814_v28, 7  ;;  %v17293_v28 = vmax.f32 %v17292_v18, 0.0 }
 0x773   :  { %8387 = vmatmul.msk.f32.gmra.mxu2 %vm2727_vm4, %v16813_v2  ;;  %8662 = vmatmul.msk.f32.gmra.mxu3 %vm2727_vm4, %v11180_v35  ;;  %v11211_v2 = vmax.f32 %v2249_v55, 0.0  ;;  %v16817_v55 = vrot.slane %v11220_v50, 7 }
 0x774   :  { %8535 = vmatmul.msk.f32.gmra.mxu1 %vm2727_vm4, %v17282_v25  ;;  %v11217_v25 = vpop.f32.mrf.mxu1 }
 0x775   :  { %17286 = vst [vmem:[#allocation317_spill] sm:$0xff] %v11217_v25  ;;  %v3191_v25 = vrot.slane %v16815_v32, 7  ;;  %v2606_v32 = vrot.slane %v11244_v9, 7 }
 0x776   :  { %v11209_v17 = vpop.f32.mrf.mxu3 }
 0x777   :  { %17284 = vst [vmem:[#allocation315_spill] sm:$0xff] %v11209_v17  ;;  %v3193_v43 = vsel %vm2587_vm5, %v3191_v25, %v3192_v10 }
 0x77b   :  { %8388 = vmatmul.msk.f32.gmra.mxu2 %vm2727_vm4, %v11211_v2  ;;  %8663 = vmatmul.msk.f32.gmra.mxu3 %vm2727_vm4, %v11223_v49 }
 0x77c   :  { %8536 = vmatmul.msk.f32.gmra.mxu1 %vm2727_vm4, %v17287_v46  ;;  %v11250_v46 = vsel %vm2587_vm5, %v2601_v59, %v16817_v55 }
 0x77d   :  { %17291 = vst [vmem:[#allocation319_spill] sm:$0xff] %v11250_v46 }
 0x77e   :  { %v11238_v17 = vpop.f32.mrf.mxu3 }
 0x77f   :  { %17289 = vst [vmem:[#allocation53_spill] sm:$0xff] %v11238_v17  ;;  %v2059_v17 = vadd.f32 %v11012_v19, %v17294_v15 }
 0x780   :  { %v11242_v13 = vpop.f32.mrf.mxu1 }
 0x781   :  { %17290 = vst [vmem:[#allocation318_spill] sm:$0xff] %v11242_v13  ;;  %v17296_v13 = vld [vmem:[#allocation51_spill] sm:$0xff]  ;;  %v11266_v55 = vmax.f32 %v2059_v17, 0.0 }
 0x782   :  { %v2605_v29 = vrot.slane %v17296_v13, 7 }
 0x783   :  { %8392 = vmatmul.msk.f32.vlgmr.msrb.gmra.mxu2 %vm2727_vm4, %v3193_v43  ;;  %8664 = vmatmul.msk.f32.gmra.mxu3 %vm2727_vm4, %v11250_v46  ;;  %v17298_v43 = vld [vmem:[#allocation10_spill] sm:$0xff]  ;;  %v2608_v15 = vrot.slane %v11266_v55, 7  ;;  %v17354_v46 = vld [vmem:[#allocation33_spill] sm:$0xff] }
 0x784   :  { %8537 = vmatmul.msk.f32.gmra.mxu1 %vm2727_vm4, %v17293_v28  ;;  %v3195_v8 = vsel %vm2587_vm5, %v3192_v10, %v17298_v43  ;;  %v2607_v18 = vsel %vm2587_vm5, %v2605_v29, %v2606_v32  ;;  %v17299_v28 = vld [vmem:[#allocation48_spill] sm:$0xff] }
 0x785   :  { %v17300_v44 = vmax.f32 %v17299_v28, 0.0  ;;  %v11286_v29 = vsel %vm2587_vm5, %v2606_v32, %v2608_v15 }
 0x786   :  { %v11261_v25 = vpop.f32.mrf.mxu3 }
 0x787   :  { %17295 = vst [vmem:[#allocation46_spill] sm:$0xff] %v11261_v25  ;;  %v17301_v25 = vld [vmem:[#allocation55_spill] sm:$0xff] }
 0x788   :  { %v11264_v59 = vpop.f32.mrf.mxu1  ;;  %17305 = vst [vmem:[#allocation55_spill] sm:$0xff] %v11286_v29 }
 0x789   :  { %17297 = vst [vmem:[#allocation54_spill] sm:$0xff] %v11264_v59  ;;  %v2060_v59 = vadd.f32 %v11040_v4, %v17301_v25 }
 0x78b   :  { %8393 = vmatmul.msk.f32.gmra.mxu2 %vm2727_vm4, %v3195_v8  ;;  %8665 = vmatmul.msk.f32.gmra.mxu3 %vm2727_vm4, %v2607_v18  ;;  %v11283_v10 = vmax.f32 %v2060_v59, 0.0  ;;  %v17306_v8 = vld [vmem:[#allocation11_spill] sm:$0xff]  ;;  %v17309_v18 = vld [vmem:[#allocation56_spill] sm:$0xff] }
 0x78c   :  { %8538 = vmatmul.msk.f32.gmra.mxu1 %vm2727_vm4, %v17300_v44  ;;  %v17307_v44 = vld [vmem:[#allocation49_spill] sm:$0xff]  ;;  %v2061_v28 = vadd.f32 %v11069_v41, %v17309_v18 }
 0x78d   :  { %17304 = vst [vmem:[#allocation48_spill] sm:$0xff] %v11283_v10  ;;  %v17308_v43 = vmax.f32 %v17307_v44, 0.0  ;;  %v2610_v25 = vrot.slane %v11283_v10, 7 }
 0x78e   :  { %v11279_v17 = vpop.f32.mrf.mxu3  ;;  %v11302_v32 = vmax.f32 %v2061_v28, 0.0 }
 0x78f   :  { %17302 = vst [vmem:[#allocation51_spill] sm:$0xff] %v11279_v17 }
 0x790   :  { %v11281_v58 = vpop.f32.mrf.mxu1  ;;  %17312 = vst [vmem:[#allocation56_spill] sm:$0xff] %v11302_v32  ;;  %v2612_v44 = vrot.slane %v11302_v32, 7 }
 0x791   :  { %17303 = vst [vmem:[#allocation10_spill] sm:$0xff] %v11281_v58  ;;  %v17314_v58 = vld [vmem:[#allocation12_spill] sm:$0xff] }
 0x793   :  { %8394 = vmatmul.msk.f32.gmra.mxu2 %vm2727_vm4, %v17306_v8  ;;  %8666 = vmatmul.msk.f32.gmra.mxu3 %vm2727_vm4, %v11286_v29  ;;  %v11305_v8 = vsel %vm2587_vm5, %v2608_v15, %v2610_v25 }
 0x794   :  { %8539 = vmatmul.msk.f32.gmra.mxu1 %vm2727_vm4, %v17308_v43  ;;  %17313 = vst [vmem:[#allocation320_spill] sm:$0xff] %v11305_v8  ;;  %v17315_v43 = vld [vmem:[#allocation57_spill] sm:$0xff] }
 0x795   :  { %v2062_v18 = vadd.f32 %v11099_v20, %v17315_v43  ;;  %v17321_v43 = vld [vmem:[#allocation58_spill] sm:$0xff] }
 0x796   :  { %v11298_v59 = vpop.f32.mrf.mxu3 }
 0x797   :  { %17310 = vst [vmem:[#allocation11_spill] sm:$0xff] %v11298_v59  ;;  %v11320_v15 = vmax.f32 %v2062_v18, 0.0 }
 0x798   :  { %v11300_v17 = vpop.f32.mrf.mxu1 }
 0x799   :  { %17311 = vst [vmem:[#allocation49_spill] sm:$0xff] %v11300_v17  ;;  %v11323_v17 = vsel %vm2587_vm5, %v2610_v25, %v2612_v44 }
 0x79a   :  { %17318 = vst [vmem:[#allocation321_spill] sm:$0xff] %v11320_v15 }
 0x79b   :  { %8395 = vmatmul.msk.f32.gmra.mxu2 %vm2727_vm4, %v17314_v58  ;;  %8667 = vmatmul.msk.f32.gmra.mxu3 %vm2727_vm4, %v11305_v8  ;;  %17319 = vst [vmem:[#allocation322_spill] sm:$0xff] %v11323_v17  ;;  %v17320_v58 = vld [vmem:[#allocation13_spill] sm:$0xff] }
 0x79c   :  { %8540 = vmatmul.msk.f32.gmra.mxu1 %vm2727_vm4, %v17296_v13  ;;  %v2614_v13 = vrot.slane %v11320_v15, 7 }
 0x79e   :  { %v11316_v59 = vpop.f32.mrf.mxu3  ;;  %v11341_v8 = vsel %vm2587_vm5, %v2612_v44, %v2614_v13 }
 0x79f   :  { %17316 = vst [vmem:[#allocation12_spill] sm:$0xff] %v11316_v59  ;;  %v2063_v59 = vadd.f32 %v11126_v33, %v17321_v43 }
 0x7a0   :  { %v11318_v28 = vpop.f32.mrf.mxu1  ;;  %17325 = vst [vmem:[#allocation324_spill] sm:$0xff] %v11341_v8 }
 0x7a1   :  { %17317 = vst [vmem:[#allocation57_spill] sm:$0xff] %v11318_v28  ;;  %v11338_v25 = vmax.f32 %v2063_v59, 0.0 }
 0x7a3   :  { %8396 = vmatmul.msk.f32.gmra.mxu2 %vm2727_vm4, %v17320_v58  ;;  %8668 = vmatmul.msk.f32.gmra.mxu3 %vm2727_vm4, %v11323_v17  ;;  %17324 = vst [vmem:[#allocation323_spill] sm:$0xff] %v11338_v25  ;;  %v17326_v58 = vld [vmem:[#allocation14_spill] sm:$0xff]  ;;  %v17327_v17 = vld [vmem:[#allocation88_spill] sm:$0xff]  ;;  %v2616_v43 = vrot.slane %v11338_v25, 7 }
 0x7a4   :  { %8541 = vmatmul.msk.f32.gmra.mxu1 %vm2727_vm4, %v11244_v9  ;;  %v17328_v15 = vmax.f32 %v17327_v17, 0.0  ;;  %v17336_v17 = vld [vmem:[#allocation89_spill] sm:$0xff] }
 0x7a6   :  { %v11334_v28 = vpop.f32.mrf.mxu3 }
 0x7a7   :  { %17322 = vst [vmem:[#allocation13_spill] sm:$0xff] %v11334_v28  ;;  %v17329_v28 = vld [vmem:[#allocation59_spill] sm:$0xff] }
 0x7a9   :  { %v11336_v18 = vpop.f32.mrf.mxu1 }
 0x7aa   :  { %17323 = vst [vmem:[#allocation58_spill] sm:$0xff] %v11336_v18  ;;  %v2064_v18 = vadd.f32 %v11155_v52, %v17329_v28 }
 0x7ab   :  { %8397 = vmatmul.msk.f32.gmra.mxu2 %vm2727_vm4, %v17326_v58  ;;  %8669 = vmatmul.msk.f32.gmra.mxu3 %vm2727_vm4, %v11341_v8  ;;  %v11362_v58 = vsel %vm2587_vm5, %v2614_v13, %v2616_v43  ;;  %v17335_v8 = vld [vmem:[#allocation15_spill] sm:$0xff]  ;;  %v17341_v13 = vld [vmem:[#allocation32_spill] sm:$0xff] }
 0x7ac   :  { %8542 = vmatmul.msk.f32.gmra.mxu1 %vm2727_vm4, %v17328_v15  ;;  %v11359_v32 = vmax.f32 %v2064_v18, 0.0  ;;  %17334 = vst [vmem:[#allocation326_spill] sm:$0xff] %v11362_v58  ;;  %v17337_v15 = vmax.f32 %v17336_v17, 0.0  ;;  %v11380_v25 = vadd.f32 %v11200_v54, %v17341_v13 }
 0x7ae   :  { %v11353_v59 = vpop.f32.mrf.mxu2  ;;  %v11355_v29 = vpop.f32.mrf.mxu3  ;;  %17333 = vst [vmem:[#allocation325_spill] sm:$0xff] %v11359_v32  ;;  %v2618_v28 = vrot.slane %v11359_v32, 7 }
 0x7af   :  { %17330 = vst [vmem:[#allocation14_spill] sm:$0xff] %v11353_v59 }
 0x7b0   :  { %17331 = vst [vmem:[#allocation88_spill] sm:$0xff] %v11355_v29  ;;  %v17338_v29 = vld [vmem:[#allocation60_spill] sm:$0xff]  ;;  %v11387_v17 = vsel %vm2587_vm5, %v2616_v43, %v2618_v28 }
 0x7b1   :  { %v11357_v44 = vpop.f32.mrf.mxu1  ;;  %17342 = vst [vmem:[#allocation60_spill] sm:$0xff] %v11380_v25 }
 0x7b2   :  { %17332 = vst [vmem:[#allocation59_spill] sm:$0xff] %v11357_v44  ;;  %v2065_v44 = vadd.f32 %v11185_v48, %v17338_v29  ;;  %v16836_v29 = vmax.f32 %v11380_v25, 0.0 }
 0x7b3   :  { %8398 = vmatmul.msk.f32.gmra.mxu2 %vm2727_vm4, %v17335_v8  ;;  %8670 = vmatmul.msk.f32.gmra.mxu3 %vm2727_vm4, %v11362_v58  ;;  %17345 = vst [vmem:[#allocation328_spill] sm:$0xff] %v11387_v17 }
 0x7b4   :  { %8543 = vmatmul.msk.f32.gmra.mxu1 %vm2727_vm4, %v17337_v15  ;;  %v11384_v58 = vmax.f32 %v2065_v44, 0.0  ;;  %v17346_v15 = vld [vmem:[#allocation17_spill] sm:$0xff] }
 0x7b6   :  { %v11374_v18 = vpop.f32.mrf.mxu2  ;;  %v11376_v59 = vpop.f32.mrf.mxu3  ;;  %17344 = vst [vmem:[#allocation327_spill] sm:$0xff] %v11384_v58  ;;  %v16837_v13 = vrot.slane %v11384_v58, 7 }
 0x7b7   :  { %17339 = vst [vmem:[#allocation15_spill] sm:$0xff] %v11374_v18 }
 0x7b8   :  { %17340 = vst [vmem:[#allocation89_spill] sm:$0xff] %v11376_v59  ;;  %v17347_v59 = vld [vmem:[#allocation90_spill] sm:$0xff] }
 0x7b9   :  { %v11382_v8 = vpop.f32.mrf.mxu1  ;;  %v17348_v18 = vmax.f32 %v17347_v59, 0.0 }
 0x7ba   :  { %17343 = vst [vmem:[#allocation32_spill] sm:$0xff] %v11382_v8  ;;  %v17349_v8 = vld [vmem:[#allocation95_spill] sm:$0xff] }
 0x7bb   :  { %8399 = vmatmul.msk.f32.gmra.mxu2 %vm2727_vm4, %v17346_v15  ;;  %8671 = vmatmul.msk.f32.gmra.mxu3 %vm2727_vm4, %v11387_v17  ;;  %v2090_v44 = vadd.f32 %v10987_v34, %v17349_v8  ;;  %v3208_v15 = vrot.slane %v16836_v29, 7  ;;  %v17356_v8 = vld [vmem:[#allocation91_spill] sm:$0xff]  ;;  %v17358_v29 = vld [vmem:[#allocation96_spill] sm:$0xff] }
 0x7bc   :  { %8544 = vmatmul.msk.f32.gmra.mxu1 %vm2727_vm4, %v17348_v18  ;;  %v11415_v18 = vsel %vm2587_vm5, %v2618_v28, %v16837_v13  ;;  %v17361_v28 = vld [vmem:[#allocation94_spill] sm:$0xff] }
 0x7bd   :  { %v11408_v17 = vmax.f32 %v2090_v44, 0.0  ;;  %v3210_v59 = vsel %vm2587_vm5, %v3208_v15, %v17354_v46  ;;  %17355 = vst [vmem:[#allocation33_spill] sm:$0xff] %v11415_v18  ;;  %v2622_v13 = vrot.slane %v17361_v28, 7 }
 0x7be   :  { %v11400_v32 = vpop.f32.mrf.mxu2  ;;  %v11402_v43 = vpop.f32.mrf.mxu3 }
 0x7bf   :  { %17350 = vst [vmem:[#allocation17_spill] sm:$0xff] %v11400_v32  ;;  %v2623_v44 = vrot.slane %v11408_v17, 7 }
 0x7c0   :  { %17351 = vst [vmem:[#allocation90_spill] sm:$0xff] %v11402_v43  ;;  %v17357_v43 = vmax.f32 %v17356_v8, 0.0  ;;  %v17364_v8 = vld [vmem:[#allocation34_spill] sm:$0xff] }
 0x7c1   :  { %v11406_v10 = vpop.f32.mrf.mxu1  ;;  %17353 = vst [vmem:[#allocation329_spill] sm:$0xff] %v11408_v17  ;;  %v2624_v32 = vsel %vm2587_vm5, %v2622_v13, %v2623_v44 }
 0x7c2   :  { %17352 = vst [vmem:[#allocation95_spill] sm:$0xff] %v11406_v10  ;;  %v2091_v10 = vadd.f32 %v11012_v19, %v17358_v29 }
 0x7c3   :  { %8400 = vmatmul.msk.f32.gmra.mxu2 %vm2727_vm4, %v3210_v59  ;;  %8672 = vmatmul.msk.f32.gmra.mxu3 %vm2727_vm4, %v11415_v18 }
 0x7c4   :  { %8545 = vmatmul.msk.f32.gmra.mxu1 %vm2727_vm4, %v17357_v43  ;;  %v11433_v59 = vmax.f32 %v2091_v10, 0.0  ;;  %v17365_v43 = vld [vmem:[#allocation92_spill] sm:$0xff] }
 0x7c5   :  { %v17366_v18 = vmax.f32 %v17365_v43, 0.0 }
 0x7c6   :  { %v11426_v46 = vpop.f32.mrf.mxu2  ;;  %v11428_v15 = vpop.f32.mrf.mxu3  ;;  %17363 = vst [vmem:[#allocation330_spill] sm:$0xff] %v11433_v59  ;;  %v2625_v29 = vrot.slane %v11433_v59, 7 }
 0x7c7   :  { %17359 = vst [vmem:[#allocation91_spill] sm:$0xff] %v11426_v46 }
 0x7c8   :  { %17360 = vst [vmem:[#allocation96_spill] sm:$0xff] %v11428_v15  ;;  %v17367_v15 = vld [vmem:[#allocation97_spill] sm:$0xff] }
 0x7c9   :  { %v11431_v25 = vpop.f32.mrf.mxu1  ;;  %v2092_v46 = vadd.f32 %v11040_v4, %v17367_v15 }
 0x7ca   :  { %17362 = vst [vmem:[#allocation94_spill] sm:$0xff] %v11431_v25 }
 0x7cb   :  { %8401 = vmatmul.msk.f32.gmra.mxu2 %vm2727_vm4, %v17364_v8  ;;  %8673 = vmatmul.msk.f32.gmra.mxu3 %vm2727_vm4, %v2624_v32  ;;  %v11451_v13 = vmax.f32 %v2092_v46, 0.0  ;;  %v11454_v8 = vsel %vm2587_vm5, %v2623_v44, %v2625_v29  ;;  %v17373_v32 = vld [vmem:[#allocation35_spill] sm:$0xff] }
 0x7cc   :  { %8546 = vmatmul.msk.f32.gmra.mxu1 %vm2727_vm4, %v17366_v18  ;;  %17372 = vst [vmem:[#allocation332_spill] sm:$0xff] %v11454_v8  ;;  %v17374_v18 = vld [vmem:[#allocation93_spill] sm:$0xff] }
 0x7cd   :  { %17371 = vst [vmem:[#allocation331_spill] sm:$0xff] %v11451_v13  ;;  %v17375_v43 = vmax.f32 %v17374_v18, 0.0  ;;  %v2627_v15 = vrot.slane %v11451_v13, 7  ;;  %v17383_v18 = vld [vmem:[#allocation99_spill] sm:$0xff] }
 0x7ce   :  { %v11445_v58 = vpop.f32.mrf.mxu2  ;;  %v11447_v10 = vpop.f32.mrf.mxu3 }
 0x7cf   :  { %17368 = vst [vmem:[#allocation34_spill] sm:$0xff] %v11445_v58  ;;  %v17376_v58 = vld [vmem:[#allocation98_spill] sm:$0xff] }
 0x7d0   :  { %17369 = vst [vmem:[#allocation92_spill] sm:$0xff] %v11447_v10 }
 0x7d1   :  { %v11449_v25 = vpop.f32.mrf.mxu1 }
 0x7d2   :  { %17370 = vst [vmem:[#allocation97_spill] sm:$0xff] %v11449_v25  ;;  %v2093_v25 = vadd.f32 %v11069_v41, %v17376_v58 }
 0x7d3   :  { %8402 = vmatmul.msk.f32.gmra.mxu2 %vm2727_vm4, %v17373_v32  ;;  %8674 = vmatmul.msk.f32.gmra.mxu3 %vm2727_vm4, %v11454_v8  ;;  %v11475_v32 = vsel %vm2587_vm5, %v2625_v29, %v2627_v15  ;;  %v17382_v8 = vld [vmem:[#allocation36_spill] sm:$0xff] }
 0x7d4   :  { %8547 = vmatmul.msk.f32.gmra.mxu1 %vm2727_vm4, %v17375_v43  ;;  %v11472_v59 = vmax.f32 %v2093_v25, 0.0  ;;  %17381 = vst [vmem:[#allocation334_spill] sm:$0xff] %v11475_v32  ;;  %v2094_v43 = vadd.f32 %v11099_v20, %v17383_v18  ;;  %v17390_v18 = vld [vmem:[#allocation100_spill] sm:$0xff] }
 0x7d6   :  { %v11466_v46 = vpop.f32.mrf.mxu2  ;;  %v11468_v10 = vpop.f32.mrf.mxu3  ;;  %17380 = vst [vmem:[#allocation333_spill] sm:$0xff] %v11472_v59  ;;  %v2629_v58 = vrot.slane %v11472_v59, 7 }
 0x7d7   :  { %17377 = vst [vmem:[#allocation35_spill] sm:$0xff] %v11466_v46 }
 0x7d8   :  { %17378 = vst [vmem:[#allocation93_spill] sm:$0xff] %v11468_v10  ;;  %v17389_v10 = vld [vmem:[#allocation37_spill] sm:$0xff] }
 0x7d9   :  { %v11470_v44 = vpop.f32.mrf.mxu1 }
 0x7da   :  { %17379 = vst [vmem:[#allocation98_spill] sm:$0xff] %v11470_v44  ;;  %v11492_v44 = vmax.f32 %v2094_v43, 0.0 }
 0x7db   :  { %8403 = vmatmul.msk.f32.gmra.mxu2 %vm2727_vm4, %v17382_v8  ;;  %8675 = vmatmul.msk.f32.gmra.mxu3 %vm2727_vm4, %v11475_v32  ;;  %v11495_v8 = vsel %vm2587_vm5, %v2627_v15, %v2629_v58  ;;  %v17397_v32 = vld [vmem:[#allocation130_spill] sm:$0xff] }
 0x7dc   :  { %8548 = vmatmul.msk.f32.gmra.mxu1 %vm2727_vm4, %v17361_v28  ;;  %17387 = vst [vmem:[#allocation336_spill] sm:$0xff] %v11492_v44  ;;  %v2631_v28 = vrot.slane %v11492_v44, 7  ;;  %v17398_v44 = vmax.f32 %v17397_v32, 0.0 }
 0x7dd   :  { %17388 = vst [vmem:[#allocation337_spill] sm:$0xff] %v11495_v8 }
 0x7de   :  { %v11486_v46 = vpop.f32.mrf.mxu2  ;;  %v11488_v25 = vpop.f32.mrf.mxu3 }
 0x7df   :  { %17384 = vst [vmem:[#allocation36_spill] sm:$0xff] %v11486_v46  ;;  %v2095_v46 = vadd.f32 %v11126_v33, %v17390_v18 }
 0x7e0   :  { %17385 = vst [vmem:[#allocation99_spill] sm:$0xff] %v11488_v25 }
 0x7e1   :  { %v11490_v29 = vpop.f32.mrf.mxu1  ;;  %v11512_v25 = vmax.f32 %v2095_v46, 0.0 }
 0x7e2   :  { %17386 = vst [vmem:[#allocation335_spill] sm:$0xff] %v11490_v29 }
 0x7e3   :  { %8404 = vmatmul.msk.f32.gmra.mxu2 %vm2727_vm4, %v17389_v10  ;;  %8676 = vmatmul.msk.f32.gmra.mxu3 %vm2727_vm4, %v11495_v8  ;;  %17394 = vst [vmem:[#allocation339_spill] sm:$0xff] %v11512_v25  ;;  %v11515_v10 = vsel %vm2587_vm5, %v2629_v58, %v2631_v28  ;;  %v17396_v8 = vld [vmem:[#allocation39_spill] sm:$0xff]  ;;  %v2633_v18 = vrot.slane %v11512_v25, 7 }
 0x7e4   :  { %8549 = vmatmul.msk.f32.gmra.mxu1 %vm2727_vm4, %v11408_v17  ;;  %17395 = vst [vmem:[#allocation340_spill] sm:$0xff] %v11515_v10  ;;  %v17424_v17 = vld [vmem:[#allocation73_spill] sm:$0xff] }
 0x7e6   :  { %v11506_v29 = vpop.f32.mrf.mxu2  ;;  %v11508_v43 = vpop.f32.mrf.mxu3 }
 0x7e7   :  { %17391 = vst [vmem:[#allocation37_spill] sm:$0xff] %v11506_v29  ;;  %v17399_v29 = vld [vmem:[#allocation101_spill] sm:$0xff] }
 0x7e8   :  { %17392 = vst [vmem:[#allocation100_spill] sm:$0xff] %v11508_v43 }
 0x7e9   :  { %v11510_v15 = vpop.f32.mrf.mxu1 }
 0x7ea   :  { %17393 = vst [vmem:[#allocation338_spill] sm:$0xff] %v11510_v15  ;;  %v2096_v15 = vadd.f32 %v11155_v52, %v17399_v29 }
 0x7eb   :  { %8405 = vmatmul.msk.f32.gmra.mxu2 %vm2727_vm4, %v17396_v8  ;;  %8677 = vmatmul.msk.f32.gmra.mxu3 %vm2727_vm4, %v11515_v10  ;;  %v11536_v8 = vsel %vm2587_vm5, %v2631_v28, %v2633_v18  ;;  %v17405_v10 = vld [vmem:[#allocation40_spill] sm:$0xff]  ;;  %v17411_v28 = vld [vmem:[#allocation70_spill] sm:$0xff] }
 0x7ec   :  { %8550 = vmatmul.msk.f32.gmra.mxu1 %vm2727_vm4, %v17398_v44  ;;  %v11533_v59 = vmax.f32 %v2096_v15, 0.0  ;;  %17404 = vst [vmem:[#allocation342_spill] sm:$0xff] %v11536_v8  ;;  %v17406_v44 = vld [vmem:[#allocation132_spill] sm:$0xff]  ;;  %v11554_v25 = vadd.f32 %v11200_v54, %v17411_v28 }
 0x7ed   :  { %v17407_v32 = vmax.f32 %v17406_v44, 0.0 }
 0x7ee   :  { %v11527_v46 = vpop.f32.mrf.mxu2  ;;  %v11529_v43 = vpop.f32.mrf.mxu3  ;;  %17403 = vst [vmem:[#allocation341_spill] sm:$0xff] %v11533_v59  ;;  %v2635_v29 = vrot.slane %v11533_v59, 7 }
 0x7ef   :  { %17400 = vst [vmem:[#allocation39_spill] sm:$0xff] %v11527_v46  ;;  %v17408_v46 = vld [vmem:[#allocation102_spill] sm:$0xff] }
 0x7f0   :  { %17401 = vst [vmem:[#allocation130_spill] sm:$0xff] %v11529_v43  ;;  %v11561_v44 = vsel %vm2587_vm5, %v2633_v18, %v2635_v29 }
 0x7f1   :  { %v11531_v58 = vpop.f32.mrf.mxu1  ;;  %17412 = vst [vmem:[#allocation102_spill] sm:$0xff] %v11554_v25 }
 0x7f2   :  { %17402 = vst [vmem:[#allocation101_spill] sm:$0xff] %v11531_v58  ;;  %v2097_v58 = vadd.f32 %v11185_v48, %v17408_v46  ;;  %v16861_v46 = vmax.f32 %v11554_v25, 0.0 }
 0x7f3   :  { %8406 = vmatmul.msk.f32.gmra.mxu2 %vm2727_vm4, %v17405_v10  ;;  %8678 = vmatmul.msk.f32.gmra.mxu3 %vm2727_vm4, %v11536_v8  ;;  %17415 = vst [vmem:[#allocation344_spill] sm:$0xff] %v11561_v44 }
 0x7f4   :  { %8551 = vmatmul.msk.f32.gmra.mxu1 %vm2727_vm4, %v17407_v32  ;;  %v11558_v8 = vmax.f32 %v2097_v58, 0.0  ;;  %v17416_v32 = vld [vmem:[#allocation42_spill] sm:$0xff] }
 0x7f6   :  { %v11548_v15 = vpop.f32.mrf.mxu2  ;;  %v11550_v43 = vpop.f32.mrf.mxu3  ;;  %17414 = vst [vmem:[#allocation343_spill] sm:$0xff] %v11558_v8  ;;  %v16862_v28 = vrot.slane %v11558_v8, 7 }
 0x7f7   :  { %17409 = vst [vmem:[#allocation40_spill] sm:$0xff] %v11548_v15  ;;  %v17417_v15 = vld [vmem:[#allocation134_spill] sm:$0xff] }
 0x7f8   :  { %17410 = vst [vmem:[#allocation132_spill] sm:$0xff] %v11550_v43  ;;  %v17418_v43 = vmax.f32 %v17417_v15, 0.0 }
 0x7f9   :  { %v11556_v10 = vpop.f32.mrf.mxu1 }
 0x7fa   :  { %17413 = vst [vmem:[#allocation70_spill] sm:$0xff] %v11556_v10  ;;  %v17419_v10 = vld [vmem:[#allocation143_spill] sm:$0xff] }
 0x7fb   :  { %8407 = vmatmul.msk.f32.gmra.mxu2 %vm2727_vm4, %v17416_v32  ;;  %8679 = vmatmul.msk.f32.gmra.mxu3 %vm2727_vm4, %v11561_v44  ;;  %v2122_v58 = vadd.f32 %v10987_v34, %v17419_v10  ;;  %v3225_v32 = vrot.slane %v16861_v46, 7  ;;  %v17426_v10 = vld [vmem:[#allocation136_spill] sm:$0xff] }
 0x7fc   :  { %8552 = vmatmul.msk.f32.gmra.mxu1 %vm2727_vm4, %v17418_v43  ;;  %v11589_v43 = vsel %vm2587_vm5, %v2635_v29, %v16862_v28  ;;  %v17428_v46 = vld [vmem:[#allocation144_spill] sm:$0xff]  ;;  %v17431_v29 = vld [vmem:[#allocation141_spill] sm:$0xff] }
 0x7fd   :  { %v11582_v44 = vmax.f32 %v2122_v58, 0.0  ;;  %v3227_v15 = vsel %vm2587_vm5, %v3225_v32, %v17424_v17  ;;  %17425 = vst [vmem:[#allocation73_spill] sm:$0xff] %v11589_v43  ;;  %v2639_v28 = vrot.slane %v17431_v29, 7 }
 0x7fe   :  { %v11574_v59 = vpop.f32.mrf.mxu2  ;;  %v11576_v18 = vpop.f32.mrf.mxu3 }
 0x7ff   :  { %17420 = vst [vmem:[#allocation42_spill] sm:$0xff] %v11574_v59  ;;  %v17427_v59 = vmax.f32 %v17426_v10, 0.0  ;;  %v2640_v58 = vrot.slane %v11582_v44, 7  ;;  %v17434_v10 = vld [vmem:[#allocation74_spill] sm:$0xff] }
 0x800   :  { %17421 = vst [vmem:[#allocation134_spill] sm:$0xff] %v11576_v18 }
 0x801   :  { %v11580_v13 = vpop.f32.mrf.mxu1  ;;  %17423 = vst [vmem:[#allocation345_spill] sm:$0xff] %v11582_v44  ;;  %v2641_v18 = vsel %vm2587_vm5, %v2639_v28, %v2640_v58 }
 0x802   :  { %17422 = vst [vmem:[#allocation143_spill] sm:$0xff] %v11580_v13  ;;  %v2123_v13 = vadd.f32 %v11012_v19, %v17428_v46 }
 0x803   :  { %8408 = vmatmul.msk.f32.gmra.mxu2 %vm2727_vm4, %v3227_v15  ;;  %8680 = vmatmul.msk.f32.gmra.mxu3 %vm2727_vm4, %v11589_v43 }
 0x804   :  { %8553 = vmatmul.msk.f32.gmra.mxu1 %vm2727_vm4, %v17427_v59  ;;  %v11607_v15 = vmax.f32 %v2123_v13, 0.0  ;;  %v17435_v59 = vld [vmem:[#allocation138_spill] sm:$0xff] }
 0x805   :  { %v17436_v43 = vmax.f32 %v17435_v59, 0.0 }
 0x806   :  { %v11600_v17 = vpop.f32.mrf.mxu2  ;;  %v11602_v32 = vpop.f32.mrf.mxu3  ;;  %17433 = vst [vmem:[#allocation346_spill] sm:$0xff] %v11607_v15  ;;  %v2642_v46 = vrot.slane %v11607_v15, 7 }
 0x807   :  { %17429 = vst [vmem:[#allocation136_spill] sm:$0xff] %v11600_v17 }
 0x808   :  { %17430 = vst [vmem:[#allocation144_spill] sm:$0xff] %v11602_v32  ;;  %v17437_v32 = vld [vmem:[#allocation145_spill] sm:$0xff] }
 0x809   :  { %v11605_v25 = vpop.f32.mrf.mxu1  ;;  %v2124_v17 = vadd.f32 %v11040_v4, %v17437_v32 }
 0x80a   :  { %17432 = vst [vmem:[#allocation141_spill] sm:$0xff] %v11605_v25 }
 0x80b   :  { %8409 = vmatmul.msk.f32.gmra.mxu2 %vm2727_vm4, %v17434_v10  ;;  %8681 = vmatmul.msk.f32.gmra.mxu3 %vm2727_vm4, %v2641_v18  ;;  %v11625_v28 = vmax.f32 %v2124_v17, 0.0  ;;  %v11628_v10 = vsel %vm2587_vm5, %v2640_v58, %v2642_v46  ;;  %v17443_v18 = vld [vmem:[#allocation76_spill] sm:$0xff] }
 0x80c   :  { %8554 = vmatmul.msk.f32.gmra.mxu1 %vm2727_vm4, %v17436_v43  ;;  %17442 = vst [vmem:[#allocation348_spill] sm:$0xff] %v11628_v10  ;;  %v17444_v43 = vld [vmem:[#allocation139_spill] sm:$0xff] }
 0x80d   :  { %17441 = vst [vmem:[#allocation347_spill] sm:$0xff] %v11625_v28  ;;  %v17445_v59 = vmax.f32 %v17444_v43, 0.0  ;;  %v2644_v32 = vrot.slane %v11625_v28, 7  ;;  %v17453_v43 = vld [vmem:[#allocation147_spill] sm:$0xff] }
 0x80e   :  { %v11619_v8 = vpop.f32.mrf.mxu2  ;;  %v11621_v13 = vpop.f32.mrf.mxu3 }
 0x80f   :  { %17438 = vst [vmem:[#allocation74_spill] sm:$0xff] %v11619_v8 }
 0x810   :  { %17439 = vst [vmem:[#allocation138_spill] sm:$0xff] %v11621_v13  ;;  %v17446_v13 = vld [vmem:[#allocation146_spill] sm:$0xff] }
 0x811   :  { %v11623_v25 = vpop.f32.mrf.mxu1 }
 0x812   :  { %17440 = vst [vmem:[#allocation145_spill] sm:$0xff] %v11623_v25  ;;  %v2125_v25 = vadd.f32 %v11069_v41, %v17446_v13 }
 0x813   :  { %8410 = vmatmul.msk.f32.gmra.mxu2 %vm2727_vm4, %v17443_v18  ;;  %8682 = vmatmul.msk.f32.gmra.mxu3 %vm2727_vm4, %v11628_v10  ;;  %v11649_v18 = vsel %vm2587_vm5, %v2642_v46, %v2644_v32  ;;  %v17452_v10 = vld [vmem:[#allocation78_spill] sm:$0xff] }
 0x814   :  { %8555 = vmatmul.msk.f32.gmra.mxu1 %vm2727_vm4, %v17445_v59  ;;  %v11646_v15 = vmax.f32 %v2125_v25, 0.0  ;;  %17451 = vst [vmem:[#allocation350_spill] sm:$0xff] %v11649_v18  ;;  %v2126_v59 = vadd.f32 %v11099_v20, %v17453_v43  ;;  %v17460_v43 = vld [vmem:[#allocation148_spill] sm:$0xff] }
 0x816   :  { %v11640_v17 = vpop.f32.mrf.mxu2  ;;  %v11642_v8 = vpop.f32.mrf.mxu3  ;;  %17450 = vst [vmem:[#allocation349_spill] sm:$0xff] %v11646_v15  ;;  %v2646_v13 = vrot.slane %v11646_v15, 7 }
 0x817   :  { %17447 = vst [vmem:[#allocation76_spill] sm:$0xff] %v11640_v17  ;;  %v17459_v17 = vld [vmem:[#allocation79_spill] sm:$0xff] }
 0x818   :  { %17448 = vst [vmem:[#allocation139_spill] sm:$0xff] %v11642_v8  ;;  %v11666_v8 = vmax.f32 %v2126_v59, 0.0 }
 0x819   :  { %v11644_v58 = vpop.f32.mrf.mxu1 }
 0x81a   :  { %17449 = vst [vmem:[#allocation146_spill] sm:$0xff] %v11644_v58 }
 0x81b   :  { %8411 = vmatmul.msk.f32.gmra.mxu2 %vm2727_vm4, %v17452_v10  ;;  %8683 = vmatmul.msk.f32.gmra.mxu3 %vm2727_vm4, %v11649_v18  ;;  %17457 = vst [vmem:[#allocation352_spill] sm:$0xff] %v11666_v8  ;;  %v11669_v10 = vsel %vm2587_vm5, %v2644_v32, %v2646_v13  ;;  %v17467_v18 = vld [vmem:[#allocation178_spill] sm:$0xff] }
 0x81c   :  { %8556 = vmatmul.msk.f32.gmra.mxu1 %vm2727_vm4, %v17431_v29  ;;  %17458 = vst [vmem:[#allocation353_spill] sm:$0xff] %v11669_v10  ;;  %v2648_v29 = vrot.slane %v11666_v8, 7  ;;  %v17468_v8 = vmax.f32 %v17467_v18, 0.0 }
 0x81e   :  { %v11660_v58 = vpop.f32.mrf.mxu2  ;;  %v11662_v25 = vpop.f32.mrf.mxu3 }
 0x81f   :  { %17454 = vst [vmem:[#allocation78_spill] sm:$0xff] %v11660_v58 }
 0x820   :  { %17455 = vst [vmem:[#allocation147_spill] sm:$0xff] %v11662_v25  ;;  %v2127_v25 = vadd.f32 %v11126_v33, %v17460_v43 }
 0x821   :  { %v11664_v46 = vpop.f32.mrf.mxu1 }
 0x822   :  { %17456 = vst [vmem:[#allocation351_spill] sm:$0xff] %v11664_v46  ;;  %v11686_v58 = vmax.f32 %v2127_v25, 0.0 }
 0x823   :  { %8412 = vmatmul.msk.f32.gmra.mxu2 %vm2727_vm4, %v17459_v17  ;;  %8684 = vmatmul.msk.f32.gmra.mxu3 %vm2727_vm4, %v11669_v10  ;;  %v11689_v17 = vsel %vm2587_vm5, %v2646_v13, %v2648_v29  ;;  %v17466_v10 = vld [vmem:[#allocation82_spill] sm:$0xff] }
 0x824   :  { %8557 = vmatmul.msk.f32.gmra.mxu1 %vm2727_vm4, %v11582_v44  ;;  %17464 = vst [vmem:[#allocation355_spill] sm:$0xff] %v11686_v58  ;;  %v2650_v43 = vrot.slane %v11686_v58, 7  ;;  %v17494_v44 = vld [vmem:[#allocation115_spill] sm:$0xff] }
 0x825   :  { %17465 = vst [vmem:[#allocation356_spill] sm:$0xff] %v11689_v17 }
 0x826   :  { %v11680_v46 = vpop.f32.mrf.mxu2  ;;  %v11682_v59 = vpop.f32.mrf.mxu3 }
 0x827   :  { %17461 = vst [vmem:[#allocation79_spill] sm:$0xff] %v11680_v46 }
 0x828   :  { %17462 = vst [vmem:[#allocation148_spill] sm:$0xff] %v11682_v59  ;;  %v17469_v59 = vld [vmem:[#allocation149_spill] sm:$0xff] }
 0x829   :  { %v11684_v32 = vpop.f32.mrf.mxu1 }
 0x82a   :  { %17463 = vst [vmem:[#allocation354_spill] sm:$0xff] %v11684_v32  ;;  %v2128_v32 = vadd.f32 %v11155_v52, %v17469_v59 }
 0x82b   :  { %8413 = vmatmul.msk.f32.gmra.mxu2 %vm2727_vm4, %v17466_v10  ;;  %8685 = vmatmul.msk.f32.gmra.mxu3 %vm2727_vm4, %v11689_v17  ;;  %v11710_v10 = vsel %vm2587_vm5, %v2648_v29, %v2650_v43  ;;  %v17475_v17 = vld [vmem:[#allocation84_spill] sm:$0xff] }
 0x82c   :  { %8558 = vmatmul.msk.f32.gmra.mxu1 %vm2727_vm4, %v17468_v8  ;;  %v11707_v15 = vmax.f32 %v2128_v32, 0.0  ;;  %17474 = vst [vmem:[#allocation358_spill] sm:$0xff] %v11710_v10  ;;  %v17476_v8 = vld [vmem:[#allocation180_spill] sm:$0xff] }
 0x82d   :  { %v17477_v18 = vmax.f32 %v17476_v8, 0.0  ;;  %v17481_v29 = vld [vmem:[#allocation112_spill] sm:$0xff] }
 0x82e   :  { %v11701_v25 = vpop.f32.mrf.mxu2  ;;  %v11703_v46 = vpop.f32.mrf.mxu3  ;;  %17473 = vst [vmem:[#allocation357_spill] sm:$0xff] %v11707_v15  ;;  %v2652_v59 = vrot.slane %v11707_v15, 7  ;;  %v11728_v58 = vadd.f32 %v11200_v54, %v17481_v29 }
 0x82f   :  { %17470 = vst [vmem:[#allocation82_spill] sm:$0xff] %v11701_v25 }
 0x830   :  { %17471 = vst [vmem:[#allocation178_spill] sm:$0xff] %v11703_v46  ;;  %v17478_v46 = vld [vmem:[#allocation150_spill] sm:$0xff]  ;;  %v11735_v8 = vsel %vm2587_vm5, %v2650_v43, %v2652_v59 }
 0x831   :  { %v11705_v13 = vpop.f32.mrf.mxu1  ;;  %17482 = vst [vmem:[#allocation150_spill] sm:$0xff] %v11728_v58 }
 0x832   :  { %17472 = vst [vmem:[#allocation149_spill] sm:$0xff] %v11705_v13  ;;  %v2129_v13 = vadd.f32 %v11185_v48, %v17478_v46  ;;  %v16887_v46 = vmax.f32 %v11728_v58, 0.0 }
 0x833   :  { %8414 = vmatmul.msk.f32.gmra.mxu2 %vm2727_vm4, %v17475_v17  ;;  %8686 = vmatmul.msk.f32.gmra.mxu3 %vm2727_vm4, %v11710_v10  ;;  %17485 = vst [vmem:[#allocation360_spill] sm:$0xff] %v11735_v8 }
 0x834   :  { %8559 = vmatmul.msk.f32.gmra.mxu1 %vm2727_vm4, %v17477_v18  ;;  %v11732_v10 = vmax.f32 %v2129_v13, 0.0  ;;  %v17486_v18 = vld [vmem:[#allocation87_spill] sm:$0xff] }
 0x836   :  { %v11722_v32 = vpop.f32.mrf.mxu2  ;;  %v11724_v25 = vpop.f32.mrf.mxu3  ;;  %17484 = vst [vmem:[#allocation359_spill] sm:$0xff] %v11732_v10  ;;  %v16888_v29 = vrot.slane %v11732_v10, 7 }
 0x837   :  { %17479 = vst [vmem:[#allocation84_spill] sm:$0xff] %v11722_v32 }
 0x838   :  { %17480 = vst [vmem:[#allocation180_spill] sm:$0xff] %v11724_v25  ;;  %v17487_v25 = vld [vmem:[#allocation182_spill] sm:$0xff] }
 0x839   :  { %v11730_v17 = vpop.f32.mrf.mxu1  ;;  %v17488_v32 = vmax.f32 %v17487_v25, 0.0 }
 0x83a   :  { %17483 = vst [vmem:[#allocation112_spill] sm:$0xff] %v11730_v17  ;;  %v17489_v17 = vld [vmem:[#allocation191_spill] sm:$0xff] }
 0x83b   :  { %8415 = vmatmul.msk.f32.gmra.mxu2 %vm2727_vm4, %v17486_v18  ;;  %8687 = vmatmul.msk.f32.gmra.mxu3 %vm2727_vm4, %v11735_v8  ;;  %v2154_v13 = vadd.f32 %v10987_v34, %v17489_v17  ;;  %v3242_v18 = vrot.slane %v16887_v46, 7  ;;  %v17496_v17 = vld [vmem:[#allocation184_spill] sm:$0xff] }
 0x83c   :  { %8560 = vmatmul.msk.f32.gmra.mxu1 %vm2727_vm4, %v17488_v32  ;;  %v11763_v32 = vsel %vm2587_vm5, %v2652_v59, %v16888_v29  ;;  %v17497_v58 = vmax.f32 %v17496_v17, 0.0  ;;  %v17498_v46 = vld [vmem:[#allocation192_spill] sm:$0xff]  ;;  %v17501_v59 = vld [vmem:[#allocation189_spill] sm:$0xff] }
 0x83d   :  { %v11756_v8 = vmax.f32 %v2154_v13, 0.0  ;;  %v3244_v25 = vsel %vm2587_vm5, %v3242_v18, %v17494_v44  ;;  %17495 = vst [vmem:[#allocation115_spill] sm:$0xff] %v11763_v32  ;;  %v2656_v29 = vrot.slane %v17501_v59, 7  ;;  %v17504_v17 = vld [vmem:[#allocation116_spill] sm:$0xff] }
 0x83e   :  { %v11748_v15 = vpop.f32.mrf.mxu2  ;;  %v11750_v43 = vpop.f32.mrf.mxu3 }
 0x83f   :  { %17490 = vst [vmem:[#allocation87_spill] sm:$0xff] %v11748_v15  ;;  %v2657_v13 = vrot.slane %v11756_v8, 7 }
 0x840   :  { %17491 = vst [vmem:[#allocation182_spill] sm:$0xff] %v11750_v43 }
 0x841   :  { %v11754_v28 = vpop.f32.mrf.mxu1  ;;  %17493 = vst [vmem:[#allocation361_spill] sm:$0xff] %v11756_v8  ;;  %v2658_v15 = vsel %vm2587_vm5, %v2656_v29, %v2657_v13 }
 0x842   :  { %17492 = vst [vmem:[#allocation191_spill] sm:$0xff] %v11754_v28  ;;  %v2155_v28 = vadd.f32 %v11012_v19, %v17498_v46 }
 0x843   :  { %8416 = vmatmul.msk.f32.gmra.mxu2 %vm2727_vm4, %v3244_v25  ;;  %8688 = vmatmul.msk.f32.gmra.mxu3 %vm2727_vm4, %v11763_v32 }
 0x844   :  { %8561 = vmatmul.msk.f32.gmra.mxu1 %vm2727_vm4, %v17497_v58  ;;  %v11781_v25 = vmax.f32 %v2155_v28, 0.0  ;;  %v17505_v58 = vld [vmem:[#allocation186_spill] sm:$0xff] }
 0x845   :  { %v17506_v32 = vmax.f32 %v17505_v58, 0.0 }
 0x846   :  { %v11774_v44 = vpop.f32.mrf.mxu2  ;;  %v11776_v18 = vpop.f32.mrf.mxu3  ;;  %17503 = vst [vmem:[#allocation362_spill] sm:$0xff] %v11781_v25  ;;  %v2659_v46 = vrot.slane %v11781_v25, 7 }
 0x847   :  { %17499 = vst [vmem:[#allocation184_spill] sm:$0xff] %v11774_v44 }
 0x848   :  { %17500 = vst [vmem:[#allocation192_spill] sm:$0xff] %v11776_v18  ;;  %v17507_v18 = vld [vmem:[#allocation193_spill] sm:$0xff] }
 0x849   :  { %v11779_v43 = vpop.f32.mrf.mxu1  ;;  %v2156_v44 = vadd.f32 %v11040_v4, %v17507_v18 }
 0x84a   :  { %17502 = vst [vmem:[#allocation189_spill] sm:$0xff] %v11779_v43 }
 0x84b   :  { %8417 = vmatmul.msk.f32.gmra.mxu2 %vm2727_vm4, %v17504_v17  ;;  %8689 = vmatmul.msk.f32.gmra.mxu3 %vm2727_vm4, %v2658_v15  ;;  %v11799_v29 = vmax.f32 %v2156_v44, 0.0  ;;  %v11802_v17 = vsel %vm2587_vm5, %v2657_v13, %v2659_v46  ;;  %v17513_v15 = vld [vmem:[#allocation118_spill] sm:$0xff] }
 0x84c   :  { %8562 = vmatmul.msk.f32.gmra.mxu1 %vm2727_vm4, %v17506_v32  ;;  %17512 = vst [vmem:[#allocation364_spill] sm:$0xff] %v11802_v17  ;;  %v17514_v32 = vld [vmem:[#allocation187_spill] sm:$0xff] }
 0x84d   :  { %17511 = vst [vmem:[#allocation363_spill] sm:$0xff] %v11799_v29  ;;  %v17515_v58 = vmax.f32 %v17514_v32, 0.0  ;;  %v2661_v18 = vrot.slane %v11799_v29, 7  ;;  %v17523_v32 = vld [vmem:[#allocation195_spill] sm:$0xff] }
 0x84e   :  { %v11793_v10 = vpop.f32.mrf.mxu2  ;;  %v11795_v28 = vpop.f32.mrf.mxu3 }
 0x84f   :  { %17508 = vst [vmem:[#allocation116_spill] sm:$0xff] %v11793_v10 }
 0x850   :  { %17509 = vst [vmem:[#allocation186_spill] sm:$0xff] %v11795_v28  ;;  %v17516_v28 = vld [vmem:[#allocation194_spill] sm:$0xff] }
 0x851   :  { %v11797_v43 = vpop.f32.mrf.mxu1 }
 0x852   :  { %17510 = vst [vmem:[#allocation193_spill] sm:$0xff] %v11797_v43  ;;  %v2157_v43 = vadd.f32 %v11069_v41, %v17516_v28 }
 0x853   :  { %8418 = vmatmul.msk.f32.gmra.mxu2 %vm2727_vm4, %v17513_v15  ;;  %8690 = vmatmul.msk.f32.gmra.mxu3 %vm2727_vm4, %v11802_v17  ;;  %v11823_v15 = vsel %vm2587_vm5, %v2659_v46, %v2661_v18  ;;  %v17522_v17 = vld [vmem:[#allocation120_spill] sm:$0xff] }
 0x854   :  { %8563 = vmatmul.msk.f32.gmra.mxu1 %vm2727_vm4, %v17515_v58  ;;  %v11820_v25 = vmax.f32 %v2157_v43, 0.0  ;;  %17521 = vst [vmem:[#allocation366_spill] sm:$0xff] %v11823_v15  ;;  %v2158_v58 = vadd.f32 %v11099_v20, %v17523_v32  ;;  %v17530_v32 = vld [vmem:[#allocation196_spill] sm:$0xff] }
 0x856   :  { %v11814_v44 = vpop.f32.mrf.mxu2  ;;  %v11816_v10 = vpop.f32.mrf.mxu3  ;;  %17520 = vst [vmem:[#allocation365_spill] sm:$0xff] %v11820_v25  ;;  %v2663_v28 = vrot.slane %v11820_v25, 7 }
 0x857   :  { %17517 = vst [vmem:[#allocation118_spill] sm:$0xff] %v11814_v44  ;;  %v17529_v44 = vld [vmem:[#allocation121_spill] sm:$0xff] }
 0x858   :  { %17518 = vst [vmem:[#allocation187_spill] sm:$0xff] %v11816_v10  ;;  %v11840_v10 = vmax.f32 %v2158_v58, 0.0 }
 0x859   :  { %v11818_v13 = vpop.f32.mrf.mxu1 }
 0x85a   :  { %17519 = vst [vmem:[#allocation194_spill] sm:$0xff] %v11818_v13 }
 0x85b   :  { %8419 = vmatmul.msk.f32.gmra.mxu2 %vm2727_vm4, %v17522_v17  ;;  %8691 = vmatmul.msk.f32.gmra.mxu3 %vm2727_vm4, %v11823_v15  ;;  %17527 = vst [vmem:[#allocation368_spill] sm:$0xff] %v11840_v10  ;;  %v11843_v17 = vsel %vm2587_vm5, %v2661_v18, %v2663_v28  ;;  %v17537_v15 = vld [vmem:[#allocation226_spill] sm:$0xff] }
 0x85c   :  { %8564 = vmatmul.msk.f32.gmra.mxu1 %vm2727_vm4, %v17501_v59  ;;  %17528 = vst [vmem:[#allocation369_spill] sm:$0xff] %v11843_v17  ;;  %v2665_v59 = vrot.slane %v11840_v10, 7  ;;  %v17538_v10 = vmax.f32 %v17537_v15, 0.0 }
 0x85e   :  { %v11834_v13 = vpop.f32.mrf.mxu2  ;;  %v11836_v43 = vpop.f32.mrf.mxu3 }
 0x85f   :  { %17524 = vst [vmem:[#allocation120_spill] sm:$0xff] %v11834_v13 }
 0x860   :  { %17525 = vst [vmem:[#allocation195_spill] sm:$0xff] %v11836_v43  ;;  %v2159_v43 = vadd.f32 %v11126_v33, %v17530_v32 }
 0x861   :  { %v11838_v46 = vpop.f32.mrf.mxu1 }
 0x862   :  { %17526 = vst [vmem:[#allocation367_spill] sm:$0xff] %v11838_v46  ;;  %v11860_v13 = vmax.f32 %v2159_v43, 0.0 }
 0x863   :  { %8420 = vmatmul.msk.f32.gmra.mxu2 %vm2727_vm4, %v17529_v44  ;;  %8692 = vmatmul.msk.f32.gmra.mxu3 %vm2727_vm4, %v11843_v17  ;;  %v11863_v44 = vsel %vm2587_vm5, %v2663_v28, %v2665_v59  ;;  %v17536_v17 = vld [vmem:[#allocation124_spill] sm:$0xff] }
 0x864   :  { %8565 = vmatmul.msk.f32.gmra.mxu1 %vm2727_vm4, %v11756_v8  ;;  %17534 = vst [vmem:[#allocation371_spill] sm:$0xff] %v11860_v13  ;;  %v2667_v32 = vrot.slane %v11860_v13, 7  ;;  %v17562_v8 = vld [vmem:[#allocation163_spill] sm:$0xff] }
 0x865   :  { %17535 = vst [vmem:[#allocation372_spill] sm:$0xff] %v11863_v44 }
 0x866   :  { %v11854_v46 = vpop.f32.mrf.mxu2  ;;  %v11856_v58 = vpop.f32.mrf.mxu3 }
 0x867   :  { %17531 = vst [vmem:[#allocation121_spill] sm:$0xff] %v11854_v46 }
 0x868   :  { %17532 = vst [vmem:[#allocation196_spill] sm:$0xff] %v11856_v58  ;;  %v17539_v58 = vld [vmem:[#allocation197_spill] sm:$0xff] }
 0x869   :  { %v11858_v18 = vpop.f32.mrf.mxu1 }
 0x86a   :  { %17533 = vst [vmem:[#allocation370_spill] sm:$0xff] %v11858_v18  ;;  %v2160_v18 = vadd.f32 %v11155_v52, %v17539_v58 }
 0x86b   :  { %8421 = vmatmul.msk.f32.gmra.mxu2 %vm2727_vm4, %v17536_v17  ;;  %8693 = vmatmul.msk.f32.gmra.mxu3 %vm2727_vm4, %v11863_v44  ;;  %v11884_v17 = vsel %vm2587_vm5, %v2665_v59, %v2667_v32  ;;  %v17545_v44 = vld [vmem:[#allocation126_spill] sm:$0xff]  ;;  %v17551_v59 = vld [vmem:[#allocation160_spill] sm:$0xff] }
 0x86c   :  { %8566 = vmatmul.msk.f32.gmra.mxu1 %vm2727_vm4, %v17538_v10  ;;  %v11881_v25 = vmax.f32 %v2160_v18, 0.0  ;;  %17544 = vst [vmem:[#allocation374_spill] sm:$0xff] %v11884_v17  ;;  %v17546_v10 = vld [vmem:[#allocation228_spill] sm:$0xff]  ;;  %v11902_v13 = vadd.f32 %v11200_v54, %v17551_v59 }
 0x86d   :  { %v17547_v15 = vmax.f32 %v17546_v10, 0.0 }
 0x86e   :  { %v11875_v43 = vpop.f32.mrf.mxu2  ;;  %v11877_v46 = vpop.f32.mrf.mxu3  ;;  %17543 = vst [vmem:[#allocation373_spill] sm:$0xff] %v11881_v25  ;;  %v2669_v58 = vrot.slane %v11881_v25, 7 }
 0x86f   :  { %17540 = vst [vmem:[#allocation124_spill] sm:$0xff] %v11875_v43 }
 0x870   :  { %17541 = vst [vmem:[#allocation226_spill] sm:$0xff] %v11877_v46  ;;  %v17548_v46 = vld [vmem:[#allocation198_spill] sm:$0xff]  ;;  %v11909_v10 = vsel %vm2587_vm5, %v2667_v32, %v2669_v58 }
 0x871   :  { %v11879_v28 = vpop.f32.mrf.mxu1  ;;  %17552 = vst [vmem:[#allocation198_spill] sm:$0xff] %v11902_v13 }
 0x872   :  { %17542 = vst [vmem:[#allocation197_spill] sm:$0xff] %v11879_v28  ;;  %v2161_v28 = vadd.f32 %v11185_v48, %v17548_v46  ;;  %v16911_v46 = vmax.f32 %v11902_v13, 0.0 }
 0x873   :  { %8422 = vmatmul.msk.f32.gmra.mxu2 %vm2727_vm4, %v17545_v44  ;;  %8694 = vmatmul.msk.f32.gmra.mxu3 %vm2727_vm4, %v11884_v17  ;;  %17554 = vst [vmem:[#allocation375_spill] sm:$0xff] %v11909_v10 }
 0x874   :  { %8567 = vmatmul.msk.f32.gmra.mxu1 %vm2727_vm4, %v17547_v15  ;;  %v11906_v17 = vmax.f32 %v2161_v28, 0.0  ;;  %v17555_v15 = vld [vmem:[#allocation129_spill] sm:$0xff] }
 0x876   :  { %v11896_v18 = vpop.f32.mrf.mxu2  ;;  %v11898_v43 = vpop.f32.mrf.mxu3  ;;  %v16912_v59 = vrot.slane %v11906_v17, 7 }
 0x877   :  { %17549 = vst [vmem:[#allocation126_spill] sm:$0xff] %v11896_v18 }
 0x878   :  { %17550 = vst [vmem:[#allocation228_spill] sm:$0xff] %v11898_v43  ;;  %v17556_v43 = vld [vmem:[#allocation230_spill] sm:$0xff] }
 0x879   :  { %v11904_v44 = vpop.f32.mrf.mxu1  ;;  %v17557_v18 = vmax.f32 %v17556_v43, 0.0 }
 0x87a   :  { %17553 = vst [vmem:[#allocation160_spill] sm:$0xff] %v11904_v44  ;;  %v17558_v44 = vld [vmem:[#allocation239_spill] sm:$0xff] }
 0x87b   :  { %8423 = vmatmul.msk.f32.gmra.mxu2 %vm2727_vm4, %v17555_v15  ;;  %8695 = vmatmul.msk.f32.gmra.mxu3 %vm2727_vm4, %v11909_v10  ;;  %v2186_v28 = vadd.f32 %v10987_v34, %v17558_v44  ;;  %v3259_v15 = vrot.slane %v16911_v46, 7  ;;  %v17563_v34 = vld [vmem:[#allocation232_spill] sm:$0xff] }
 0x87c   :  { %8568 = vmatmul.msk.f32.gmra.mxu1 %vm2727_vm4, %v17557_v18  ;;  %v11937_v18 = vsel %vm2587_vm5, %v2669_v58, %v16912_v59  ;;  %v17564_v44 = vmax.f32 %v17563_v34, 0.0  ;;  %v17565_v46 = vld [vmem:[#allocation240_spill] sm:$0xff]  ;;  %v17568_v58 = vld [vmem:[#allocation237_spill] sm:$0xff] }
 0x87d   :  { %v11930_v10 = vmax.f32 %v2186_v28, 0.0  ;;  %v3261_v43 = vsel %vm2587_vm5, %v3259_v15, %v17562_v8  ;;  %v2673_v59 = vrot.slane %v17568_v58, 7  ;;  %v17570_v34 = vld [vmem:[#allocation164_spill] sm:$0xff] }
 0x87e   :  { %v11922_v25 = vpop.f32.mrf.mxu2  ;;  %v11924_v32 = vpop.f32.mrf.mxu3 }
 0x87f   :  { %17559 = vst [vmem:[#allocation129_spill] sm:$0xff] %v11922_v25  ;;  %v2674_v28 = vrot.slane %v11930_v10, 7 }
 0x880   :  { %17560 = vst [vmem:[#allocation230_spill] sm:$0xff] %v11924_v32 }
 0x881   :  { %v11928_v29 = vpop.f32.mrf.mxu1  ;;  %v2675_v32 = vsel %vm2587_vm5, %v2673_v59, %v2674_v28 }
 0x882   :  { %17561 = vst [vmem:[#allocation239_spill] sm:$0xff] %v11928_v29  ;;  %v2187_v29 = vadd.f32 %v11012_v19, %v17565_v46  ;;  %v17573_v46 = vld [vmem:[#allocation241_spill] sm:$0xff] }
 0x883   :  { %8424 = vmatmul.msk.f32.gmra.mxu2 %vm2727_vm4, %v3261_v43  ;;  %8696 = vmatmul.msk.f32.gmra.mxu3 %vm2727_vm4, %v11937_v18 }
 0x884   :  { %8569 = vmatmul.msk.f32.gmra.mxu1 %vm2727_vm4, %v17564_v44  ;;  %v11955_v43 = vmax.f32 %v2187_v29, 0.0  ;;  %v17571_v44 = vld [vmem:[#allocation234_spill] sm:$0xff] }
 0x885   :  { %v17572_v25 = vmax.f32 %v17571_v44, 0.0 }
 0x886   :  { %v11948_v8 = vpop.f32.mrf.mxu2  ;;  %v11950_v15 = vpop.f32.mrf.mxu3  ;;  %v2676_v19 = vrot.slane %v11955_v43, 7 }
 0x887   :  { %17566 = vst [vmem:[#allocation163_spill] sm:$0xff] %v11948_v8 }
 0x888   :  { %17567 = vst [vmem:[#allocation232_spill] sm:$0xff] %v11950_v15  ;;  %v2188_v15 = vadd.f32 %v11040_v4, %v17573_v46  ;;  %v17581_v46 = vld [vmem:[#allocation242_spill] sm:$0xff] }
 0x889   :  { %v11953_v13 = vpop.f32.mrf.mxu1 }
 0x88a   :  { %17569 = vst [vmem:[#allocation240_spill] sm:$0xff] %v11953_v13  ;;  %v11973_v59 = vmax.f32 %v2188_v15, 0.0 }
 0x88b   :  { %8425 = vmatmul.msk.f32.gmra.mxu2 %vm2727_vm4, %v17570_v34  ;;  %8697 = vmatmul.msk.f32.gmra.mxu3 %vm2727_vm4, %v2675_v32  ;;  %v11976_v34 = vsel %vm2587_vm5, %v2674_v28, %v2676_v19  ;;  %v17578_v32 = vld [vmem:[#allocation166_spill] sm:$0xff] }
 0x88c   :  { %8570 = vmatmul.msk.f32.gmra.mxu1 %vm2727_vm4, %v17572_v25  ;;  %17577 = vst [vmem:[#allocation241_spill] sm:$0xff] %v11976_v34  ;;  %v17579_v25 = vld [vmem:[#allocation235_spill] sm:$0xff]  ;;  %v2678_v4 = vrot.slane %v11973_v59, 7 }
 0x88d   :  { %v17580_v44 = vmax.f32 %v17579_v25, 0.0  ;;  %v17586_v25 = vld [vmem:[#allocation243_spill] sm:$0xff] }
 0x88e   :  { %v11967_v8 = vpop.f32.mrf.mxu2  ;;  %v11969_v29 = vpop.f32.mrf.mxu3 }
 0x88f   :  { %17574 = vst [vmem:[#allocation237_spill] sm:$0xff] %v11967_v8 }
 0x890   :  { %17575 = vst [vmem:[#allocation164_spill] sm:$0xff] %v11969_v29 }
 0x891   :  { %v11971_v13 = vpop.f32.mrf.mxu1 }
 0x892   :  { %17576 = vst [vmem:[#allocation234_spill] sm:$0xff] %v11971_v13  ;;  %v2189_v13 = vadd.f32 %v11069_v41, %v17581_v46 }
 0x893   :  { %8426 = vmatmul.msk.f32.gmra.mxu2 %vm2727_vm4, %v17578_v32  ;;  %8698 = vmatmul.msk.f32.gmra.mxu3 %vm2727_vm4, %v11976_v34  ;;  %v11997_v32 = vsel %vm2587_vm5, %v2676_v19, %v2678_v4  ;;  %v17585_v34 = vld [vmem:[#allocation168_spill] sm:$0xff] }
 0x894   :  { %8571 = vmatmul.msk.f32.gmra.mxu1 %vm2727_vm4, %v17580_v44  ;;  %v11994_v8 = vmax.f32 %v2189_v13, 0.0  ;;  %v2190_v44 = vadd.f32 %v11099_v20, %v17586_v25 }
 0x896   :  { %v11988_v15 = vpop.f32.mrf.mxu2  ;;  %v11990_v29 = vpop.f32.mrf.mxu3  ;;  %v2680_v41 = vrot.slane %v11994_v8, 7 }
 0x897   :  { %17582 = vst [vmem:[#allocation166_spill] sm:$0xff] %v11988_v15  ;;  %v17597_v15 = vmax.f32 %v10849_v12, 0.0  ;;  %v17605_v12 = vmax.f32 %v10876_v16, 0.0 }
 0x898   :  { %17583 = vst [vmem:[#allocation235_spill] sm:$0xff] %v11990_v29  ;;  %v17590_v29 = vld [vmem:[#allocation169_spill] sm:$0xff] }
 0x899   :  { %v11992_v28 = vpop.f32.mrf.mxu1 }
 0x89a   :  { %17584 = vst [vmem:[#allocation242_spill] sm:$0xff] %v11992_v28  ;;  %v12014_v28 = vmax.f32 %v2190_v44, 0.0 }
 0x89b   :  { %8427 = vmatmul.msk.f32.gmra.mxu2 %vm2727_vm4, %v17585_v34  ;;  %8699 = vmatmul.msk.f32.gmra.mxu3 %vm2727_vm4, %v11997_v32  ;;  %v12017_v34 = vsel %vm2587_vm5, %v2678_v4, %v2680_v41 }
 0x89c   :  { %8572 = vmatmul.msk.f32.gmra.mxu1 %vm2727_vm4, %v17568_v58  ;;  %v2682_v20 = vrot.slane %v12014_v28, 7  ;;  %v17591_v58 = vld [vmem:[#allocation245_spill] sm:$0xff] }
 0x89d   :  { %v2191_v25 = vadd.f32 %v11126_v33, %v17591_v58  ;;  %v17598_v58 = vld [vmem:[#allocation247_spill] sm:$0xff] }
 0x89e   :  { %v12008_v46 = vpop.f32.mrf.mxu2  ;;  %v12010_v13 = vpop.f32.mrf.mxu3 }
 0x89f   :  { %17587 = vst [vmem:[#allocation168_spill] sm:$0xff] %v12008_v46  ;;  %v17596_v46 = vld [vmem:[#allocation172_spill] sm:$0xff] }
 0x8a0   :  { %17588 = vst [vmem:[#allocation243_spill] sm:$0xff] %v12010_v13  ;;  %v12034_v13 = vmax.f32 %v2191_v25, 0.0 }
 0x8a1   :  { %v12012_v19 = vpop.f32.mrf.mxu1 }
 0x8a2   :  { %17589 = vst [vmem:[#allocation376_spill] sm:$0xff] %v12012_v19  ;;  %v2684_v33 = vrot.slane %v12034_v13, 7 }
 0x8a3   :  { %8428 = vmatmul.msk.f32.gmra.mxu2 %vm2727_vm4, %v17590_v29  ;;  %8700 = vmatmul.msk.f32.gmra.mxu3 %vm2727_vm4, %v12017_v34  ;;  %v12037_v29 = vsel %vm2587_vm5, %v2680_v41, %v2682_v20 }
 0x8a4   :  { %8573 = vmatmul.msk.f32.gmra.mxu1 %vm2727_vm4, %v11930_v10  ;;  %17595 = vst [vmem:[#allocation378_spill] sm:$0xff] %v12037_v29 }
 0x8a6   :  { %v12028_v19 = vpop.f32.mrf.mxu2  ;;  %v12030_v44 = vpop.f32.mrf.mxu3 }
 0x8a7   :  { %17592 = vst [vmem:[#allocation169_spill] sm:$0xff] %v12028_v19 }
 0x8a8   :  { %17593 = vst [vmem:[#allocation245_spill] sm:$0xff] %v12030_v44 }
 0x8a9   :  { %v12032_v4 = vpop.f32.mrf.mxu1 }
 0x8aa   :  { %17594 = vst [vmem:[#allocation377_spill] sm:$0xff] %v12032_v4  ;;  %v2192_v4 = vadd.f32 %v11155_v52, %v17598_v58 }
 0x8ab   :  { %8429 = vmatmul.msk.f32.gmra.mxu2 %vm2727_vm4, %v17596_v46  ;;  %8701 = vmatmul.msk.f32.gmra.mxu3 %vm2727_vm4, %v12037_v29  ;;  %v12058_v46 = vsel %vm2587_vm5, %v2682_v20, %v2684_v33  ;;  %v17604_v29 = vld [vmem:[#allocation174_spill] sm:$0xff]  ;;  %v17609_v20 = vld [vmem:[#allocation208_spill] sm:$0xff] }
 0x8ac   :  { %8574 = vmatmul.msk.f32.gmra.mxu1 %vm2727_vm4, %v17597_v15  ;;  %v12055_v19 = vmax.f32 %v2192_v4, 0.0  ;;  %17603 = vst [vmem:[#allocation381_spill] sm:$0xff] %v12058_v46  ;;  %v17606_v15 = vld [vmem:[#allocation248_spill] sm:$0xff] }
 0x8ad   :  { %v2193_v58 = vadd.f32 %v11185_v48, %v17606_v15  ;;  %v17615_v15 = vmax.f32 %v10895_v21, 0.0 }
 0x8ae   :  { %v12049_v25 = vpop.f32.mrf.mxu2  ;;  %v12051_v44 = vpop.f32.mrf.mxu3  ;;  %17602 = vst [vmem:[#allocation380_spill] sm:$0xff] %v12055_v19  ;;  %v2686_v52 = vrot.slane %v12055_v19, 7  ;;  %v17682_v19 = vld [vmem:[#allocation275_spill] sm:$0xff] }
 0x8af   :  { %17599 = vst [vmem:[#allocation172_spill] sm:$0xff] %v12049_v25  ;;  %v12080_v25 = vmax.f32 %v2193_v58, 0.0  ;;  %v17616_v58 = vld [vmem:[#allocation16_spill] sm:$0xff] }
 0x8b0   :  { %17600 = vst [vmem:[#allocation247_spill] sm:$0xff] %v12051_v44  ;;  %v12076_v44 = vadd.f32 %v11200_v54, %v17609_v20  ;;  %v12083_v16 = vsel %vm2587_vm5, %v2684_v33, %v2686_v52  ;;  %v12096_v54 = vld [vmem:[%s16710_s2 + $0xb8] sm:$0xff] }
 0x8b1   :  { %v12053_v41 = vpop.f32.mrf.mxu1  ;;  %17612 = vst [vmem:[#allocation383_spill] sm:$0xff] %v12080_v25  ;;  %v2218_v33 = vadd.f32 %v12096_v54, %v17616_v58  ;;  %v16919_v20 = vrot.slane %v12080_v25, 7 }
 0x8b2   :  { %17601 = vst [vmem:[#allocation379_spill] sm:$0xff] %v12053_v41  ;;  %v16918_v48 = vmax.f32 %v12076_v44, 0.0 }
 0x8b3   :  { %8430 = vmatmul.msk.f32.gmra.mxu2 %vm2727_vm4, %v17604_v29  ;;  %8702 = vmatmul.msk.f32.gmra.mxu3 %vm2727_vm4, %v12058_v46  ;;  %17610 = vst [vmem:[#allocation208_spill] sm:$0xff] %v12076_v44  ;;  %v12116_v58 = vsel %vm2587_vm5, %v2686_v52, %v16919_v20  ;;  %v17623_v44 = vmax.f32 %v10912_v60, 0.0  ;;  %v17624_v52 = vld [vmem:[#allocation18_spill] sm:$0xff] }
 0x8b4   :  { %8575 = vmatmul.msk.f32.gmra.mxu1 %vm2727_vm4, %v17605_v12  ;;  %17613 = vst [vmem:[#allocation384_spill] sm:$0xff] %v12083_v16  ;;  %v17614_v12 = vld [vmem:[#allocation177_spill] sm:$0xff] }
 0x8b6   :  { %v12070_v4 = vpop.f32.mrf.mxu2  ;;  %v12072_v41 = vpop.f32.mrf.mxu3 }
 0x8b7   :  { %17607 = vst [vmem:[#allocation174_spill] sm:$0xff] %v12070_v4  ;;  %v17621_v4 = vld [vmem:[#allocation211_spill] sm:$0xff] }
 0x8b8   :  { %17608 = vst [vmem:[#allocation248_spill] sm:$0xff] %v12072_v41  ;;  %v3276_v41 = vrot.slane %v16918_v48, 7 }
 0x8b9   :  { %v12078_v29 = vpop.f32.mrf.mxu1  ;;  %17622 = vst [vmem:[#allocation211_spill] sm:$0xff] %v12116_v58 }
 0x8ba   :  { %17611 = vst [vmem:[#allocation382_spill] sm:$0xff] %v12078_v29 }
 0x8bb   :  { %8431 = vmatmul.msk.f32.gmra.mxu2 %vm2727_vm4, %v17614_v12  ;;  %8703 = vmatmul.msk.f32.gmra.mxu3 %vm2727_vm4, %v12083_v16  ;;  %v3278_v16 = vsel %vm2587_vm5, %v3276_v41, %v17621_v4  ;;  %v12129_v41 = vld [vmem:[%s16710_s2 + $0xc0] sm:$0xff] }
 0x8bc   :  { %8576 = vmatmul.msk.f32.gmra.mxu1 %vm2727_vm4, %v17615_v15  ;;  %v12109_v15 = vmax.f32 %v2218_v33, 0.0  ;;  %v2690_v33 = vrot.slane %v10981_v22, 7  ;;  %v2219_v4 = vadd.f32 %v12129_v41, %v17624_v52 }
 0x8be   :  { %v12101_v12 = vpop.f32.mrf.mxu2  ;;  %v12103_v29 = vpop.f32.mrf.mxu3  ;;  %17620 = vst [vmem:[#allocation386_spill] sm:$0xff] %v12109_v15  ;;  %v2691_v48 = vrot.slane %v12109_v15, 7  ;;  %v12139_v60 = vmax.f32 %v2219_v4, 0.0  ;;  %v17631_v4 = vld [vmem:[#allocation19_spill] sm:$0xff] }
 0x8bf   :  { %17617 = vst [vmem:[#allocation177_spill] sm:$0xff] %v12101_v12  ;;  %v17630_v12 = vmax.f32 %v10933_v42, 0.0 }
 0x8c0   :  { %17618 = vst [vmem:[#allocation16_spill] sm:$0xff] %v12103_v29  ;;  %v17629_v29 = vld [vmem:[#allocation212_spill] sm:$0xff]  ;;  %v2693_v52 = vrot.slane %v12139_v60, 7 }
 0x8c1   :  { %v12107_v21 = vpop.f32.mrf.mxu1  ;;  %17628 = vst [vmem:[#allocation389_spill] sm:$0xff] %v12139_v60  ;;  %v17660_v60 = vmax.f32 %v11016_v61, 0.0 }
 0x8c2   :  { %17619 = vst [vmem:[#allocation385_spill] sm:$0xff] %v12107_v21  ;;  %v12165_v42 = vsel %vm2587_vm5, %v2691_v48, %v2693_v52 }
 0x8c3   :  { %8432 = vmatmul.msk.f32.gmra.mxu2 %vm2727_vm4, %v3278_v16  ;;  %8704 = vmatmul.msk.f32.gmra.mxu3 %vm2727_vm4, %v12116_v58  ;;  %17636 = vst [vmem:[#allocation392_spill] sm:$0xff] %v12165_v42  ;;  %v17638_v58 = vmax.f32 %v10959_v51, 0.0 }
 0x8c4   :  { %8577 = vmatmul.msk.f32.gmra.mxu1 %vm2727_vm4, %v17623_v44  ;;  %v2692_v44 = vsel %vm2587_vm5, %v2690_v33, %v2691_v48 }
 0x8c6   :  { %v12133_v16 = vpop.f32.mrf.mxu2  ;;  %v12135_v20 = vpop.f32.mrf.mxu3 }
 0x8c7   :  { %17625 = vst [vmem:[#allocation18_spill] sm:$0xff] %v12133_v16 }
 0x8c8   :  { %17626 = vst [vmem:[#allocation387_spill] sm:$0xff] %v12135_v20  ;;  %v12152_v20 = vld [vmem:[%s16710_s2 + $0xc8] sm:$0xff] }
 0x8c9   :  { %v12137_v21 = vpop.f32.mrf.mxu1 }
 0x8ca   :  { %17627 = vst [vmem:[#allocation388_spill] sm:$0xff] %v12137_v21  ;;  %v2220_v21 = vadd.f32 %v12152_v20, %v17631_v4 }
 0x8cb   :  { %8433 = vmatmul.msk.f32.gmra.mxu2 %vm2727_vm4, %v17629_v29  ;;  %8705 = vmatmul.msk.f32.gmra.mxu3 %vm2727_vm4, %v2692_v44 }
 0x8cc   :  { %8578 = vmatmul.msk.f32.gmra.mxu1 %vm2727_vm4, %v17630_v12  ;;  %v12162_v44 = vmax.f32 %v2220_v21, 0.0  ;;  %v17637_v12 = vld [vmem:[#allocation214_spill] sm:$0xff]  ;;  %v12178_v21 = vld [vmem:[%s16710_s2 + $0xd0] sm:$0xff] }
 0x8ce   :  { %v12156_v33 = vpop.f32.mrf.mxu2  ;;  %v12158_v16 = vpop.f32.mrf.mxu3  ;;  %17635 = vst [vmem:[#allocation391_spill] sm:$0xff] %v12162_v44  ;;  %v2695_v4 = vrot.slane %v12162_v44, 7 }
 0x8cf   :  { %17632 = vst [vmem:[#allocation212_spill] sm:$0xff] %v12156_v33 }
 0x8d0   :  { %17633 = vst [vmem:[#allocation19_spill] sm:$0xff] %v12158_v16  ;;  %v12191_v51 = vsel %vm2587_vm5, %v2693_v52, %v2695_v4 }
 0x8d1   :  { %v12160_v29 = vpop.f32.mrf.mxu1  ;;  %17644 = vst [vmem:[#allocation395_spill] sm:$0xff] %v12191_v51 }
 0x8d2   :  { %17634 = vst [vmem:[#allocation390_spill] sm:$0xff] %v12160_v29  ;;  %v17639_v29 = vld [vmem:[#allocation20_spill] sm:$0xff] }
 0x8d3   :  { %8434 = vmatmul.msk.f32.gmra.mxu2 %vm2727_vm4, %v17637_v12  ;;  %8706 = vmatmul.msk.f32.gmra.mxu3 %vm2727_vm4, %v12165_v42  ;;  %v2221_v48 = vadd.f32 %v12178_v21, %v17639_v29 }
 0x8d4   :  { %8579 = vmatmul.msk.f32.gmra.mxu1 %vm2727_vm4, %v17638_v58  ;;  %v17645_v58 = vld [vmem:[#allocation216_spill] sm:$0xff] }
 0x8d5   :  { %v12188_v42 = vmax.f32 %v2221_v48, 0.0  ;;  %v17646_v48 = vld [vmem:[#allocation21_spill] sm:$0xff] }
 0x8d6   :  { %v12182_v16 = vpop.f32.mrf.mxu2  ;;  %v12184_v12 = vpop.f32.mrf.mxu3 }
 0x8d7   :  { %17640 = vst [vmem:[#allocation214_spill] sm:$0xff] %v12182_v16  ;;  %v2697_v29 = vrot.slane %v12188_v42, 7 }
 0x8d8   :  { %17641 = vst [vmem:[#allocation20_spill] sm:$0xff] %v12184_v12 }
 0x8d9   :  { %v12186_v33 = vpop.f32.mrf.mxu1  ;;  %17643 = vst [vmem:[#allocation394_spill] sm:$0xff] %v12188_v42  ;;  %v17652_v42 = vld [vmem:[#allocation217_spill] sm:$0xff] }
 0x8da   :  { %17642 = vst [vmem:[#allocation393_spill] sm:$0xff] %v12186_v33  ;;  %v12203_v33 = vld [vmem:[%s16710_s2 + $0xd8] sm:$0xff] }
 0x8db   :  { %8435 = vmatmul.msk.f32.gmra.mxu2 %vm2727_vm4, %v17645_v58  ;;  %8707 = vmatmul.msk.f32.gmra.mxu3 %vm2727_vm4, %v12191_v51  ;;  %v2222_v52 = vadd.f32 %v12203_v33, %v17646_v48 }
 0x8dc   :  { %8580 = vmatmul.msk.f32.gmra.mxu1 %vm2727_vm4, %v10981_v22  ;;  %v12216_v22 = vsel %vm2587_vm5, %v2695_v4, %v2697_v29 }
 0x8dd   :  { %v12213_v51 = vmax.f32 %v2222_v52, 0.0  ;;  %17651 = vst [vmem:[#allocation398_spill] sm:$0xff] %v12216_v22  ;;  %v17653_v52 = vld [vmem:[#allocation22_spill] sm:$0xff] }
 0x8de   :  { %v12207_v12 = vpop.f32.mrf.mxu2  ;;  %v12209_v16 = vpop.f32.mrf.mxu3 }
 0x8df   :  { %17647 = vst [vmem:[#allocation216_spill] sm:$0xff] %v12207_v12  ;;  %v2699_v48 = vrot.slane %v12213_v51, 7 }
 0x8e0   :  { %17648 = vst [vmem:[#allocation21_spill] sm:$0xff] %v12209_v16 }
 0x8e1   :  { %v12211_v58 = vpop.f32.mrf.mxu1  ;;  %17650 = vst [vmem:[#allocation397_spill] sm:$0xff] %v12213_v51  ;;  %v12241_v44 = vsel %vm2587_vm5, %v2697_v29, %v2699_v48  ;;  %v17659_v51 = vld [vmem:[#allocation220_spill] sm:$0xff] }
 0x8e2   :  { %17649 = vst [vmem:[#allocation396_spill] sm:$0xff] %v12211_v58  ;;  %v12228_v58 = vld [vmem:[%s16710_s2 + $0xe0] sm:$0xff] }
 0x8e3   :  { %8436 = vmatmul.msk.f32.gmra.mxu2 %vm2727_vm4, %v17652_v42  ;;  %8708 = vmatmul.msk.f32.gmra.mxu3 %vm2727_vm4, %v12216_v22  ;;  %v2223_v4 = vadd.f32 %v12228_v58, %v17653_v52  ;;  %17658 = vst [vmem:[#allocation401_spill] sm:$0xff] %v12241_v44 }
 0x8e4   :  { %8581 = vmatmul.msk.f32.gmra.mxu1 %vm2727_vm4, %v12109_v15 }
 0x8e5   :  { %v12238_v22 = vmax.f32 %v2223_v4, 0.0  ;;  %v12254_v4 = vld [vmem:[%s16710_s2 + $0xe8] sm:$0xff] }
 0x8e6   :  { %v12232_v16 = vpop.f32.mrf.mxu2  ;;  %v12234_v12 = vpop.f32.mrf.mxu3 }
 0x8e7   :  { %17654 = vst [vmem:[#allocation217_spill] sm:$0xff] %v12232_v16  ;;  %v2701_v52 = vrot.slane %v12238_v22, 7 }
 0x8e8   :  { %17655 = vst [vmem:[#allocation22_spill] sm:$0xff] %v12234_v12 }
 0x8e9   :  { %v12236_v42 = vpop.f32.mrf.mxu1  ;;  %17657 = vst [vmem:[#allocation400_spill] sm:$0xff] %v12238_v22  ;;  %v12267_v61 = vsel %vm2587_vm5, %v2699_v48, %v2701_v52  ;;  %v17668_v22 = vmax.f32 %v11051_v39, 0.0  ;;  %v12291_v39 = vld [vmem:[%s16710_s2 + $0x38] sm:$0xff] }
 0x8ea   :  { %17656 = vst [vmem:[#allocation399_spill] sm:$0xff] %v12236_v42  ;;  %v17661_v42 = vld [vmem:[#allocation23_spill] sm:$0xff] }
 0x8eb   :  { %8437 = vmatmul.msk.f32.gmra.mxu2 %vm2727_vm4, %v17659_v51  ;;  %8709 = vmatmul.msk.f32.gmra.mxu3 %vm2727_vm4, %v12241_v44  ;;  %v2224_v29 = vadd.f32 %v12254_v4, %v17661_v42  ;;  %17666 = vst [vmem:[#allocation404_spill] sm:$0xff] %v12267_v61 }
 0x8ec   :  { %8582 = vmatmul.msk.f32.gmra.mxu1 %vm2727_vm4, %v17660_v60  ;;  %v17667_v60 = vld [vmem:[#allocation222_spill] sm:$0xff] }
 0x8ed   :  { %v12264_v44 = vmax.f32 %v2224_v29, 0.0  ;;  %v12280_v29 = vld [vmem:[%s16710_s2 + $0xf0] sm:$0xff] }
 0x8ee   :  { %v12258_v12 = vpop.f32.mrf.mxu2  ;;  %v12260_v51 = vpop.f32.mrf.mxu3 }
 0x8ef   :  { %17662 = vst [vmem:[#allocation220_spill] sm:$0xff] %v12258_v12  ;;  %v2703_v42 = vrot.slane %v12264_v44, 7 }
 0x8f0   :  { %17663 = vst [vmem:[#allocation23_spill] sm:$0xff] %v12260_v51 }
 0x8f1   :  { %v12262_v16 = vpop.f32.mrf.mxu1  ;;  %17665 = vst [vmem:[#allocation403_spill] sm:$0xff] %v12264_v44  ;;  %v12302_v15 = vsel %vm2587_vm5, %v2701_v52, %v2703_v42 }
 0x8f2   :  { %17664 = vst [vmem:[#allocation402_spill] sm:$0xff] %v12262_v16  ;;  %v17669_v16 = vld [vmem:[#allocation38_spill] sm:$0xff] }
 0x8f3   :  { %8438 = vmatmul.msk.f32.gmra.mxu2 %vm2727_vm4, %v17667_v60  ;;  %8710 = vmatmul.msk.f32.gmra.mxu3 %vm2727_vm4, %v12267_v61  ;;  %v2225_v48 = vadd.f32 %v12280_v29, %v17669_v16  ;;  %17675 = vst [vmem:[#allocation406_spill] sm:$0xff] %v12302_v15  ;;  %v17676_v16 = vld [vmem:[#allocation225_spill] sm:$0xff] }
 0x8f4   :  { %8583 = vmatmul.msk.f32.gmra.mxu1 %vm2727_vm4, %v17668_v22  ;;  %v17672_v22 = vld [vmem:[#allocation270_spill] sm:$0xff] }
 0x8f5   :  { %v12295_v12 = vadd.f32 %v12291_v39, %v17672_v22  ;;  %v12299_v44 = vmax.f32 %v2225_v48, 0.0 }
 0x8f6   :  { %v12284_v51 = vpop.f32.mrf.mxu2  ;;  %v12286_v60 = vpop.f32.mrf.mxu3 }
 0x8f7   :  { %17670 = vst [vmem:[#allocation222_spill] sm:$0xff] %v12284_v51  ;;  %v17677_v51 = vmax.f32 %v11073_v56, 0.0  ;;  %v16946_v22 = vrot.slane %v12299_v44, 7 }
 0x8f8   :  { %17671 = vst [vmem:[#allocation38_spill] sm:$0xff] %v12286_v60  ;;  %v16945_v60 = vmax.f32 %v12295_v12, 0.0 }
 0x8f9   :  { %17673 = vst [vmem:[#allocation270_spill] sm:$0xff] %v12295_v12  ;;  %v12297_v61 = vpop.f32.mrf.mxu1 }
 0x8fa   :  { %17674 = vst [vmem:[#allocation405_spill] sm:$0xff] %v12297_v61  ;;  %v17678_v61 = vld [vmem:[#allocation69_spill] sm:$0xff] }
 0x8fb   :  { %8439 = vmatmul.msk.f32.gmra.mxu2 %vm2727_vm4, %v17676_v16  ;;  %8711 = vmatmul.msk.f32.gmra.mxu3 %vm2727_vm4, %v12302_v15  ;;  %v2250_v48 = vadd.f32 %v12096_v54, %v17678_v61  ;;  %v3293_v16 = vrot.slane %v16945_v60, 7  ;;  %v17683_v54 = vmax.f32 %v11110_v3, 0.0  ;;  %v2707_v61 = vrot.slane %v11211_v2, 7  ;;  %v17684_v60 = vld [vmem:[#allocation71_spill] sm:$0xff] }
 0x8fc   :  { %8584 = vmatmul.msk.f32.gmra.mxu1 %vm2727_vm4, %v17677_v51  ;;  %v12330_v51 = vsel %vm2587_vm5, %v2703_v42, %v16946_v22 }
 0x8fd   :  { %v12323_v15 = vmax.f32 %v2250_v48, 0.0  ;;  %v3295_v56 = vsel %vm2587_vm5, %v3293_v16, %v17682_v19  ;;  %v2251_v19 = vadd.f32 %v12129_v41, %v17684_v60  ;;  %v17689_v41 = vmax.f32 %v11130_v11, 0.0 }
 0x8fe   :  { %v12315_v46 = vpop.f32.mrf.mxu2  ;;  %v12317_v52 = vpop.f32.mrf.mxu3  ;;  %v17695_v11 = vmax.f32 %v11167_v57, 0.0 }
 0x8ff   :  { %17679 = vst [vmem:[#allocation225_spill] sm:$0xff] %v12315_v46  ;;  %v2708_v48 = vrot.slane %v12323_v15, 7  ;;  %v12351_v3 = vmax.f32 %v2251_v19, 0.0 }
 0x900   :  { %17680 = vst [vmem:[#allocation69_spill] sm:$0xff] %v12317_v52  ;;  %v17700_v52 = vld [vmem:[#allocation282_spill] sm:$0xff] }
 0x901   :  { %v12321_v25 = vpop.f32.mrf.mxu1  ;;  %v2710_v60 = vrot.slane %v12351_v3, 7 }
 0x902   :  { %17681 = vst [vmem:[#allocation407_spill] sm:$0xff] %v12321_v25  ;;  %v17688_v25 = vld [vmem:[#allocation276_spill] sm:$0xff] }
 0x903   :  { %8440 = vmatmul.msk.f32.gmra.mxu2 %vm2727_vm4, %v3295_v56  ;;  %8712 = vmatmul.msk.f32.gmra.mxu3 %vm2727_vm4, %v12330_v51  ;;  %v8389_v56 = vld [vmem:[%s16709_s3 + $0x10] sm:$0x3f] }
 0x904   :  { %8585 = vmatmul.msk.f32.gmra.mxu1 %vm2727_vm4, %v17683_v54  ;;  %v2709_v54 = vsel %vm2587_vm5, %v2707_v61, %v2708_v48 }
 0x905   :  { %8721 = vmatpush.msk.msrb.mxu1 %vm2912_vm3, %v8389_v56 }
 0x906   :  { %v12342_v16 = vpop.f32.mrf.mxu2  ;;  %v12344_v42 = vpop.f32.mrf.mxu3 }
 0x907   :  { %17685 = vst [vmem:[#allocation275_spill] sm:$0xff] %v12342_v16 }
 0x908   :  { %17686 = vst [vmem:[#allocation71_spill] sm:$0xff] %v12344_v42 }
 0x909   :  { %v12346_v22 = vpop.f32.mrf.mxu1 }
 0x90a   :  { %17687 = vst [vmem:[#allocation408_spill] sm:$0xff] %v12346_v22  ;;  %v17690_v22 = vld [vmem:[#allocation72_spill] sm:$0xff] }
 0x90b   :  { %8441 = vmatmul.msk.f32.gmra.mxu2 %vm2727_vm4, %v17688_v25  ;;  %8713 = vmatmul.msk.f32.gmra.mxu3 %vm2727_vm4, %v2709_v54  ;;  %v2252_v12 = vadd.f32 %v12152_v20, %v17690_v22  ;;  %v12373_v25 = vsel %vm2587_vm5, %v2708_v48, %v2710_v60  ;;  %v17694_v54 = vld [vmem:[#allocation279_spill] sm:$0xff] }
 0x90c   :  { %8586 = vmatmul.msk.f32.gmra.mxu1 %vm2727_vm4, %v17689_v41  ;;  %v17696_v22 = vld [vmem:[#allocation75_spill] sm:$0xff] }
 0x90d   :  { %v12370_v56 = vmax.f32 %v2252_v12, 0.0  ;;  %v2253_v41 = vadd.f32 %v12178_v21, %v17696_v22  ;;  %v17701_v21 = vld [vmem:[#allocation77_spill] sm:$0xff] }
 0x90e   :  { %v12364_v19 = vpop.f32.mrf.mxu2  ;;  %v12366_v42 = vpop.f32.mrf.mxu3 }
 0x90f   :  { %17691 = vst [vmem:[#allocation276_spill] sm:$0xff] %v12364_v19  ;;  %v2712_v20 = vrot.slane %v12370_v56, 7 }
 0x910   :  { %17692 = vst [vmem:[#allocation72_spill] sm:$0xff] %v12366_v42  ;;  %v12391_v42 = vmax.f32 %v2253_v41, 0.0 }
 0x911   :  { %v12368_v61 = vpop.f32.mrf.mxu1 }
 0x912   :  { %17693 = vst [vmem:[#allocation409_spill] sm:$0xff] %v12368_v61  ;;  %v2714_v57 = vrot.slane %v12391_v42, 7 }
 0x913   :  { %8442 = vmatmul.msk.f32.gmra.mxu2 %vm2727_vm4, %v17694_v54  ;;  %8714 = vmatmul.msk.f32.gmra.mxu3 %vm2727_vm4, %v12373_v25  ;;  %v12394_v54 = vsel %vm2587_vm5, %v2710_v60, %v2712_v20 }
 0x914   :  { %8587 = vmatmul.msk.f32.gmra.mxu1 %vm2727_vm4, %v17695_v11  ;;  %v2254_v11 = vadd.f32 %v12203_v33, %v17701_v21  ;;  %v17706_v33 = vld [vmem:[#allocation80_spill] sm:$0xff] }
 0x915   :  { %v2255_v21 = vadd.f32 %v12228_v58, %v17706_v33  ;;  %v17710_v33 = vld [vmem:[#allocation83_spill] sm:$0xff] }
 0x916   :  { %v12385_v12 = vpop.f32.mrf.mxu2  ;;  %v12387_v61 = vpop.f32.mrf.mxu3 }
 0x917   :  { %17697 = vst [vmem:[#allocation279_spill] sm:$0xff] %v12385_v12  ;;  %v17709_v12 = vld [vmem:[#allocation286_spill] sm:$0xff] }
 0x918   :  { %17698 = vst [vmem:[#allocation75_spill] sm:$0xff] %v12387_v61  ;;  %v17705_v61 = vld [vmem:[#allocation284_spill] sm:$0xff] }
 0x919   :  { %v12389_v48 = vpop.f32.mrf.mxu1 }
 0x91a   :  { %17699 = vst [vmem:[#allocation410_spill] sm:$0xff] %v12389_v48  ;;  %v12411_v48 = vmax.f32 %v2254_v11, 0.0 }
 0x91b   :  { %8443 = vmatmul.msk.f32.gmra.mxu2 %vm2727_vm4, %v17700_v52  ;;  %8715 = vmatmul.msk.f32.gmra.mxu3 %vm2727_vm4, %v12394_v54  ;;  %v12414_v52 = vsel %vm2587_vm5, %v2712_v20, %v2714_v57 }
 0x91c   :  { %8588 = vmatmul.msk.f32.gmra.mxu1 %vm2727_vm4, %v11211_v2  ;;  %v2716_v2 = vrot.slane %v12411_v48, 7 }
 0x91e   :  { %v12405_v22 = vpop.f32.mrf.mxu2  ;;  %v12407_v41 = vpop.f32.mrf.mxu3 }
 0x91f   :  { %17702 = vst [vmem:[#allocation282_spill] sm:$0xff] %v12405_v22  ;;  %v12437_v22 = vsel %vm2587_vm5, %v2714_v57, %v2716_v2 }
 0x920   :  { %17703 = vst [vmem:[#allocation77_spill] sm:$0xff] %v12407_v41  ;;  %v12434_v41 = vmax.f32 %v2255_v21, 0.0  ;;  %v2256_v21 = vadd.f32 %v12254_v4, %v17710_v33  ;;  %v17713_v4 = vld [vmem:[#allocation86_spill] sm:$0xff] }
 0x921   :  { %v12409_v60 = vpop.f32.mrf.mxu1  ;;  %v2257_v33 = vadd.f32 %v12280_v29, %v17713_v4 }
 0x922   :  { %17704 = vst [vmem:[#allocation411_spill] sm:$0xff] %v12409_v60  ;;  %v2718_v58 = vrot.slane %v12434_v41, 7 }
 0x923   :  { %8444 = vmatmul.msk.f32.gmra.mxu2 %vm2727_vm4, %v17705_v61  ;;  %8716 = vmatmul.msk.f32.gmra.mxu3 %vm2727_vm4, %v12414_v52  ;;  %v8523_v61 = vld [vmem:[%s16709_s3 + $0x30] sm:$0x3f]  ;;  %v12479_v19 = vmax.f32 %v2257_v33, 0.0 }
 0x924   :  { %8589 = vmatmul.msk.f32.gmra.mxu1 %vm2727_vm4, %v12323_v15  ;;  %8851 = vmatpush.msk.msrb.mxu3 %vm2912_vm3, %v8523_v61  ;;  %v12455_v61 = vmax.f32 %v2256_v21, 0.0 }
 0x925   :  { %v16949_v29 = vrot.slane %v12479_v19, 7 }
 0x926   :  { %v12425_v60 = vpop.f32.mrf.mxu2  ;;  %v12427_v11 = vpop.f32.mrf.mxu3 }
 0x927   :  { %17707 = vst [vmem:[#allocation284_spill] sm:$0xff] %v12425_v60 }
 0x929   :  { %v12429_v20 = vpop.f32.mrf.mxu1 }
 0x92a   :  { %17708 = vst [vmem:[#allocation80_spill] sm:$0xff] %v12429_v20 }
 0x92b   :  { %8445 = vmatmul.msk.f32.gmra.mxu2 %vm2727_vm4, %v17709_v12  ;;  %8717 = vmatmul.msk.f32.gmra.mxu3 %vm2727_vm4, %v12437_v22  ;;  %v12458_v12 = vsel %vm2587_vm5, %v2716_v2, %v2718_v58 }
 0x92c   :  { %8722 = vmatmul.msk.f32.vlgmr.msrb.gmra.mxu1 %vm2727_vm4, %v11007_v37  ;;  %v2720_v37 = vrot.slane %v12455_v61, 7 }
 0x92e   :  { %v12449_v20 = vpop.f32.mrf.mxu2  ;;  %v12451_v57 = vpop.f32.mrf.mxu3  ;;  %v12483_v46 = vsel %vm2587_vm5, %v2718_v58, %v2720_v37 }
 0x92f   :  { %17711 = vst [vmem:[#allocation286_spill] sm:$0xff] %v12449_v20 }
 0x931   :  { %v12453_v60 = vpop.f32.mrf.mxu1 }
 0x932   :  { %17712 = vst [vmem:[#allocation83_spill] sm:$0xff] %v12453_v60  ;;  %v17714_v60 = vld [vmem:[#allocation85_spill] sm:$0xff] }
 0x933   :  { %8446 = vmatmul.msk.f32.gmra.mxu2 %vm2727_vm4, %v10831_v40  ;;  %8718 = vmatmul.msk.f32.gmra.mxu3 %vm2727_vm4, %v12458_v12  ;;  %v12471_v21 = vadd.f32 %v12291_v39, %v17714_v60  ;;  %v17718_v60 = vmax.f32 %v10840_v5, 0.0  ;;  %v17721_v5 = vmax.f32 %v10860_v63, 0.0 }
 0x934   :  { %8723 = vmatmul.msk.f32.gmra.mxu1 %vm2727_vm4, %v11034_v31 }
 0x935   :  { %17715 = vst [vmem:[#allocation86_spill] sm:$0xff] %v12471_v21  ;;  %v16948_v16 = vmax.f32 %v12471_v21, 0.0  ;;  %v3311_v4 = vrot.slane %v17718_v60, 7  ;;  %v3313_v60 = vrot.slane %v17721_v5, 7 }
 0x936   :  { %v12473_v2 = vpop.f32.mrf.mxu2  ;;  %v12475_v20 = vpop.f32.mrf.mxu3 }
 0x937   :  { %17716 = vst [vmem:[#allocation85_spill] sm:$0xff] %v12473_v2  ;;  %v3310_v39 = vrot.slane %v16948_v16, 7  ;;  %v12506_v2 = vsel %vm2587_vm5, %v2720_v37, %v16949_v29  ;;  %v3314_v37 = vsel %vm2587_vm5, %v3311_v4, %v3313_v60 }
 0x939   :  { %v12477_v40 = vpop.f32.mrf.mxu1 }
 0x93a   :  { %17717 = vst [vmem:[#allocation412_spill] sm:$0xff] %v12477_v40 }
 0x93b   :  { %8447 = vmatmul.msk.f32.gmra.mxu2 %vm2727_vm4, %v10845_v62  ;;  %8719 = vmatmul.msk.f32.gmra.mxu3 %vm2727_vm4, %v12483_v46  ;;  %v3312_v62 = vsel %vm2587_vm5, %v3310_v39, %v3311_v4 }
 0x93c   :  { %8724 = vmatmul.msk.f32.gmra.mxu1 %vm2727_vm4, %v11061_v0 }
 0x93e   :  { %v12496_v33 = vpop.f32.mrf.mxu2  ;;  %v12498_v58 = vpop.f32.mrf.mxu3 }
 0x93f   :  { %17719 = vst [vmem:[#allocation413_spill] sm:$0xff] %v12496_v33 }
 0x941   :  { %v12500_v40 = vpop.f32.mrf.mxu1 }
 0x942   :  { %17720 = vst [vmem:[#allocation414_spill] sm:$0xff] %v12500_v40 }
 0x943   :  { %8448 = vmatmul.msk.f32.gmra.mxu2 %vm2727_vm4, %v3312_v62  ;;  %8720 = vmatmul.msk.f32.gmra.mxu3 %vm2727_vm4, %v12506_v2  ;;  %v17724_v62 = vmax.f32 %v10881_v30, 0.0 }
 0x944   :  { %8725 = vmatmul.msk.f32.gmra.mxu1 %vm2727_vm4, %v11089_v38 }
 0x945   :  { %v3315_v63 = vrot.slane %v17724_v62, 7 }
 0x946   :  { %v12515_v16 = vpop.f32.mrf.mxu2  ;;  %v12517_v40 = vpop.f32.mrf.mxu3 }
 0x947   :  { %17722 = vst [vmem:[#allocation415_spill] sm:$0xff] %v12515_v16 }
 0x949   :  { %v12519_v39 = vpop.f32.mrf.mxu1 }
 0x94a   :  { %17723 = vst [vmem:[#allocation416_spill] sm:$0xff] %v12519_v39  ;;  %v3316_v39 = vsel %vm2587_vm5, %v3313_v60, %v3315_v63 }
 0x94b   :  { %8449 = vmatmul.msk.f32.gmra.mxu2 %vm2727_vm4, %v3314_v37  ;;  %8852 = vmatmul.msk.f32.vlgmr.msrb.gmra.mxu3 %vm2727_vm4, %v11064_v14  ;;  %v17728_v14 = vmax.f32 %v10900_v23, 0.0 }
 0x94c   :  { %8726 = vmatmul.msk.f32.gmra.mxu1 %vm2727_vm4, %v11118_v45 }
 0x94d   :  { %v3317_v30 = vrot.slane %v17728_v14, 7 }
 0x94e   :  { %v12529_v5 = vpop.f32.mrf.mxu2  ;;  %v12531_v29 = vpop.f32.mrf.mxu3 }
 0x94f   :  { %17725 = vst [vmem:[#allocation417_spill] sm:$0xff] %v12529_v5 }
 0x950   :  { %17726 = vst [vmem:[#allocation418_spill] sm:$0xff] %v12531_v29 }
 0x951   :  { %v12533_v21 = vpop.f32.mrf.mxu1 }
 0x952   :  { %17727 = vst [vmem:[#allocation419_spill] sm:$0xff] %v12533_v21  ;;  %v3318_v21 = vsel %vm2587_vm5, %v3315_v63, %v3317_v30  ;;  %v17733_v63 = vmax.f32 %v10942_v1, 0.0 }
 0x953   :  { %8450 = vmatmul.msk.f32.gmra.mxu2 %vm2727_vm4, %v3316_v39  ;;  %8853 = vmatmul.msk.f32.gmra.mxu3 %vm2727_vm4, %v11094_v6  ;;  %v17731_v6 = vmax.f32 %v10919_v47, 0.0 }
 0x954   :  { %8727 = vmatmul.msk.f32.gmra.mxu1 %vm2727_vm4, %v11147_v26 }
 0x955   :  { %v3319_v23 = vrot.slane %v17731_v6, 7  ;;  %v17735_v6 = vmax.f32 %v10970_v36, 0.0  ;;  %v3325_v36 = vrot.slane %v11005_v27, 7  ;;  %v17742_v27 = vld [vmem:[#allocation48_spill] sm:$0xff] }
 0x956   :  { %v12543_v4 = vpop.f32.mrf.mxu2  ;;  %v12545_v37 = vpop.f32.mrf.mxu3 }
 0x957   :  { %17729 = vst [vmem:[#allocation420_spill] sm:$0xff] %v12543_v4 }
 0x959   :  { %v12547_v62 = vpop.f32.mrf.mxu1 }
 0x95a   :  { %17730 = vst [vmem:[#allocation421_spill] sm:$0xff] %v12547_v62  ;;  %v3320_v62 = vsel %vm2587_vm5, %v3317_v30, %v3319_v23  ;;  %v3321_v30 = vrot.slane %v17733_v63, 7 }
 0x95b   :  { %8451 = vmatmul.msk.f32.gmra.mxu2 %vm2727_vm4, %v3318_v21  ;;  %8854 = vmatmul.msk.f32.gmra.mxu3 %vm2727_vm4, %v11121_v53  ;;  %v8590_v53 = vld [vmem:[%s16709_s3 + $0x40] sm:$0x3f] }
 0x95c   :  { %8728 = vmatmul.msk.f32.gmra.mxu1 %vm2727_vm4, %v11177_v24  ;;  %8591 = vmatpush.msk.msrb.mxu2 %vm2912_vm3, %v8590_v53  ;;  %v3323_v53 = vrot.slane %v17735_v6, 7 }
 0x95e   :  { %v12557_v60 = vpop.f32.mrf.mxu2  ;;  %v12559_v39 = vpop.f32.mrf.mxu3  ;;  %v3324_v63 = vsel %vm2587_vm5, %v3321_v30, %v3323_v53 }
 0x961   :  { %v12561_v14 = vpop.f32.mrf.mxu1 }
 0x962   :  { %17732 = vst [vmem:[#allocation422_spill] sm:$0xff] %v12561_v14 }
 0x963   :  { %8452 = vmatmul.msk.f32.gmra.mxu2 %vm2727_vm4, %v3320_v62  ;;  %8855 = vmatmul.msk.f32.gmra.mxu3 %vm2727_vm4, %v11150_v7  ;;  %v3322_v7 = vsel %vm2587_vm5, %v3319_v23, %v3321_v30  ;;  %v12599_v23 = vld [vmem:[%s16710_s2 + $0xf8] sm:$0xff] }
 0x964   :  { %8729 = vmatmul.msk.f32.gmra.mxu1 %vm2727_vm4, %v11220_v50 }
 0x966   :  { %v12573_v47 = vpop.f32.mrf.mxu2  ;;  %v12575_v21 = vpop.f32.mrf.mxu3 }
 0x969   :  { %v12579_v62 = vpop.f32.mrf.mxu1 }
 0x96a   :  { %17734 = vst [vmem:[#allocation423_spill] sm:$0xff] %v12579_v62 }
 0x96b   :  { %8453 = vmatmul.msk.f32.gmra.mxu2 %vm2727_vm4, %v3322_v7  ;;  %8856 = vmatmul.msk.f32.gmra.mxu3 %vm2727_vm4, %v11180_v35 }
 0x96c   :  { %8730 = vmatmul.msk.f32.gmra.mxu1 %vm2727_vm4, %v11244_v9  ;;  %v17738_v9 = vld [vmem:[#allocation24_spill] sm:$0xff] }
 0x96d   :  { %v12609_v35 = vadd.f32 %v12599_v23, %v17738_v9 }
 0x96e   :  { %v12589_v14 = vpop.f32.mrf.mxu2  ;;  %v12591_v29 = vpop.f32.mrf.mxu3 }
 0x96f   :  { %17736 = vst [vmem:[#allocation424_spill] sm:$0xff] %v12591_v29 }
 0x971   :  { %v12593_v1 = vpop.f32.mrf.mxu1 }
 0x972   :  { %17737 = vst [vmem:[#allocation425_spill] sm:$0xff] %v12593_v1  ;;  %v3326_v1 = vsel %vm2587_vm5, %v3323_v53, %v3325_v36  ;;  %v8456_v53 = vld [vmem:[%s16709_s3 + $0x20] sm:$0x3f] }
 0x973   :  { %8454 = vmatmul.msk.f32.gmra.mxu2 %vm2727_vm4, %v3324_v63  ;;  %8857 = vmatmul.msk.f32.gmra.mxu3 %vm2727_vm4, %v11223_v49  ;;  %v16951_v63 = vmax.f32 %v12609_v35, 0.0  ;;  %v17741_v49 = vld [vmem:[#allocation319_spill] sm:$0xff] }
 0x974   :  { %8731 = vmatmul.msk.f32.gmra.mxu1 %vm2727_vm4, %v11266_v55 }
 0x975   :  { %v4005_v9 = vrot.slane %v16951_v63, 7  ;;  %v17748_v63 = vld [vmem:[#allocation56_spill] sm:$0xff] }
 0x976   :  { %v12611_v30 = vpop.f32.mrf.mxu2  ;;  %v12613_v7 = vpop.f32.mrf.mxu3 }
 0x977   :  { %17739 = vst [vmem:[#allocation24_spill] sm:$0xff] %v12613_v7 }
 0x979   :  { %v12615_v6 = vpop.f32.mrf.mxu1 }
 0x97a   :  { %17740 = vst [vmem:[#allocation426_spill] sm:$0xff] %v12615_v6 }
 0x97b   :  { %8455 = vmatmul.msk.f32.gmra.mxu2 %vm2727_vm4, %v3326_v1  ;;  %8858 = vmatmul.msk.f32.gmra.mxu3 %vm2727_vm4, %v17741_v49  ;;  %v17745_v1 = vrot.slane %v11220_v50, 7  ;;  %v17746_v49 = vld [vmem:[#allocation314_spill] sm:$0xff] }
 0x97c   :  { %8732 = vmatmul.msk.f32.gmra.mxu1 %vm2727_vm4, %v17742_v27  ;;  %v17747_v5 = vmax.f32 %v17746_v49, 0.0  ;;  %v17756_v49 = vld [vmem:[#allocation320_spill] sm:$0xff] }
 0x97d   :  { %v4006_v36 = vsel %vm2587_vm5, %v17745_v1, %v4005_v9  ;;  %v17752_v9 = vld [vmem:[#allocation55_spill] sm:$0xff] }
 0x97e   :  { %v12626_v62 = vpop.f32.mrf.mxu2  ;;  %v12628_v4 = vpop.f32.mrf.mxu3 }
 0x97f   :  { %17743 = vst [vmem:[#allocation319_spill] sm:$0xff] %v12628_v4 }
 0x981   :  { %v12630_v6 = vpop.f32.mrf.mxu1 }
 0x982   :  { %17744 = vst [vmem:[#allocation48_spill] sm:$0xff] %v12630_v6 }
 0x983   :  { %8459 = vmatmul.msk.f32.vlgmr.msra.gmra.mxu2 %vm2727_vm4, %v17747_v5  ;;  %8859 = vmatmul.msk.f32.gmra.mxu3 %vm2727_vm4, %v4006_v36  ;;  %v17753_v5 = vld [vmem:[#allocation321_spill] sm:$0xff] }
 0x984   :  { %8733 = vmatmul.msk.f32.gmra.mxu1 %vm2727_vm4, %v17748_v63  ;;  %8786 = vmatpush.msk.msra.mxu2 %vm2912_vm3, %v8456_v53  ;;  %vm6303_vm3 = vcmask 917248  }
 0x986   :  { %v12645_v6 = vpop.f32.mrf.mxu2  ;;  %v12647_v16 = vpop.f32.mrf.mxu3 }
 0x987   :  { %17749 = vst [vmem:[#allocation314_spill] sm:$0xff] %v12645_v6 }
 0x988   :  { %17750 = vst [vmem:[#allocation56_spill] sm:$0xff] %v12647_v16 }
 0x989   :  { %v12649_v33 = vpop.f32.mrf.mxu1 }
 0x98a   :  { %17751 = vst [vmem:[#allocation427_spill] sm:$0xff] %v12649_v33  ;;  %v17757_v33 = vld [vmem:[#allocation323_spill] sm:$0xff] }
 0x98b   :  { %8592 = vmatmul.msk.f32.vlgmr.msrb.gmra.mxu2 %vm2727_vm4, %v11034_v31  ;;  %8860 = vmatmul.msk.f32.gmra.mxu3 %vm2727_vm4, %v17752_v9 }
 0x98c   :  { %8734 = vmatmul.msk.f32.gmra.mxu1 %vm2727_vm4, %v17753_v5 }
 0x98e   :  { %v12657_v1 = vpop.f32.mrf.mxu2  ;;  %v12659_v36 = vpop.f32.mrf.mxu3 }
 0x98f   :  { %17754 = vst [vmem:[#allocation55_spill] sm:$0xff] %v12659_v36  ;;  %v17760_v36 = vld [vmem:[#allocation322_spill] sm:$0xff] }
 0x991   :  { %v12661_v53 = vpop.f32.mrf.mxu1 }
 0x992   :  { %17755 = vst [vmem:[#allocation321_spill] sm:$0xff] %v12661_v53  ;;  %v17761_v53 = vld [vmem:[#allocation325_spill] sm:$0xff] }
 0x993   :  { %8593 = vmatmul.msk.f32.gmra.mxu2 %vm2727_vm4, %v11061_v0  ;;  %8861 = vmatmul.msk.f32.gmra.mxu3 %vm2727_vm4, %v17756_v49 }
 0x994   :  { %8735 = vmatmul.msk.f32.gmra.mxu1 %vm2727_vm4, %v17757_v33 }
 0x996   :  { %v12669_v31 = vpop.f32.mrf.mxu2  ;;  %v12671_v9 = vpop.f32.mrf.mxu3 }
 0x997   :  { %17758 = vst [vmem:[#allocation320_spill] sm:$0xff] %v12671_v9  ;;  %v17764_v9 = vld [vmem:[#allocation324_spill] sm:$0xff] }
 0x999   :  { %v12673_v6 = vpop.f32.mrf.mxu1 }
 0x99a   :  { %17759 = vst [vmem:[#allocation323_spill] sm:$0xff] %v12673_v6  ;;  %v17765_v6 = vld [vmem:[#allocation327_spill] sm:$0xff] }
 0x99b   :  { %8594 = vmatmul.msk.f32.gmra.mxu2 %vm2727_vm4, %v11089_v38  ;;  %8862 = vmatmul.msk.f32.gmra.mxu3 %vm2727_vm4, %v17760_v36 }
 0x99c   :  { %8736 = vmatmul.msk.f32.gmra.mxu1 %vm2727_vm4, %v17761_v53 }
 0x99e   :  { %v12681_v0 = vpop.f32.mrf.mxu2  ;;  %v12683_v49 = vpop.f32.mrf.mxu3 }
 0x99f   :  { %17762 = vst [vmem:[#allocation322_spill] sm:$0xff] %v12683_v49  ;;  %v17769_v49 = vld [vmem:[#allocation326_spill] sm:$0xff] }
 0x9a1   :  { %v12685_v16 = vpop.f32.mrf.mxu1 }
 0x9a2   :  { %17763 = vst [vmem:[#allocation325_spill] sm:$0xff] %v12685_v16  ;;  %v17770_v16 = vld [vmem:[#allocation329_spill] sm:$0xff] }
 0x9a3   :  { %8595 = vmatmul.msk.f32.gmra.mxu2 %vm2727_vm4, %v11118_v45  ;;  %8863 = vmatmul.msk.f32.gmra.mxu3 %vm2727_vm4, %v17764_v9 }
 0x9a4   :  { %8737 = vmatmul.msk.f32.gmra.mxu1 %vm2727_vm4, %v17765_v6 }
 0x9a6   :  { %v12693_v38 = vpop.f32.mrf.mxu2  ;;  %v12695_v36 = vpop.f32.mrf.mxu3 }
 0x9a7   :  { %17766 = vst [vmem:[#allocation324_spill] sm:$0xff] %v12693_v38 }
 0x9a8   :  { %17767 = vst [vmem:[#allocation327_spill] sm:$0xff] %v12695_v36  ;;  %v17774_v36 = vld [vmem:[#allocation328_spill] sm:$0xff] }
 0x9a9   :  { %v12697_v4 = vpop.f32.mrf.mxu1 }
 0x9aa   :  { %17768 = vst [vmem:[#allocation428_spill] sm:$0xff] %v12697_v4  ;;  %v17775_v4 = vld [vmem:[#allocation330_spill] sm:$0xff] }
 0x9ab   :  { %8596 = vmatmul.msk.f32.gmra.mxu2 %vm2727_vm4, %v11147_v26  ;;  %8864 = vmatmul.msk.f32.gmra.mxu3 %vm2727_vm4, %v17769_v49  ;;  %v17776_v26 = vld [vmem:[#allocation61_spill] sm:$0xff] }
 0x9ac   :  { %8738 = vmatmul.msk.f32.gmra.mxu1 %vm2727_vm4, %v17770_v16  ;;  %v12719_v49 = vadd.f32 %v12599_v23, %v17776_v26 }
 0x9ae   :  { %v12705_v45 = vpop.f32.mrf.mxu2  ;;  %v12707_v9 = vpop.f32.mrf.mxu3 }
 0x9af   :  { %17771 = vst [vmem:[#allocation326_spill] sm:$0xff] %v12705_v45 }
 0x9b0   :  { %17772 = vst [vmem:[#allocation329_spill] sm:$0xff] %v12707_v9 }
 0x9b1   :  { %v12709_v7 = vpop.f32.mrf.mxu1 }
 0x9b2   :  { %17773 = vst [vmem:[#allocation429_spill] sm:$0xff] %v12709_v7  ;;  %v2322_v7 = vmax.f32 %v12719_v49, 0.0 }
 0x9b3   :  { %8597 = vmatmul.msk.f32.gmra.mxu2 %vm2727_vm4, %v11177_v24  ;;  %8865 = vmatmul.msk.f32.gmra.mxu3 %vm2727_vm4, %v17774_v36  ;;  %v17780_v24 = vld [vmem:[#allocation33_spill] sm:$0xff]  ;;  %v17781_v36 = vld [vmem:[#allocation331_spill] sm:$0xff] }
 0x9b4   :  { %8739 = vmatmul.msk.f32.gmra.mxu1 %vm2727_vm4, %v17775_v4  ;;  %v4007_v38 = vrot.slane %v2322_v7, 7 }
 0x9b6   :  { %v12721_v16 = vpop.f32.mrf.mxu2  ;;  %v12723_v45 = vpop.f32.mrf.mxu3 }
 0x9b7   :  { %17777 = vst [vmem:[#allocation328_spill] sm:$0xff] %v12721_v16 }
 0x9b8   :  { %17778 = vst [vmem:[#allocation330_spill] sm:$0xff] %v12723_v45  ;;  %v17785_v45 = vrot.slane %v17765_v6, 7 }
 0x9b9   :  { %v12725_v9 = vpop.f32.mrf.mxu1 }
 0x9ba   :  { %17779 = vst [vmem:[#allocation61_spill] sm:$0xff] %v12725_v9  ;;  %v4008_v49 = vsel %vm2587_vm5, %v17785_v45, %v4007_v38  ;;  %v17786_v9 = vmax.f32 %v12609_v35, 0.0  ;;  %v17792_v35 = vld [vmem:[#allocation336_spill] sm:$0xff] }
 0x9bb   :  { %8598 = vmatmul.msk.f32.gmra.mxu2 %vm2727_vm4, %v11220_v50  ;;  %8866 = vmatmul.msk.f32.gmra.mxu3 %vm2727_vm4, %v17780_v24  ;;  %v17787_v50 = vld [vmem:[#allocation333_spill] sm:$0xff] }
 0x9bc   :  { %8740 = vmatmul.msk.f32.gmra.mxu1 %vm2727_vm4, %v17781_v36 }
 0x9be   :  { %v12734_v26 = vpop.f32.mrf.mxu2  ;;  %v12736_v29 = vpop.f32.mrf.mxu3 }
 0x9bf   :  { %17782 = vst [vmem:[#allocation33_spill] sm:$0xff] %v12734_v26 }
 0x9c0   :  { %17783 = vst [vmem:[#allocation331_spill] sm:$0xff] %v12736_v29 }
 0x9c1   :  { %v12738_v16 = vpop.f32.mrf.mxu1 }
 0x9c2   :  { %17784 = vst [vmem:[#allocation430_spill] sm:$0xff] %v12738_v16  ;;  %v17791_v16 = vld [vmem:[#allocation332_spill] sm:$0xff] }
 0x9c3   :  { %8599 = vmatmul.msk.f32.gmra.mxu2 %vm2727_vm4, %v17786_v9  ;;  %8867 = vmatmul.msk.f32.gmra.mxu3 %vm2727_vm4, %v4008_v49  ;;  %v17796_v49 = vld [vmem:[#allocation334_spill] sm:$0xff] }
 0x9c4   :  { %8741 = vmatmul.msk.f32.gmra.mxu1 %vm2727_vm4, %v17787_v50 }
 0x9c6   :  { %v12749_v24 = vpop.f32.mrf.mxu2  ;;  %v12751_v26 = vpop.f32.mrf.mxu3 }
 0x9c7   :  { %17788 = vst [vmem:[#allocation333_spill] sm:$0xff] %v12749_v24 }
 0x9c8   :  { %17789 = vst [vmem:[#allocation431_spill] sm:$0xff] %v12751_v26  ;;  %v17797_v26 = vld [vmem:[#allocation339_spill] sm:$0xff] }
 0x9c9   :  { %v12753_v29 = vpop.f32.mrf.mxu1 }
 0x9ca   :  { %17790 = vst [vmem:[#allocation432_spill] sm:$0xff] %v12753_v29 }
 0x9cb   :  { %8600 = vmatmul.msk.f32.gmra.mxu2 %vm2727_vm4, %v11266_v55  ;;  %8868 = vmatmul.msk.f32.gmra.mxu3 %vm2727_vm4, %v17791_v16 }
 0x9cc   :  { %8742 = vmatmul.msk.f32.gmra.mxu1 %vm2727_vm4, %v17792_v35 }
 0x9ce   :  { %v12761_v38 = vpop.f32.mrf.mxu2  ;;  %v12763_v45 = vpop.f32.mrf.mxu3 }
 0x9cf   :  { %17793 = vst [vmem:[#allocation332_spill] sm:$0xff] %v12761_v38  ;;  %v17801_v38 = vld [vmem:[#allocation337_spill] sm:$0xff] }
 0x9d0   :  { %17794 = vst [vmem:[#allocation336_spill] sm:$0xff] %v12763_v45 }
 0x9d1   :  { %v12765_v9 = vpop.f32.mrf.mxu1 }
 0x9d2   :  { %17795 = vst [vmem:[#allocation433_spill] sm:$0xff] %v12765_v9  ;;  %v17802_v9 = vld [vmem:[#allocation341_spill] sm:$0xff] }
 0x9d3   :  { %8601 = vmatmul.msk.f32.gmra.mxu2 %vm2727_vm4, %v17742_v27  ;;  %8869 = vmatmul.msk.f32.gmra.mxu3 %vm2727_vm4, %v17796_v49 }
 0x9d4   :  { %8743 = vmatmul.msk.f32.gmra.mxu1 %vm2727_vm4, %v17797_v26 }
 0x9d6   :  { %v12773_v55 = vpop.f32.mrf.mxu2  ;;  %v12775_v16 = vpop.f32.mrf.mxu3 }
 0x9d7   :  { %17798 = vst [vmem:[#allocation334_spill] sm:$0xff] %v12773_v55  ;;  %v17806_v55 = vld [vmem:[#allocation340_spill] sm:$0xff] }
 0x9d8   :  { %17799 = vst [vmem:[#allocation339_spill] sm:$0xff] %v12775_v16 }
 0x9d9   :  { %v12777_v24 = vpop.f32.mrf.mxu1 }
 0x9da   :  { %17800 = vst [vmem:[#allocation434_spill] sm:$0xff] %v12777_v24  ;;  %v17807_v24 = vld [vmem:[#allocation343_spill] sm:$0xff] }
 0x9db   :  { %8602 = vmatmul.msk.f32.gmra.mxu2 %vm2727_vm4, %v17748_v63  ;;  %8870 = vmatmul.msk.f32.gmra.mxu3 %vm2727_vm4, %v17801_v38 }
 0x9dc   :  { %8744 = vmatmul.msk.f32.gmra.mxu1 %vm2727_vm4, %v17802_v9 }
 0x9de   :  { %v12785_v27 = vpop.f32.mrf.mxu2  ;;  %v12787_v49 = vpop.f32.mrf.mxu3 }
 0x9df   :  { %17803 = vst [vmem:[#allocation337_spill] sm:$0xff] %v12785_v27  ;;  %v17811_v27 = vld [vmem:[#allocation342_spill] sm:$0xff] }
 0x9e0   :  { %17804 = vst [vmem:[#allocation341_spill] sm:$0xff] %v12787_v49 }
 0x9e1   :  { %v12789_v29 = vpop.f32.mrf.mxu1 }
 0x9e2   :  { %17805 = vst [vmem:[#allocation435_spill] sm:$0xff] %v12789_v29  ;;  %v17812_v29 = vld [vmem:[#allocation345_spill] sm:$0xff] }
 0x9e3   :  { %8603 = vmatmul.msk.f32.gmra.mxu2 %vm2727_vm4, %v17753_v5  ;;  %8871 = vmatmul.msk.f32.gmra.mxu3 %vm2727_vm4, %v17806_v55 }
 0x9e4   :  { %8745 = vmatmul.msk.f32.gmra.mxu1 %vm2727_vm4, %v17807_v24 }
 0x9e6   :  { %v12797_v63 = vpop.f32.mrf.mxu2  ;;  %v12799_v38 = vpop.f32.mrf.mxu3 }
 0x9e7   :  { %17808 = vst [vmem:[#allocation340_spill] sm:$0xff] %v12797_v63  ;;  %v17816_v63 = vld [vmem:[#allocation344_spill] sm:$0xff] }
 0x9e8   :  { %17809 = vst [vmem:[#allocation343_spill] sm:$0xff] %v12799_v38 }
 0x9e9   :  { %v12801_v16 = vpop.f32.mrf.mxu1 }
 0x9ea   :  { %17810 = vst [vmem:[#allocation436_spill] sm:$0xff] %v12801_v16  ;;  %v17817_v16 = vld [vmem:[#allocation346_spill] sm:$0xff] }
 0x9eb   :  { %8604 = vmatmul.msk.f32.gmra.mxu2 %vm2727_vm4, %v17757_v33  ;;  %8872 = vmatmul.msk.f32.gmra.mxu3 %vm2727_vm4, %v17811_v27  ;;  %v17818_v33 = vld [vmem:[#allocation103_spill] sm:$0xff] }
 0x9ec   :  { %8746 = vmatmul.msk.f32.gmra.mxu1 %vm2727_vm4, %v17812_v29  ;;  %v12823_v27 = vadd.f32 %v12599_v23, %v17818_v33 }
 0x9ee   :  { %v12809_v5 = vpop.f32.mrf.mxu2  ;;  %v12811_v55 = vpop.f32.mrf.mxu3 }
 0x9ef   :  { %17813 = vst [vmem:[#allocation342_spill] sm:$0xff] %v12809_v5 }
 0x9f0   :  { %17814 = vst [vmem:[#allocation345_spill] sm:$0xff] %v12811_v55 }
 0x9f1   :  { %v12813_v49 = vpop.f32.mrf.mxu1 }
 0x9f2   :  { %17815 = vst [vmem:[#allocation437_spill] sm:$0xff] %v12813_v49  ;;  %v2354_v49 = vmax.f32 %v12823_v27, 0.0 }
 0x9f3   :  { %8605 = vmatmul.msk.f32.gmra.mxu2 %vm2727_vm4, %v17761_v53  ;;  %8873 = vmatmul.msk.f32.gmra.mxu3 %vm2727_vm4, %v17816_v63  ;;  %v17822_v53 = vld [vmem:[#allocation73_spill] sm:$0xff]  ;;  %v17823_v63 = vld [vmem:[#allocation347_spill] sm:$0xff] }
 0x9f4   :  { %8747 = vmatmul.msk.f32.gmra.mxu1 %vm2727_vm4, %v17817_v16  ;;  %v4009_v38 = vrot.slane %v2354_v49, 7 }
 0x9f6   :  { %v12825_v29 = vpop.f32.mrf.mxu2  ;;  %v12827_v5 = vpop.f32.mrf.mxu3 }
 0x9f7   :  { %17819 = vst [vmem:[#allocation344_spill] sm:$0xff] %v12825_v29 }
 0x9f8   :  { %17820 = vst [vmem:[#allocation346_spill] sm:$0xff] %v12827_v5 }
 0x9f9   :  { %v12829_v55 = vpop.f32.mrf.mxu1 }
 0x9fa   :  { %17821 = vst [vmem:[#allocation103_spill] sm:$0xff] %v12829_v55  ;;  %v17827_v55 = vrot.slane %v17807_v24, 7 }
 0x9fb   :  { %8606 = vmatmul.msk.f32.gmra.mxu2 %vm2727_vm4, %v17765_v6  ;;  %8874 = vmatmul.msk.f32.gmra.mxu3 %vm2727_vm4, %v17822_v53  ;;  %v17828_v6 = vld [vmem:[#allocation349_spill] sm:$0xff] }
 0x9fc   :  { %8748 = vmatmul.msk.f32.gmra.mxu1 %vm2727_vm4, %v17823_v63  ;;  %v4010_v27 = vsel %vm2587_vm5, %v17827_v55, %v4009_v38  ;;  %v17833_v38 = vld [vmem:[#allocation352_spill] sm:$0xff] }
 0x9fe   :  { %v12838_v33 = vpop.f32.mrf.mxu2  ;;  %v12840_v45 = vpop.f32.mrf.mxu3 }
 0x9ff   :  { %17824 = vst [vmem:[#allocation73_spill] sm:$0xff] %v12838_v33 }
 0xa00   :  { %17825 = vst [vmem:[#allocation347_spill] sm:$0xff] %v12840_v45 }
 0xa01   :  { %v12842_v29 = vpop.f32.mrf.mxu1 }
 0xa02   :  { %17826 = vst [vmem:[#allocation438_spill] sm:$0xff] %v12842_v29  ;;  %v17832_v29 = vld [vmem:[#allocation348_spill] sm:$0xff] }
 0xa03   :  { %8607 = vmatmul.msk.f32.gmra.mxu2 %vm2727_vm4, %v2322_v7  ;;  %8875 = vmatmul.msk.f32.gmra.mxu3 %vm2727_vm4, %v4010_v27 }
 0xa04   :  { %8749 = vmatmul.msk.f32.gmra.mxu1 %vm2727_vm4, %v17828_v6 }
 0xa06   :  { %v12851_v53 = vpop.f32.mrf.mxu2  ;;  %v12853_v5 = vpop.f32.mrf.mxu3 }
 0xa07   :  { %17829 = vst [vmem:[#allocation349_spill] sm:$0xff] %v12851_v53 }
 0xa08   :  { %17830 = vst [vmem:[#allocation439_spill] sm:$0xff] %v12853_v5  ;;  %v17837_v5 = vld [vmem:[#allocation350_spill] sm:$0xff] }
 0xa09   :  { %v12855_v33 = vpop.f32.mrf.mxu1 }
 0xa0a   :  { %17831 = vst [vmem:[#allocation440_spill] sm:$0xff] %v12855_v33  ;;  %v17838_v33 = vld [vmem:[#allocation355_spill] sm:$0xff] }
 0xa0b   :  { %8608 = vmatmul.msk.f32.gmra.mxu2 %vm2727_vm4, %v17775_v4  ;;  %8876 = vmatmul.msk.f32.gmra.mxu3 %vm2727_vm4, %v17832_v29 }
 0xa0c   :  { %8750 = vmatmul.msk.f32.gmra.mxu1 %vm2727_vm4, %v17833_v38 }
 0xa0e   :  { %v12863_v7 = vpop.f32.mrf.mxu2  ;;  %v12865_v55 = vpop.f32.mrf.mxu3 }
 0xa0f   :  { %17834 = vst [vmem:[#allocation348_spill] sm:$0xff] %v12863_v7 }
 0xa10   :  { %17835 = vst [vmem:[#allocation352_spill] sm:$0xff] %v12865_v55  ;;  %v17842_v55 = vld [vmem:[#allocation353_spill] sm:$0xff] }
 0xa11   :  { %v12867_v27 = vpop.f32.mrf.mxu1 }
 0xa12   :  { %17836 = vst [vmem:[#allocation441_spill] sm:$0xff] %v12867_v27  ;;  %v17843_v27 = vld [vmem:[#allocation357_spill] sm:$0xff] }
 0xa13   :  { %8609 = vmatmul.msk.f32.gmra.mxu2 %vm2727_vm4, %v17781_v36  ;;  %8877 = vmatmul.msk.f32.gmra.mxu3 %vm2727_vm4, %v17837_v5 }
 0xa14   :  { %8751 = vmatmul.msk.f32.gmra.mxu1 %vm2727_vm4, %v17838_v33 }
 0xa16   :  { %v12875_v4 = vpop.f32.mrf.mxu2  ;;  %v12877_v29 = vpop.f32.mrf.mxu3 }
 0xa17   :  { %17839 = vst [vmem:[#allocation350_spill] sm:$0xff] %v12875_v4 }
 0xa18   :  { %17840 = vst [vmem:[#allocation355_spill] sm:$0xff] %v12877_v29  ;;  %v17847_v29 = vld [vmem:[#allocation356_spill] sm:$0xff] }
 0xa19   :  { %v12879_v45 = vpop.f32.mrf.mxu1 }
 0xa1a   :  { %17841 = vst [vmem:[#allocation442_spill] sm:$0xff] %v12879_v45  ;;  %v17848_v45 = vld [vmem:[#allocation359_spill] sm:$0xff] }
 0xa1b   :  { %8610 = vmatmul.msk.f32.gmra.mxu2 %vm2727_vm4, %v17787_v50  ;;  %8878 = vmatmul.msk.f32.gmra.mxu3 %vm2727_vm4, %v17842_v55 }
 0xa1c   :  { %8752 = vmatmul.msk.f32.gmra.mxu1 %vm2727_vm4, %v17843_v27 }
 0xa1e   :  { %v12887_v36 = vpop.f32.mrf.mxu2  ;;  %v12889_v5 = vpop.f32.mrf.mxu3 }
 0xa1f   :  { %17844 = vst [vmem:[#allocation353_spill] sm:$0xff] %v12887_v36 }
 0xa20   :  { %17845 = vst [vmem:[#allocation357_spill] sm:$0xff] %v12889_v5  ;;  %v17852_v5 = vld [vmem:[#allocation358_spill] sm:$0xff] }
 0xa21   :  { %v12891_v7 = vpop.f32.mrf.mxu1 }
 0xa22   :  { %17846 = vst [vmem:[#allocation443_spill] sm:$0xff] %v12891_v7  ;;  %v17853_v7 = vld [vmem:[#allocation361_spill] sm:$0xff] }
 0xa23   :  { %8611 = vmatmul.msk.f32.gmra.mxu2 %vm2727_vm4, %v17792_v35  ;;  %8879 = vmatmul.msk.f32.gmra.mxu3 %vm2727_vm4, %v17847_v29 }
 0xa24   :  { %8753 = vmatmul.msk.f32.gmra.mxu1 %vm2727_vm4, %v17848_v45 }
 0xa26   :  { %v12899_v50 = vpop.f32.mrf.mxu2  ;;  %v12903_v4 = vpop.f32.mrf.mxu3 }
 0xa27   :  { %17849 = vst [vmem:[#allocation356_spill] sm:$0xff] %v12899_v50  ;;  %v17856_v50 = vld [vmem:[#allocation360_spill] sm:$0xff] }
 0xa28   :  { %17851 = vst [vmem:[#allocation444_spill] sm:$0xff] %v12903_v4  ;;  %v17859_v4 = vld [vmem:[#allocation151_spill] sm:$0xff] }
 0xa29   :  { %v12901_v55 = vpop.f32.mrf.mxu1 }
 0xa2a   :  { %17850 = vst [vmem:[#allocation359_spill] sm:$0xff] %v12901_v55  ;;  %v17857_v55 = vld [vmem:[#allocation362_spill] sm:$0xff] }
 0xa2b   :  { %8612 = vmatmul.msk.f32.gmra.mxu2 %vm2727_vm4, %v17797_v26  ;;  %8880 = vmatmul.msk.f32.gmra.mxu3 %vm2727_vm4, %v17852_v5  ;;  %v12925_v5 = vadd.f32 %v12599_v23, %v17859_v4 }
 0xa2c   :  { %8754 = vmatmul.msk.f32.gmra.mxu1 %vm2727_vm4, %v17853_v7 }
 0xa2e   :  { %v12911_v35 = vpop.f32.mrf.mxu2  ;;  %v12921_v26 = vpop.f32.mrf.mxu3 }
 0xa2f   :  { %17854 = vst [vmem:[#allocation358_spill] sm:$0xff] %v12911_v35 }
 0xa30   :  { %17858 = vst [vmem:[#allocation360_spill] sm:$0xff] %v12921_v26 }
 0xa31   :  { %v12913_v29 = vpop.f32.mrf.mxu1 }
 0xa32   :  { %17855 = vst [vmem:[#allocation361_spill] sm:$0xff] %v12913_v29  ;;  %v2386_v29 = vmax.f32 %v12925_v5, 0.0 }
 0xa33   :  { %8613 = vmatmul.msk.f32.gmra.mxu2 %vm2727_vm4, %v17802_v9  ;;  %8881 = vmatmul.msk.f32.gmra.mxu3 %vm2727_vm4, %v17856_v50  ;;  %v17862_v9 = vld [vmem:[#allocation115_spill] sm:$0xff] }
 0xa34   :  { %8755 = vmatmul.msk.f32.gmra.mxu1 %vm2727_vm4, %v17857_v55  ;;  %v17863_v50 = vld [vmem:[#allocation363_spill] sm:$0xff]  ;;  %v4011_v26 = vrot.slane %v2386_v29, 7 }
 0xa36   :  { %v12927_v7 = vpop.f32.mrf.mxu2  ;;  %v12940_v4 = vpop.f32.mrf.mxu3 }
 0xa37   :  { %17860 = vst [vmem:[#allocation362_spill] sm:$0xff] %v12927_v7 }
 0xa38   :  { %17865 = vst [vmem:[#allocation363_spill] sm:$0xff] %v12940_v4  ;;  %v17883_v4 = vld [vmem:[#allocation372_spill] sm:$0xff] }
 0xa39   :  { %v12929_v35 = vpop.f32.mrf.mxu1 }
 0xa3a   :  { %17861 = vst [vmem:[#allocation151_spill] sm:$0xff] %v12929_v35  ;;  %v17867_v35 = vrot.slane %v17848_v45, 7 }
 0xa3b   :  { %8614 = vmatmul.msk.f32.gmra.mxu2 %vm2727_vm4, %v17807_v24  ;;  %8882 = vmatmul.msk.f32.gmra.mxu3 %vm2727_vm4, %v17862_v9  ;;  %v17868_v24 = vld [vmem:[#allocation365_spill] sm:$0xff] }
 0xa3c   :  { %8756 = vmatmul.msk.f32.gmra.mxu1 %vm2727_vm4, %v17863_v50  ;;  %v4012_v5 = vsel %vm2587_vm5, %v17867_v35, %v4011_v26  ;;  %v17873_v35 = vld [vmem:[#allocation368_spill] sm:$0xff] }
 0xa3e   :  { %v12938_v36 = vpop.f32.mrf.mxu2  ;;  %v12953_v7 = vpop.f32.mrf.mxu3 }
 0xa3f   :  { %17864 = vst [vmem:[#allocation115_spill] sm:$0xff] %v12938_v36 }
 0xa40   :  { %17870 = vst [vmem:[#allocation446_spill] sm:$0xff] %v12953_v7  ;;  %v17879_v7 = vld [vmem:[#allocation369_spill] sm:$0xff] }
 0xa41   :  { %v12942_v53 = vpop.f32.mrf.mxu1 }
 0xa42   :  { %17866 = vst [vmem:[#allocation445_spill] sm:$0xff] %v12942_v53  ;;  %v17872_v53 = vld [vmem:[#allocation364_spill] sm:$0xff] }
 0xa43   :  { %8615 = vmatmul.msk.f32.gmra.mxu2 %vm2727_vm4, %v2354_v49  ;;  %8883 = vmatmul.msk.f32.gmra.mxu3 %vm2727_vm4, %v4012_v5 }
 0xa44   :  { %8757 = vmatmul.msk.f32.gmra.mxu1 %vm2727_vm4, %v17868_v24 }
 0xa46   :  { %v12951_v9 = vpop.f32.mrf.mxu2  ;;  %v12967_v5 = vpop.f32.mrf.mxu3 }
 0xa47   :  { %17869 = vst [vmem:[#allocation365_spill] sm:$0xff] %v12951_v9  ;;  %v17876_v9 = vld [vmem:[#allocation366_spill] sm:$0xff] }
 0xa48   :  { %17875 = vst [vmem:[#allocation368_spill] sm:$0xff] %v12967_v5 }
 0xa49   :  { %v12955_v36 = vpop.f32.mrf.mxu1 }
 0xa4a   :  { %17871 = vst [vmem:[#allocation447_spill] sm:$0xff] %v12955_v36  ;;  %v17877_v36 = vld [vmem:[#allocation371_spill] sm:$0xff] }
 0xa4b   :  { %8616 = vmatmul.msk.f32.gmra.mxu2 %vm2727_vm4, %v17817_v16  ;;  %8884 = vmatmul.msk.f32.gmra.mxu3 %vm2727_vm4, %v17872_v53 }
 0xa4c   :  { %8758 = vmatmul.msk.f32.gmra.mxu1 %vm2727_vm4, %v17873_v35 }
 0xa4e   :  { %v12963_v49 = vpop.f32.mrf.mxu2 }
 0xa51   :  { %v12965_v26 = vpop.f32.mrf.mxu1 }
 0xa52   :  { %17874 = vst [vmem:[#allocation364_spill] sm:$0xff] %v12965_v26  ;;  %v17880_v26 = vld [vmem:[#allocation373_spill] sm:$0xff] }
 0xa53   :  { %8617 = vmatmul.msk.f32.gmra.mxu2 %vm2727_vm4, %v17823_v63  ;;  %8885 = vmatmul.msk.f32.gmra.mxu3 %vm2727_vm4, %v17876_v9  ;;  %v12985_v63 = vpop.f32.mrf.mxu3 }
 0xa54   :  { %8759 = vmatmul.msk.f32.gmra.mxu1 %vm2727_vm4, %v17877_v36  ;;  %17881 = vst [vmem:[#allocation371_spill] sm:$0xff] %v12985_v63  ;;  %v17886_v63 = vld [vmem:[#allocation374_spill] sm:$0xff] }
 0xa56   :  { %v12975_v16 = vpop.f32.mrf.mxu2 }
 0xa59   :  { %v12977_v53 = vpop.f32.mrf.mxu1 }
 0xa5a   :  { %17878 = vst [vmem:[#allocation366_spill] sm:$0xff] %v12977_v53 }
 0xa5b   :  { %8618 = vmatmul.msk.f32.gmra.mxu2 %vm2727_vm4, %v17828_v6  ;;  %8886 = vmatmul.msk.f32.gmra.mxu3 %vm2727_vm4, %v17879_v7  ;;  %v12999_v7 = vpop.f32.mrf.mxu3 }
 0xa5c   :  { %8760 = vmatmul.msk.f32.gmra.mxu1 %vm2727_vm4, %v17880_v26  ;;  %17884 = vst [vmem:[#allocation373_spill] sm:$0xff] %v12999_v7  ;;  %v17889_v7 = vld [vmem:[#allocation375_spill] sm:$0xff] }
 0xa5e   :  { %v12987_v5 = vpop.f32.mrf.mxu2 }
 0xa61   :  { %v12989_v9 = vpop.f32.mrf.mxu1 }
 0xa62   :  { %17882 = vst [vmem:[#allocation369_spill] sm:$0xff] %v12989_v9 }
 0xa63   :  { %8619 = vmatmul.msk.f32.gmra.mxu2 %vm2727_vm4, %v17833_v38  ;;  %8887 = vmatmul.msk.f32.gmra.mxu3 %vm2727_vm4, %v17883_v4  ;;  %v13011_v4 = vpop.f32.mrf.mxu3 }
 0xa64   :  { %8761 = vmatmul.msk.f32.gmra.mxu1 %vm2727_vm4, %v11906_v17  ;;  %17887 = vst [vmem:[#allocation374_spill] sm:$0xff] %v13011_v4 }
 0xa66   :  { %v12997_v6 = vpop.f32.mrf.mxu2 }
 0xa69   :  { %v13001_v53 = vpop.f32.mrf.mxu1 }
 0xa6a   :  { %17885 = vst [vmem:[#allocation372_spill] sm:$0xff] %v13001_v53 }
 0xa6b   :  { %8620 = vmatmul.msk.f32.gmra.mxu2 %vm2727_vm4, %v17838_v33  ;;  %8888 = vmatmul.msk.f32.gmra.mxu3 %vm2727_vm4, %v17886_v63  ;;  %v17890_v33 = vld [vmem:[#allocation199_spill] sm:$0xff] }
 0xa6c   :  { %8762 = vmatmul.msk.f32.gmra.mxu1 %vm2727_vm4, %v11930_v10  ;;  %v13023_v63 = vadd.f32 %v12599_v23, %v17890_v33 }
 0xa6e   :  { %v13009_v38 = vpop.f32.mrf.mxu2  ;;  %v2418_v4 = vmax.f32 %v13023_v63, 0.0 }
 0xa71   :  { %v13013_v9 = vpop.f32.mrf.mxu1 }
 0xa72   :  { %17888 = vst [vmem:[#allocation448_spill] sm:$0xff] %v13013_v9  ;;  %v13030_v9 = vpop.f32.mrf.mxu3 }
 0xa73   :  { %8621 = vmatmul.msk.f32.gmra.mxu2 %vm2727_vm4, %v17843_v27  ;;  %8889 = vmatmul.msk.f32.gmra.mxu3 %vm2727_vm4, %v17889_v7  ;;  %17892 = vst [vmem:[#allocation199_spill] sm:$0xff] %v13030_v9  ;;  %v4013_v27 = vrot.slane %v2418_v4, 7 }
 0xa74   :  { %8763 = vmatmul.msk.f32.gmra.mxu1 %vm2727_vm4, %v11955_v43 }
 0xa76   :  { %v13025_v10 = vpop.f32.mrf.mxu2 }
 0xa79   :  { %v13027_v53 = vpop.f32.mrf.mxu1 }
 0xa7a   :  { %17891 = vst [vmem:[#allocation375_spill] sm:$0xff] %v13027_v53  ;;  %v17894_v53 = vrot.slane %v11906_v17, 7 }
 0xa7b   :  { %8622 = vmatmul.msk.f32.gmra.mxu2 %vm2727_vm4, %v17848_v45  ;;  %8890 = vmatmul.msk.f32.gmra.mxu3 %vm2727_vm4, %v11937_v18  ;;  %v13049_v18 = vpop.f32.mrf.mxu3 }
 0xa7c   :  { %8764 = vmatmul.msk.f32.gmra.mxu1 %vm2727_vm4, %v11973_v59  ;;  %v4014_v63 = vsel %vm2587_vm5, %v17894_v53, %v4013_v27  ;;  %17895 = vst [vmem:[#allocation450_spill] sm:$0xff] %v13049_v18  ;;  %v17915_v18 = vld [vmem:[#allocation384_spill] sm:$0xff] }
 0xa7e   :  { %v13038_v7 = vpop.f32.mrf.mxu2 }
 0xa81   :  { %v13040_v33 = vpop.f32.mrf.mxu1 }
 0xa82   :  { %17893 = vst [vmem:[#allocation449_spill] sm:$0xff] %v13040_v33  ;;  %v17897_v33 = vld [vmem:[#allocation241_spill] sm:$0xff] }
 0xa83   :  { %8623 = vmatmul.msk.f32.gmra.mxu2 %vm2727_vm4, %v2386_v29  ;;  %8891 = vmatmul.msk.f32.gmra.mxu3 %vm2727_vm4, %v4014_v63  ;;  %v13063_v53 = vpop.f32.mrf.mxu3 }
 0xa84   :  { %8765 = vmatmul.msk.f32.gmra.mxu1 %vm2727_vm4, %v11994_v8  ;;  %17898 = vst [vmem:[#allocation241_spill] sm:$0xff] %v13063_v53  ;;  %v17910_v53 = vld [vmem:[#allocation381_spill] sm:$0xff] }
 0xa86   :  { %v13051_v45 = vpop.f32.mrf.mxu2 }
 0xa89   :  { %v13053_v9 = vpop.f32.mrf.mxu1 }
 0xa8a   :  { %17896 = vst [vmem:[#allocation451_spill] sm:$0xff] %v13053_v9 }
 0xa8b   :  { %8624 = vmatmul.msk.f32.gmra.mxu2 %vm2727_vm4, %v17857_v55  ;;  %8892 = vmatmul.msk.f32.gmra.mxu3 %vm2727_vm4, %v17897_v33  ;;  %v13075_v33 = vpop.f32.mrf.mxu3 }
 0xa8c   :  { %8766 = vmatmul.msk.f32.gmra.mxu1 %vm2727_vm4, %v12014_v28  ;;  %17900 = vst [vmem:[#allocation453_spill] sm:$0xff] %v13075_v33  ;;  %v17906_v33 = vld [vmem:[#allocation378_spill] sm:$0xff] }
 0xa8e   :  { %v13061_v29 = vpop.f32.mrf.mxu2 }
 0xa91   :  { %v13065_v27 = vpop.f32.mrf.mxu1 }
 0xa92   :  { %17899 = vst [vmem:[#allocation452_spill] sm:$0xff] %v13065_v27  ;;  %v17902_v27 = vld [vmem:[#allocation380_spill] sm:$0xff] }
 0xa93   :  { %8625 = vmatmul.msk.f32.gmra.mxu2 %vm2727_vm4, %v17863_v50  ;;  %8893 = vmatmul.msk.f32.gmra.mxu3 %vm2727_vm4, %v11997_v32  ;;  %v13089_v9 = vpop.f32.mrf.mxu3 }
 0xa94   :  { %8767 = vmatmul.msk.f32.gmra.mxu1 %vm2727_vm4, %v12034_v13  ;;  %17905 = vst [vmem:[#allocation456_spill] sm:$0xff] %v13089_v9 }
 0xa96   :  { %v13073_v55 = vpop.f32.mrf.mxu2 }
 0xa99   :  { %v13077_v63 = vpop.f32.mrf.mxu1 }
 0xa9a   :  { %17901 = vst [vmem:[#allocation454_spill] sm:$0xff] %v13077_v63  ;;  %v17907_v63 = vld [vmem:[#allocation383_spill] sm:$0xff] }
 0xa9b   :  { %8626 = vmatmul.msk.f32.gmra.mxu2 %vm2727_vm4, %v17868_v24  ;;  %8894 = vmatmul.msk.f32.gmra.mxu3 %vm2727_vm4, %v12017_v34 }
 0xa9c   :  { %8768 = vmatmul.msk.f32.gmra.mxu1 %vm2727_vm4, %v17902_v27 }
 0xa9e   :  { %v13085_v50 = vpop.f32.mrf.mxu2 }
 0xa9f   :  { %17903 = vst [vmem:[#allocation380_spill] sm:$0xff] %v13085_v50 }
 0xaa1   :  { %v13087_v32 = vpop.f32.mrf.mxu1 }
 0xaa2   :  { %17904 = vst [vmem:[#allocation455_spill] sm:$0xff] %v13087_v32  ;;  %v17911_v32 = vld [vmem:[#allocation386_spill] sm:$0xff] }
 0xaa3   :  { %8627 = vmatmul.msk.f32.gmra.mxu2 %vm2727_vm4, %v17873_v35  ;;  %8895 = vmatmul.msk.f32.gmra.mxu3 %vm2727_vm4, %v17906_v33  ;;  %v13107_v35 = vpop.f32.mrf.mxu3 }
 0xaa4   :  { %8769 = vmatmul.msk.f32.gmra.mxu1 %vm2727_vm4, %v17907_v63  ;;  %17912 = vst [vmem:[#allocation381_spill] sm:$0xff] %v13107_v35 }
 0xaa6   :  { %v13097_v24 = vpop.f32.mrf.mxu2 }
 0xaa7   :  { %17908 = vst [vmem:[#allocation378_spill] sm:$0xff] %v13097_v24 }
 0xaa9   :  { %v13099_v34 = vpop.f32.mrf.mxu1 }
 0xaaa   :  { %17909 = vst [vmem:[#allocation383_spill] sm:$0xff] %v13099_v34  ;;  %v17916_v34 = vld [vmem:[#allocation389_spill] sm:$0xff] }
 0xaab   :  { %8628 = vmatmul.msk.f32.gmra.mxu2 %vm2727_vm4, %v17877_v36  ;;  %8896 = vmatmul.msk.f32.gmra.mxu3 %vm2727_vm4, %v17910_v53  ;;  %v17917_v36 = vld [vmem:[#allocation250_spill] sm:$0xff]  ;;  %v13125_v35 = vpop.f32.mrf.mxu3 }
 0xaac   :  { %8770 = vmatmul.msk.f32.gmra.mxu1 %vm2727_vm4, %v17911_v32  ;;  %v13121_v53 = vadd.f32 %v12599_v23, %v17917_v36  ;;  %17919 = vst [vmem:[#allocation389_spill] sm:$0xff] %v13125_v35 }
 0xaae   :  { %v13109_v9 = vpop.f32.mrf.mxu2 }
 0xaaf   :  { %17913 = vst [vmem:[#allocation386_spill] sm:$0xff] %v13109_v9 }
 0xab1   :  { %v13111_v33 = vpop.f32.mrf.mxu1 }
 0xab2   :  { %17914 = vst [vmem:[#allocation457_spill] sm:$0xff] %v13111_v33  ;;  %v2450_v33 = vmax.f32 %v13121_v53, 0.0 }
 0xab3   :  { %8629 = vmatmul.msk.f32.gmra.mxu2 %vm2727_vm4, %v17880_v26  ;;  %8897 = vmatmul.msk.f32.gmra.mxu3 %vm2727_vm4, %v17915_v18  ;;  %v17921_v26 = vld [vmem:[#allocation211_spill] sm:$0xff]  ;;  %v13138_v50 = vpop.f32.mrf.mxu3 }
 0xab4   :  { %8771 = vmatmul.msk.f32.gmra.mxu1 %vm2727_vm4, %v17916_v34  ;;  %v17922_v18 = vld [vmem:[#allocation391_spill] sm:$0xff]  ;;  %v4015_v24 = vrot.slane %v2450_v33, 7 }
 0xab5   :  { %17924 = vst [vmem:[#allocation391_spill] sm:$0xff] %v13138_v50  ;;  %v17940_v50 = vld [vmem:[#allocation398_spill] sm:$0xff] }
 0xab6   :  { %v13123_v32 = vpop.f32.mrf.mxu2 }
 0xab7   :  { %17918 = vst [vmem:[#allocation384_spill] sm:$0xff] %v13123_v32 }
 0xab9   :  { %v13127_v9 = vpop.f32.mrf.mxu1 }
 0xaba   :  { %17920 = vst [vmem:[#allocation250_spill] sm:$0xff] %v13127_v9  ;;  %v17926_v9 = vrot.slane %v17907_v63, 7 }
 0xabb   :  { %8630 = vmatmul.msk.f32.gmra.mxu2 %vm2727_vm4, %v11906_v17  ;;  %8898 = vmatmul.msk.f32.gmra.mxu3 %vm2727_vm4, %v17921_v26  ;;  %v17927_v17 = vld [vmem:[#allocation394_spill] sm:$0xff] }
 0xabc   :  { %8772 = vmatmul.msk.f32.gmra.mxu1 %vm2727_vm4, %v17922_v18  ;;  %v4016_v53 = vsel %vm2587_vm5, %v17926_v9, %v4015_v24  ;;  %v17932_v9 = vld [vmem:[#allocation397_spill] sm:$0xff] }
 0xabe   :  { %v13136_v36 = vpop.f32.mrf.mxu2 }
 0xabf   :  { %17923 = vst [vmem:[#allocation211_spill] sm:$0xff] %v13136_v36  ;;  %v13153_v36 = vpop.f32.mrf.mxu3 }
 0xac0   :  { %17930 = vst [vmem:[#allocation460_spill] sm:$0xff] %v13153_v36 }
 0xac1   :  { %v13140_v32 = vpop.f32.mrf.mxu1 }
 0xac2   :  { %17925 = vst [vmem:[#allocation458_spill] sm:$0xff] %v13140_v32  ;;  %v17931_v32 = vld [vmem:[#allocation392_spill] sm:$0xff] }
 0xac3   :  { %8631 = vmatmul.msk.f32.gmra.mxu2 %vm2727_vm4, %v2418_v4  ;;  %8899 = vmatmul.msk.f32.gmra.mxu3 %vm2727_vm4, %v4016_v53  ;;  %v17935_v53 = vld [vmem:[#allocation395_spill] sm:$0xff] }
 0xac4   :  { %8773 = vmatmul.msk.f32.gmra.mxu1 %vm2727_vm4, %v17927_v17 }
 0xac6   :  { %v13149_v26 = vpop.f32.mrf.mxu2 }
 0xac7   :  { %17928 = vst [vmem:[#allocation394_spill] sm:$0xff] %v13149_v26 }
 0xac9   :  { %v13151_v35 = vpop.f32.mrf.mxu1 }
 0xaca   :  { %17929 = vst [vmem:[#allocation459_spill] sm:$0xff] %v13151_v35  ;;  %v17936_v35 = vld [vmem:[#allocation400_spill] sm:$0xff] }
 0xacb   :  { %8632 = vmatmul.msk.f32.gmra.mxu2 %vm2727_vm4, %v11955_v43  ;;  %8900 = vmatmul.msk.f32.gmra.mxu3 %vm2727_vm4, %v17931_v32  ;;  %v13171_v43 = vpop.f32.mrf.mxu3 }
 0xacc   :  { %8774 = vmatmul.msk.f32.gmra.mxu1 %vm2727_vm4, %v17932_v9  ;;  %17937 = vst [vmem:[#allocation395_spill] sm:$0xff] %v13171_v43  ;;  %v17945_v43 = vld [vmem:[#allocation401_spill] sm:$0xff] }
 0xace   :  { %v13161_v4 = vpop.f32.mrf.mxu2 }
 0xacf   :  { %17933 = vst [vmem:[#allocation392_spill] sm:$0xff] %v13161_v4 }
 0xad1   :  { %v13163_v24 = vpop.f32.mrf.mxu1 }
 0xad2   :  { %17934 = vst [vmem:[#allocation397_spill] sm:$0xff] %v13163_v24  ;;  %v17941_v24 = vld [vmem:[#allocation403_spill] sm:$0xff] }
 0xad3   :  { %8633 = vmatmul.msk.f32.gmra.mxu2 %vm2727_vm4, %v11973_v59  ;;  %8901 = vmatmul.msk.f32.gmra.mxu3 %vm2727_vm4, %v17935_v53  ;;  %v13185_v53 = vpop.f32.mrf.mxu3 }
 0xad4   :  { %8775 = vmatmul.msk.f32.gmra.mxu1 %vm2727_vm4, %v17936_v35  ;;  %17943 = vst [vmem:[#allocation403_spill] sm:$0xff] %v13185_v53  ;;  %v17949_v53 = vld [vmem:[#allocation404_spill] sm:$0xff] }
 0xad6   :  { %v13173_v36 = vpop.f32.mrf.mxu2 }
 0xad7   :  { %17938 = vst [vmem:[#allocation400_spill] sm:$0xff] %v13173_v36 }
 0xad9   :  { %v13175_v32 = vpop.f32.mrf.mxu1 }
 0xada   :  { %17939 = vst [vmem:[#allocation461_spill] sm:$0xff] %v13175_v32 }
 0xadb   :  { %8634 = vmatmul.msk.f32.gmra.mxu2 %vm2727_vm4, %v11994_v8  ;;  %8902 = vmatmul.msk.f32.gmra.mxu3 %vm2727_vm4, %v17940_v50  ;;  %v13197_v50 = vpop.f32.mrf.mxu3 }
 0xadc   :  { %8776 = vmatmul.msk.f32.gmra.mxu1 %vm2727_vm4, %v17941_v24  ;;  %17947 = vst [vmem:[#allocation463_spill] sm:$0xff] %v13197_v50  ;;  %v17953_v50 = vld [vmem:[#allocation406_spill] sm:$0xff] }
 0xade   :  { %v13183_v59 = vpop.f32.mrf.mxu2 }
 0xadf   :  { %17942 = vst [vmem:[#allocation398_spill] sm:$0xff] %v13183_v59 }
 0xae1   :  { %v13187_v4 = vpop.f32.mrf.mxu1 }
 0xae2   :  { %17944 = vst [vmem:[#allocation462_spill] sm:$0xff] %v13187_v4 }
 0xae3   :  { %8635 = vmatmul.msk.f32.gmra.mxu2 %vm2727_vm4, %v12014_v28  ;;  %8903 = vmatmul.msk.f32.gmra.mxu3 %vm2727_vm4, %v17945_v43  ;;  %v13211_v4 = vpop.f32.mrf.mxu3 }
 0xae4   :  { %8777 = vmatmul.msk.f32.gmra.mxu1 %vm2727_vm4, %v12299_v44  ;;  %17952 = vst [vmem:[#allocation466_spill] sm:$0xff] %v13211_v4 }
 0xae6   :  { %v13195_v8 = vpop.f32.mrf.mxu2 }
 0xae7   :  { %17946 = vst [vmem:[#allocation401_spill] sm:$0xff] %v13195_v8 }
 0xae9   :  { %v13199_v32 = vpop.f32.mrf.mxu1 }
 0xaea   :  { %17948 = vst [vmem:[#allocation464_spill] sm:$0xff] %v13199_v32 }
 0xaeb   :  { %8636 = vmatmul.msk.f32.gmra.mxu2 %vm2727_vm4, %v12034_v13  ;;  %8904 = vmatmul.msk.f32.gmra.mxu3 %vm2727_vm4, %v17949_v53  ;;  %v17954_v13 = vld [vmem:[#allocation41_spill] sm:$0xff] }
 0xaec   :  { %8778 = vmatmul.msk.f32.gmra.mxu1 %vm2727_vm4, %v12323_v15  ;;  %v13221_v53 = vadd.f32 %v12599_v23, %v17954_v13 }
 0xaee   :  { %v13207_v28 = vpop.f32.mrf.mxu2 }
 0xaef   :  { %17950 = vst [vmem:[#allocation404_spill] sm:$0xff] %v13207_v28 }
 0xaf1   :  { %v13209_v43 = vpop.f32.mrf.mxu1 }
 0xaf2   :  { %17951 = vst [vmem:[#allocation465_spill] sm:$0xff] %v13209_v43  ;;  %v16952_v43 = vmax.f32 %v13221_v53, 0.0 }
 0xaf3   :  { %8637 = vmatmul.msk.f32.gmra.mxu2 %vm2727_vm4, %v17902_v27  ;;  %8905 = vmatmul.msk.f32.gmra.mxu3 %vm2727_vm4, %v17953_v50  ;;  %v13234_v27 = vpop.f32.mrf.mxu3 }
 0xaf4   :  { %8779 = vmatmul.msk.f32.gmra.mxu1 %vm2727_vm4, %v12351_v3  ;;  %17957 = vst [vmem:[#allocation467_spill] sm:$0xff] %v13234_v27  ;;  %v4017_v50 = vrot.slane %v16952_v43, 7 }
 0xaf6   :  { %v13223_v15 = vpop.f32.mrf.mxu2 }
 0xaf7   :  { %17955 = vst [vmem:[#allocation406_spill] sm:$0xff] %v13223_v15 }
 0xaf9   :  { %v13225_v32 = vpop.f32.mrf.mxu1 }
 0xafa   :  { %17956 = vst [vmem:[#allocation41_spill] sm:$0xff] %v13225_v32  ;;  %v17959_v32 = vld [vmem:[#allocation306_spill] sm:$0xff] }
 0xafb   :  { %8638 = vmatmul.msk.f32.gmra.mxu2 %vm2727_vm4, %v17907_v63  ;;  %8906 = vmatmul.msk.f32.gmra.mxu3 %vm2727_vm4, %v12330_v51  ;;  %v4873_v15 = vadd.f32 %v12427_v11, %v17959_v32  ;;  %v17960_v63 = vrot.slane %v12299_v44, 7  ;;  %v17964_v32 = vld [vmem:[#allocation308_spill] sm:$0xff] }
 0xafc   :  { %8780 = vmatmul.msk.f32.gmra.mxu1 %vm2727_vm4, %v12370_v56 }
 0xafd   :  { %v4018_v51 = vsel %vm2587_vm5, %v17960_v63, %v4017_v50  ;;  %v17968_v63 = vld [vmem:[#allocation310_spill] sm:$0xff] }
 0xafe   :  { %v13238_v13 = vpop.f32.mrf.mxu2 }
 0xaff   :  { %17958 = vst [vmem:[#allocation468_spill] sm:$0xff] %v13238_v13  ;;  %v13254_v13 = vpop.f32.mrf.mxu3 }
 0xb00   :  { %17963 = vst [vmem:[#allocation470_spill] sm:$0xff] %v13254_v13 }
 0xb01   :  { %v5084_v4 = vpop.f32.mrf.mxu1 }
 0xb02   :  { %v5085_v28 = vadd.f32 %v5084_v4, %v12557_v60  ;;  %v4876_v60 = vadd.f32 %v12451_v57, %v17964_v32  ;;  %v4879_v57 = vadd.f32 %v12475_v20, %v17968_v63 }
 0xb03   :  { %8639 = vmatmul.msk.f32.gmra.mxu2 %vm2727_vm4, %v2450_v33  ;;  %8907 = vmatmul.msk.f32.gmra.mxu3 %vm2727_vm4, %v4018_v51 }
 0xb04   :  { %v13248_v27 = vadd.f32 %v5085_v28, %v4873_v15  ;;  %8781 = vmatmul.msk.f32.gmra.mxu1 %vm2727_vm4, %v12391_v42 }
 0xb06   :  { %17961 = vst [vmem:[#allocation306_spill] sm:$0xff] %v13248_v27  ;;  %v13252_v43 = vpop.f32.mrf.mxu2 }
 0xb07   :  { %17962 = vst [vmem:[#allocation469_spill] sm:$0xff] %v13252_v43  ;;  %v13269_v15 = vpop.f32.mrf.mxu3 }
 0xb08   :  { %17967 = vst [vmem:[#allocation472_spill] sm:$0xff] %v13269_v15 }
 0xb09   :  { %v5087_v11 = vpop.f32.mrf.mxu1 }
 0xb0a   :  { %v5088_v4 = vadd.f32 %v5087_v11, %v12573_v47  ;;  %v17971_v11 = vld [vmem:[#allocation312_spill] sm:$0xff] }
 0xb0b   :  { %8640 = vmatmul.msk.f32.gmra.mxu2 %vm2727_vm4, %v17916_v34  ;;  %8908 = vmatmul.msk.f32.gmra.mxu3 %vm2727_vm4, %v12373_v25  ;;  %v4882_v32 = vadd.f32 %v12498_v58, %v17971_v11 }
 0xb0c   :  { %v13263_v33 = vadd.f32 %v5088_v4, %v4876_v60  ;;  %8782 = vmatmul.msk.f32.gmra.mxu1 %vm2727_vm4, %v12411_v48  ;;  %v17975_v4 = vld [vmem:[#allocation317_spill] sm:$0xff] }
 0xb0d   :  { %v4885_v58 = vadd.f32 %v12517_v40, %v17975_v4 }
 0xb0e   :  { %17965 = vst [vmem:[#allocation308_spill] sm:$0xff] %v13263_v33  ;;  %v13267_v28 = vpop.f32.mrf.mxu2 }
 0xb0f   :  { %17966 = vst [vmem:[#allocation471_spill] sm:$0xff] %v13267_v28 }
 0xb11   :  { %v5090_v50 = vpop.f32.mrf.mxu1 }
 0xb12   :  { %v5091_v47 = vadd.f32 %v5090_v50, %v12589_v14  ;;  %v13287_v14 = vpop.f32.mrf.mxu3 }
 0xb13   :  { %8641 = vmatmul.msk.f32.gmra.mxu2 %vm2727_vm4, %v17922_v18  ;;  %8909 = vmatmul.msk.f32.gmra.mxu3 %vm2727_vm4, %v12394_v54  ;;  %17972 = vst [vmem:[#allocation312_spill] sm:$0xff] %v13287_v14  ;;  %v18146_v14 = vld [vmem:[#allocation147_spill] sm:$0xff] }
 0xb14   :  { %v13278_v25 = vadd.f32 %v5091_v47, %v4879_v57  ;;  %8783 = vmatmul.msk.f32.gmra.mxu1 %vm2727_vm4, %v12434_v41 }
 0xb16   :  { %17969 = vst [vmem:[#allocation310_spill] sm:$0xff] %v13278_v25  ;;  %v13282_v34 = vpop.f32.mrf.mxu2 }
 0xb17   :  { %17970 = vst [vmem:[#allocation473_spill] sm:$0xff] %v13282_v34 }
 0xb19   :  { %v5093_v51 = vpop.f32.mrf.mxu1 }
 0xb1a   :  { %v5094_v20 = vadd.f32 %v5093_v51, %v12611_v30  ;;  %v17984_v51 = vld [vmem:[#allocation111_spill] sm:$0xff] }
 0xb1b   :  { %8642 = vmatmul.msk.f32.gmra.mxu2 %vm2727_vm4, %v17927_v17  ;;  %8910 = vmatmul.msk.f32.gmra.mxu3 %vm2727_vm4, %v12414_v52  ;;  %v13310_v17 = vpop.f32.mrf.mxu3 }
 0xb1c   :  { %v13293_v54 = vadd.f32 %v5094_v20, %v4882_v32  ;;  %8784 = vmatmul.msk.f32.gmra.mxu1 %vm2727_vm4, %v12455_v61  ;;  %17977 = vst [vmem:[#allocation476_spill] sm:$0xff] %v13310_v17  ;;  %v18141_v17 = vld [vmem:[#allocation121_spill] sm:$0xff] }
 0xb1e   :  { %17973 = vst [vmem:[#allocation474_spill] sm:$0xff] %v13293_v54  ;;  %v13297_v18 = vpop.f32.mrf.mxu2 }
 0xb1f   :  { %17974 = vst [vmem:[#allocation475_spill] sm:$0xff] %v13297_v18 }
 0xb21   :  { %v5096_v60 = vpop.f32.mrf.mxu1 }
 0xb22   :  { %v5097_v30 = vadd.f32 %v5096_v60, %v12626_v62 }
 0xb23   :  { %8643 = vmatmul.msk.f32.gmra.mxu2 %vm2727_vm4, %v17932_v9  ;;  %8911 = vmatmul.msk.f32.gmra.mxu3 %vm2727_vm4, %v12437_v22  ;;  %v13322_v22 = vpop.f32.mrf.mxu3  ;;  %v17982_v9 = vld [vmem:[#allocation54_spill] sm:$0xff] }
 0xb24   :  { %v13306_v52 = vadd.f32 %v5097_v30, %v4885_v58  ;;  %8785 = vmatmul.msk.f32.gmra.mxu1 %vm2727_vm4, %v12479_v19  ;;  %17981 = vst [vmem:[#allocation480_spill] sm:$0xff] %v13322_v22  ;;  %v4891_v57 = vadd.f32 %v12545_v37, %v17982_v9  ;;  %v17987_v37 = vld [vmem:[#allocation10_spill] sm:$0xff]  ;;  %v17990_v30 = vld [vmem:[#allocation49_spill] sm:$0xff]  ;;  %v18139_v22 = vld [vmem:[#allocation120_spill] sm:$0xff] }
 0xb26   :  { %17976 = vst [vmem:[#allocation317_spill] sm:$0xff] %v13306_v52  ;;  %v13312_v50 = vpop.f32.mrf.mxu2  ;;  %v18060_v52 = vld [vmem:[#allocation58_spill] sm:$0xff] }
 0xb27   :  { %17978 = vst [vmem:[#allocation477_spill] sm:$0xff] %v13312_v50  ;;  %v18143_v50 = vld [vmem:[#allocation175_spill] sm:$0xff] }
 0xb29   :  { %v13314_v63 = vpop.f32.mrf.mxu1 }
 0xb2a   :  { %17979 = vst [vmem:[#allocation478_spill] sm:$0xff] %v13314_v63 }
 0xb2b   :  { %8644 = vmatmul.msk.f32.gmra.mxu2 %vm2727_vm4, %v17936_v35  ;;  %8912 = vmatmul.msk.f32.gmra.mxu3 %vm2727_vm4, %v12458_v12  ;;  %v2258_v12 = vadd.f32 %v12599_v23, %v17984_v51  ;;  %v13337_v32 = vpop.f32.mrf.mxu3 }
 0xb2c   :  { %17986 = vst [vmem:[#allocation481_spill] sm:$0xff] %v13337_v32 }
 0xb2d   :  { %v2514_v60 = vmax.f32 %v2258_v12, 0.0  ;;  %v17997_v12 = vld [vmem:[#allocation424_spill] sm:$0xff] }
 0xb2e   :  { %v13320_v40 = vpop.f32.mrf.mxu2 }
 0xb2f   :  { %17980 = vst [vmem:[#allocation479_spill] sm:$0xff] %v13320_v40  ;;  %v4019_v23 = vrot.slane %v2514_v60, 7 }
 0xb31   :  { %v5102_v62 = vpop.f32.mrf.mxu1 }
 0xb32   :  { %v5103_v47 = vadd.f32 %v5102_v62, %v12657_v1  ;;  %v4894_v1 = vadd.f32 %v12559_v39, %v17987_v37  ;;  %v4897_v62 = vadd.f32 %v12575_v21, %v17990_v30  ;;  %v17991_v39 = vrot.slane %v12479_v19, 7  ;;  %v17996_v21 = vld [vmem:[#allocation57_spill] sm:$0xff] }
 0xb33   :  { %8645 = vmatmul.msk.f32.gmra.mxu2 %vm2727_vm4, %v17941_v24  ;;  %8913 = vmatmul.msk.f32.gmra.mxu3 %vm2727_vm4, %v12483_v46 }
 0xb34   :  { %v13331_v35 = vadd.f32 %v5103_v47, %v4891_v57  ;;  %v13356_v57 = vpop.f32.mrf.mxu3 }
 0xb35   :  { %17992 = vst [vmem:[#allocation49_spill] sm:$0xff] %v13356_v57  ;;  %v18133_v57 = vld [vmem:[#allocation352_spill] sm:$0xff] }
 0xb36   :  { %17983 = vst [vmem:[#allocation54_spill] sm:$0xff] %v13331_v35  ;;  %v13335_v11 = vpop.f32.mrf.mxu2 }
 0xb37   :  { %17985 = vst [vmem:[#allocation111_spill] sm:$0xff] %v13335_v11  ;;  %v18137_v11 = vld [vmem:[#allocation118_spill] sm:$0xff] }
 0xb39   :  { %v5105_v20 = vpop.f32.mrf.mxu1 }
 0xb3a   :  { %v5106_v4 = vadd.f32 %v5105_v20, %v12669_v31  ;;  %v4020_v31 = vsel %vm2587_vm5, %v17991_v39, %v4019_v23  ;;  %v17998_v20 = vld [vmem:[#allocation324_spill] sm:$0xff]  ;;  %v18001_v23 = vld [vmem:[#allocation14_spill] sm:$0xff] }
 0xb3b   :  { %8646 = vmatmul.msk.f32.gmra.mxu2 %vm2727_vm4, %v12299_v44  ;;  %8914 = vmatmul.msk.f32.gmra.mxu3 %vm2727_vm4, %v12506_v2  ;;  %v17993_v44 = vmax.f32 %v13221_v53, 0.0 }
 0xb3c   :  { %v13346_v46 = vadd.f32 %v5106_v4, %v4894_v1 }
 0xb3e   :  { %17988 = vst [vmem:[#allocation10_spill] sm:$0xff] %v13346_v46  ;;  %v13348_v24 = vpop.f32.mrf.mxu2 }
 0xb3f   :  { %17989 = vst [vmem:[#allocation482_spill] sm:$0xff] %v13348_v24  ;;  %v18134_v24 = vld [vmem:[#allocation159_spill] sm:$0xff] }
 0xb41   :  { %v5108_v58 = vpop.f32.mrf.mxu1 }
 0xb42   :  { %v5109_v9 = vadd.f32 %v5108_v58, %v12681_v0  ;;  %v4900_v0 = vadd.f32 %v17997_v12, %v17996_v21  ;;  %v18002_v58 = vld [vmem:[#allocation24_spill] sm:$0xff] }
 0xb43   :  { %8647 = vmatmul.msk.f32.gmra.mxu2 %vm2727_vm4, %v17993_v44  ;;  %8915 = vmatmul.msk.f32.gmra.mxu3 %vm2727_vm4, %v4020_v31  ;;  %v4903_v30 = vadd.f32 %v18002_v58, %v18001_v23  ;;  %v18008_v12 = vld [vmem:[#allocation328_spill] sm:$0xff]  ;;  %v18011_v23 = vld [vmem:[#allocation17_spill] sm:$0xff] }
 0xb44   :  { %v13362_v2 = vadd.f32 %v5109_v9, %v4897_v62  ;;  %v18003_v62 = vld [vmem:[#allocation326_spill] sm:$0xff] }
 0xb46   :  { %17994 = vst [vmem:[#allocation483_spill] sm:$0xff] %v13362_v2  ;;  %v13364_v47 = vpop.f32.mrf.mxu2 }
 0xb47   :  { %17995 = vst [vmem:[#allocation484_spill] sm:$0xff] %v13364_v47 }
 0xb49   :  { %v5111_v51 = vpop.f32.mrf.mxu1 }
 0xb4a   :  { %v5112_v37 = vadd.f32 %v5111_v51, %v17998_v20  ;;  %v18006_v51 = vld [vmem:[#allocation15_spill] sm:$0xff] }
 0xb4b   :  { %8648 = vmatmul.msk.f32.gmra.mxu2 %vm2727_vm4, %v12351_v3  ;;  %v18007_v3 = vld [vmem:[#allocation319_spill] sm:$0xff] }
 0xb4c   :  { %v13371_v1 = vadd.f32 %v5112_v37, %v4900_v0  ;;  %v4906_v21 = vadd.f32 %v18007_v3, %v18006_v51 }
 0xb4e   :  { %17999 = vst [vmem:[#allocation57_spill] sm:$0xff] %v13371_v1  ;;  %v13373_v53 = vpop.f32.mrf.mxu2 }
 0xb4f   :  { %18000 = vst [vmem:[#allocation424_spill] sm:$0xff] %v13373_v53 }
 0xb51   :  { %v5114_v4 = vpop.f32.mrf.mxu1 }
 0xb52   :  { %v5115_v9 = vadd.f32 %v5114_v4, %v18003_v62 }
 0xb53   :  { %8649 = vmatmul.msk.f32.gmra.mxu2 %vm2727_vm4, %v12370_v56  ;;  %v18012_v56 = vld [vmem:[#allocation56_spill] sm:$0xff] }
 0xb54   :  { %v13380_v39 = vadd.f32 %v5115_v9, %v4903_v30  ;;  %v4909_v58 = vadd.f32 %v18012_v56, %v18011_v23  ;;  %v18013_v30 = vld [vmem:[#allocation33_spill] sm:$0xff] }
 0xb56   :  { %18004 = vst [vmem:[#allocation324_spill] sm:$0xff] %v13380_v39  ;;  %v13382_v31 = vpop.f32.mrf.mxu2 }
 0xb57   :  { %18005 = vst [vmem:[#allocation14_spill] sm:$0xff] %v13382_v31 }
 0xb59   :  { %v5117_v44 = vpop.f32.mrf.mxu1 }
 0xb5a   :  { %v5118_v0 = vadd.f32 %v5117_v44, %v18008_v12 }
 0xb5b   :  { %8650 = vmatmul.msk.f32.gmra.mxu2 %vm2727_vm4, %v12391_v42 }
 0xb5c   :  { %v13389_v20 = vadd.f32 %v5118_v0, %v4906_v21  ;;  %v13427_v0 = vld [vmem:[%s16710_s2 + $0x8] sm:$0xff] }
 0xb5e   :  { %18009 = vst [vmem:[#allocation24_spill] sm:$0xff] %v13389_v20  ;;  %v13391_v37 = vpop.f32.mrf.mxu2 }
 0xb5f   :  { %18010 = vst [vmem:[#allocation326_spill] sm:$0xff] %v13391_v37 }
 0xb61   :  { %v5120_v4 = vpop.f32.mrf.mxu1 }
 0xb62   :  { %v5121_v62 = vadd.f32 %v5120_v4, %v18013_v30 }
 0xb63   :  { %8651 = vmatmul.msk.f32.gmra.mxu2 %vm2727_vm4, %v12411_v48  ;;  %v13417_v48 = vld [vmem:[%s16710_s2] sm:$0xff] }
 0xb64   :  { %v13398_v9 = vadd.f32 %v5121_v62, %v4909_v58  ;;  %v18023_v58 = vld [vmem:[#allocation5_spill] sm:$0xff] }
 0xb66   :  { %18014 = vst [vmem:[#allocation15_spill] sm:$0xff] %v13398_v9  ;;  %v13400_v51 = vpop.f32.mrf.mxu2 }
 0xb67   :  { %18015 = vst [vmem:[#allocation319_spill] sm:$0xff] %v13400_v51 }
 0xb6b   :  { %8652 = vmatmul.msk.f32.gmra.mxu2 %vm2727_vm4, %v12434_v41  ;;  %v18019_v41 = vld [vmem:[#allocation3_spill] sm:$0xff] }
 0xb6c   :  { %v2003_v21 = vadd.f32 %v13417_v48, %v18019_v41 }
 0xb6e   :  { %v13404_v42 = vpop.f32.mrf.mxu2 }
 0xb6f   :  { %18016 = vst [vmem:[#allocation328_spill] sm:$0xff] %v13404_v42 }
 0xb73   :  { %8653 = vmatmul.msk.f32.gmra.mxu2 %vm2727_vm4, %v12455_v61  ;;  %v2259_v61 = vmax.f32 %v2003_v21, 0.0  ;;  %v13447_v21 = vld [vmem:[%s16710_s2 + $0x18] sm:$0xff] }
 0xb76   :  { %v13408_v44 = vpop.f32.mrf.mxu2 }
 0xb77   :  { %18017 = vst [vmem:[#allocation17_spill] sm:$0xff] %v13408_v44 }
 0xb7b   :  { %8654 = vmatmul.msk.f32.gmra.mxu2 %vm2727_vm4, %v12479_v19  ;;  %v18021_v19 = vld [vmem:[#allocation4_spill] sm:$0xff] }
 0xb7c   :  { %v2004_v4 = vadd.f32 %v13427_v0, %v18021_v19 }
 0xb7e   :  { %v13412_v3 = vpop.f32.mrf.mxu2  ;;  %v2260_v56 = vmax.f32 %v2004_v4, 0.0 }
 0xb7f   :  { %18018 = vst [vmem:[#allocation56_spill] sm:$0xff] %v13412_v3  ;;  %v18062_v3 = vld [vmem:[#allocation349_spill] sm:$0xff] }
 0xb83   :  { %8655 = vmatmul.msk.f32.gmra.mxu2 %vm2727_vm4, %v2514_v60  ;;  %v13437_v60 = vld [vmem:[%s16710_s2 + $0x10] sm:$0xff] }
 0xb84   :  { %v2005_v30 = vadd.f32 %v13437_v60, %v18023_v58  ;;  %v18027_v58 = vld [vmem:[#allocation7_spill] sm:$0xff] }
 0xb86   :  { %v13422_v12 = vpop.f32.mrf.mxu2  ;;  %v2261_v41 = vmax.f32 %v2005_v30, 0.0 }
 0xb87   :  { %18020 = vst [vmem:[#allocation33_spill] sm:$0xff] %v13422_v12  ;;  %v18059_v12 = vld [vmem:[#allocation92_spill] sm:$0xff] }
 0xb8b   :  { %8787 = vmatmul.msk.f32.vlgmr.msra.gmra.mxu2 %vm2727_vm4, %v2259_v61  ;;  %v18025_v61 = vld [vmem:[#allocation6_spill] sm:$0xff] }
 0xb8c   :  { %v2006_v19 = vadd.f32 %v13447_v21, %v18025_v61  ;;  %v18029_v61 = vld [vmem:[#allocation8_spill] sm:$0xff] }
 0xb8e   :  { %v13432_v23 = vpop.f32.mrf.mxu2  ;;  %v2262_v9 = vmax.f32 %v2006_v19, 0.0 }
 0xb8f   :  { %18022 = vst [vmem:[#allocation3_spill] sm:$0xff] %v13432_v23 }
 0xb93   :  { %8788 = vmatmul.msk.f32.gmra.mxu2 %vm2727_vm4, %v2260_v56  ;;  %v13457_v56 = vld [vmem:[%s16710_s2 + $0x20] sm:$0xff] }
 0xb94   :  { %v2007_v30 = vadd.f32 %v13457_v56, %v18027_v58  ;;  %v18031_v58 = vld [vmem:[#allocation9_spill] sm:$0xff] }
 0xb96   :  { %v13442_v62 = vpop.f32.mrf.mxu2  ;;  %v2263_v39 = vmax.f32 %v2007_v30, 0.0 }
 0xb97   :  { %18024 = vst [vmem:[#allocation4_spill] sm:$0xff] %v13442_v62 }
 0xb9b   :  { %8789 = vmatmul.msk.f32.gmra.mxu2 %vm2727_vm4, %v2261_v41  ;;  %v13467_v41 = vld [vmem:[%s16710_s2 + $0x28] sm:$0xff] }
 0xb9c   :  { %v2008_v19 = vadd.f32 %v13467_v41, %v18029_v61  ;;  %v18034_v61 = vld [vmem:[#allocation316_spill] sm:$0xff] }
 0xb9e   :  { %v13452_v4 = vpop.f32.mrf.mxu2  ;;  %v2264_v2 = vmax.f32 %v2008_v19, 0.0  ;;  %v18036_v19 = vld [vmem:[#allocation25_spill] sm:$0xff] }
 0xb9f   :  { %18026 = vst [vmem:[#allocation5_spill] sm:$0xff] %v13452_v4  ;;  %v2035_v46 = vadd.f32 %v13417_v48, %v18036_v19  ;;  %v18042_v19 = vld [vmem:[#allocation28_spill] sm:$0xff] }
 0xba3   :  { %8790 = vmatmul.msk.f32.gmra.mxu2 %vm2727_vm4, %v2262_v9  ;;  %v13477_v9 = vld [vmem:[%s16710_s2 + $0x30] sm:$0xff] }
 0xba4   :  { %v2009_v30 = vadd.f32 %v13477_v9, %v18031_v58  ;;  %v18038_v58 = vld [vmem:[#allocation26_spill] sm:$0xff] }
 0xba6   :  { %v13462_v20 = vpop.f32.mrf.mxu2  ;;  %v2265_v4 = vmax.f32 %v2009_v30, 0.0 }
 0xba7   :  { %18028 = vst [vmem:[#allocation6_spill] sm:$0xff] %v13462_v20 }
 0xbab   :  { %8791 = vmatmul.msk.f32.gmra.mxu2 %vm2727_vm4, %v2263_v39 }
 0xbae   :  { %v13472_v1 = vpop.f32.mrf.mxu2 }
 0xbaf   :  { %18030 = vst [vmem:[#allocation7_spill] sm:$0xff] %v13472_v1  ;;  %v18035_v1 = vmax.f32 %v18034_v61, 0.0 }
 0xbb3   :  { %8792 = vmatmul.msk.f32.gmra.mxu2 %vm2727_vm4, %v2264_v2  ;;  %v2291_v2 = vmax.f32 %v2035_v46, 0.0  ;;  %v2038_v46 = vadd.f32 %v13447_v21, %v18042_v19  ;;  %v18048_v19 = vld [vmem:[#allocation31_spill] sm:$0xff] }
 0xbb6   :  { %v13482_v20 = vpop.f32.mrf.mxu2 }
 0xbb7   :  { %18032 = vst [vmem:[#allocation8_spill] sm:$0xff] %v13482_v20  ;;  %v2036_v20 = vadd.f32 %v13427_v0, %v18038_v58  ;;  %v18044_v58 = vld [vmem:[#allocation29_spill] sm:$0xff] }
 0xbbb   :  { %8793 = vmatmul.msk.f32.gmra.mxu2 %vm2727_vm4, %v2265_v4  ;;  %v2292_v4 = vmax.f32 %v2036_v20, 0.0  ;;  %v2039_v20 = vadd.f32 %v13457_v56, %v18044_v58 }
 0xbbe   :  { %v13485_v39 = vpop.f32.mrf.mxu2 }
 0xbbf   :  { %18033 = vst [vmem:[#allocation9_spill] sm:$0xff] %v13485_v39  ;;  %v18040_v39 = vld [vmem:[#allocation27_spill] sm:$0xff] }
 0xbc0   :  { %v2037_v61 = vadd.f32 %v13437_v60, %v18040_v39  ;;  %v18046_v39 = vld [vmem:[#allocation30_spill] sm:$0xff] }
 0xbc2   :  { %v2293_v35 = vmax.f32 %v2037_v61, 0.0  ;;  %v2040_v61 = vadd.f32 %v13467_v41, %v18046_v39  ;;  %v18053_v39 = vld [vmem:[#allocation62_spill] sm:$0xff] }
 0xbc3   :  { %8794 = vmatmul.msk.f32.gmra.mxu2 %vm2727_vm4, %v18035_v1 }
 0xbc6   :  { %v13492_v62 = vpop.f32.mrf.mxu2 }
 0xbc7   :  { %18037 = vst [vmem:[#allocation316_spill] sm:$0xff] %v13492_v62  ;;  %v2294_v62 = vmax.f32 %v2038_v46, 0.0  ;;  %v2041_v46 = vadd.f32 %v13477_v9, %v18048_v19  ;;  %v18055_v19 = vld [vmem:[#allocation63_spill] sm:$0xff] }
 0xbcb   :  { %8795 = vmatmul.msk.f32.gmra.mxu2 %vm2727_vm4, %v2291_v2 }
 0xbce   :  { %v13497_v30 = vpop.f32.mrf.mxu2 }
 0xbcf   :  { %18039 = vst [vmem:[#allocation25_spill] sm:$0xff] %v13497_v30  ;;  %v2295_v30 = vmax.f32 %v2039_v20, 0.0  ;;  %v18051_v20 = vld [vmem:[#allocation60_spill] sm:$0xff] }
 0xbd3   :  { %8796 = vmatmul.msk.f32.gmra.mxu2 %vm2727_vm4, %v2292_v4 }
 0xbd6   :  { %v13502_v1 = vpop.f32.mrf.mxu2 }
 0xbd7   :  { %18041 = vst [vmem:[#allocation26_spill] sm:$0xff] %v13502_v1  ;;  %v2296_v1 = vmax.f32 %v2040_v61, 0.0 }
 0xbdb   :  { %8797 = vmatmul.msk.f32.gmra.mxu2 %vm2727_vm4, %v2293_v35 }
 0xbde   :  { %v13507_v2 = vpop.f32.mrf.mxu2 }
 0xbdf   :  { %18043 = vst [vmem:[#allocation27_spill] sm:$0xff] %v13507_v2  ;;  %v2297_v2 = vmax.f32 %v2041_v46, 0.0  ;;  %v18056_v46 = vld [vmem:[#allocation136_spill] sm:$0xff] }
 0xbe3   :  { %8798 = vmatmul.msk.f32.gmra.mxu2 %vm2727_vm4, %v2294_v62 }
 0xbe6   :  { %v13512_v4 = vpop.f32.mrf.mxu2 }
 0xbe7   :  { %18045 = vst [vmem:[#allocation28_spill] sm:$0xff] %v13512_v4  ;;  %v18057_v4 = vld [vmem:[#allocation428_spill] sm:$0xff] }
 0xbeb   :  { %8799 = vmatmul.msk.f32.gmra.mxu2 %vm2727_vm4, %v2295_v30  ;;  %v18052_v30 = vmax.f32 %v18051_v20, 0.0 }
 0xbee   :  { %v13517_v35 = vpop.f32.mrf.mxu2 }
 0xbef   :  { %18047 = vst [vmem:[#allocation29_spill] sm:$0xff] %v13517_v35  ;;  %v2067_v35 = vadd.f32 %v13417_v48, %v18053_v39 }
 0xbf3   :  { %8800 = vmatmul.msk.f32.gmra.mxu2 %vm2727_vm4, %v2296_v1  ;;  %v2323_v1 = vmax.f32 %v2067_v35, 0.0 }
 0xbf6   :  { %v13522_v62 = vpop.f32.mrf.mxu2 }
 0xbf7   :  { %18049 = vst [vmem:[#allocation30_spill] sm:$0xff] %v13522_v62  ;;  %v2068_v62 = vadd.f32 %v13427_v0, %v18055_v19 }
 0xbf9   :  { %v2324_v54 = vmax.f32 %v2068_v62, 0.0 }
 0xbfb   :  { %8801 = vmatmul.msk.f32.gmra.mxu2 %vm2727_vm4, %v2297_v2  ;;  %v4956_v2 = vadd.f32 %v18057_v4, %v18056_v46  ;;  %v18064_v4 = vld [vmem:[#allocation74_spill] sm:$0xff]  ;;  %v18065_v46 = vld [vmem:[#allocation429_spill] sm:$0xff] }
 0xbfc   :  { %v4959_v25 = vadd.f32 %v18065_v46, %v18064_v4 }
 0xbfe   :  { %v13525_v58 = vpop.f32.mrf.mxu2 }
 0xbff   :  { %18050 = vst [vmem:[#allocation31_spill] sm:$0xff] %v13525_v58  ;;  %v18058_v58 = vld [vmem:[#allocation123_spill] sm:$0xff] }
 0xc00   :  { %v4744_v20 = vadd.f32 %v18059_v12, %v18058_v58  ;;  %v18066_v12 = vld [vmem:[#allocation127_spill] sm:$0xff]  ;;  %v18067_v58 = vld [vmem:[#allocation93_spill] sm:$0xff] }
 0xc01   :  { %v4747_v33 = vadd.f32 %v18067_v58, %v18066_v12  ;;  %v18074_v12 = vld [vmem:[#allocation131_spill] sm:$0xff] }
 0xc02   :  { %v18075_v58 = vld [vmem:[#allocation99_spill] sm:$0xff] }
 0xc03   :  { %8802 = vmatmul.msk.f32.gmra.mxu2 %vm2727_vm4, %v18052_v30  ;;  %v18061_v30 = vld [vmem:[#allocation336_spill] sm:$0xff]  ;;  %v4750_v51 = vadd.f32 %v18075_v58, %v18074_v12  ;;  %v18082_v12 = vld [vmem:[#allocation133_spill] sm:$0xff] }
 0xc04   :  { %v5580_v63 = vadd.f32 %v18061_v30, %v18060_v52  ;;  %v18068_v52 = vld [vmem:[#allocation59_spill] sm:$0xff]  ;;  %v18083_v58 = vld [vmem:[#allocation100_spill] sm:$0xff] }
 0xc05   :  { %v18069_v30 = vld [vmem:[#allocation339_spill] sm:$0xff]  ;;  %v4753_v27 = vadd.f32 %v18083_v58, %v18082_v12  ;;  %v18091_v58 = vld [vmem:[#allocation130_spill] sm:$0xff] }
 0xc06   :  { %v13532_v61 = vpop.f32.mrf.mxu2  ;;  %v18090_v12 = vld [vmem:[#allocation135_spill] sm:$0xff] }
 0xc07   :  { %18054 = vst [vmem:[#allocation60_spill] sm:$0xff] %v13532_v61  ;;  %v5771_v61 = vadd.f32 %v4956_v2, %v4744_v20  ;;  %v4756_v37 = vadd.f32 %v18091_v58, %v18090_v12  ;;  %v18098_v12 = vld [vmem:[#allocation137_spill] sm:$0xff]  ;;  %v18099_v58 = vld [vmem:[#allocation132_spill] sm:$0xff] }
 0xc08   :  { %v4759_v31 = vadd.f32 %v18099_v58, %v18098_v12  ;;  %v18107_v12 = vld [vmem:[#allocation98_spill] sm:$0xff]  ;;  %v18108_v58 = vld [vmem:[#allocation347_spill] sm:$0xff] }
 0xc09   :  { %v5598_v47 = vadd.f32 %v18108_v58, %v18107_v12  ;;  %v18117_v12 = vld [vmem:[#allocation335_spill] sm:$0xff] }
 0xc0b   :  { %8803 = vmatmul.msk.f32.gmra.mxu2 %vm2727_vm4, %v2323_v1  ;;  %v18063_v1 = vld [vmem:[#allocation64_spill] sm:$0xff] }
 0xc0c   :  { %v2069_v19 = vadd.f32 %v13437_v60, %v18063_v1  ;;  %v18073_v1 = vld [vmem:[#allocation61_spill] sm:$0xff] }
 0xc0e   :  { %v5351_v23 = vpop.f32.mrf.mxu2 }
 0xc0f   :  { %v5352_v39 = vadd.f32 %v5351_v23, %v18062_v3  ;;  %v5583_v3 = vadd.f32 %v18069_v30, %v18068_v52  ;;  %v18070_v23 = vld [vmem:[#allocation113_spill] sm:$0xff]  ;;  %v18076_v52 = vld [vmem:[#allocation32_spill] sm:$0xff] }
 0xc10   :  { %v18077_v30 = vld [vmem:[#allocation341_spill] sm:$0xff] }
 0xc11   :  { %v5835_v35 = vadd.f32 %v5580_v63, %v5352_v39  ;;  %v2325_v63 = vmax.f32 %v2069_v19, 0.0  ;;  %v18078_v19 = vld [vmem:[#allocation114_spill] sm:$0xff] }
 0xc13   :  { %v13544_v44 = vadd.f32 %v5835_v35, %v5771_v61  ;;  %8804 = vmatmul.msk.f32.gmra.mxu2 %vm2727_vm4, %v2324_v54  ;;  %v5772_v61 = vadd.f32 %v4959_v25, %v4747_v33  ;;  %v18071_v54 = vld [vmem:[#allocation65_spill] sm:$0xff]  ;;  %v18072_v35 = vld [vmem:[#allocation76_spill] sm:$0xff] }
 0xc14   :  { %v2070_v39 = vadd.f32 %v13447_v21, %v18071_v54  ;;  %v4962_v4 = vadd.f32 %v18073_v1, %v18072_v35  ;;  %v18081_v54 = vld [vmem:[#allocation430_spill] sm:$0xff] }
 0xc16   :  { %v5354_v42 = vpop.f32.mrf.mxu2  ;;  %v2326_v25 = vmax.f32 %v2070_v39, 0.0  ;;  %v18086_v39 = vld [vmem:[#allocation117_spill] sm:$0xff] }
 0xc17   :  { %v5355_v62 = vadd.f32 %v5354_v42, %v18070_v23  ;;  %v5586_v42 = vadd.f32 %v18077_v30, %v18076_v52  ;;  %v18084_v52 = vld [vmem:[#allocation95_spill] sm:$0xff] }
 0xc18   :  { %v18085_v30 = vld [vmem:[#allocation343_spill] sm:$0xff] }
 0xc19   :  { %v5836_v2 = vadd.f32 %v5583_v3, %v5355_v62  ;;  %v5773_v3 = vadd.f32 %v4962_v4, %v4750_v51 }
 0xc1b   :  { %v13556_v20 = vadd.f32 %v5836_v2, %v5772_v61  ;;  %8805 = vmatmul.msk.f32.gmra.mxu2 %vm2727_vm4, %v2325_v63  ;;  %v18079_v63 = vld [vmem:[#allocation66_spill] sm:$0xff] }
 0xc1c   :  { %v2071_v61 = vadd.f32 %v13457_v56, %v18079_v63  ;;  %v18080_v2 = vld [vmem:[#allocation78_spill] sm:$0xff]  ;;  %v18089_v63 = vld [vmem:[#allocation432_spill] sm:$0xff] }
 0xc1d   :  { %v4965_v35 = vadd.f32 %v18081_v54, %v18080_v2 }
 0xc1e   :  { %v5357_v46 = vpop.f32.mrf.mxu2  ;;  %v2327_v4 = vmax.f32 %v2071_v61, 0.0  ;;  %v18094_v61 = vld [vmem:[#allocation119_spill] sm:$0xff] }
 0xc1f   :  { %v5358_v33 = vadd.f32 %v5357_v46, %v18078_v19  ;;  %v5589_v46 = vadd.f32 %v18085_v30, %v18084_v52  ;;  %v18092_v52 = vld [vmem:[#allocation94_spill] sm:$0xff]  ;;  %v18093_v30 = vld [vmem:[#allocation345_spill] sm:$0xff] }
 0xc21   :  { %v5837_v23 = vadd.f32 %v5586_v42, %v5358_v33  ;;  %v5774_v42 = vadd.f32 %v4965_v35, %v4753_v27 }
 0xc23   :  { %v13568_v62 = vadd.f32 %v5837_v23, %v5773_v3  ;;  %8806 = vmatmul.msk.f32.gmra.mxu2 %vm2727_vm4, %v2326_v25  ;;  %v18087_v25 = vld [vmem:[#allocation67_spill] sm:$0xff] }
 0xc24   :  { %v2072_v3 = vadd.f32 %v13467_v41, %v18087_v25  ;;  %v18088_v23 = vld [vmem:[#allocation79_spill] sm:$0xff]  ;;  %v18097_v25 = vld [vmem:[#allocation433_spill] sm:$0xff] }
 0xc25   :  { %v4968_v2 = vadd.f32 %v18089_v63, %v18088_v23 }
 0xc26   :  { %v5360_v1 = vpop.f32.mrf.mxu2  ;;  %v2328_v35 = vmax.f32 %v2072_v3, 0.0  ;;  %v18102_v3 = vld [vmem:[#allocation122_spill] sm:$0xff] }
 0xc27   :  { %v5361_v51 = vadd.f32 %v5360_v1, %v18086_v39  ;;  %v5592_v1 = vadd.f32 %v18093_v30, %v18092_v52  ;;  %v18100_v52 = vld [vmem:[#allocation97_spill] sm:$0xff]  ;;  %v18101_v30 = vld [vmem:[#allocation346_spill] sm:$0xff] }
 0xc29   :  { %v5838_v19 = vadd.f32 %v5589_v46, %v5361_v51  ;;  %v5775_v46 = vadd.f32 %v4968_v2, %v4756_v37 }
 0xc2b   :  { %v13580_v33 = vadd.f32 %v5838_v19, %v5774_v42  ;;  %8807 = vmatmul.msk.f32.gmra.mxu2 %vm2727_vm4, %v2327_v4  ;;  %v18095_v4 = vld [vmem:[#allocation68_spill] sm:$0xff]  ;;  %v18096_v19 = vld [vmem:[#allocation82_spill] sm:$0xff] }
 0xc2c   :  { %v2073_v42 = vadd.f32 %v13477_v9, %v18095_v4  ;;  %v4971_v23 = vadd.f32 %v18097_v25, %v18096_v19  ;;  %v18105_v19 = vld [vmem:[#allocation140_spill] sm:$0xff]  ;;  %v18106_v25 = vld [vmem:[#allocation134_spill] sm:$0xff] }
 0xc2d   :  { %v4762_v53 = vadd.f32 %v18106_v25, %v18105_v19  ;;  %v18116_v19 = vld [vmem:[#allocation144_spill] sm:$0xff] }
 0xc2e   :  { %v5363_v54 = vpop.f32.mrf.mxu2  ;;  %v2329_v2 = vmax.f32 %v2073_v42, 0.0 }
 0xc2f   :  { %v5364_v27 = vadd.f32 %v5363_v54, %v18094_v61  ;;  %v5595_v54 = vadd.f32 %v18101_v30, %v18100_v52  ;;  %v18109_v52 = vld [vmem:[#allocation125_spill] sm:$0xff] }
 0xc31   :  { %v5839_v39 = vadd.f32 %v5592_v1, %v5364_v27  ;;  %v5776_v1 = vadd.f32 %v4971_v23, %v4759_v31  ;;  %v18110_v23 = vld [vmem:[#allocation102_spill] sm:$0xff] }
 0xc33   :  { %v13592_v51 = vadd.f32 %v5839_v39, %v5775_v46  ;;  %8808 = vmatmul.msk.f32.gmra.mxu2 %vm2727_vm4, %v2328_v35  ;;  %v18103_v35 = vld [vmem:[#allocation84_spill] sm:$0xff]  ;;  %v18104_v46 = vld [vmem:[#allocation434_spill] sm:$0xff] }
 0xc34   :  { %v4974_v39 = vadd.f32 %v18104_v46, %v18103_v35  ;;  %v18115_v46 = vld [vmem:[#allocation142_spill] sm:$0xff] }
 0xc35   :  { %v4765_v25 = vadd.f32 %v18116_v19, %v18115_v46  ;;  %v18124_v19 = vld [vmem:[#allocation109_spill] sm:$0xff] }
 0xc36   :  { %v5366_v63 = vpop.f32.mrf.mxu2 }
 0xc37   :  { %v5367_v37 = vadd.f32 %v5366_v63, %v18102_v3  ;;  %v5777_v63 = vadd.f32 %v4974_v39, %v4762_v53  ;;  %v18112_v3 = vld [vmem:[#allocation104_spill] sm:$0xff] }
 0xc39   :  { %v5840_v61 = vadd.f32 %v5595_v54, %v5367_v37  ;;  %v18111_v54 = vmax.f32 %v18110_v23, 0.0  ;;  %v2099_v37 = vadd.f32 %v13417_v48, %v18112_v3  ;;  %v18121_v23 = vld [vmem:[#allocation106_spill] sm:$0xff]  ;;  %v18122_v3 = vld [vmem:[#allocation107_spill] sm:$0xff] }
 0xc3b   :  { %v13604_v27 = vadd.f32 %v5840_v61, %v5776_v1  ;;  %8809 = vmatmul.msk.f32.gmra.mxu2 %vm2727_vm4, %v2329_v2  ;;  %v18113_v2 = vld [vmem:[#allocation87_spill] sm:$0xff]  ;;  %v2355_v58 = vmax.f32 %v2099_v37, 0.0  ;;  %v13644_v37 = vadd.f32 %v13467_v41, %v18124_v19 }
 0xc3c   :  { %v18114_v1 = vld [vmem:[#allocation435_spill] sm:$0xff] }
 0xc3d   :  { %v4977_v61 = vadd.f32 %v18114_v1, %v18113_v2  ;;  %v13636_v2 = vadd.f32 %v13447_v21, %v18122_v3  ;;  %v18123_v1 = vld [vmem:[#allocation108_spill] sm:$0xff] }
 0xc3e   :  { %v5369_v4 = vpop.f32.mrf.mxu2  ;;  %v13640_v46 = vadd.f32 %v13457_v56, %v18123_v1  ;;  %v18135_v1 = vld [vmem:[#allocation116_spill] sm:$0xff] }
 0xc3f   :  { %v5370_v30 = vadd.f32 %v5369_v4, %v18109_v52  ;;  %v18118_v4 = vld [vmem:[#allocation439_spill] sm:$0xff]  ;;  %v18120_v52 = vld [vmem:[#allocation105_spill] sm:$0xff] }
 0xc40   :  { %v5601_v53 = vadd.f32 %v18118_v4, %v18117_v12  ;;  %v18126_v4 = vld [vmem:[#allocation110_spill] sm:$0xff] }
 0xc41   :  { %v5841_v42 = vadd.f32 %v5598_v47, %v5370_v30  ;;  %v18119_v47 = vld [vmem:[#allocation128_spill] sm:$0xff]  ;;  %v2100_v30 = vadd.f32 %v13427_v0, %v18120_v52 }
 0xc42   :  { %v18129_v52 = vld [vmem:[#allocation436_spill] sm:$0xff] }
 0xc43   :  { %v13614_v31 = vadd.f32 %v5841_v42, %v5777_v63  ;;  %8810 = vmatmul.msk.f32.gmra.mxu2 %vm2727_vm4, %v18111_v54  ;;  %v5778_v63 = vadd.f32 %v4977_v61, %v4765_v25  ;;  %v13632_v54 = vadd.f32 %v13437_v60, %v18121_v23  ;;  %v13651_v25 = vld [vmem:[%s16711_s4] ss:$0 sm:$0xff]  ;;  %v2356_v23 = vmax.f32 %v2100_v30, 0.0 }
 0xc44   :  { %v18145_v30 = vld [vmem:[#allocation179_spill] sm:$0xff] }
 0xc45   :  { %v2357_v3 = vmax.f32 %v13632_v54, 0.0  ;;  %v4774_v54 = vadd.f32 %v18146_v14, %v18145_v30  ;;  %v18156_v14 = vld [vmem:[#allocation188_spill] sm:$0xff]  ;;  %v18157_v30 = vld [vmem:[#allocation182_spill] sm:$0xff] }
 0xc46   :  { %v5372_v35 = vpop.f32.mrf.mxu2 }
 0xc47   :  { %v5373_v39 = vadd.f32 %v5372_v35, %v18119_v47  ;;  %v18125_v35 = vld [vmem:[#allocation348_spill] sm:$0xff] }
 0xc48   :  { %v5963_v61 = vadd.f32 %v13544_v44, %v18125_v35  ;;  %v18127_v47 = vld [vmem:[#allocation152_spill] sm:$0xff] }
 0xc49   :  { %v5842_v42 = vadd.f32 %v5601_v53, %v5373_v39  ;;  %v13658_v53 = vadd.f32 %v13477_v9, %v18126_v4  ;;  %v13662_v41 = vadd.f32 %v13417_v48, %v18127_v47  ;;  %v18128_v39 = vld [vmem:[#allocation184_spill] sm:$0xff]  ;;  %v18132_v4 = vld [vmem:[#allocation338_spill] sm:$0xff] }
 0xc4a   :  { %v4980_v44 = vadd.f32 %v18129_v52, %v18128_v39  ;;  %v5604_v48 = vadd.f32 %v18133_v57, %v18132_v4  ;;  %v6031_v47 = vadd.f32 %v13651_v25, %v5963_v61  ;;  %v18140_v9 = vld [vmem:[#allocation438_spill] sm:$0xff]  ;;  %v18142_v57 = vld [vmem:[#allocation440_spill] sm:$0xff] }
 0xc4b   :  { %v13653_v12 = vadd.f32 %v5842_v42, %v5778_v63  ;;  %8811 = vmatmul.msk.f32.gmra.mxu2 %vm2727_vm4, %v2355_v58  ;;  %v18130_v42 = vld [vmem:[#allocation171_spill] sm:$0xff]  ;;  %v18131_v58 = vld [vmem:[#allocation138_spill] sm:$0xff]  ;;  %v18136_v63 = vld [vmem:[#allocation437_spill] sm:$0xff]  ;;  %v4989_v40 = vadd.f32 %v18140_v9, %v18139_v22  ;;  %v4992_v4 = vadd.f32 %v18142_v57, %v18141_v17 }
 0xc4c   :  { %v4768_v19 = vadd.f32 %v18131_v58, %v18130_v42  ;;  %v4983_v32 = vadd.f32 %v18136_v63, %v18135_v1  ;;  %v18138_v42 = vld [vmem:[#allocation103_spill] sm:$0xff]  ;;  %v18149_v1 = vld [vmem:[#allocation350_spill] sm:$0xff]  ;;  %v6095_v17 = vmax.f32 %v6031_v47, 0.0 }
 0xc4d   :  { %v4986_v58 = vadd.f32 %v18138_v42, %v18137_v11  ;;  %v5964_v63 = vadd.f32 %v13556_v20, %v18149_v1  ;;  %v18150_v11 = vld [vmem:[#allocation181_spill] sm:$0xff]  ;;  %v18151_v42 = vld [vmem:[#allocation148_spill] sm:$0xff]  ;;  %v18152_v22 = vld [vmem:[#allocation183_spill] sm:$0xff] }
 0xc4e   :  { %v5375_v35 = vpop.f32.mrf.mxu2  ;;  %v5779_v52 = vadd.f32 %v4980_v44, %v4768_v19  ;;  %v18147_v44 = vld [vmem:[#allocation124_spill] sm:$0xff]  ;;  %v18148_v19 = vld [vmem:[#allocation441_spill] sm:$0xff]  ;;  %v4777_v15 = vadd.f32 %v18151_v42, %v18150_v11  ;;  %v18153_v9 = vld [vmem:[#allocation178_spill] sm:$0xff] }
 0xc4f   :  { %v5376_v39 = vadd.f32 %v5375_v35, %v18134_v24  ;;  %v18144_v24 = vld [vmem:[#allocation139_spill] sm:$0xff]  ;;  %v4995_v18 = vadd.f32 %v18148_v19, %v18147_v44  ;;  %v4780_v34 = vadd.f32 %v18153_v9, %v18152_v22  ;;  %v18158_v44 = vld [vmem:[#allocation190_spill] sm:$0xff]  ;;  %v18159_v19 = vld [vmem:[#allocation192_spill] sm:$0xff]  ;;  %v5781_v11 = vadd.f32 %v4986_v58, %v4774_v54 }
 0xc50   :  { %v4771_v35 = vadd.f32 %v18144_v24, %v18143_v50  ;;  %v18154_v50 = vld [vmem:[#allocation185_spill] sm:$0xff]  ;;  %v13703_v24 = vadd.f32 %v18157_v30, %v18156_v14  ;;  %v13707_v20 = vadd.f32 %v18159_v19, %v18158_v44  ;;  %v13709_v42 = vadd.f32 %v4989_v40, %v4777_v15  ;;  %v18163_v44 = vld [vmem:[#allocation126_spill] sm:$0xff] }
 0xc51   :  { %v5843_v61 = vadd.f32 %v5604_v48, %v5376_v39  ;;  %v18155_v39 = vld [vmem:[#allocation180_spill] sm:$0xff]  ;;  %v13711_v22 = vadd.f32 %v4992_v4, %v4780_v34  ;;  %v18165_v34 = vld [vmem:[#allocation161_spill] sm:$0xff]  ;;  %v6191_v58 = vrot.slane %v6095_v17, 1  ;;  %v6248_v4 = vrot.slane %v6095_v17, 4 }
 0xc52   :  { %v4783_v57 = vadd.f32 %v18155_v39, %v18154_v50  ;;  %v5780_v1 = vadd.f32 %v4983_v32, %v4771_v35  ;;  %v6032_v50 = vadd.f32 %v13651_v25, %v5964_v63  ;;  %v18162_v39 = vld [vmem:[#allocation353_spill] sm:$0xff]  ;;  %v18164_v32 = vld [vmem:[#allocation442_spill] sm:$0xff]  ;;  %v6286_v63 = vrot.slane %v6095_v17, 6 }
 0xc53   :  { %v5907_v48 = vadd.f32 %v5843_v61, %v5779_v52  ;;  %8812 = vmatmul.msk.f32.gmra.mxu2 %vm2727_vm4, %v2356_v23  ;;  %v18160_v52 = vld [vmem:[#allocation101_spill] sm:$0xff]  ;;  %v18161_v61 = vld [vmem:[#allocation355_spill] sm:$0xff]  ;;  %v5965_v14 = vadd.f32 %v13568_v62, %v18162_v39  ;;  %v13723_v54 = vadd.f32 %v18164_v32, %v18163_v44  ;;  %v6267_v39 = vrot.slane %v6095_v17, 5 }
 0xc54   :  { %v13714_v23 = vadd.f32 %v4995_v18, %v4783_v57  ;;  %v5607_v9 = vadd.f32 %v18161_v61, %v18160_v52  ;;  %v6210_v18 = vrot.slane %v6095_v17, 2  ;;  %v6229_v57 = vrot.slane %v6095_v17, 3  ;;  %v18166_v52 = vld [vmem:[#allocation356_spill] sm:$0xff] }
 0xc55   :  { %v5971_v47 = vadd.f32 %v5907_v48, %v12963_v49  ;;  %v6305_v49 = vrot.slane %v6095_v17, 7  ;;  %v13727_v19 = vmax.f32 %v6032_v50, 0.0  ;;  %v6033_v62 = vadd.f32 %v13651_v25, %v5965_v14 }
 0xc56   :  { %v5378_v30 = vpop.f32.mrf.mxu2  ;;  %v5966_v61 = vadd.f32 %v13580_v33, %v18166_v52 }
 0xc57   :  { %v6039_v15 = vadd.f32 %v13651_v25, %v5971_v47  ;;  %v5379_v40 = vadd.f32 %v5378_v30, %v18165_v34 }
 0xc59   :  { %v6103_v35 = vmax.f32 %v6039_v15, 0.0  ;;  %v5844_v48 = vadd.f32 %v5607_v9, %v5379_v40 }
 0xc5b   :  { %v5908_v47 = vadd.f32 %v5844_v48, %v5780_v1  ;;  %8813 = vmatmul.msk.f32.gmra.mxu2 %vm2727_vm4, %v2357_v3  ;;  %v6306_v30 = vrot.slane %v6103_v35, 6  ;;  %v6211_v44 = vrot.slane %v6103_v35, 1  ;;  %v13734_v32 = vsel %vm6168_vm6, %v6103_v35, %v6191_v58 }
 0xc5c   :  { %v6249_v15 = vrot.slane %v6103_v35, 3  ;;  %v6287_v9 = vrot.slane %v6103_v35, 5  ;;  %v6230_v34 = vrot.slane %v6103_v35, 2  ;;  %v6268_v40 = vrot.slane %v6103_v35, 4 }
 0xc5d   :  { %v5972_v50 = vadd.f32 %v5908_v47, %v12975_v16  ;;  %v13738_v14 = vsel %vm6168_vm6, %v6306_v30, %v6305_v49  ;;  %v13741_v33 = vsel %vm6168_vm6, %v6211_v44, %v6210_v18  ;;  %v6167_v1 = vrot.slane %v6103_v35, 7  ;;  %v18167_v16 = vld [vmem:[#allocation70_spill] sm:$0xff]  ;;  %v18168_v49 = vld [vmem:[#allocation357_spill] sm:$0xff] }
 0xc5e   :  { %v5381_v48 = vpop.f32.mrf.mxu2  ;;  %v13744_v3 = vsel %vm6168_vm6, %v6249_v15, %v6248_v4  ;;  %v13747_v58 = vsel %vm6168_vm6, %v6287_v9, %v6286_v63  ;;  %v13750_v52 = vsel %vm6168_vm6, %v6230_v34, %v6229_v57  ;;  %v13753_v13 = vsel %vm6168_vm6, %v6268_v40, %v6267_v39  ;;  %v18169_v30 = vld [vmem:[#allocation162_spill] sm:$0xff] }
 0xc5f   :  { %v5610_v47 = vadd.f32 %v18168_v49, %v18167_v16  ;;  %v6040_v18 = vadd.f32 %v13651_v25, %v5972_v50  ;;  %v5382_v35 = vadd.f32 %v5381_v48, %v18169_v30  ;;  %v13760_v44 = vsel %vm6168_vm6, %v6167_v1, %v6095_v17  ;;  %v18170_v16 = vld [vmem:[#allocation358_spill] sm:$0xff] }
 0xc60   :  { %v6384_v4 = vrot.slane %v13727_v19, 3  ;;  %v6456_v63 = vrot.slane %v13727_v19, 7  ;;  %v6402_v57 = vrot.slane %v13727_v19, 4  ;;  %v6348_v15 = vrot.slane %v13727_v19, 1 }
 0xc61   :  { %v6104_v39 = vmax.f32 %v6040_v18, 0.0  ;;  %v5845_v9 = vadd.f32 %v5610_v47, %v5382_v35  ;;  %v6420_v34 = vrot.slane %v13727_v19, 5  ;;  %v6438_v40 = vrot.slane %v13727_v19, 6 }
 0xc62   :  { %v6097_v50 = vmax.f32 %v6033_v62, 0.0  ;;  %v6034_v48 = vadd.f32 %v13651_v25, %v5966_v61  ;;  %v5967_v17 = vadd.f32 %v13592_v51, %v18170_v16  ;;  %v6366_v1 = vrot.slane %v13727_v19, 2 }
 0xc63   :  { %v5909_v49 = vadd.f32 %v5845_v9, %v5781_v11  ;;  %v18171_v30 = vmax.f32 %v13636_v2, 0.0  ;;  %v6385_v28 = vrot.slane %v6104_v39, 2  ;;  %v6457_v18 = vrot.slane %v6104_v39, 6 }
 0xc64   :  { %v6403_v47 = vrot.slane %v6104_v39, 3  ;;  %v13776_v35 = vsel %vm6168_vm6, %v6104_v39, %v6348_v15  ;;  %v6421_v43 = vrot.slane %v6104_v39, 4  ;;  %v6439_v62 = vrot.slane %v6104_v39, 5 }
 0xc65   :  { %8814 = vmatmul.msk.f32.gmra.mxu2 %vm2727_vm4, %v18171_v30  ;;  %v6367_v8 = vrot.slane %v6104_v39, 1  ;;  %v5973_v61 = vadd.f32 %v5909_v49, %v12987_v5  ;;  %v13780_v51 = vsel %vm6168_vm6, %v6385_v28, %v6384_v4  ;;  %v13783_v11 = vsel %vm6168_vm6, %v6457_v18, %v6456_v63  ;;  %v18172_v49 = vld [vmem:[#allocation143_spill] sm:$0xff]  ;;  %v18173_v28 = vld [vmem:[#allocation444_spill] sm:$0xff]  ;;  %v18174_v18 = vld [vmem:[#allocation165_spill] sm:$0xff] }
 0xc66   :  { %v13786_v2 = vsel %vm6168_vm6, %v6403_v47, %v6402_v57  ;;  %v5384_v9 = vpop.f32.mrf.mxu2  ;;  %v13789_v16 = vsel %vm6168_vm6, %v6421_v43, %v6420_v34  ;;  %v13792_v15 = vsel %vm6168_vm6, %v6439_v62, %v6438_v40  ;;  %v6332_v5 = vrot.slane %v6104_v39, 7 }
 0xc67   :  { %v13795_v30 = vsel %vm6168_vm6, %v6367_v8, %v6366_v1  ;;  %v5613_v4 = vadd.f32 %v18173_v28, %v18172_v49  ;;  %v6041_v63 = vadd.f32 %v13651_v25, %v5973_v61  ;;  %v5385_v59 = vadd.f32 %v5384_v9, %v18174_v18  ;;  %v18176_v49 = vld [vmem:[#allocation362_spill] sm:$0xff] }
 0xc68   :  { %v6498_v57 = vrot.slane %v6097_v50, 1  ;;  %v6606_v47 = vrot.slane %v6097_v50, 7  ;;  %v6516_v36 = vrot.slane %v6097_v50, 2  ;;  %v6552_v26 = vrot.slane %v6097_v50, 4 }
 0xc69   :  { %v13803_v43 = vsel %vm6168_vm6, %v6332_v5, %v13727_v19  ;;  %v6105_v34 = vmax.f32 %v6041_v63, 0.0  ;;  %v5846_v40 = vadd.f32 %v5613_v4, %v5385_v59  ;;  %v6534_v8 = vrot.slane %v6097_v50, 3 }
 0xc6a   :  { %18175 = vst [vmem:[#allocation62_spill] sm:$0xff] %v13803_v43  ;;  %v6570_v1 = vrot.slane %v6097_v50, 5  ;;  %v6098_v39 = vmax.f32 %v6034_v48, 0.0  ;;  %v6035_v62 = vadd.f32 %v13651_v25, %v5967_v17  ;;  %v5968_v61 = vadd.f32 %v13604_v27, %v18176_v49 }
 0xc6b   :  { %v6588_v28 = vrot.slane %v6097_v50, 6  ;;  %v5910_v9 = vadd.f32 %v5846_v40, %v13709_v42  ;;  %v18177_v18 = vmax.f32 %v13640_v46, 0.0  ;;  %v13813_v19 = vsel %vm6168_vm6, %v6105_v34, %v6498_v57 }
 0xc6c   :  { %18178 = vst [vmem:[#allocation63_spill] sm:$0xff] %v13813_v19  ;;  %v6607_v5 = vrot.slane %v6105_v34, 6  ;;  %v6517_v59 = vrot.slane %v6105_v34, 1  ;;  %v6553_v4 = vrot.slane %v6105_v34, 3  ;;  %v6535_v63 = vrot.slane %v6105_v34, 2 }
 0xc6d   :  { %8815 = vmatmul.msk.f32.gmra.mxu2 %vm2727_vm4, %v18177_v18  ;;  %v6571_v48 = vrot.slane %v6105_v34, 4  ;;  %v6589_v43 = vrot.slane %v6105_v34, 5  ;;  %v5974_v17 = vadd.f32 %v5910_v9, %v12997_v6  ;;  %v6482_v46 = vrot.slane %v6105_v34, 7  ;;  %v18182_v6 = vld [vmem:[#allocation141_spill] sm:$0xff] }
 0xc6e   :  { %v13817_v27 = vsel %vm6168_vm6, %v6607_v5, %v6606_v47  ;;  %v13820_v42 = vsel %vm6168_vm6, %v6517_v59, %v6516_v36  ;;  %v5387_v40 = vpop.f32.mrf.mxu2  ;;  %v13823_v49 = vsel %vm6168_vm6, %v6553_v4, %v6552_v26  ;;  %v13826_v57 = vsel %vm6168_vm6, %v6535_v63, %v6534_v8  ;;  %v18183_v47 = vld [vmem:[#allocation360_spill] sm:$0xff]  ;;  %v18184_v5 = vld [vmem:[#allocation167_spill] sm:$0xff]  ;;  %v18186_v26 = vld [vmem:[#allocation145_spill] sm:$0xff] }
 0xc6f   :  { %18179 = vst [vmem:[#allocation136_spill] sm:$0xff] %v13826_v57  ;;  %v13829_v18 = vsel %vm6168_vm6, %v6571_v48, %v6570_v1  ;;  %v13832_v19 = vsel %vm6168_vm6, %v6589_v43, %v6588_v28  ;;  %v5616_v9 = vadd.f32 %v18183_v47, %v18182_v6  ;;  %v6042_v36 = vadd.f32 %v13651_v25, %v5974_v17  ;;  %v18187_v4 = vld [vmem:[#allocation363_spill] sm:$0xff] }
 0xc70   :  { %18180 = vst [vmem:[#allocation428_spill] sm:$0xff] %v13829_v18  ;;  %v5388_v34 = vadd.f32 %v5387_v40, %v18184_v5  ;;  %v13839_v59 = vsel %vm6168_vm6, %v6482_v46, %v6097_v50  ;;  %v5619_v8 = vadd.f32 %v18187_v4, %v18186_v26  ;;  %v6648_v63 = vrot.slane %v6098_v39, 1 }
 0xc71   :  { %18181 = vst [vmem:[#allocation123_spill] sm:$0xff] %v13832_v19  ;;  %v6756_v57 = vrot.slane %v6098_v39, 7  ;;  %v6666_v1 = vrot.slane %v6098_v39, 2  ;;  %v6106_v48 = vmax.f32 %v6042_v36, 0.0  ;;  %v6720_v43 = vrot.slane %v6098_v39, 5 }
 0xc72   :  { %18185 = vst [vmem:[#allocation92_spill] sm:$0xff] %v13839_v59  ;;  %v5847_v18 = vadd.f32 %v5616_v9, %v5388_v34  ;;  %v6684_v28 = vrot.slane %v6098_v39, 3  ;;  %v13843_v19 = vmax.f32 %v6035_v62, 0.0  ;;  %v6036_v6 = vadd.f32 %v13651_v25, %v5968_v61 }
 0xc73   :  { %v6738_v17 = vrot.slane %v6098_v39, 6  ;;  %v6702_v47 = vrot.slane %v6098_v39, 4  ;;  %v18188_v50 = vmax.f32 %v13644_v37, 0.0  ;;  %v13851_v46 = vsel %vm6168_vm6, %v6106_v48, %v6648_v63 }
 0xc74   :  { %v5911_v40 = vadd.f32 %v5847_v18, %v13711_v22  ;;  %18189 = vst [vmem:[#allocation58_spill] sm:$0xff] %v13851_v46  ;;  %v6757_v5 = vrot.slane %v6106_v48, 6  ;;  %v6667_v36 = vrot.slane %v6106_v48, 1  ;;  %v6721_v9 = vrot.slane %v6106_v48, 4 }
 0xc75   :  { %8816 = vmatmul.msk.f32.gmra.mxu2 %vm2727_vm4, %v18188_v50  ;;  %v6685_v34 = vrot.slane %v6106_v48, 2  ;;  %v6739_v26 = vrot.slane %v6106_v48, 5  ;;  %v6703_v62 = vrot.slane %v6106_v48, 3  ;;  %v6632_v37 = vrot.slane %v6106_v48, 7 }
 0xc76   :  { %v5975_v4 = vadd.f32 %v5911_v40, %v13009_v38  ;;  %v13855_v61 = vsel %vm6168_vm6, %v6757_v5, %v6756_v57  ;;  %v13858_v22 = vsel %vm6168_vm6, %v6667_v36, %v6666_v1  ;;  %v5390_v18 = vpop.f32.mrf.mxu2  ;;  %v13861_v50 = vsel %vm6168_vm6, %v6721_v9, %v6720_v43  ;;  %v18191_v38 = vld [vmem:[#allocation115_spill] sm:$0xff]  ;;  %v18192_v40 = vld [vmem:[#allocation170_spill] sm:$0xff] }
 0xc77   :  { %v13864_v63 = vsel %vm6168_vm6, %v6685_v34, %v6684_v28  ;;  %v13867_v46 = vsel %vm6168_vm6, %v6739_v26, %v6738_v17  ;;  %v13870_v59 = vsel %vm6168_vm6, %v6703_v62, %v6702_v47  ;;  %v5969_v57 = vadd.f32 %v13614_v31, %v18191_v38  ;;  %v18194_v28 = vld [vmem:[#allocation129_spill] sm:$0xff]  ;;  %v18195_v36 = vld [vmem:[#allocation443_spill] sm:$0xff] }
 0xc78   :  { %18190 = vst [vmem:[#allocation336_spill] sm:$0xff] %v13870_v59  ;;  %v6043_v1 = vadd.f32 %v13651_v25, %v5975_v4  ;;  %v5391_v48 = vadd.f32 %v5390_v18, %v18192_v40  ;;  %v13877_v5 = vsel %vm6168_vm6, %v6632_v37, %v6098_v39  ;;  %v5785_v43 = vadd.f32 %v13723_v54, %v13703_v24 }
 0xc79   :  { %18193 = vst [vmem:[#allocation349_spill] sm:$0xff] %v13877_v5  ;;  %v13883_v17 = vadd.f32 %v18195_v36, %v18194_v28  ;;  %v6906_v47 = vrot.slane %v13843_v19, 7  ;;  %v6834_v9 = vrot.slane %v13843_v19, 3  ;;  %v6870_v26 = vrot.slane %v13843_v19, 5 }
 0xc7a   :  { %v6107_v34 = vmax.f32 %v6043_v1, 0.0  ;;  %v5848_v31 = vadd.f32 %v5619_v8, %v5391_v48  ;;  %v6816_v62 = vrot.slane %v13843_v19, 2  ;;  %v13889_v4 = vmax.f32 %v6036_v6, 0.0 }
 0xc7b   :  { %v6888_v39 = vrot.slane %v13843_v19, 6  ;;  %v6798_v24 = vrot.slane %v13843_v19, 1  ;;  %v6852_v54 = vrot.slane %v13843_v19, 4  ;;  %v6037_v37 = vadd.f32 %v13651_v25, %v5969_v57 }
 0xc7c   :  { %18196 = vst [vmem:[#allocation64_spill] sm:$0xff] %v13889_v4  ;;  %v5912_v18 = vadd.f32 %v5848_v31, %v13714_v23  ;;  %v18197_v38 = vmax.f32 %v13658_v53, 0.0  ;;  %v6907_v8 = vrot.slane %v6107_v34, 6  ;;  %v6835_v1 = vrot.slane %v6107_v34, 2 }
 0xc7d   :  { %v6871_v40 = vrot.slane %v6107_v34, 4  ;;  %v6817_v48 = vrot.slane %v6107_v34, 1  ;;  %v6889_v6 = vrot.slane %v6107_v34, 5  ;;  %v13900_v28 = vsel %vm6168_vm6, %v6107_v34, %v6798_v24 }
 0xc7e   :  { %8817 = vmatmul.msk.f32.gmra.mxu2 %vm2727_vm4, %v18197_v38  ;;  %18198 = vst [vmem:[#allocation74_spill] sm:$0xff] %v13900_v28  ;;  %v5976_v36 = vadd.f32 %v5912_v18, %v13025_v10  ;;  %v13904_v5 = vsel %vm6168_vm6, %v6907_v8, %v6906_v47  ;;  %v13907_v57 = vsel %vm6168_vm6, %v6835_v1, %v6834_v9  ;;  %v6853_v23 = vrot.slane %v6107_v34, 3  ;;  %v5393_v53 = vpop.f32.mrf.mxu2  ;;  %v18199_v28 = vld [vmem:[#allocation146_spill] sm:$0xff]  ;;  %v18201_v8 = vld [vmem:[#allocation173_spill] sm:$0xff] }
 0xc7f   :  { %v13910_v31 = vsel %vm6168_vm6, %v6871_v40, %v6870_v26  ;;  %v13913_v38 = vsel %vm6168_vm6, %v6817_v48, %v6816_v62  ;;  %v13916_v59 = vsel %vm6168_vm6, %v6889_v6, %v6888_v39  ;;  %v6782_v24 = vrot.slane %v6107_v34, 7  ;;  %v18200_v10 = vld [vmem:[#allocation446_spill] sm:$0xff]  ;;  %v18204_v34 = vld [vmem:[#allocation365_spill] sm:$0xff] }
 0xc80   :  { %v5622_v18 = vadd.f32 %v18200_v10, %v18199_v28  ;;  %v6044_v47 = vadd.f32 %v13651_v25, %v5976_v36  ;;  %v5394_v9 = vadd.f32 %v5393_v53, %v18201_v8  ;;  %v13923_v1 = vsel %vm6168_vm6, %v6853_v23, %v6852_v54 }
 0xc81   :  { %18202 = vst [vmem:[#allocation429_spill] sm:$0xff] %v13923_v1  ;;  %v7002_v26 = vrot.slane %v13889_v4, 4  ;;  %v7056_v40 = vrot.slane %v13889_v4, 7  ;;  %v6948_v62 = vrot.slane %v13889_v4, 1  ;;  %v13930_v39 = vsel %vm6168_vm6, %v6782_v24, %v13843_v19  ;;  %v18206_v1 = vld [vmem:[#allocation150_spill] sm:$0xff] }
 0xc82   :  { %18203 = vst [vmem:[#allocation127_spill] sm:$0xff] %v13930_v39  ;;  %v5970_v48 = vadd.f32 %v13653_v12, %v18204_v34  ;;  %v13934_v6 = vmax.f32 %v6044_v47, 0.0  ;;  %v5849_v28 = vadd.f32 %v5622_v18, %v5394_v9  ;;  %v7020_v36 = vrot.slane %v13889_v4, 5 }
 0xc83   :  { %v13937_v54 = vmax.f32 %v6037_v37, 0.0  ;;  %v6966_v23 = vrot.slane %v13889_v4, 2  ;;  %v7038_v53 = vrot.slane %v13889_v4, 6  ;;  %v6984_v10 = vrot.slane %v13889_v4, 3 }
 0xc84   :  { %v5913_v8 = vadd.f32 %v5849_v28, %v5785_v43  ;;  %v18207_v19 = vmax.f32 %v18206_v1, 0.0  ;;  %v7003_v12 = vrot.slane %v13934_v6, 3  ;;  %v7057_v24 = vrot.slane %v13934_v6, 6 }
 0xc85   :  { %18205 = vst [vmem:[#allocation93_spill] sm:$0xff] %v13937_v54  ;;  %v13949_v18 = vsel %vm6168_vm6, %v13934_v6, %v6948_v62  ;;  %v7021_v37 = vrot.slane %v13934_v6, 4  ;;  %v6967_v47 = vrot.slane %v13934_v6, 1  ;;  %v7039_v9 = vrot.slane %v13934_v6, 5 }
 0xc86   :  { %8818 = vmatmul.msk.f32.gmra.mxu2 %vm2727_vm4, %v18207_v19  ;;  %18208 = vst [vmem:[#allocation59_spill] sm:$0xff] %v13949_v18  ;;  %v6985_v43 = vrot.slane %v13934_v6, 2  ;;  %v6038_v1 = vadd.f32 %v13651_v25, %v5970_v48  ;;  %v5977_v34 = vadd.f32 %v5913_v8, %v13038_v7  ;;  %v13958_v28 = vsel %vm6168_vm6, %v7003_v12, %v7002_v26  ;;  %v5396_v62 = vpop.f32.mrf.mxu2  ;;  %v18214_v7 = vld [vmem:[#allocation153_spill] sm:$0xff]  ;;  %v18215_v8 = vld [vmem:[#allocation351_spill] sm:$0xff]  ;;  %v18216_v12 = vld [vmem:[#allocation368_spill] sm:$0xff] }
 0xc87   :  { %18209 = vst [vmem:[#allocation339_spill] sm:$0xff] %v13958_v28  ;;  %v13961_v19 = vsel %vm6168_vm6, %v7057_v24, %v7056_v40  ;;  %v13964_v4 = vsel %vm6168_vm6, %v7021_v37, %v7020_v36  ;;  %v13967_v18 = vsel %vm6168_vm6, %v6967_v47, %v6966_v23  ;;  %v13970_v39 = vsel %vm6168_vm6, %v7039_v9, %v7038_v53  ;;  %v18218_v37 = vld [vmem:[#allocation163_spill] sm:$0xff] }
 0xc88   :  { %18210 = vst [vmem:[#allocation113_spill] sm:$0xff] %v13961_v19  ;;  %v13973_v48 = vsel %vm6168_vm6, %v6985_v43, %v6984_v10  ;;  %v2132_v26 = vadd.f32 %v13427_v0, %v18214_v7  ;;  %v5625_v40 = vadd.f32 %v18216_v12, %v18215_v8  ;;  %v6045_v24 = vadd.f32 %v13651_v25, %v5977_v34  ;;  %v18217_v19 = vld [vmem:[#allocation176_spill] sm:$0xff]  ;;  %v18219_v47 = vld [vmem:[#allocation359_spill] sm:$0xff] }
 0xc89   :  { %18211 = vst [vmem:[#allocation65_spill] sm:$0xff] %v13964_v4  ;;  %v5397_v36 = vadd.f32 %v5396_v62, %v18217_v19  ;;  %v5786_v23 = vadd.f32 %v13883_v17, %v13707_v20  ;;  %v5004_v53 = vadd.f32 %v18219_v47, %v18218_v37  ;;  %v7134_v9 = vrot.slane %v13937_v54, 3 }
 0xc8a   :  { %18212 = vst [vmem:[#allocation76_spill] sm:$0xff] %v13970_v39  ;;  %v7098_v10 = vrot.slane %v13937_v54, 1  ;;  %v13987_v43 = vmax.f32 %v6045_v24, 0.0  ;;  %v7116_v7 = vrot.slane %v13937_v54, 2  ;;  %v7152_v8 = vrot.slane %v13937_v54, 4 }
 0xc8b   :  { %18213 = vst [vmem:[#allocation61_spill] sm:$0xff] %v13973_v48  ;;  %v5850_v0 = vadd.f32 %v5625_v40, %v5397_v36  ;;  %v13991_v34 = vmax.f32 %v6038_v1, 0.0  ;;  %v7170_v19 = vrot.slane %v13937_v54, 5  ;;  %v7206_v20 = vrot.slane %v13937_v54, 7 }
 0xc8c   :  { %v7188_v17 = vrot.slane %v13937_v54, 6  ;;  %v18221_v12 = vmax.f32 %v13662_v41, 0.0  ;;  %v7135_v24 = vrot.slane %v13987_v43, 2  ;;  %v14002_v40 = vsel %vm6168_vm6, %v13987_v43, %v7098_v10  ;;  %v18224_v41 = vld [vmem:[#allocation186_spill] sm:$0xff] }
 0xc8d   :  { %18220 = vst [vmem:[#allocation131_spill] sm:$0xff] %v13991_v34  ;;  %v5914_v62 = vadd.f32 %v5850_v0, %v5786_v23  ;;  %v7117_v1 = vrot.slane %v13987_v43, 1  ;;  %v7153_v36 = vrot.slane %v13987_v43, 3  ;;  %v7171_v37 = vrot.slane %v13987_v43, 4  ;;  %v18223_v0 = vld [vmem:[#allocation219_spill] sm:$0xff] }
 0xc8e   :  { %8819 = vmatmul.msk.f32.gmra.mxu2 %vm2727_vm4, %v18221_v12  ;;  %18222 = vst [vmem:[#allocation99_spill] sm:$0xff] %v14002_v40  ;;  %v7207_v47 = vrot.slane %v13987_v43, 6  ;;  %v7189_v23 = vrot.slane %v13987_v43, 5  ;;  %v4792_v54 = vadd.f32 %v18224_v41, %v18223_v0  ;;  %v14013_v48 = vsel %vm6168_vm6, %v7135_v24, %v7134_v9  ;;  %v5399_v40 = vpop.f32.mrf.mxu2 }
 0xc8f   :  { %v5978_v12 = vadd.f32 %v5914_v62, %v13051_v45  ;;  %18225 = vst [vmem:[#allocation32_spill] sm:$0xff] %v14013_v48  ;;  %v14016_v10 = vsel %vm6168_vm6, %v7117_v1, %v7116_v7  ;;  %v14019_v39 = vsel %vm6168_vm6, %v7153_v36, %v7152_v8  ;;  %v14022_v4 = vsel %vm6168_vm6, %v7171_v37, %v7170_v19  ;;  %v18228_v45 = vld [vmem:[#allocation354_spill] sm:$0xff]  ;;  %v18229_v62 = vld [vmem:[#allocation371_spill] sm:$0xff] }
 0xc90   :  { %v14025_v28 = vsel %vm6168_vm6, %v7207_v47, %v7206_v20  ;;  %v14028_v0 = vsel %vm6168_vm6, %v7189_v23, %v7188_v17  ;;  %v5628_v9 = vadd.f32 %v18229_v62, %v18228_v45  ;;  %v18230_v7 = vld [vmem:[#allocation207_spill] sm:$0xff]  ;;  %v2388_v41 = vmax.f32 %v2132_v26, 0.0  ;;  %v18231_v48 = vld [vmem:[#allocation154_spill] sm:$0xff] }
 0xc91   :  { %18226 = vst [vmem:[#allocation341_spill] sm:$0xff] %v14025_v28  ;;  %v6046_v24 = vadd.f32 %v13651_v25, %v5978_v12  ;;  %v5400_v1 = vadd.f32 %v5399_v40, %v18230_v7  ;;  %v2133_v8 = vadd.f32 %v13437_v60, %v18231_v48  ;;  %v5787_v36 = vadd.f32 %v5004_v53, %v4792_v54  ;;  %v18233_v7 = vld [vmem:[#allocation237_spill] sm:$0xff] }
 0xc92   :  { %18227 = vst [vmem:[#allocation114_spill] sm:$0xff] %v14028_v0  ;;  %v7248_v19 = vrot.slane %v13991_v34, 1  ;;  %v7266_v17 = vrot.slane %v13991_v34, 2  ;;  %v7284_v47 = vrot.slane %v13991_v34, 3  ;;  %v7356_v23 = vrot.slane %v13991_v34, 7 }
 0xc93   :  { %v14037_v37 = vmax.f32 %v6046_v24, 0.0  ;;  %v5851_v20 = vadd.f32 %v5628_v9, %v5400_v1  ;;  %v7320_v12 = vrot.slane %v13991_v34, 5  ;;  %v7338_v40 = vrot.slane %v13991_v34, 6  ;;  %v18234_v1 = vld [vmem:[#allocation361_spill] sm:$0xff] }
 0xc94   :  { %v7302_v26 = vrot.slane %v13991_v34, 4 }
 0xc95   :  { %v5915_v45 = vadd.f32 %v5851_v20, %v5787_v36  ;;  %v14048_v60 = vsel %vm6168_vm6, %v14037_v37, %v7248_v19  ;;  %v7267_v54 = vrot.slane %v14037_v37, 1  ;;  %v7285_v48 = vrot.slane %v14037_v37, 2 }
 0xc96   :  { %8820 = vmatmul.msk.f32.gmra.mxu2 %vm2727_vm4, %v2388_v41  ;;  %18232 = vst [vmem:[#allocation66_spill] sm:$0xff] %v14048_v60  ;;  %v7357_v53 = vrot.slane %v14037_v37, 6  ;;  %v7321_v62 = vrot.slane %v14037_v37, 4  ;;  %v7339_v9 = vrot.slane %v14037_v37, 5  ;;  %v7303_v24 = vrot.slane %v14037_v37, 3  ;;  %v5402_v60 = vpop.f32.mrf.mxu2 }
 0xc97   :  { %v5007_v36 = vadd.f32 %v18234_v1, %v18233_v7  ;;  %v5979_v41 = vadd.f32 %v5915_v45, %v13061_v29  ;;  %v14060_v19 = vsel %vm6168_vm6, %v7267_v54, %v7266_v17  ;;  %v14063_v20 = vsel %vm6168_vm6, %v7285_v48, %v7284_v47  ;;  %v18240_v29 = vld [vmem:[#allocation223_spill] sm:$0xff]  ;;  %v18242_v54 = vld [vmem:[#allocation149_spill] sm:$0xff] }
 0xc98   :  { %18235 = vst [vmem:[#allocation78_spill] sm:$0xff] %v14063_v20  ;;  %v14066_v34 = vsel %vm6168_vm6, %v7357_v53, %v7356_v23  ;;  %v14069_v0 = vsel %vm6168_vm6, %v7321_v62, %v7320_v12  ;;  %v14072_v28 = vsel %vm6168_vm6, %v7339_v9, %v7338_v40  ;;  %v14075_v7 = vsel %vm6168_vm6, %v7303_v24, %v7302_v26  ;;  %v18241_v45 = vld [vmem:[#allocation187_spill] sm:$0xff]  ;;  %v18243_v1 = vld [vmem:[#allocation373_spill] sm:$0xff] }
 0xc99   :  { %18236 = vst [vmem:[#allocation430_spill] sm:$0xff] %v14066_v34  ;;  %v4795_v17 = vadd.f32 %v18241_v45, %v18240_v29  ;;  %v5631_v47 = vadd.f32 %v18243_v1, %v18242_v54  ;;  %v6047_v48 = vadd.f32 %v13651_v25, %v5979_v41  ;;  %v18244_v20 = vld [vmem:[#allocation209_spill] sm:$0xff]  ;;  %v2389_v53 = vmax.f32 %v2133_v8, 0.0  ;;  %v18245_v40 = vld [vmem:[#allocation155_spill] sm:$0xff] }
 0xc9a   :  { %18237 = vst [vmem:[#allocation133_spill] sm:$0xff] %v14069_v0  ;;  %v5403_v23 = vadd.f32 %v5402_v60, %v18244_v20  ;;  %v2134_v9 = vadd.f32 %v13447_v21, %v18245_v40  ;;  %v18246_v26 = vld [vmem:[#allocation227_spill] sm:$0xff] }
 0xc9b   :  { %18238 = vst [vmem:[#allocation100_spill] sm:$0xff] %v14072_v28  ;;  %v5788_v12 = vadd.f32 %v5007_v36, %v4795_v17  ;;  %v6111_v62 = vmax.f32 %v6047_v48, 0.0  ;;  %v18247_v24 = vld [vmem:[#allocation195_spill] sm:$0xff]  ;;  %v18248_v28 = vld [vmem:[#allocation166_spill] sm:$0xff] }
 0xc9c   :  { %18239 = vst [vmem:[#allocation95_spill] sm:$0xff] %v14075_v7  ;;  %v5852_v0 = vadd.f32 %v5631_v47, %v5403_v23  ;;  %v4798_v7 = vadd.f32 %v18247_v24, %v18246_v26  ;;  %v18249_v29 = vld [vmem:[#allocation151_spill] sm:$0xff]  ;;  %v18253_v24 = vld [vmem:[#allocation156_spill] sm:$0xff] }
 0xc9d   :  { %v5010_v45 = vadd.f32 %v18249_v29, %v18248_v28  ;;  %v6308_v41 = vrot.slane %v6111_v62, 5  ;;  %v14092_v60 = vsel %vm6171_vm7, %v6111_v62, %v13741_v33  ;;  %v6193_v8 = vrot.slane %v6111_v62, 7 }
 0xc9e   :  { %v5916_v34 = vadd.f32 %v5852_v0, %v5788_v12  ;;  %8821 = vmatmul.msk.f32.gmra.mxu2 %vm2727_vm4, %v2389_v53  ;;  %v6251_v36 = vrot.slane %v6111_v62, 2  ;;  %v6289_v20 = vrot.slane %v6111_v62, 4  ;;  %v6232_v17 = vrot.slane %v6111_v62, 1  ;;  %v5405_v47 = vpop.f32.mrf.mxu2  ;;  %v18252_v12 = vld [vmem:[#allocation210_spill] sm:$0xff] }
 0xc9f   :  { %v6270_v54 = vrot.slane %v6111_v62, 3  ;;  %v14097_v1 = vsel %vm6171_vm7, %v6308_v41, %v13738_v14  ;;  %v14101_v28 = vsel %vm6171_vm7, %v6193_v8, %v13734_v32  ;;  %v6170_v0 = vrot.slane %v6111_v62, 6  ;;  %v18250_v32 = vld [vmem:[#allocation112_spill] sm:$0xff]  ;;  %v18255_v41 = vld [vmem:[#allocation445_spill] sm:$0xff] }
 0xca0   :  { %v5980_v21 = vadd.f32 %v5916_v34, %v13073_v55  ;;  %v14105_v33 = vsel %vm6171_vm7, %v6251_v36, %v13744_v3  ;;  %v14109_v48 = vsel %vm6171_vm7, %v6289_v20, %v13747_v58  ;;  %v14113_v55 = vsel %vm6171_vm7, %v6232_v17, %v13750_v52  ;;  %v18251_v34 = vld [vmem:[#allocation374_spill] sm:$0xff] }
 0xca1   :  { %v14117_v14 = vsel %vm6171_vm7, %v6270_v54, %v13753_v13  ;;  %v5634_v23 = vadd.f32 %v18251_v34, %v18250_v32  ;;  %v5406_v3 = vadd.f32 %v5405_v47, %v18252_v12  ;;  %v14125_v62 = vsel %vm6171_vm7, %v6170_v0, %v13760_v44  ;;  %v18254_v13 = vld [vmem:[#allocation168_spill] sm:$0xff] }
 0xca2   :  { %v6048_v53 = vadd.f32 %v13651_v25, %v5980_v21  ;;  %v2390_v58 = vmax.f32 %v2134_v9, 0.0  ;;  %v5789_v40 = vadd.f32 %v5010_v45, %v4798_v7  ;;  %v2135_v29 = vadd.f32 %v13457_v56, %v18253_v24  ;;  %v18256_v9 = vld [vmem:[#allocation380_spill] sm:$0xff]  ;;  %v18261_v24 = vld [vmem:[#allocation213_spill] sm:$0xff] }
 0xca3   :  { %v5853_v52 = vadd.f32 %v5634_v23, %v5406_v3  ;;  %v5013_v8 = vadd.f32 %v18255_v41, %v18254_v13  ;;  %v18258_v12 = vld [vmem:[#allocation196_spill] sm:$0xff]  ;;  %v18262_v13 = vld [vmem:[#allocation62_spill] sm:$0xff] }
 0xca4   :  { %v6112_v26 = vmax.f32 %v6048_v53, 0.0 }
 0xca5   :  { %v5917_v36 = vadd.f32 %v5853_v52, %v5789_v40 }
 0xca6   :  { %8822 = vmatmul.msk.f32.gmra.mxu2 %vm2727_vm4, %v2390_v58  ;;  %v6387_v20 = vrot.slane %v6112_v26, 1  ;;  %v6459_v17 = vrot.slane %v6112_v26, 5  ;;  %v6405_v54 = vrot.slane %v6112_v26, 2  ;;  %v6350_v21 = vrot.slane %v6112_v26, 7  ;;  %v5408_v34 = vpop.f32.mrf.mxu2  ;;  %v18259_v58 = vld [vmem:[#allocation191_spill] sm:$0xff] }
 0xca7   :  { %v6423_v47 = vrot.slane %v6112_v26, 3  ;;  %v6441_v44 = vrot.slane %v6112_v26, 4  ;;  %v14134_v7 = vsel %vm6171_vm7, %v6112_v26, %v13795_v30  ;;  %v5981_v45 = vadd.f32 %v5917_v36, %v18256_v9  ;;  %v18266_v9 = vld [vmem:[#allocation169_spill] sm:$0xff] }
 0xca8   :  { %v14139_v56 = vsel %vm6171_vm7, %v6387_v20, %v13780_v51  ;;  %v14143_v0 = vsel %vm6171_vm7, %v6459_v17, %v13783_v11  ;;  %v14147_v32 = vsel %vm6171_vm7, %v6405_v54, %v13786_v2  ;;  %v14151_v23 = vsel %vm6171_vm7, %v6350_v21, %v13776_v35  ;;  %v18257_v11 = vld [vmem:[#allocation229_spill] sm:$0xff]  ;;  %v18260_v2 = vld [vmem:[#allocation199_spill] sm:$0xff] }
 0xca9   :  { %v14155_v30 = vsel %vm6171_vm7, %v6423_v47, %v13789_v16  ;;  %v14159_v51 = vsel %vm6171_vm7, %v6441_v44, %v13792_v15  ;;  %v6334_v53 = vrot.slane %v6112_v26, 6  ;;  %v4801_v3 = vadd.f32 %v18258_v12, %v18257_v11  ;;  %v14174_v26 = vld [vmem:[%s16710_s2 + $0x28] sm:$0xff]  ;;  %v18263_v17 = vld [vmem:[#allocation157_spill] sm:$0xff]  ;;  %v18264_v21 = vld [vmem:[#allocation231_spill] sm:$0xff] }
 0xcaa   :  { %v5637_v40 = vadd.f32 %v18260_v2, %v18259_v58  ;;  %v6049_v52 = vadd.f32 %v13651_v25, %v5981_v45  ;;  %v5409_v35 = vadd.f32 %v5408_v34, %v18261_v24  ;;  %v2391_v16 = vmax.f32 %v2135_v29, 0.0  ;;  %v18265_v47 = vld [vmem:[#allocation226_spill] sm:$0xff]  ;;  %v18267_v45 = vld [vmem:[#allocation447_spill] sm:$0xff] }
 0xcab   :  { %v14169_v41 = vsel %vm6171_vm7, %v6334_v53, %v18262_v13  ;;  %v5790_v36 = vadd.f32 %v5013_v8, %v4801_v3  ;;  %v2136_v54 = vadd.f32 %v14174_v26, %v18263_v17  ;;  %v4804_v44 = vadd.f32 %v18265_v47, %v18264_v21  ;;  %v18269_v24 = vld [vmem:[#allocation63_spill] sm:$0xff]  ;;  %v18271_v21 = vld [vmem:[#allocation428_spill] sm:$0xff] }
 0xcac   :  { %v6113_v20 = vmax.f32 %v6049_v52, 0.0  ;;  %v5854_v15 = vadd.f32 %v5637_v40, %v5409_v35  ;;  %v5016_v34 = vadd.f32 %v18267_v45, %v18266_v9  ;;  %v18268_v40 = vld [vmem:[#allocation378_spill] sm:$0xff]  ;;  %v18272_v9 = vld [vmem:[#allocation123_spill] sm:$0xff] }
 0xcae   :  { %v5918_v53 = vadd.f32 %v5854_v15, %v5790_v36  ;;  %8823 = vmatmul.msk.f32.gmra.mxu2 %vm2727_vm4, %v2391_v16  ;;  %v6500_v29 = vrot.slane %v6113_v20, 7  ;;  %v6609_v8 = vrot.slane %v6113_v20, 5  ;;  %v14185_v11 = vsel %vm6171_vm7, %v6113_v20, %v13820_v42  ;;  %v5411_v36 = vpop.f32.mrf.mxu2  ;;  %v18270_v15 = vld [vmem:[#allocation136_spill] sm:$0xff] }
 0xcaf   :  { %v6555_v12 = vrot.slane %v6113_v20, 2  ;;  %v6537_v3 = vrot.slane %v6113_v20, 1  ;;  %v6573_v58 = vrot.slane %v6113_v20, 3  ;;  %v6591_v2 = vrot.slane %v6113_v20, 4 }
 0xcb0   :  { %v5982_v52 = vadd.f32 %v5918_v53, %v18268_v40  ;;  %v14190_v35 = vsel %vm6171_vm7, %v6500_v29, %v18269_v24  ;;  %v14194_v13 = vsel %vm6171_vm7, %v6609_v8, %v13817_v27  ;;  %v6484_v16 = vrot.slane %v6113_v20, 6  ;;  %v18274_v27 = vld [vmem:[#allocation189_spill] sm:$0xff]  ;;  %v18275_v53 = vld [vmem:[#allocation450_spill] sm:$0xff]  ;;  %v18276_v8 = vld [vmem:[#allocation215_spill] sm:$0xff] }
 0xcb1   :  { %v14198_v42 = vsel %vm6171_vm7, %v6555_v12, %v13823_v49  ;;  %v14202_v17 = vsel %vm6171_vm7, %v6537_v3, %v18270_v15  ;;  %v14206_v47 = vsel %vm6171_vm7, %v6573_v58, %v18271_v21  ;;  %v14210_v45 = vsel %vm6171_vm7, %v6591_v2, %v18272_v9  ;;  %v18277_v12 = vld [vmem:[#allocation92_spill] sm:$0xff]  ;;  %v7413_v2 = vld [vmem:[%s16712_s5 + $0xf8] sm:$0xff] }
 0xcb2   :  { %18273 = vst [vmem:[#allocation343_spill] sm:$0xff] %v14210_v45  ;;  %v5640_v20 = vadd.f32 %v18275_v53, %v18274_v27  ;;  %v6050_v29 = vadd.f32 %v13651_v25, %v5982_v52  ;;  %v5412_v49 = vadd.f32 %v5411_v36, %v18276_v8  ;;  %v14218_v40 = vsel %vm6171_vm7, %v6484_v16, %v18277_v12  ;;  %v7397_v21 = vld [vmem:[%s16712_s5 + $0x78] sm:$0xff]  ;;  %v14229_v52 = vld [vmem:[%s16710_s2 + $0x30] sm:$0xff]  ;;  %v18283_v9 = vld [vmem:[#allocation172_spill] sm:$0xff] }
 0xcb3   :  { %18278 = vst [vmem:[#allocation117_spill] sm:$0xff] %v14218_v40  ;;  %v2392_v3 = vmax.f32 %v2136_v54, 0.0  ;;  %v5791_v24 = vadd.f32 %v5016_v34, %v4804_v44  ;;  %v18280_v36 = vld [vmem:[#allocation158_spill] sm:$0xff]  ;;  %v18281_v54 = vld [vmem:[#allocation233_spill] sm:$0xff]  ;;  %v18282_v44 = vld [vmem:[#allocation228_spill] sm:$0xff]  ;;  %7534 = vmatpush.msrb.mxu2 %v7413_v2  ;;  %7514 = vmatpush.msra.mxu1 %v7397_v21 }
 0xcb4   :  { %v6114_v15 = vmax.f32 %v6050_v29, 0.0  ;;  %v5855_v58 = vadd.f32 %v5640_v20, %v5412_v49  ;;  %18279 = vst [vmem:[#allocation67_spill] sm:$0xff] %v14229_v52  ;;  %v2137_v16 = vadd.f32 %v14229_v52, %v18280_v36  ;;  %v4807_v34 = vadd.f32 %v18282_v44, %v18281_v54  ;;  %v18284_v27 = vld [vmem:[#allocation364_spill] sm:$0xff]  ;;  %v18286_v45 = vld [vmem:[#allocation386_spill] sm:$0xff] }
 0xcb5   :  { %v5019_v53 = vadd.f32 %v18284_v27, %v18283_v9  ;;  %v18287_v44 = vld [vmem:[#allocation58_spill] sm:$0xff]  ;;  %v18291_v21 = vld [vmem:[#allocation336_spill] sm:$0xff] }
 0xcb6   :  { %v5919_v20 = vadd.f32 %v5855_v58, %v5791_v24  ;;  %8824 = vmatmul.msk.f32.gmra.mxu2 %vm2727_vm4, %v2392_v3  ;;  %v6650_v29 = vrot.slane %v6114_v15, 7  ;;  %v6759_v8 = vrot.slane %v6114_v15, 5  ;;  %v14240_v49 = vsel %vm6171_vm7, %v6114_v15, %v13858_v22  ;;  %v5414_v58 = vpop.f32.mrf.mxu2 }
 0xcb7   :  { %18285 = vst [vmem:[#allocation79_spill] sm:$0xff] %v14240_v49  ;;  %v6723_v12 = vrot.slane %v6114_v15, 3  ;;  %v6687_v40 = vrot.slane %v6114_v15, 1  ;;  %v6741_v36 = vrot.slane %v6114_v15, 4  ;;  %v6705_v52 = vrot.slane %v6114_v15, 2 }
 0xcb8   :  { %v5983_v54 = vadd.f32 %v5919_v20, %v18286_v45  ;;  %v14245_v9 = vsel %vm6171_vm7, %v6650_v29, %v18287_v44  ;;  %v14249_v24 = vsel %vm6171_vm7, %v6759_v8, %v13855_v61  ;;  %v6634_v3 = vrot.slane %v6114_v15, 6  ;;  %v18293_v61 = vld [vmem:[#allocation193_spill] sm:$0xff]  ;;  %v18295_v8 = vld [vmem:[#allocation218_spill] sm:$0xff] }
 0xcb9   :  { %18288 = vst [vmem:[#allocation432_spill] sm:$0xff] %v14249_v24  ;;  %v14253_v22 = vsel %vm6171_vm7, %v6723_v12, %v13861_v50  ;;  %v14257_v2 = vsel %vm6171_vm7, %v6687_v40, %v13864_v63  ;;  %v14261_v45 = vsel %vm6171_vm7, %v6741_v36, %v13867_v46  ;;  %v14265_v27 = vsel %vm6171_vm7, %v6705_v52, %v18291_v21  ;;  %v18294_v20 = vld [vmem:[#allocation241_spill] sm:$0xff]  ;;  %v18297_v36 = vld [vmem:[#allocation236_spill] sm:$0xff]  ;;  %v18299_v52 = vld [vmem:[#allocation174_spill] sm:$0xff] }
 0xcba   :  { %18289 = vst [vmem:[#allocation135_spill] sm:$0xff] %v14253_v22  ;;  %v5643_v15 = vadd.f32 %v18294_v20, %v18293_v61  ;;  %v6051_v29 = vadd.f32 %v13651_v25, %v5983_v54  ;;  %v5415_v50 = vadd.f32 %v5414_v58, %v18295_v8  ;;  %v18296_v12 = vld [vmem:[#allocation349_spill] sm:$0xff]  ;;  %v2393_v63 = vmax.f32 %v2137_v16, 0.0  ;;  %v18300_v21 = vld [vmem:[#allocation366_spill] sm:$0xff] }
 0xcbb   :  { %18290 = vst [vmem:[#allocation130_spill] sm:$0xff] %v14261_v45  ;;  %v14273_v44 = vsel %vm6171_vm7, %v6634_v3, %v18296_v12  ;;  %v5792_v40 = vadd.f32 %v5019_v53, %v4807_v34  ;;  %v18298_v45 = vld [vmem:[#allocation230_spill] sm:$0xff]  ;;  %v18301_v53 = vld [vmem:[#allocation384_spill] sm:$0xff] }
 0xcbc   :  { %18292 = vst [vmem:[#allocation94_spill] sm:$0xff] %v14265_v27  ;;  %v6115_v22 = vmax.f32 %v6051_v29, 0.0  ;;  %v5856_v46 = vadd.f32 %v5643_v15, %v5415_v50  ;;  %v4810_v49 = vadd.f32 %v18298_v45, %v18297_v36  ;;  %v5022_v27 = vadd.f32 %v18300_v21, %v18299_v52  ;;  %v18302_v12 = vld [vmem:[#allocation74_spill] sm:$0xff]  ;;  %v18305_v36 = vld [vmem:[#allocation221_spill] sm:$0xff] }
 0xcbd   :  { %v18306_v21 = vld [vmem:[#allocation429_spill] sm:$0xff] }
 0xcbe   :  { %v5920_v24 = vadd.f32 %v5856_v46, %v5792_v40  ;;  %8825 = vmatmul.msk.f32.gmra.mxu2 %vm2727_vm4, %v2393_v63  ;;  %v6909_v54 = vrot.slane %v6115_v22, 5  ;;  %v6837_v61 = vrot.slane %v6115_v22, 1  ;;  %v6873_v58 = vrot.slane %v6115_v22, 3  ;;  %v5417_v8 = vpop.f32.mrf.mxu2  ;;  %v18303_v63 = vld [vmem:[#allocation194_spill] sm:$0xff]  ;;  %v18304_v40 = vld [vmem:[#allocation453_spill] sm:$0xff] }
 0xcbf   :  { %v14282_v3 = vsel %vm6171_vm7, %v6115_v22, %v13913_v38  ;;  %v6891_v16 = vrot.slane %v6115_v22, 4  ;;  %v6800_v34 = vrot.slane %v6115_v22, 7  ;;  %v6855_v29 = vrot.slane %v6115_v22, 2 }
 0xcc0   :  { %v5984_v20 = vadd.f32 %v5920_v24, %v18301_v53  ;;  %v14287_v45 = vsel %vm6171_vm7, %v6909_v54, %v13904_v5  ;;  %v14291_v15 = vsel %vm6171_vm7, %v6837_v61, %v13907_v57  ;;  %v14295_v50 = vsel %vm6171_vm7, %v6873_v58, %v13910_v31  ;;  %v18307_v54 = vld [vmem:[#allocation127_spill] sm:$0xff] }
 0xcc1   :  { %v14299_v38 = vsel %vm6171_vm7, %v6891_v16, %v13916_v59  ;;  %v14303_v24 = vsel %vm6171_vm7, %v6800_v34, %v18302_v12  ;;  %v6784_v5 = vrot.slane %v6115_v22, 6  ;;  %v5646_v46 = vadd.f32 %v18304_v40, %v18303_v63  ;;  %v14320_v61 = vld [vmem:[%s16710_s2] sm:$0xff]  ;;  %v18310_v22 = vld [vmem:[#allocation200_spill] sm:$0xff]  ;;  %v18314_v63 = vld [vmem:[#allocation369_spill] sm:$0xff] }
 0xcc2   :  { %v6052_v57 = vadd.f32 %v13651_v25, %v5984_v20  ;;  %v5418_v52 = vadd.f32 %v5417_v8, %v18305_v36  ;;  %v14311_v31 = vsel %vm6171_vm7, %v6855_v29, %v18306_v21  ;;  %18309 = vst [vmem:[#allocation119_spill] sm:$0xff] %v14320_v61  ;;  %v2163_v58 = vadd.f32 %v14320_v61, %v18310_v22  ;;  %v7429_v20 = vld [vmem:[%s16712_s5 + $0x178] sm:$0xff]  ;;  %v18312_v8 = vld [vmem:[#allocation232_spill] sm:$0xff] }
 0xcc3   :  { %v14315_v59 = vsel %vm6171_vm7, %v6784_v5, %v18307_v54  ;;  %v5793_v16 = vadd.f32 %v5022_v27, %v4810_v49  ;;  %v18311_v29 = vld [vmem:[#allocation238_spill] sm:$0xff]  ;;  %v18313_v5 = vld [vmem:[#allocation177_spill] sm:$0xff]  ;;  %7554 = vmatpush.msra.mxu3 %v7429_v20  ;;  %v6932_v36 = vrot.slane %v13934_v6, 7  ;;  %v7082_v21 = vrot.slane %v13987_v43, 7  ;;  %v18318_v20 = vld [vmem:[#allocation211_spill] sm:$0xff] }
 0xcc4   :  { %18308 = vst [vmem:[#allocation345_spill] sm:$0xff] %v14315_v59  ;;  %v6116_v34 = vmax.f32 %v6052_v57, 0.0  ;;  %v5857_v53 = vadd.f32 %v5646_v46, %v5418_v52  ;;  %v4813_v12 = vadd.f32 %v18312_v8, %v18311_v29  ;;  %v5025_v40 = vadd.f32 %v18314_v63, %v18313_v5  ;;  %v18315_v22 = vld [vmem:[#allocation198_spill] sm:$0xff]  ;;  %v18319_v6 = vld [vmem:[#allocation339_spill] sm:$0xff]  ;;  %v18325_v59 = vld [vmem:[#allocation65_spill] sm:$0xff] }
 0xcc5   :  { %v18316_v49 = vmax.f32 %v18315_v22, 0.0  ;;  %v18323_v22 = vld [vmem:[#allocation59_spill] sm:$0xff] }
 0xcc6   :  { %v5921_v54 = vadd.f32 %v5857_v53, %v5793_v16  ;;  %v7005_v27 = vrot.slane %v6116_v34, 2  ;;  %v7059_v46 = vrot.slane %v6116_v34, 5  ;;  %v6950_v57 = vrot.slane %v6116_v34, 7  ;;  %v18321_v16 = vld [vmem:[#allocation113_spill] sm:$0xff]  ;;  %v5420_v61 = vpop.f32.mrf.mxu2 }
 0xcc7   :  { %8826 = vmatmul.msk.f32.gmra.mxu2 %vm2727_vm4, %v18316_v49  ;;  %v7023_v52 = vrot.slane %v6116_v34, 3  ;;  %v14338_v29 = vsel %vm6171_vm7, %v6116_v34, %v13967_v18  ;;  %v7041_v8 = vrot.slane %v6116_v34, 4  ;;  %v6987_v5 = vrot.slane %v6116_v34, 1 }
 0xcc8   :  { %18317 = vst [vmem:[#allocation68_spill] sm:$0xff] %v14338_v29  ;;  %v5985_v63 = vadd.f32 %v5921_v54, %v18318_v20  ;;  %v14343_v43 = vsel %vm6171_vm7, %v7005_v27, %v18319_v6  ;;  %v14347_v53 = vsel %vm6171_vm7, %v7059_v46, %v18321_v16  ;;  %v14351_v49 = vsel %vm6171_vm7, %v6950_v57, %v18323_v22  ;;  %v18327_v29 = vld [vmem:[#allocation76_spill] sm:$0xff]  ;;  %v18329_v20 = vld [vmem:[#allocation61_spill] sm:$0xff]  ;;  %v18330_v46 = vld [vmem:[#allocation367_spill] sm:$0xff] }
 0xcc9   :  { %18320 = vst [vmem:[#allocation82_spill] sm:$0xff] %v14343_v43  ;;  %v14355_v18 = vsel %vm6171_vm7, %v7023_v52, %v18325_v59  ;;  %v14359_v54 = vsel %vm6171_vm7, %v7041_v8, %v18327_v29  ;;  %v14363_v27 = vsel %vm6171_vm7, %v6987_v5, %v18329_v20  ;;  %v6934_v6 = vrot.slane %v6116_v34, 6  ;;  %v18331_v16 = vld [vmem:[#allocation456_spill] sm:$0xff]  ;;  %v18335_v34 = vld [vmem:[#allocation201_spill] sm:$0xff] }
 0xcca   :  { %18322 = vst [vmem:[#allocation433_spill] sm:$0xff] %v14347_v53  ;;  %v5649_v53 = vadd.f32 %v18331_v16, %v18330_v46  ;;  %v6053_v57 = vadd.f32 %v13651_v25, %v5985_v63  ;;  %v18332_v22 = vld [vmem:[#allocation224_spill] sm:$0xff]  ;;  %v2419_v52 = vmax.f32 %v2163_v58, 0.0  ;;  %v5794_v5 = vadd.f32 %v5025_v40, %v4813_v12  ;;  %v18338_v16 = vld [vmem:[#allocation18_spill] sm:$0xff] }
 0xccb   :  { %18324 = vst [vmem:[#allocation137_spill] sm:$0xff] %v14351_v49  ;;  %v5421_v49 = vadd.f32 %v5420_v61, %v18332_v22  ;;  %v18333_v43 = vld [vmem:[#allocation64_spill] sm:$0xff] }
 0xccc   :  { %18326 = vst [vmem:[#allocation132_spill] sm:$0xff] %v14355_v18  ;;  %v6933_v59 = vsel %vm6168_vm6, %v6932_v36, %v18333_v43  ;;  %v14377_v29 = vld [vmem:[%s16710_s2 + $0x8] sm:$0xff]  ;;  %v6117_v20 = vmax.f32 %v6053_v57, 0.0  ;;  %v7232_v43 = vrot.slane %v14037_v37, 7 }
 0xccd   :  { %18328 = vst [vmem:[#allocation97_spill] sm:$0xff] %v14359_v54  ;;  %v14372_v18 = vsel %vm6171_vm7, %v6934_v6, %v6933_v59  ;;  %v2164_v8 = vadd.f32 %v14377_v29, %v18335_v34  ;;  %v5858_v25 = vadd.f32 %v5649_v53, %v5421_v49  ;;  %v18336_v63 = vld [vmem:[#allocation256_spill] sm:$0xff]  ;;  %v18340_v6 = vld [vmem:[#allocation93_spill] sm:$0xff]  ;;  %v18341_v34 = vld [vmem:[#allocation394_spill] sm:$0xff] }
 0xcce   :  { %18334 = vst [vmem:[#allocation346_spill] sm:$0xff] %v14372_v18  ;;  %v18337_v61 = vld [vmem:[#allocation164_spill] sm:$0xff]  ;;  %v7083_v22 = vsel %vm6168_vm6, %v7082_v21, %v18340_v6  ;;  %v7137_v18 = vrot.slane %v6117_v20, 1  ;;  %v7100_v54 = vrot.slane %v6117_v20, 7  ;;  %v14391_v12 = vsel %vm6171_vm7, %v6117_v20, %v14016_v10  ;;  %v18343_v21 = vld [vmem:[#allocation99_spill] sm:$0xff] }
 0xccf   :  { %v4816_v46 = vadd.f32 %v18337_v61, %v18336_v63  ;;  %v18339_v36 = vld [vmem:[#allocation372_spill] sm:$0xff]  ;;  %v5922_v59 = vadd.f32 %v5858_v25, %v5794_v5  ;;  %8827 = vmatmul.msk.f32.gmra.mxu2 %vm2727_vm4, %v2419_v52  ;;  %v7155_v40 = vrot.slane %v6117_v20, 2  ;;  %v7173_v53 = vrot.slane %v6117_v20, 3  ;;  %v5423_v25 = vpop.f32.mrf.mxu2 }
 0xcd0   :  { %v5028_v58 = vadd.f32 %v18339_v36, %v18338_v16  ;;  %v7209_v49 = vrot.slane %v6117_v20, 5  ;;  %v7191_v57 = vrot.slane %v6117_v20, 4  ;;  %v18342_v61 = vld [vmem:[#allocation32_spill] sm:$0xff]  ;;  %v14400_v5 = vsel %vm6171_vm7, %v7100_v54, %v18343_v21  ;;  %v18346_v36 = vld [vmem:[#allocation341_spill] sm:$0xff]  ;;  %v18350_v54 = vld [vmem:[#allocation370_spill] sm:$0xff] }
 0xcd1   :  { %v5986_v63 = vadd.f32 %v5922_v59, %v18341_v34  ;;  %v14396_v37 = vsel %vm6171_vm7, %v7137_v18, %v18342_v61  ;;  %v7084_v52 = vrot.slane %v6117_v20, 6  ;;  %v14404_v10 = vsel %vm6171_vm7, %v7155_v40, %v14019_v39  ;;  %v18348_v18 = vld [vmem:[#allocation114_spill] sm:$0xff]  ;;  %v18351_v34 = vld [vmem:[#allocation381_spill] sm:$0xff]  ;;  %v14423_v39 = vld [vmem:[%s16711_s4] ss:$0 sm:$0xff] }
 0xcd2   :  { %18344 = vst [vmem:[#allocation122_spill] sm:$0xff] %v14404_v10  ;;  %v14408_v16 = vsel %vm6171_vm7, %v7173_v53, %v14022_v4  ;;  %v14412_v6 = vsel %vm6171_vm7, %v7209_v49, %v18346_v36  ;;  %v14416_v59 = vsel %vm6171_vm7, %v7191_v57, %v18348_v18  ;;  %v5652_v20 = vadd.f32 %v18351_v34, %v18350_v54  ;;  %v18352_v4 = vld [vmem:[#allocation244_spill] sm:$0xff]  ;;  %v14433_v57 = vld [vmem:[%s16710_s2 + $0x10] sm:$0xff]  ;;  %v18355_v21 = vld [vmem:[#allocation202_spill] sm:$0xff] }
 0xcd3   :  { %18345 = vst [vmem:[#allocation84_spill] sm:$0xff] %v14408_v16  ;;  %v6054_v40 = vadd.f32 %v14423_v39, %v5986_v63  ;;  %v5424_v53 = vadd.f32 %v5423_v25, %v18352_v4  ;;  %v14428_v61 = vsel %vm6171_vm7, %v7084_v52, %v7083_v22  ;;  %v2420_v49 = vmax.f32 %v2164_v8, 0.0  ;;  %v7412_v63 = vld [vmem:[%s16712_s5 + $0xf0] sm:$0xff]  ;;  %v18356_v8 = vld [vmem:[#allocation260_spill] sm:$0xff]  ;;  %v18357_v52 = vld [vmem:[#allocation235_spill] sm:$0xff] }
 0xcd4   :  { %18347 = vst [vmem:[#allocation434_spill] sm:$0xff] %v14412_v6  ;;  %v2165_v36 = vadd.f32 %v14433_v57, %v18355_v21  ;;  %v5795_v18 = vadd.f32 %v5028_v58, %v4816_v46  ;;  %v7396_v22 = vld [vmem:[%s16712_s5 + $0x70] sm:$0xff]  ;;  %v4819_v25 = vadd.f32 %v18357_v52, %v18356_v8  ;;  %v18358_v4 = vld [vmem:[#allocation212_spill] sm:$0xff]  ;;  %7535 = vmatpush.msrb.mxu2 %v7412_v63  ;;  %v18360_v21 = vld [vmem:[#allocation131_spill] sm:$0xff] }
 0xcd5   :  { %18349 = vst [vmem:[#allocation140_spill] sm:$0xff] %v14416_v59  ;;  %v6118_v54 = vmax.f32 %v6054_v40, 0.0  ;;  %v5859_v34 = vadd.f32 %v5652_v20, %v5424_v53  ;;  %7515 = vmatpush.msra.mxu1 %v7396_v22  ;;  %v7233_v46 = vsel %vm6168_vm6, %v7232_v43, %v18360_v21  ;;  %v18362_v16 = vld [vmem:[#allocation392_spill] sm:$0xff]  ;;  %v18363_v63 = vld [vmem:[#allocation66_spill] sm:$0xff]  ;;  %v18368_v21 = vld [vmem:[#allocation133_spill] sm:$0xff] }
 0xcd6   :  { %18353 = vst [vmem:[#allocation134_spill] sm:$0xff] %v14428_v61  ;;  %v18359_v61 = vld [vmem:[#allocation448_spill] sm:$0xff]  ;;  %v18365_v43 = vld [vmem:[#allocation78_spill] sm:$0xff] }
 0xcd7   :  { %18354 = vst [vmem:[#allocation98_spill] sm:$0xff] %v14433_v57  ;;  %v5031_v59 = vadd.f32 %v18359_v61, %v18358_v4  ;;  %v5923_v58 = vadd.f32 %v5859_v34, %v5795_v18  ;;  %8828 = vmatmul.msk.f32.gmra.mxu2 %vm2727_vm4, %v2420_v49  ;;  %v7250_v20 = vrot.slane %v6118_v54, 7  ;;  %v14452_v40 = vsel %vm6171_vm7, %v6118_v54, %v14060_v19  ;;  %v5426_v34 = vpop.f32.mrf.mxu2  ;;  %v18366_v4 = vld [vmem:[#allocation430_spill] sm:$0xff]  ;;  %v18370_v10 = vld [vmem:[#allocation100_spill] sm:$0xff] }
 0xcd8   :  { %18361 = vst [vmem:[#allocation347_spill] sm:$0xff] %v14452_v40  ;;  %v7287_v53 = vrot.slane %v6118_v54, 1  ;;  %v7359_v57 = vrot.slane %v6118_v54, 5  ;;  %v7323_v6 = vrot.slane %v6118_v54, 3  ;;  %v7341_v8 = vrot.slane %v6118_v54, 4 }
 0xcd9   :  { %v7305_v52 = vrot.slane %v6118_v54, 2  ;;  %v5987_v61 = vadd.f32 %v5923_v58, %v18362_v16  ;;  %v14457_v22 = vsel %vm6171_vm7, %v7250_v20, %v18363_v63  ;;  %v7234_v49 = vrot.slane %v6118_v54, 6  ;;  %v18371_v58 = vld [vmem:[#allocation95_spill] sm:$0xff]  ;;  %v18373_v63 = vld [vmem:[#allocation389_spill] sm:$0xff] }
 0xcda   :  { %18364 = vst [vmem:[#allocation125_spill] sm:$0xff] %v14457_v22  ;;  %v14461_v18 = vsel %vm6171_vm7, %v7287_v53, %v18365_v43  ;;  %v14465_v19 = vsel %vm6171_vm7, %v7359_v57, %v18366_v4  ;;  %v14469_v40 = vsel %vm6171_vm7, %v7323_v6, %v18368_v21  ;;  %v14473_v16 = vsel %vm6171_vm7, %v7341_v8, %v18370_v10  ;;  %v18372_v53 = vld [vmem:[#allocation197_spill] sm:$0xff]  ;;  %v18374_v22 = vld [vmem:[#allocation246_spill] sm:$0xff]  ;;  %v18375_v8 = vld [vmem:[#allocation203_spill] sm:$0xff] }
 0xcdb   :  { %18367 = vst [vmem:[#allocation102_spill] sm:$0xff] %v14465_v19  ;;  %v14477_v20 = vsel %vm6171_vm7, %v7305_v52, %v18371_v58  ;;  %v5655_v54 = vadd.f32 %v18373_v63, %v18372_v53  ;;  %v6055_v43 = vadd.f32 %v14423_v39, %v5987_v61  ;;  %v5427_v57 = vadd.f32 %v5426_v34, %v18374_v22  ;;  %v14489_v10 = vld [vmem:[%s16710_s2 + $0x18] sm:$0xff]  ;;  %v18377_v61 = vld [vmem:[#allocation375_spill] sm:$0xff] }
 0xcdc   :  { %18369 = vst [vmem:[#allocation104_spill] sm:$0xff] %v14469_v40  ;;  %v14484_v4 = vsel %vm6171_vm7, %v7234_v49, %v7233_v46  ;;  %v2421_v6 = vmax.f32 %v2165_v36, 0.0  ;;  %v5796_v21 = vadd.f32 %v5031_v59, %v4819_v25  ;;  %v2166_v52 = vadd.f32 %v14489_v10, %v18375_v8  ;;  %v18376_v58 = vld [vmem:[#allocation214_spill] sm:$0xff] }
 0xcdd   :  { %v6119_v40 = vmax.f32 %v6055_v43, 0.0  ;;  %v5860_v19 = vadd.f32 %v5655_v54, %v5427_v57  ;;  %v5034_v53 = vadd.f32 %v18377_v61, %v18376_v58  ;;  %v18379_v54 = vld [vmem:[#allocation400_spill] sm:$0xff]  ;;  %v18381_v61 = vld [vmem:[#allocation243_spill] sm:$0xff] }
 0xcdf   :  { %v5924_v22 = vadd.f32 %v5860_v19, %v5796_v21  ;;  %8829 = vmatmul.msk.f32.gmra.mxu2 %vm2727_vm4, %v2421_v6  ;;  %v6310_v46 = vrot.slane %v6119_v40, 4  ;;  %v6214_v36 = vrot.slane %v6119_v40, 7  ;;  %v6195_v59 = vrot.slane %v6119_v40, 6  ;;  %v5429_v21 = vpop.f32.mrf.mxu2 }
 0xce0   :  { %v6253_v25 = vrot.slane %v6119_v40, 1  ;;  %v6291_v49 = vrot.slane %v6119_v40, 3  ;;  %v14498_v34 = vsel %vm6174_vm8, %v6119_v40, %v14113_v55  ;;  %v6272_v63 = vrot.slane %v6119_v40, 2 }
 0xce1   :  { %18378 = vst [vmem:[#allocation87_spill] sm:$0xff] %v14498_v34  ;;  %v5988_v43 = vadd.f32 %v5924_v22, %v18379_v54  ;;  %v14503_v57 = vsel %vm6174_vm8, %v6310_v46, %v14097_v1  ;;  %v14507_v19 = vsel %vm6174_vm8, %v6214_v36, %v14092_v60  ;;  %v14511_v6 = vsel %vm6174_vm8, %v6195_v59, %v14101_v28  ;;  %v18380_v60 = vld [vmem:[#allocation263_spill] sm:$0xff]  ;;  %v18382_v46 = vld [vmem:[#allocation160_spill] sm:$0xff]  ;;  %v18384_v54 = vld [vmem:[#allocation249_spill] sm:$0xff] }
 0xce2   :  { %v14515_v55 = vsel %vm6174_vm8, %v6253_v25, %v14105_v33  ;;  %v14519_v8 = vsel %vm6174_vm8, %v6291_v49, %v14109_v48  ;;  %v14523_v1 = vsel %vm6174_vm8, %v6272_v63, %v14117_v14  ;;  %v6173_v58 = vrot.slane %v6119_v40, 5  ;;  %v18383_v28 = vld [vmem:[#allocation391_spill] sm:$0xff]  ;;  %v7428_v40 = vld [vmem:[%s16712_s5 + $0x170] sm:$0xff] }
 0xce3   :  { %v4822_v22 = vadd.f32 %v18381_v61, %v18380_v60  ;;  %v5658_v36 = vadd.f32 %v18383_v28, %v18382_v46  ;;  %v6056_v59 = vadd.f32 %v14423_v39, %v5988_v43  ;;  %v5430_v33 = vadd.f32 %v5429_v21, %v18384_v54  ;;  %v14541_v63 = vld [vmem:[%s16710_s2 + $0x20] sm:$0xff]  ;;  %v18387_v43 = vld [vmem:[#allocation204_spill] sm:$0xff]  ;;  %v18388_v60 = vld [vmem:[#allocation266_spill] sm:$0xff]  ;;  %7555 = vmatpush.msra.mxu3 %v7428_v40 }
 0xce4   :  { %v14533_v25 = vsel %vm6174_vm8, %v6173_v58, %v14125_v62  ;;  %v2422_v48 = vmax.f32 %v2166_v52, 0.0  ;;  %18386 = vst [vmem:[#allocation142_spill] sm:$0xff] %v14541_v63  ;;  %v2167_v21 = vadd.f32 %v14541_v63, %v18387_v43  ;;  %v18389_v61 = vld [vmem:[#allocation245_spill] sm:$0xff]  ;;  %v18390_v58 = vld [vmem:[#allocation216_spill] sm:$0xff]  ;;  %v18392_v63 = vld [vmem:[#allocation398_spill] sm:$0xff] }
 0xce5   :  { %18385 = vst [vmem:[#allocation435_spill] sm:$0xff] %v14533_v25  ;;  %v5797_v49 = vadd.f32 %v5034_v53, %v4822_v22  ;;  %v6120_v34 = vmax.f32 %v6056_v59, 0.0  ;;  %v5861_v14 = vadd.f32 %v5658_v36, %v5430_v33  ;;  %v4825_v62 = vadd.f32 %v18389_v61, %v18388_v60  ;;  %v18391_v52 = vld [vmem:[#allocation449_spill] sm:$0xff]  ;;  %v18395_v61 = vld [vmem:[#allocation460_spill] sm:$0xff] }
 0xce6   :  { %v5037_v53 = vadd.f32 %v18391_v52, %v18390_v58  ;;  %v18396_v52 = vld [vmem:[#allocation251_spill] sm:$0xff] }
 0xce7   :  { %v5925_v22 = vadd.f32 %v5861_v14, %v5797_v49  ;;  %8830 = vmatmul.msk.f32.gmra.mxu2 %vm2727_vm4, %v2422_v48  ;;  %v14552_v46 = vsel %vm6174_vm8, %v6120_v34, %v14139_v56  ;;  %v6461_v28 = vrot.slane %v6120_v34, 4  ;;  %v6407_v36 = vrot.slane %v6120_v34, 1 }
 0xce8   :  { %v6352_v59 = vrot.slane %v6120_v34, 6  ;;  %v6425_v54 = vrot.slane %v6120_v34, 2  ;;  %v6443_v33 = vrot.slane %v6120_v34, 3  ;;  %v6370_v43 = vrot.slane %v6120_v34, 7  ;;  %v5432_v14 = vpop.f32.mrf.mxu2 }
 0xce9   :  { %v5989_v25 = vadd.f32 %v5925_v22, %v18392_v63  ;;  %v14557_v60 = vsel %vm6174_vm8, %v6461_v28, %v14143_v0  ;;  %v14561_v49 = vsel %vm6174_vm8, %v6407_v36, %v14147_v32  ;;  %v6336_v48 = vrot.slane %v6120_v34, 5  ;;  %v18394_v32 = vld [vmem:[#allocation239_spill] sm:$0xff] }
 0xcea   :  { %v14565_v56 = vsel %vm6174_vm8, %v6352_v59, %v14151_v23  ;;  %v14569_v40 = vsel %vm6174_vm8, %v6425_v54, %v14155_v30  ;;  %v14573_v63 = vsel %vm6174_vm8, %v6443_v33, %v14159_v51  ;;  %v14577_v0 = vsel %vm6174_vm8, %v6370_v43, %v14134_v7  ;;  %v18397_v59 = vld [vmem:[#allocation205_spill] sm:$0xff]  ;;  %v18399_v33 = vld [vmem:[#allocation451_spill] sm:$0xff] }
 0xceb   :  { %18393 = vst [vmem:[#allocation144_spill] sm:$0xff] %v14577_v0  ;;  %v5661_v34 = vadd.f32 %v18395_v61, %v18394_v32  ;;  %v6057_v58 = vadd.f32 %v14423_v39, %v5989_v25  ;;  %v5433_v23 = vadd.f32 %v5432_v14, %v18396_v52  ;;  %v14585_v22 = vsel %vm6174_vm8, %v6336_v48, %v14169_v41  ;;  %v18398_v7 = vld [vmem:[#allocation217_spill] sm:$0xff] }
 0xcec   :  { %v2423_v30 = vmax.f32 %v2167_v21, 0.0  ;;  %v5798_v28 = vadd.f32 %v5037_v53, %v4825_v62  ;;  %v2168_v54 = vadd.f32 %v14174_v26, %v18397_v59  ;;  %v5040_v43 = vadd.f32 %v18399_v33, %v18398_v7  ;;  %v18400_v53 = vld [vmem:[#allocation401_spill] sm:$0xff]  ;;  %v18404_v7 = vld [vmem:[#allocation240_spill] sm:$0xff] }
 0xced   :  { %v6121_v36 = vmax.f32 %v6057_v58, 0.0  ;;  %v5862_v51 = vadd.f32 %v5661_v34, %v5433_v23 }
 0xcef   :  { %v5926_v0 = vadd.f32 %v5862_v51, %v5798_v28  ;;  %8831 = vmatmul.msk.f32.gmra.mxu2 %vm2727_vm4, %v2423_v30  ;;  %v6502_v25 = vrot.slane %v6121_v36, 6  ;;  %v6611_v32 = vrot.slane %v6121_v36, 4  ;;  %v6520_v14 = vrot.slane %v6121_v36, 7  ;;  %v18401_v30 = vld [vmem:[#allocation343_spill] sm:$0xff] }
 0xcf0   :  { %v6557_v61 = vrot.slane %v6121_v36, 1  ;;  %v14594_v41 = vsel %vm6174_vm8, %v6121_v36, %v14202_v17  ;;  %v6575_v21 = vrot.slane %v6121_v36, 2  ;;  %v6593_v62 = vrot.slane %v6121_v36, 3  ;;  %v5435_v23 = vpop.f32.mrf.mxu2  ;;  %v18403_v51 = vld [vmem:[#allocation247_spill] sm:$0xff] }
 0xcf1   :  { %v5990_v48 = vadd.f32 %v5926_v0, %v18400_v53  ;;  %v14599_v34 = vsel %vm6174_vm8, %v6502_v25, %v14190_v35  ;;  %v14603_v58 = vsel %vm6174_vm8, %v6611_v32, %v14194_v13  ;;  %v14607_v52 = vsel %vm6174_vm8, %v6520_v14, %v14185_v11  ;;  %v18402_v13 = vld [vmem:[#allocation269_spill] sm:$0xff]  ;;  %v18405_v11 = vld [vmem:[#allocation395_spill] sm:$0xff] }
 0xcf2   :  { %v14611_v17 = vsel %vm6174_vm8, %v6557_v61, %v14198_v42  ;;  %v14615_v0 = vsel %vm6174_vm8, %v6575_v21, %v14206_v47  ;;  %v14619_v35 = vsel %vm6174_vm8, %v6593_v62, %v18401_v30  ;;  %v6486_v28 = vrot.slane %v6121_v36, 5  ;;  %v18406_v32 = vld [vmem:[#allocation253_spill] sm:$0xff]  ;;  %v7411_v36 = vld [vmem:[%s16712_s5 + $0xe8] sm:$0xff] }
 0xcf3   :  { %v4828_v59 = vadd.f32 %v18403_v51, %v18402_v13  ;;  %v5664_v33 = vadd.f32 %v18405_v11, %v18404_v7  ;;  %v6058_v25 = vadd.f32 %v14423_v39, %v5990_v48  ;;  %v5436_v42 = vadd.f32 %v5435_v23, %v18406_v32  ;;  %v18407_v14 = vld [vmem:[#allocation117_spill] sm:$0xff]  ;;  %v7395_v30 = vld [vmem:[%s16712_s5 + $0x68] sm:$0xff]  ;;  %v18409_v13 = vld [vmem:[#allocation206_spill] sm:$0xff]  ;;  %7536 = vmatpush.msrb.mxu2 %v7411_v36 }
 0xcf4   :  { %v14629_v61 = vsel %vm6174_vm8, %v6486_v28, %v18407_v14  ;;  %v2424_v47 = vmax.f32 %v2168_v54, 0.0  ;;  %v18410_v48 = vld [vmem:[#allocation67_spill] sm:$0xff]  ;;  %v18411_v23 = vld [vmem:[#allocation220_spill] sm:$0xff]  ;;  %7516 = vmatpush.msra.mxu1 %v7395_v30 }
 0xcf5   :  { %18408 = vst [vmem:[#allocation335_spill] sm:$0xff] %v14629_v61  ;;  %v5799_v21 = vadd.f32 %v5040_v43, %v4828_v59  ;;  %v6122_v53 = vmax.f32 %v6058_v25, 0.0  ;;  %v5863_v62 = vadd.f32 %v5664_v33, %v5436_v42  ;;  %v2169_v51 = vadd.f32 %v18410_v48, %v18409_v13  ;;  %v18412_v7 = vld [vmem:[#allocation452_spill] sm:$0xff]  ;;  %v18430_v48 = vld [vmem:[#allocation255_spill] sm:$0xff]  ;;  %v18435_v61 = vld [vmem:[#allocation242_spill] sm:$0xff] }
 0xcf6   :  { %v5043_v11 = vadd.f32 %v18412_v7, %v18411_v23  ;;  %v18414_v14 = vld [vmem:[#allocation404_spill] sm:$0xff]  ;;  %v18420_v7 = vld [vmem:[#allocation135_spill] sm:$0xff] }
 0xcf7   :  { %v5927_v54 = vadd.f32 %v5863_v62, %v5799_v21  ;;  %8832 = vmatmul.msk.f32.gmra.mxu2 %vm2727_vm4, %v2424_v47  ;;  %v6652_v43 = vrot.slane %v6122_v53, 6  ;;  %v6761_v28 = vrot.slane %v6122_v53, 4  ;;  %v6670_v59 = vrot.slane %v6122_v53, 7  ;;  %v18416_v36 = vld [vmem:[#allocation432_spill] sm:$0xff]  ;;  %v18418_v47 = vld [vmem:[#allocation79_spill] sm:$0xff] }
 0xcf8   :  { %v6725_v33 = vrot.slane %v6122_v53, 2  ;;  %v14644_v25 = vsel %vm6174_vm8, %v6122_v53, %v14257_v2  ;;  %v6743_v32 = vrot.slane %v6122_v53, 3  ;;  %v6707_v42 = vrot.slane %v6122_v53, 1  ;;  %v5438_v30 = vpop.f32.mrf.mxu2 }
 0xcf9   :  { %18413 = vst [vmem:[#allocation439_spill] sm:$0xff] %v14644_v25  ;;  %v5991_v13 = vadd.f32 %v5927_v54, %v18414_v14  ;;  %v14649_v23 = vsel %vm6174_vm8, %v6652_v43, %v14245_v9  ;;  %v14653_v21 = vsel %vm6174_vm8, %v6761_v28, %v18416_v36  ;;  %v14657_v62 = vsel %vm6174_vm8, %v6670_v59, %v18418_v47  ;;  %v18422_v25 = vld [vmem:[#allocation130_spill] sm:$0xff]  ;;  %v18426_v28 = vld [vmem:[#allocation272_spill] sm:$0xff]  ;;  %v18429_v59 = vld [vmem:[#allocation403_spill] sm:$0xff] }
 0xcfa   :  { %18415 = vst [vmem:[#allocation128_spill] sm:$0xff] %v14649_v23  ;;  %v14661_v2 = vsel %vm6174_vm8, %v6725_v33, %v18420_v7  ;;  %v14665_v54 = vsel %vm6174_vm8, %v6743_v32, %v18422_v25  ;;  %v18424_v14 = vld [vmem:[#allocation94_spill] sm:$0xff]  ;;  %v6636_v43 = vrot.slane %v6122_v53, 5  ;;  %v18427_v36 = vld [vmem:[#allocation248_spill] sm:$0xff]  ;;  %v5439_v33 = vadd.f32 %v5438_v30, %v18430_v48 }
 0xcfb   :  { %18417 = vst [vmem:[#allocation105_spill] sm:$0xff] %v14653_v21  ;;  %v14669_v9 = vsel %vm6174_vm8, %v6707_v42, %v18424_v14  ;;  %v4831_v21 = vadd.f32 %v18427_v36, %v18426_v28  ;;  %v18428_v23 = vld [vmem:[#allocation234_spill] sm:$0xff]  ;;  %v2425_v25 = vmax.f32 %v2169_v51, 0.0  ;;  %v18432_v53 = vld [vmem:[#allocation16_spill] sm:$0xff] }
 0xcfc   :  { %18419 = vst [vmem:[#allocation106_spill] sm:$0xff] %v14657_v62  ;;  %v5667_v47 = vadd.f32 %v18429_v59, %v18428_v23  ;;  %v6059_v62 = vadd.f32 %v14423_v39, %v5991_v13  ;;  %v14679_v7 = vsel %vm6174_vm8, %v6636_v43, %v14273_v44  ;;  %v18431_v14 = vld [vmem:[#allocation274_spill] sm:$0xff]  ;;  %v18436_v23 = vld [vmem:[#allocation463_spill] sm:$0xff] }
 0xcfd   :  { %18421 = vst [vmem:[#allocation107_spill] sm:$0xff] %v14661_v2  ;;  %v5800_v32 = vadd.f32 %v5043_v11, %v4831_v21  ;;  %v4834_v2 = vadd.f32 %v18432_v53, %v18431_v14  ;;  %v18434_v28 = vld [vmem:[#allocation454_spill] sm:$0xff]  ;;  %v5670_v59 = vadd.f32 %v18436_v23, %v18435_v61  ;;  %v18439_v53 = vld [vmem:[#allocation345_spill] sm:$0xff] }
 0xcfe   :  { %18423 = vst [vmem:[#allocation108_spill] sm:$0xff] %v14665_v54  ;;  %v6123_v54 = vmax.f32 %v6059_v62, 0.0  ;;  %v5864_v42 = vadd.f32 %v5667_v47, %v5439_v33  ;;  %v18437_v30 = vld [vmem:[#allocation406_spill] sm:$0xff] }
 0xcff   :  { %18425 = vst [vmem:[#allocation109_spill] sm:$0xff] %v14669_v9  ;;  %v18433_v9 = vld [vmem:[#allocation222_spill] sm:$0xff]  ;;  %8833 = vmatmul.msk.f32.gmra.mxu2 %vm2727_vm4, %v2425_v25 }
 0xd00   :  { %v5046_v36 = vadd.f32 %v18434_v28, %v18433_v9  ;;  %v5928_v13 = vadd.f32 %v5864_v42, %v5800_v32  ;;  %v6911_v48 = vrot.slane %v6123_v54, 4  ;;  %v14690_v44 = vsel %vm6174_vm8, %v6123_v54, %v14291_v15 }
 0xd01   :  { %v6875_v51 = vrot.slane %v6123_v54, 2  ;;  %v6820_v11 = vrot.slane %v6123_v54, 7  ;;  %v6893_v21 = vrot.slane %v6123_v54, 3  ;;  %v6802_v62 = vrot.slane %v6123_v54, 6  ;;  %v5441_v33 = vpop.f32.mrf.mxu2 }
 0xd02   :  { %v5992_v43 = vadd.f32 %v5928_v13, %v18437_v30  ;;  %v14695_v9 = vsel %vm6174_vm8, %v6911_v48, %v14287_v45  ;;  %v6857_v47 = vrot.slane %v6123_v54, 1  ;;  %v6786_v61 = vrot.slane %v6123_v54, 5  ;;  %v18438_v54 = vld [vmem:[#allocation259_spill] sm:$0xff]  ;;  %v18440_v13 = vld [vmem:[#allocation252_spill] sm:$0xff] }
 0xd03   :  { %v14699_v25 = vsel %vm6174_vm8, %v6875_v51, %v14295_v50  ;;  %v14703_v15 = vsel %vm6174_vm8, %v6820_v11, %v14282_v3  ;;  %v14707_v32 = vsel %vm6174_vm8, %v6893_v21, %v14299_v38  ;;  %v14711_v42 = vsel %vm6174_vm8, %v6802_v62, %v14303_v24  ;;  %v7427_v24 = vld [vmem:[%s16712_s5 + $0x168] sm:$0xff]  ;;  %v18441_v48 = vld [vmem:[#allocation119_spill] sm:$0xff]  ;;  %v18442_v11 = vld [vmem:[#allocation225_spill] sm:$0xff] }
 0xd04   :  { %v6060_v45 = vadd.f32 %v14423_v39, %v5992_v43  ;;  %v5442_v14 = vadd.f32 %v5441_v33, %v18438_v54  ;;  %v14717_v50 = vsel %vm6174_vm8, %v6857_v47, %v14311_v31  ;;  %v14721_v3 = vsel %vm6174_vm8, %v6786_v61, %v18439_v53  ;;  %v18443_v21 = vld [vmem:[#allocation455_spill] sm:$0xff]  ;;  %7556 = vmatpush.msra.mxu3 %v7427_v24  ;;  %v18444_v30 = vld [vmem:[#allocation208_spill] sm:$0xff]  ;;  %v18448_v53 = vld [vmem:[#allocation82_spill] sm:$0xff] }
 0xd05   :  { %v5801_v28 = vadd.f32 %v5046_v36, %v4834_v2  ;;  %v2195_v51 = vadd.f32 %v18441_v48, %v18440_v13  ;;  %v5049_v62 = vadd.f32 %v18443_v21, %v18442_v11  ;;  %v18445_v43 = vmax.f32 %v18444_v30, 0.0  ;;  %v18447_v54 = vld [vmem:[#allocation468_spill] sm:$0xff]  ;;  %v18452_v13 = vld [vmem:[#allocation137_spill] sm:$0xff]  ;;  %v18469_v48 = vld [vmem:[#allocation275_spill] sm:$0xff] }
 0xd06   :  { %v6124_v23 = vmax.f32 %v6060_v45, 0.0  ;;  %v5865_v38 = vadd.f32 %v5670_v59, %v5442_v14  ;;  %v18454_v30 = vld [vmem:[#allocation132_spill] sm:$0xff] }
 0xd07   :  { %8834 = vmatmul.msk.f32.gmra.mxu2 %vm2727_vm4, %v18445_v43 }
 0xd08   :  { %v5929_v31 = vadd.f32 %v5865_v38, %v5801_v28  ;;  %v7007_v47 = vrot.slane %v6124_v23, 1  ;;  %v7061_v2 = vrot.slane %v6124_v23, 4  ;;  %v6952_v36 = vrot.slane %v6124_v23, 6  ;;  %v18450_v28 = vld [vmem:[#allocation433_spill] sm:$0xff] }
 0xd09   :  { %v7025_v59 = vrot.slane %v6124_v23, 2  ;;  %v6970_v61 = vrot.slane %v6124_v23, 7  ;;  %v7043_v33 = vrot.slane %v6124_v23, 3  ;;  %v14735_v45 = vsel %vm6174_vm8, %v6124_v23, %v14363_v27  ;;  %v5444_v21 = vpop.f32.mrf.mxu2  ;;  %v18456_v27 = vld [vmem:[#allocation68_spill] sm:$0xff] }
 0xd0a   :  { %18446 = vst [vmem:[#allocation348_spill] sm:$0xff] %v14735_v45  ;;  %v5993_v14 = vadd.f32 %v5929_v31, %v18447_v54  ;;  %v14740_v24 = vsel %vm6174_vm8, %v7007_v47, %v18448_v53  ;;  %v14744_v38 = vsel %vm6174_vm8, %v7061_v2, %v18450_v28  ;;  %v14748_v11 = vsel %vm6174_vm8, %v6952_v36, %v18452_v13  ;;  %v18458_v54 = vld [vmem:[#allocation97_spill] sm:$0xff]  ;;  %v18460_v2 = vld [vmem:[#allocation278_spill] sm:$0xff]  ;;  %v18461_v28 = vld [vmem:[#allocation387_spill] sm:$0xff] }
 0xd0b   :  { %18449 = vst [vmem:[#allocation110_spill] sm:$0xff] %v14740_v24  ;;  %v14752_v43 = vsel %vm6174_vm8, %v7025_v59, %v18454_v30  ;;  %v14756_v31 = vsel %vm6174_vm8, %v6970_v61, %v18456_v27  ;;  %v14760_v47 = vsel %vm6174_vm8, %v7043_v33, %v18458_v54  ;;  %v6936_v53 = vrot.slane %v6124_v23, 5  ;;  %v18463_v36 = vld [vmem:[#allocation466_spill] sm:$0xff] }
 0xd0c   :  { %18451 = vst [vmem:[#allocation152_spill] sm:$0xff] %v14744_v38  ;;  %v4837_v45 = vadd.f32 %v18461_v28, %v18460_v2  ;;  %v18462_v38 = vld [vmem:[#allocation376_spill] sm:$0xff]  ;;  %v18464_v24 = vld [vmem:[#allocation262_spill] sm:$0xff]  ;;  %v2451_v61 = vmax.f32 %v2195_v51, 0.0  ;;  %v18468_v2 = vld [vmem:[#allocation19_spill] sm:$0xff] }
 0xd0d   :  { %18453 = vst [vmem:[#allocation184_spill] sm:$0xff] %v14748_v11  ;;  %v5673_v13 = vadd.f32 %v18463_v36, %v18462_v38  ;;  %v6061_v11 = vadd.f32 %v14423_v39, %v5993_v14  ;;  %v5445_v59 = vadd.f32 %v5444_v21, %v18464_v24  ;;  %v18465_v30 = vld [vmem:[#allocation346_spill] sm:$0xff]  ;;  %v18470_v38 = vld [vmem:[#allocation383_spill] sm:$0xff] }
 0xd0e   :  { %18455 = vst [vmem:[#allocation436_spill] sm:$0xff] %v14752_v43  ;;  %v14770_v43 = vsel %vm6174_vm8, %v6936_v53, %v18465_v30  ;;  %v5802_v27 = vadd.f32 %v5049_v62, %v4837_v45  ;;  %v18466_v54 = vld [vmem:[#allocation254_spill] sm:$0xff]  ;;  %v5052_v36 = vadd.f32 %v18470_v38, %v18469_v48 }
 0xd0f   :  { %18457 = vst [vmem:[#allocation171_spill] sm:$0xff] %v14756_v31  ;;  %v6125_v31 = vmax.f32 %v6061_v11, 0.0  ;;  %v5866_v33 = vadd.f32 %v5673_v13, %v5445_v59  ;;  %v2196_v23 = vadd.f32 %v14377_v29, %v18466_v54  ;;  %8835 = vmatmul.msk.f32.gmra.mxu2 %vm2727_vm4, %v2451_v61  ;;  %v18471_v13 = vld [vmem:[#allocation469_spill] sm:$0xff] }
 0xd10   :  { %18459 = vst [vmem:[#allocation138_spill] sm:$0xff] %v14760_v47  ;;  %v18467_v47 = vld [vmem:[#allocation281_spill] sm:$0xff] }
 0xd11   :  { %v4840_v28 = vadd.f32 %v18468_v2, %v18467_v47  ;;  %v5930_v14 = vadd.f32 %v5866_v33, %v5802_v27  ;;  %v14781_v24 = vsel %vm6174_vm8, %v6125_v31, %v14396_v37  ;;  %v7102_v51 = vrot.slane %v6125_v31, 6  ;;  %v5447_v61 = vpop.f32.mrf.mxu2  ;;  %v18473_v37 = vld [vmem:[#allocation122_spill] sm:$0xff]  ;;  %v18474_v33 = vld [vmem:[#allocation84_spill] sm:$0xff] }
 0xd12   :  { %v7120_v62 = vrot.slane %v6125_v31, 7  ;;  %v7157_v45 = vrot.slane %v6125_v31, 1  ;;  %v7175_v11 = vrot.slane %v6125_v31, 2  ;;  %v7211_v21 = vrot.slane %v6125_v31, 4  ;;  %v18476_v2 = vld [vmem:[#allocation434_spill] sm:$0xff] }
 0xd13   :  { %v7193_v53 = vrot.slane %v6125_v31, 3  ;;  %v5994_v59 = vadd.f32 %v5930_v14, %v18471_v13  ;;  %v14786_v47 = vsel %vm6174_vm8, %v7102_v51, %v14400_v5  ;;  %v7086_v30 = vrot.slane %v6125_v31, 5  ;;  %v18477_v5 = vld [vmem:[#allocation140_spill] sm:$0xff]  ;;  %v18480_v51 = vld [vmem:[#allocation467_spill] sm:$0xff]  ;;  %v18481_v13 = vld [vmem:[#allocation265_spill] sm:$0xff] }
 0xd14   :  { %v14790_v48 = vsel %vm6174_vm8, %v7120_v62, %v14391_v12  ;;  %v14794_v27 = vsel %vm6174_vm8, %v7157_v45, %v18473_v37  ;;  %v14798_v54 = vsel %vm6174_vm8, %v7175_v11, %v18474_v33  ;;  %v14802_v38 = vsel %vm6174_vm8, %v7211_v21, %v18476_v2  ;;  %v18479_v12 = vld [vmem:[#allocation377_spill] sm:$0xff]  ;;  %v18482_v37 = vld [vmem:[#allocation134_spill] sm:$0xff]  ;;  %v7394_v2 = vld [vmem:[%s16712_s5 + $0x60] sm:$0xff] }
 0xd15   :  { %18472 = vst [vmem:[#allocation338_spill] sm:$0xff] %v14790_v48  ;;  %v14806_v14 = vsel %vm6174_vm8, %v7193_v53, %v18477_v5  ;;  %v5676_v31 = vadd.f32 %v18480_v51, %v18479_v12  ;;  %v6062_v62 = vadd.f32 %v14423_v39, %v5994_v59  ;;  %v5448_v45 = vadd.f32 %v5447_v61, %v18481_v13  ;;  %v7410_v53 = vld [vmem:[%s16712_s5 + $0xe0] sm:$0xff]  ;;  %v18484_v5 = vld [vmem:[#allocation257_spill] sm:$0xff]  ;;  %v18485_v59 = vld [vmem:[#allocation98_spill] sm:$0xff] }
 0xd16   :  { %18475 = vst [vmem:[#allocation352_spill] sm:$0xff] %v14798_v54  ;;  %v14814_v48 = vsel %vm6174_vm8, %v7086_v30, %v18482_v37  ;;  %v2452_v11 = vmax.f32 %v2196_v23, 0.0  ;;  %v5803_v33 = vadd.f32 %v5052_v36, %v4840_v28  ;;  %v2197_v12 = vadd.f32 %v18485_v59, %v18484_v5  ;;  %v18486_v61 = vld [vmem:[#allocation285_spill] sm:$0xff]  ;;  %v18487_v51 = vld [vmem:[#allocation20_spill] sm:$0xff]  ;;  %7537 = vmatpush.msrb.mxu2 %v7410_v53  ;;  %v18493_v53 = vld [vmem:[#allocation347_spill] sm:$0xff] }
 0xd17   :  { %18478 = vst [vmem:[#allocation159_spill] sm:$0xff] %v14806_v14  ;;  %v6126_v54 = vmax.f32 %v6062_v62, 0.0  ;;  %v5867_v21 = vadd.f32 %v5676_v31, %v5448_v45  ;;  %v4843_v13 = vadd.f32 %v18487_v51, %v18486_v61  ;;  %v18488_v30 = vld [vmem:[#allocation276_spill] sm:$0xff]  ;;  %v18489_v37 = vld [vmem:[#allocation457_spill] sm:$0xff]  ;;  %7517 = vmatpush.msra.mxu1 %v7394_v2  ;;  %v18491_v14 = vld [vmem:[#allocation471_spill] sm:$0xff] }
 0xd18   :  { %18483 = vst [vmem:[#allocation116_spill] sm:$0xff] %v14814_v48  ;;  %v5055_v23 = vadd.f32 %v18489_v37, %v18488_v30  ;;  %8836 = vmatmul.msk.f32.gmra.mxu2 %vm2727_vm4, %v2452_v11  ;;  %v18492_v51 = vld [vmem:[#allocation125_spill] sm:$0xff]  ;;  %v18494_v2 = vld [vmem:[#allocation102_spill] sm:$0xff]  ;;  %v18495_v37 = vld [vmem:[#allocation104_spill] sm:$0xff] }
 0xd19   :  { %v5931_v28 = vadd.f32 %v5867_v21, %v5803_v33  ;;  %v7252_v36 = vrot.slane %v6126_v54, 6  ;;  %v7270_v31 = vrot.slane %v6126_v54, 7  ;;  %v14831_v62 = vsel %vm6174_vm8, %v6126_v54, %v14461_v18  ;;  %v5450_v21 = vpop.f32.mrf.mxu2 }
 0xd1a   :  { %18490 = vst [vmem:[#allocation437_spill] sm:$0xff] %v14831_v62  ;;  %v7361_v45 = vrot.slane %v6126_v54, 4  ;;  %v7325_v48 = vrot.slane %v6126_v54, 2  ;;  %v7343_v5 = vrot.slane %v6126_v54, 3  ;;  %v7307_v59 = vrot.slane %v6126_v54, 1 }
 0xd1b   :  { %v5995_v61 = vadd.f32 %v5931_v28, %v18491_v14  ;;  %v14836_v30 = vsel %vm6174_vm8, %v7252_v36, %v18492_v51  ;;  %v14840_v33 = vsel %vm6174_vm8, %v7270_v31, %v18493_v53  ;;  %v7236_v11 = vrot.slane %v6126_v54, 5  ;;  %v18498_v36 = vld [vmem:[#allocation379_spill] sm:$0xff]  ;;  %v18499_v31 = vld [vmem:[#allocation470_spill] sm:$0xff]  ;;  %v18500_v53 = vld [vmem:[#allocation268_spill] sm:$0xff] }
 0xd1c   :  { %v14844_v18 = vsel %vm6174_vm8, %v7361_v45, %v18494_v2  ;;  %v14848_v62 = vsel %vm6174_vm8, %v7325_v48, %v18495_v37  ;;  %v14852_v14 = vsel %vm6174_vm8, %v7343_v5, %v14473_v16  ;;  %v14856_v28 = vsel %vm6174_vm8, %v7307_v59, %v14477_v20  ;;  %v18501_v20 = vld [vmem:[#allocation258_spill] sm:$0xff] }
 0xd1d   :  { %18496 = vst [vmem:[#allocation118_spill] sm:$0xff] %v14848_v62  ;;  %v5679_v54 = vadd.f32 %v18499_v31, %v18498_v36  ;;  %v6063_v51 = vadd.f32 %v14423_v39, %v5995_v61  ;;  %v5451_v45 = vadd.f32 %v5450_v21, %v18500_v53  ;;  %v14864_v2 = vsel %vm6174_vm8, %v7236_v11, %v14484_v4  ;;  %v14866_v62 = vpop.f32.mrf.mxu3  ;;  %v18503_v36 = vld [vmem:[#allocation250_spill] sm:$0xff] }
 0xd1e   :  { %18497 = vst [vmem:[#allocation103_spill] sm:$0xff] %v14852_v14  ;;  %v2453_v48 = vmax.f32 %v2197_v12, 0.0  ;;  %v5804_v37 = vadd.f32 %v5055_v23, %v4843_v13  ;;  %v2198_v59 = vadd.f32 %v14489_v10, %v18501_v20  ;;  %v18502_v14 = vld [vmem:[#allocation279_spill] sm:$0xff] }
 0xd1f   :  { %v6127_v16 = vmax.f32 %v6063_v51, 0.0  ;;  %v5868_v5 = vadd.f32 %v5679_v54, %v5451_v45  ;;  %v5058_v31 = vadd.f32 %v18503_v36, %v18502_v14  ;;  %v18505_v54 = vld [vmem:[#allocation473_spill] sm:$0xff] }
 0xd20   :  { %8837 = vmatmul.msk.f32.gmra.mxu2 %vm2727_vm4, %v2453_v48 }
 0xd21   :  { %v5932_v61 = vadd.f32 %v5868_v5, %v5804_v37  ;;  %v6312_v21 = vrot.slane %v6127_v16, 3  ;;  %v6216_v53 = vrot.slane %v6127_v16, 6  ;;  %v6197_v4 = vrot.slane %v6127_v16, 5  ;;  %v5453_v37 = vpop.f32.mrf.mxu2  ;;  %v18508_v5 = vld [vmem:[#allocation87_spill] sm:$0xff] }
 0xd22   :  { %v14875_v12 = vsel %vm6177_vm9, %v6127_v16, %v14515_v55  ;;  %v6293_v13 = vrot.slane %v6127_v16, 2  ;;  %v6235_v23 = vrot.slane %v6127_v16, 7  ;;  %v6274_v11 = vrot.slane %v6127_v16, 1 }
 0xd23   :  { %18504 = vst [vmem:[#allocation120_spill] sm:$0xff] %v14875_v12  ;;  %v5996_v51 = vadd.f32 %v5932_v61, %v18505_v54  ;;  %v14880_v45 = vsel %vm6177_vm9, %v6312_v21, %v14503_v57  ;;  %v14884_v14 = vsel %vm6177_vm9, %v6216_v53, %v14507_v19  ;;  %v14888_v48 = vsel %vm6177_vm9, %v6197_v4, %v14511_v6  ;;  %v18510_v19 = vld [vmem:[#allocation288_spill] sm:$0xff]  ;;  %v18511_v61 = vld [vmem:[#allocation21_spill] sm:$0xff]  ;;  %v18512_v53 = vld [vmem:[#allocation382_spill] sm:$0xff] }
 0xd24   :  { %18506 = vst [vmem:[#allocation438_spill] sm:$0xff] %v14888_v48  ;;  %v14892_v55 = vsel %vm6177_vm9, %v6293_v13, %v14519_v8  ;;  %v14896_v20 = vsel %vm6177_vm9, %v6235_v23, %v18508_v5  ;;  %v14900_v57 = vsel %vm6177_vm9, %v6274_v11, %v14523_v1  ;;  %v6176_v36 = vrot.slane %v6127_v16, 4  ;;  %v18513_v6 = vld [vmem:[#allocation472_spill] sm:$0xff]  ;;  %v18514_v12 = vld [vmem:[#allocation271_spill] sm:$0xff]  ;;  %v18516_v11 = vld [vmem:[#allocation261_spill] sm:$0xff] }
 0xd25   :  { %18507 = vst [vmem:[#allocation121_spill] sm:$0xff] %v14892_v55  ;;  %v4846_v21 = vadd.f32 %v18511_v61, %v18510_v19  ;;  %v5682_v4 = vadd.f32 %v18513_v6, %v18512_v53  ;;  %v6064_v54 = vadd.f32 %v14423_v39, %v5996_v51  ;;  %v5454_v8 = vadd.f32 %v5453_v37, %v18514_v12  ;;  %v18515_v13 = vld [vmem:[#allocation435_spill] sm:$0xff]  ;;  %v18517_v19 = vld [vmem:[#allocation142_spill] sm:$0xff] }
 0xd26   :  { %18509 = vst [vmem:[#allocation440_spill] sm:$0xff] %v14896_v20  ;;  %v14910_v55 = vsel %vm6177_vm9, %v6176_v36, %v18515_v13  ;;  %v2454_v23 = vmax.f32 %v2198_v59, 0.0  ;;  %v7426_v16 = vld [vmem:[%s16712_s5 + $0x160] sm:$0xff]  ;;  %v2199_v61 = vadd.f32 %v18517_v19, %v18516_v11  ;;  %v18518_v53 = vld [vmem:[#allocation290_spill] sm:$0xff]  ;;  %v14921_v36 = vpop.f32.mrf.mxu3 }
 0xd27   :  { %v5805_v5 = vadd.f32 %v5058_v31, %v4846_v21  ;;  %v6128_v20 = vmax.f32 %v6064_v54, 0.0  ;;  %v5869_v1 = vadd.f32 %v5682_v4, %v5454_v8  ;;  %v18519_v6 = vld [vmem:[#allocation22_spill] sm:$0xff]  ;;  %7557 = vmatpush.msra.mxu3 %v7426_v16 }
 0xd28   :  { %v4849_v51 = vadd.f32 %v18519_v6, %v18518_v53  ;;  %v18520_v48 = vld [vmem:[#allocation282_spill] sm:$0xff]  ;;  %8838 = vmatmul.msk.f32.gmra.mxu2 %vm2727_vm4, %v2454_v23  ;;  %v18523_v53 = vld [vmem:[#allocation475_spill] sm:$0xff] }
 0xd29   :  { %v18521_v12 = vld [vmem:[#allocation458_spill] sm:$0xff]  ;;  %v5933_v59 = vadd.f32 %v5869_v1, %v5805_v5  ;;  %v6390_v31 = vrot.slane %v6128_v20, 7  ;;  %v6463_v21 = vrot.slane %v6128_v20, 3  ;;  %v14926_v4 = vsel %vm6177_vm9, %v6128_v20, %v14561_v49  ;;  %v5456_v1 = vpop.f32.mrf.mxu2 }
 0xd2a   :  { %v5061_v37 = vadd.f32 %v18521_v12, %v18520_v48  ;;  %18522 = vst [vmem:[#allocation175_spill] sm:$0xff] %v14926_v4  ;;  %v6354_v54 = vrot.slane %v6128_v20, 5  ;;  %v6427_v8 = vrot.slane %v6128_v20, 1  ;;  %v6445_v13 = vrot.slane %v6128_v20, 2 }
 0xd2b   :  { %v6372_v11 = vrot.slane %v6128_v20, 6  ;;  %v5997_v6 = vadd.f32 %v5933_v59, %v18523_v53  ;;  %v14931_v48 = vsel %vm6177_vm9, %v6390_v31, %v14552_v46  ;;  %v14935_v5 = vsel %vm6177_vm9, %v6463_v21, %v14557_v60  ;;  %v18526_v46 = vld [vmem:[#allocation144_spill] sm:$0xff]  ;;  %v18528_v60 = vld [vmem:[#allocation385_spill] sm:$0xff] }
 0xd2c   :  { %v6338_v23 = vrot.slane %v6128_v20, 4  ;;  %v14939_v49 = vsel %vm6177_vm9, %v6354_v54, %v14565_v56  ;;  %v14943_v16 = vsel %vm6177_vm9, %v6427_v8, %v14569_v40  ;;  %v14947_v12 = vsel %vm6177_vm9, %v6445_v13, %v14573_v63  ;;  %v18529_v31 = vld [vmem:[#allocation312_spill] sm:$0xff]  ;;  %v18530_v53 = vld [vmem:[#allocation273_spill] sm:$0xff] }
 0xd2d   :  { %18524 = vst [vmem:[#allocation139_spill] sm:$0xff] %v14939_v49  ;;  %v14951_v59 = vsel %vm6177_vm9, %v6372_v11, %v18526_v46  ;;  %v5685_v20 = vadd.f32 %v18529_v31, %v18528_v60  ;;  %v6065_v21 = vadd.f32 %v14423_v39, %v5997_v6  ;;  %v5457_v56 = vadd.f32 %v5456_v1, %v18530_v53  ;;  %v18531_v13 = vld [vmem:[#allocation264_spill] sm:$0xff]  ;;  %v18533_v46 = vld [vmem:[#allocation459_spill] sm:$0xff]  ;;  %v18534_v31 = vld [vmem:[#allocation477_spill] sm:$0xff] }
 0xd2e   :  { %18525 = vst [vmem:[#allocation179_spill] sm:$0xff] %v14947_v12  ;;  %v14959_v54 = vsel %vm6177_vm9, %v6338_v23, %v14585_v22  ;;  %v2455_v40 = vmax.f32 %v2199_v61, 0.0  ;;  %v5806_v8 = vadd.f32 %v5061_v37, %v4849_v51  ;;  %v2200_v12 = vadd.f32 %v14174_v26, %v18531_v13  ;;  %v18532_v11 = vld [vmem:[#allocation284_spill] sm:$0xff]  ;;  %v14970_v23 = vpop.f32.mrf.mxu3 }
 0xd2f   :  { %18527 = vst [vmem:[#allocation147_spill] sm:$0xff] %v14951_v59  ;;  %v6129_v49 = vmax.f32 %v6065_v21, 0.0  ;;  %v5870_v63 = vadd.f32 %v5685_v20, %v5457_v56  ;;  %v5064_v59 = vadd.f32 %v18533_v46, %v18532_v11  ;;  %v18539_v13 = vld [vmem:[#allocation388_spill] sm:$0xff] }
 0xd30   :  { %8839 = vmatmul.msk.f32.gmra.mxu2 %vm2727_vm4, %v2455_v40 }
 0xd31   :  { %v5934_v4 = vadd.f32 %v5870_v63, %v5806_v8  ;;  %v6504_v6 = vrot.slane %v6129_v49, 5  ;;  %v6613_v60 = vrot.slane %v6129_v49, 3  ;;  %v6522_v1 = vrot.slane %v6129_v49, 6  ;;  %v18538_v8 = vld [vmem:[#allocation23_spill] sm:$0xff] }
 0xd32   :  { %v14968_v22 = vsel %vm6177_vm9, %v6129_v49, %v14611_v17  ;;  %v6540_v61 = vrot.slane %v6129_v49, 7  ;;  %v6577_v51 = vrot.slane %v6129_v49, 1  ;;  %v6595_v37 = vrot.slane %v6129_v49, 2  ;;  %v5459_v17 = vpop.f32.mrf.mxu2 }
 0xd33   :  { %v5998_v26 = vadd.f32 %v5934_v4, %v18534_v31  ;;  %v14975_v20 = vsel %vm6177_vm9, %v6504_v6, %v14599_v34  ;;  %v14979_v21 = vsel %vm6177_vm9, %v6613_v60, %v14603_v58  ;;  %v14983_v53 = vsel %vm6177_vm9, %v6522_v1, %v14607_v52  ;;  %v18537_v58 = vld [vmem:[#allocation292_spill] sm:$0xff]  ;;  %v18541_v6 = vld [vmem:[#allocation277_spill] sm:$0xff]  ;;  %v18542_v60 = vld [vmem:[#allocation335_spill] sm:$0xff] }
 0xd34   :  { %v14987_v56 = vsel %vm6177_vm9, %v6540_v61, %v14594_v41  ;;  %v14991_v4 = vsel %vm6177_vm9, %v6577_v51, %v14615_v0  ;;  %v14995_v34 = vsel %vm6177_vm9, %v6595_v37, %v14619_v35  ;;  %v6488_v40 = vrot.slane %v6129_v49, 4  ;;  %v18540_v52 = vld [vmem:[#allocation476_spill] sm:$0xff]  ;;  %v7409_v49 = vld [vmem:[%s16712_s5 + $0xd8] sm:$0xff]  ;;  %v18544_v31 = vld [vmem:[#allocation267_spill] sm:$0xff] }
 0xd35   :  { %18535 = vst [vmem:[#allocation124_spill] sm:$0xff] %v14987_v56  ;;  %v4852_v63 = vadd.f32 %v18538_v8, %v18537_v58  ;;  %v5688_v11 = vadd.f32 %v18540_v52, %v18539_v13  ;;  %v6066_v46 = vadd.f32 %v14423_v39, %v5998_v26  ;;  %v5460_v41 = vadd.f32 %v5459_v17, %v18541_v6  ;;  %v7393_v37 = vld [vmem:[%s16712_s5 + $0x58] sm:$0xff]  ;;  %v18545_v26 = vld [vmem:[#allocation67_spill] sm:$0xff]  ;;  %v18547_v8 = vld [vmem:[#allocation397_spill] sm:$0xff] }
 0xd36   :  { %18536 = vst [vmem:[#allocation441_spill] sm:$0xff] %v14995_v34  ;;  %v15005_v1 = vsel %vm6177_vm9, %v6488_v40, %v18542_v60  ;;  %v2456_v0 = vmax.f32 %v2200_v12, 0.0  ;;  %v2201_v58 = vadd.f32 %v18545_v26, %v18544_v31  ;;  %v18546_v17 = vld [vmem:[#allocation286_spill] sm:$0xff]  ;;  %7538 = vmatpush.msrb.mxu2 %v7409_v49  ;;  %7518 = vmatpush.msra.mxu1 %v7393_v37  ;;  %v18548_v6 = vld [vmem:[#allocation109_spill] sm:$0xff]  ;;  %v18550_v60 = vld [vmem:[#allocation479_spill] sm:$0xff] }
 0xd37   :  { %18543 = vst [vmem:[#allocation350_spill] sm:$0xff] %v15005_v1  ;;  %v5807_v61 = vadd.f32 %v5064_v59, %v4852_v63  ;;  %v6130_v51 = vmax.f32 %v6066_v46, 0.0  ;;  %v5871_v35 = vadd.f32 %v5688_v11, %v5460_v41  ;;  %v5067_v13 = vadd.f32 %v18547_v8, %v18546_v17  ;;  %v18551_v26 = vld [vmem:[#allocation128_spill] sm:$0xff]  ;;  %v18553_v49 = vld [vmem:[#allocation105_spill] sm:$0xff]  ;;  %v18557_v8 = vld [vmem:[#allocation107_spill] sm:$0xff] }
 0xd38   :  { %8840 = vmatmul.msk.f32.gmra.mxu2 %vm2727_vm4, %v2456_v0  ;;  %v18555_v0 = vld [vmem:[#allocation106_spill] sm:$0xff] }
 0xd39   :  { %v5935_v12 = vadd.f32 %v5871_v35, %v5807_v61  ;;  %v6654_v59 = vrot.slane %v6130_v51, 5  ;;  %v6763_v40 = vrot.slane %v6130_v51, 3  ;;  %v6672_v63 = vrot.slane %v6130_v51, 6 }
 0xd3a   :  { %v6727_v52 = vrot.slane %v6130_v51, 1  ;;  %v6690_v11 = vrot.slane %v6130_v51, 7  ;;  %v6745_v46 = vrot.slane %v6130_v51, 2  ;;  %v15020_v41 = vsel %vm6177_vm9, %v6130_v51, %v18548_v6  ;;  %v5462_v37 = vpop.f32.mrf.mxu2  ;;  %v18559_v6 = vld [vmem:[#allocation439_spill] sm:$0xff] }
 0xd3b   :  { %18549 = vst [vmem:[#allocation181_spill] sm:$0xff] %v15020_v41  ;;  %v5999_v31 = vadd.f32 %v5935_v12, %v18550_v60  ;;  %v15025_v17 = vsel %vm6177_vm9, %v6654_v59, %v18551_v26  ;;  %v15029_v61 = vsel %vm6177_vm9, %v6763_v40, %v18553_v49  ;;  %v15033_v35 = vsel %vm6177_vm9, %v6672_v63, %v18555_v0  ;;  %v18561_v60 = vld [vmem:[#allocation108_spill] sm:$0xff]  ;;  %v18563_v40 = vld [vmem:[#allocation294_spill] sm:$0xff] }
 0xd3c   :  { %18552 = vst [vmem:[#allocation148_spill] sm:$0xff] %v15025_v17  ;;  %v15037_v1 = vsel %vm6177_vm9, %v6727_v52, %v18557_v8  ;;  %v15041_v12 = vsel %vm6177_vm9, %v6690_v11, %v18559_v6  ;;  %v15045_v59 = vsel %vm6177_vm9, %v6745_v46, %v18561_v60  ;;  %v6638_v26 = vrot.slane %v6130_v51, 4  ;;  %v18564_v49 = vld [vmem:[#allocation38_spill] sm:$0xff]  ;;  %v18566_v63 = vld [vmem:[#allocation480_spill] sm:$0xff] }
 0xd3d   :  { %18554 = vst [vmem:[#allocation183_spill] sm:$0xff] %v15029_v61  ;;  %v4855_v41 = vadd.f32 %v18564_v49, %v18563_v40  ;;  %v18565_v61 = vld [vmem:[#allocation390_spill] sm:$0xff]  ;;  %v6067_v52 = vadd.f32 %v14423_v39, %v5999_v31  ;;  %v18567_v8 = vld [vmem:[#allocation280_spill] sm:$0xff]  ;;  %v2457_v6 = vmax.f32 %v2201_v58, 0.0  ;;  %v18570_v49 = vld [vmem:[#allocation85_spill] sm:$0xff] }
 0xd3e   :  { %18556 = vst [vmem:[#allocation178_spill] sm:$0xff] %v15033_v35  ;;  %v5691_v0 = vadd.f32 %v18566_v63, %v18565_v61  ;;  %v15051_v35 = vpop.f32.mrf.mxu3  ;;  %v5463_v17 = vadd.f32 %v5462_v37, %v18567_v8  ;;  %v15057_v11 = vsel %vm6177_vm9, %v6638_v26, %v14679_v7  ;;  %v18572_v26 = vld [vmem:[#allocation111_spill] sm:$0xff] }
 0xd3f   :  { %18558 = vst [vmem:[#allocation185_spill] sm:$0xff] %v15037_v1  ;;  %v5808_v46 = vadd.f32 %v5067_v13, %v4855_v41  ;;  %v6131_v60 = vmax.f32 %v6067_v52, 0.0  ;;  %v18571_v1 = vld [vmem:[#allocation461_spill] sm:$0xff] }
 0xd40   :  { %18560 = vst [vmem:[#allocation180_spill] sm:$0xff] %v15041_v12  ;;  %v5872_v51 = vadd.f32 %v5691_v0, %v5463_v17  ;;  %v18569_v12 = vld [vmem:[#allocation69_spill] sm:$0xff]  ;;  %v5070_v61 = vadd.f32 %v18571_v1, %v18570_v49  ;;  %8841 = vmatmul.msk.f32.gmra.mxu2 %vm2727_vm4, %v2457_v6  ;;  %v18575_v6 = vld [vmem:[#allocation283_spill] sm:$0xff] }
 0xd41   :  { %18562 = vst [vmem:[#allocation188_spill] sm:$0xff] %v15045_v59  ;;  %v18568_v59 = vld [vmem:[#allocation296_spill] sm:$0xff]  ;;  %v6913_v31 = vrot.slane %v6131_v60, 3  ;;  %v6840_v34 = vrot.slane %v6131_v60, 7  ;;  %v6877_v37 = vrot.slane %v6131_v60, 1  ;;  %v6822_v8 = vrot.slane %v6131_v60, 6 }
 0xd42   :  { %v4858_v40 = vadd.f32 %v18569_v12, %v18568_v59  ;;  %v5936_v63 = vadd.f32 %v5872_v51, %v5808_v46  ;;  %v6895_v56 = vrot.slane %v6131_v60, 2  ;;  %v6804_v7 = vrot.slane %v6131_v60, 5  ;;  %v5465_v17 = vpop.f32.mrf.mxu2 }
 0xd43   :  { %v15067_v13 = vsel %vm6177_vm9, %v6913_v31, %v14695_v9  ;;  %v15071_v41 = vsel %vm6177_vm9, %v6840_v34, %v14690_v44  ;;  %v15075_v1 = vsel %vm6177_vm9, %v6131_v60, %v14717_v50  ;;  %v15079_v12 = vsel %vm6177_vm9, %v6877_v37, %v14699_v25  ;;  %v18573_v34 = vld [vmem:[#allocation393_spill] sm:$0xff]  ;;  %v18578_v31 = vld [vmem:[#allocation119_spill] sm:$0xff] }
 0xd44   :  { %v6000_v58 = vadd.f32 %v5936_v63, %v18572_v26  ;;  %v15083_v59 = vsel %vm6177_vm9, %v6822_v8, %v14703_v15  ;;  %v15087_v9 = vsel %vm6177_vm9, %v6895_v56, %v14707_v32  ;;  %v15091_v44 = vsel %vm6177_vm9, %v6804_v7, %v14711_v42  ;;  %v18574_v50 = vld [vmem:[#allocation481_spill] sm:$0xff]  ;;  %v7425_v32 = vld [vmem:[%s16712_s5 + $0x158] sm:$0xff]  ;;  %v18577_v56 = vld [vmem:[#allocation43_spill] sm:$0xff] }
 0xd45   :  { %v5694_v0 = vadd.f32 %v18574_v50, %v18573_v34  ;;  %v5466_v25 = vadd.f32 %v5465_v17, %v18575_v6  ;;  %v6788_v46 = vrot.slane %v6131_v60, 4  ;;  %v5809_v51 = vadd.f32 %v5070_v61, %v4858_v40  ;;  %v18579_v8 = vld [vmem:[#allocation298_spill] sm:$0xff]  ;;  %v18580_v7 = vld [vmem:[#allocation71_spill] sm:$0xff]  ;;  %v18581_v60 = vld [vmem:[#allocation413_spill] sm:$0xff]  ;;  %7558 = vmatpush.msra.mxu3 %v7425_v32 }
 0xd46   :  { %v6068_v52 = vadd.f32 %v14423_v39, %v6000_v58  ;;  %v15097_v49 = vpop.f32.mrf.mxu3  ;;  %v2227_v37 = vadd.f32 %v18578_v31, %v18577_v56  ;;  %v4861_v26 = vadd.f32 %v18580_v7, %v18579_v8  ;;  %v18582_v40 = vld [vmem:[#allocation462_spill] sm:$0xff]  ;;  %v18588_v7 = vld [vmem:[#allocation152_spill] sm:$0xff] }
 0xd47   :  { %v5873_v63 = vadd.f32 %v5694_v0, %v5466_v25  ;;  %v15104_v42 = vsel %vm6177_vm9, %v6788_v46, %v14721_v3  ;;  %v5073_v61 = vadd.f32 %v18582_v40, %v18581_v60  ;;  %v18583_v17 = vld [vmem:[#allocation270_spill] sm:$0xff] }
 0xd48   :  { %v6132_v15 = vmax.f32 %v6068_v52, 0.0  ;;  %18576 = vst [vmem:[#allocation182_spill] sm:$0xff] %v15104_v42  ;;  %v18584_v34 = vmax.f32 %v18583_v17, 0.0  ;;  %v18585_v50 = vld [vmem:[#allocation110_spill] sm:$0xff]  ;;  %v18592_v17 = vld [vmem:[#allocation436_spill] sm:$0xff] }
 0xd49   :  { %v5937_v58 = vadd.f32 %v5873_v63, %v5809_v51  ;;  %v18587_v31 = vld [vmem:[#allocation482_spill] sm:$0xff]  ;;  %v18590_v51 = vld [vmem:[#allocation184_spill] sm:$0xff] }
 0xd4a   :  { %8842 = vmatmul.msk.f32.gmra.mxu2 %vm2727_vm4, %v18584_v34  ;;  %v15117_v0 = vsel %vm6177_vm9, %v6132_v15, %v18585_v50  ;;  %v7063_v3 = vrot.slane %v6132_v15, 3  ;;  %v6954_v52 = vrot.slane %v6132_v15, 5  ;;  %v7027_v6 = vrot.slane %v6132_v15, 1  ;;  %v5468_v40 = vpop.f32.mrf.mxu2  ;;  %v18593_v50 = vld [vmem:[#allocation171_spill] sm:$0xff]  ;;  %v18595_v42 = vld [vmem:[#allocation138_spill] sm:$0xff] }
 0xd4b   :  { %18586 = vst [vmem:[#allocation190_spill] sm:$0xff] %v15117_v0  ;;  %v6972_v25 = vrot.slane %v6132_v15, 6  ;;  %v7045_v46 = vrot.slane %v6132_v15, 2  ;;  %v6990_v56 = vrot.slane %v6132_v15, 7  ;;  %v6001_v8 = vadd.f32 %v5937_v58, %v18587_v31 }
 0xd4c   :  { %v15122_v32 = vsel %vm6177_vm9, %v7063_v3, %v18588_v7  ;;  %v15126_v63 = vsel %vm6177_vm9, %v6954_v52, %v18590_v51  ;;  %v6938_v60 = vrot.slane %v6132_v15, 4  ;;  %v15130_v34 = vsel %vm6177_vm9, %v7027_v6, %v18592_v17  ;;  %v18597_v3 = vld [vmem:[#allocation348_spill] sm:$0xff]  ;;  %v18600_v7 = vld [vmem:[#allocation49_spill] sm:$0xff] }
 0xd4d   :  { %18589 = vst [vmem:[#allocation192_spill] sm:$0xff] %v15122_v32  ;;  %v15134_v0 = vsel %vm6177_vm9, %v6972_v25, %v18593_v50  ;;  %v15138_v58 = vsel %vm6177_vm9, %v7045_v46, %v18595_v42  ;;  %v15142_v31 = vsel %vm6177_vm9, %v6990_v56, %v18597_v3  ;;  %v18599_v52 = vld [vmem:[#allocation396_spill] sm:$0xff]  ;;  %v6069_v51 = vadd.f32 %v14423_v39, %v6001_v8  ;;  %v18603_v56 = vld [vmem:[#allocation415_spill] sm:$0xff] }
 0xd4e   :  { %18591 = vst [vmem:[#allocation101_spill] sm:$0xff] %v15126_v63  ;;  %v5697_v15 = vadd.f32 %v18600_v7, %v18599_v52  ;;  %v18601_v63 = vld [vmem:[#allocation287_spill] sm:$0xff]  ;;  %v15150_v17 = vsel %vm6177_vm9, %v6938_v60, %v14770_v43  ;;  %v2483_v25 = vmax.f32 %v2227_v37, 0.0  ;;  %v5810_v50 = vadd.f32 %v5073_v61, %v4861_v26  ;;  %v18602_v46 = vld [vmem:[#allocation44_spill] sm:$0xff]  ;;  %v15156_v32 = vpop.f32.mrf.mxu3 }
 0xd4f   :  { %18594 = vst [vmem:[#allocation355_spill] sm:$0xff] %v15134_v0  ;;  %v5469_v6 = vadd.f32 %v5468_v40, %v18601_v63  ;;  %v6133_v0 = vmax.f32 %v6069_v51, 0.0  ;;  %v18604_v3 = vld [vmem:[#allocation464_spill] sm:$0xff]  ;;  %v18606_v51 = vld [vmem:[#allocation338_spill] sm:$0xff] }
 0xd50   :  { %18596 = vst [vmem:[#allocation353_spill] sm:$0xff] %v15138_v58  ;;  %v2228_v58 = vadd.f32 %v14377_v29, %v18602_v46  ;;  %v18605_v60 = vld [vmem:[#allocation484_spill] sm:$0xff]  ;;  %v18609_v46 = vld [vmem:[#allocation159_spill] sm:$0xff] }
 0xd51   :  { %18598 = vst [vmem:[#allocation126_spill] sm:$0xff] %v15142_v31  ;;  %v5874_v42 = vadd.f32 %v5697_v15, %v5469_v6  ;;  %v5076_v31 = vadd.f32 %v18604_v3, %v18603_v56  ;;  %v7140_v8 = vrot.slane %v6133_v0, 7  ;;  %v7104_v63 = vrot.slane %v6133_v0, 5  ;;  %v18611_v3 = vld [vmem:[#allocation72_spill] sm:$0xff] }
 0xd52   :  { %8843 = vmatmul.msk.f32.gmra.mxu2 %vm2727_vm4, %v2483_v25  ;;  %v7122_v40 = vrot.slane %v6133_v0, 6  ;;  %v15161_v43 = vsel %vm6177_vm9, %v6133_v0, %v14794_v27  ;;  %v7177_v37 = vrot.slane %v6133_v0, 1  ;;  %v7213_v26 = vrot.slane %v6133_v0, 3  ;;  %v5471_v25 = vpop.f32.mrf.mxu2  ;;  %v18607_v27 = vld [vmem:[#allocation352_spill] sm:$0xff] }
 0xd53   :  { %v5938_v52 = vadd.f32 %v5874_v42, %v5810_v50  ;;  %v7195_v61 = vrot.slane %v6133_v0, 2  ;;  %v15166_v7 = vsel %vm6177_vm9, %v7140_v8, %v14781_v24  ;;  %v15170_v15 = vsel %vm6177_vm9, %v7104_v63, %v14786_v47  ;;  %v18610_v47 = vld [vmem:[#allocation300_spill] sm:$0xff]  ;;  %v18612_v8 = vld [vmem:[#allocation399_spill] sm:$0xff] }
 0xd54   :  { %v15174_v6 = vsel %vm6177_vm9, %v7122_v40, %v18606_v51  ;;  %v15178_v50 = vsel %vm6177_vm9, %v7177_v37, %v18607_v27  ;;  %v15182_v42 = vsel %vm6177_vm9, %v7213_v26, %v14802_v38  ;;  %v7088_v56 = vrot.slane %v6133_v0, 4  ;;  %v18614_v51 = vld [vmem:[#allocation116_spill] sm:$0xff]  ;;  %v7408_v0 = vld [vmem:[%s16712_s5 + $0xd0] sm:$0xff] }
 0xd55   :  { %v6002_v29 = vadd.f32 %v5938_v52, %v18605_v60  ;;  %18608 = vst [vmem:[#allocation442_spill] sm:$0xff] %v15182_v42  ;;  %v15186_v24 = vsel %vm6177_vm9, %v7195_v61, %v18609_v46  ;;  %v4864_v52 = vadd.f32 %v18611_v3, %v18610_v47  ;;  %v5700_v63 = vadd.f32 %v14866_v62, %v18612_v8  ;;  %v18613_v60 = vld [vmem:[#allocation289_spill] sm:$0xff] }
 0xd56   :  { %v5472_v37 = vadd.f32 %v5471_v25, %v18613_v60  ;;  %v15196_v27 = vsel %vm6177_vm9, %v7088_v56, %v18614_v51  ;;  %v2484_v38 = vmax.f32 %v2228_v58, 0.0  ;;  %v7392_v62 = vld [vmem:[%s16712_s5 + $0x50] sm:$0xff]  ;;  %7539 = vmatpush.msrb.mxu2 %v7408_v0  ;;  %v18620_v51 = vld [vmem:[#allocation424_spill] sm:$0xff] }
 0xd57   :  { %v6070_v40 = vadd.f32 %v14423_v39, %v6002_v29  ;;  %v5811_v26 = vadd.f32 %v5076_v31, %v4864_v52  ;;  %v18615_v46 = vld [vmem:[#allocation45_spill] sm:$0xff]  ;;  %v18616_v39 = vld [vmem:[#allocation98_spill] sm:$0xff]  ;;  %7519 = vmatpush.msra.mxu1 %v7392_v62 }
 0xd58   :  { %v5875_v61 = vadd.f32 %v5700_v63, %v5472_v37  ;;  %v2229_v29 = vadd.f32 %v18616_v39, %v18615_v46  ;;  %v18617_v25 = vld [vmem:[#allocation417_spill] sm:$0xff]  ;;  %v15213_v37 = vpop.f32.mrf.mxu3  ;;  %v18624_v39 = vld [vmem:[#allocation118_spill] sm:$0xff] }
 0xd59   :  { %v6134_v42 = vmax.f32 %v6070_v40, 0.0  ;;  %v18618_v47 = vld [vmem:[#allocation465_spill] sm:$0xff] }
 0xd5a   :  { %v5079_v3 = vadd.f32 %v18618_v47, %v18617_v25  ;;  %v5939_v58 = vadd.f32 %v5875_v61, %v5811_v26  ;;  %8844 = vmatmul.msk.f32.gmra.mxu2 %vm2727_vm4, %v2484_v38  ;;  %v18621_v26 = vld [vmem:[#allocation437_spill] sm:$0xff]  ;;  %v5474_v62 = vpop.f32.mrf.mxu2  ;;  %v18625_v47 = vld [vmem:[#allocation103_spill] sm:$0xff] }
 0xd5b   :  { %v7254_v31 = vrot.slane %v6134_v42, 5  ;;  %v7272_v56 = vrot.slane %v6134_v42, 6  ;;  %v7290_v52 = vrot.slane %v6134_v42, 7  ;;  %v7363_v8 = vrot.slane %v6134_v42, 3 }
 0xd5c   :  { %v7327_v63 = vrot.slane %v6134_v42, 1  ;;  %v7345_v40 = vrot.slane %v6134_v42, 2  ;;  %v15211_v60 = vsel %vm6177_vm9, %v6134_v42, %v14856_v28  ;;  %v6003_v46 = vadd.f32 %v5939_v58, %v18620_v51  ;;  %v18629_v51 = vld [vmem:[#allocation402_spill] sm:$0xff] }
 0xd5d   :  { %18619 = vst [vmem:[#allocation161_spill] sm:$0xff] %v15211_v60  ;;  %v15218_v0 = vsel %vm6177_vm9, %v7254_v31, %v14836_v30  ;;  %v15222_v38 = vsel %vm6177_vm9, %v7272_v56, %v14840_v33  ;;  %v15226_v61 = vsel %vm6177_vm9, %v7290_v52, %v18621_v26  ;;  %v15230_v28 = vsel %vm6177_vm9, %v7363_v8, %v14844_v18  ;;  %v18627_v33 = vld [vmem:[#allocation302_spill] sm:$0xff]  ;;  %v18628_v31 = vld [vmem:[#allocation75_spill] sm:$0xff]  ;;  %v18633_v60 = vld [vmem:[#allocation41_spill] sm:$0xff] }
 0xd5e   :  { %18622 = vst [vmem:[#allocation356_spill] sm:$0xff] %v15226_v61  ;;  %v15234_v25 = vsel %vm6177_vm9, %v7327_v63, %v18624_v39  ;;  %v15238_v30 = vsel %vm6177_vm9, %v7345_v40, %v18625_v47  ;;  %v7238_v58 = vrot.slane %v6134_v42, 4  ;;  %v4867_v56 = vadd.f32 %v18628_v31, %v18627_v33  ;;  %v15247_v18 = vld [vmem:[%s16711_s4] ss:$0 sm:$0xff] }
 0xd5f   :  { %18623 = vst [vmem:[#allocation70_spill] sm:$0xff] %v15230_v28  ;;  %v5703_v52 = vadd.f32 %v14921_v36, %v18629_v51  ;;  %v6071_v8 = vadd.f32 %v15247_v18, %v6003_v46  ;;  %v18630_v63 = vld [vmem:[#allocation291_spill] sm:$0xff]  ;;  %v2485_v39 = vmax.f32 %v2229_v29, 0.0  ;;  %v18632_v51 = vld [vmem:[#allocation420_spill] sm:$0xff] }
 0xd60   :  { %18626 = vst [vmem:[#allocation357_spill] sm:$0xff] %v15238_v30  ;;  %v5475_v26 = vadd.f32 %v5474_v62, %v18630_v63  ;;  %v15253_v40 = vsel %vm6177_vm9, %v7238_v58, %v14864_v2  ;;  %v5812_v42 = vadd.f32 %v5079_v3, %v4867_v56  ;;  %v18631_v31 = vld [vmem:[#allocation47_spill] sm:$0xff]  ;;  %v5082_v30 = vadd.f32 %v18633_v60, %v18632_v51  ;;  %v18634_v58 = vld [vmem:[#allocation14_spill] sm:$0xff]  ;;  %v18640_v51 = vld [vmem:[#allocation77_spill] sm:$0xff] }
 0xd61   :  { %v6135_v47 = vmax.f32 %v6071_v8, 0.0  ;;  %v2230_v36 = vadd.f32 %v14489_v10, %v18631_v31 }
 0xd62   :  { %v5876_v33 = vadd.f32 %v5703_v52, %v5475_v26  ;;  %8845 = vmatmul.msk.f32.gmra.mxu2 %vm2727_vm4, %v2485_v39  ;;  %v18635_v52 = vld [vmem:[#allocation438_spill] sm:$0xff]  ;;  %v5477_v26 = vpop.f32.mrf.mxu2  ;;  %v18636_v39 = vld [vmem:[#allocation120_spill] sm:$0xff] }
 0xd63   :  { %v6314_v46 = vrot.slane %v6135_v47, 2  ;;  %v6218_v62 = vrot.slane %v6135_v47, 5  ;;  %v6199_v29 = vrot.slane %v6135_v47, 4  ;;  %v6256_v63 = vrot.slane %v6135_v47, 7 }
 0xd64   :  { %v5940_v28 = vadd.f32 %v5876_v33, %v5812_v42  ;;  %v6295_v61 = vrot.slane %v6135_v47, 1  ;;  %v6237_v2 = vrot.slane %v6135_v47, 6  ;;  %v15262_v3 = vsel %vm6180_vm10, %v6135_v47, %v14900_v57  ;;  %v18637_v57 = vld [vmem:[#allocation121_spill] sm:$0xff]  ;;  %v18638_v33 = vld [vmem:[#allocation440_spill] sm:$0xff] }
 0xd65   :  { %v15267_v10 = vsel %vm6180_vm10, %v6314_v46, %v14880_v45  ;;  %v15271_v60 = vsel %vm6180_vm10, %v6218_v62, %v14884_v14  ;;  %v15275_v8 = vsel %vm6180_vm10, %v6199_v29, %v18635_v52  ;;  %v15279_v42 = vsel %vm6180_vm10, %v6256_v63, %v18636_v39  ;;  %v18639_v14 = vld [vmem:[#allocation304_spill] sm:$0xff]  ;;  %v18641_v62 = vld [vmem:[#allocation405_spill] sm:$0xff] }
 0xd66   :  { %v6004_v56 = vadd.f32 %v5940_v28, %v18634_v58  ;;  %v15283_v28 = vsel %vm6180_vm10, %v6295_v61, %v18637_v57  ;;  %v15287_v45 = vsel %vm6180_vm10, %v6237_v2, %v18638_v33  ;;  %v6179_v31 = vrot.slane %v6135_v47, 3  ;;  %v15293_v58 = vpop.f32.mrf.mxu3  ;;  %v18642_v52 = vld [vmem:[#allocation293_spill] sm:$0xff] }
 0xd67   :  { %v4870_v46 = vadd.f32 %v18640_v51, %v18639_v14  ;;  %v5706_v29 = vadd.f32 %v14970_v23, %v18641_v62  ;;  %v5478_v39 = vadd.f32 %v5477_v26, %v18642_v52  ;;  %v2486_v57 = vmax.f32 %v2230_v36, 0.0  ;;  %v7424_v14 = vld [vmem:[%s16712_s5 + $0x150] sm:$0xff]  ;;  %v18643_v51 = vld [vmem:[#allocation50_spill] sm:$0xff] }
 0xd68   :  { %v6072_v63 = vadd.f32 %v15247_v18, %v6004_v56  ;;  %v15299_v61 = vsel %vm6180_vm10, %v6179_v31, %v14910_v55  ;;  %v2231_v23 = vadd.f32 %v18517_v19, %v18643_v51  ;;  %7559 = vmatpush.msra.mxu3 %v7424_v14  ;;  %v18648_v14 = vld [vmem:[#allocation179_spill] sm:$0xff] }
 0xd69   :  { %v5813_v2 = vadd.f32 %v5082_v30, %v4870_v46  ;;  %v5877_v47 = vadd.f32 %v5706_v29, %v5478_v39  ;;  %v18645_v46 = vld [vmem:[#allocation326_spill] sm:$0xff]  ;;  %v18646_v39 = vld [vmem:[#allocation175_spill] sm:$0xff] }
 0xd6a   :  { %v6136_v33 = vmax.f32 %v6072_v63, 0.0  ;;  %8846 = vmatmul.msk.f32.gmra.mxu2 %vm2727_vm4, %v2486_v57 }
 0xd6b   :  { %v5941_v62 = vadd.f32 %v5877_v47, %v5813_v2  ;;  %v5480_v2 = vpop.f32.mrf.mxu2  ;;  %v18647_v47 = vld [vmem:[#allocation139_spill] sm:$0xff] }
 0xd6c   :  { %v6392_v56 = vrot.slane %v6136_v33, 6  ;;  %v6465_v26 = vrot.slane %v6136_v33, 2  ;;  %v6410_v52 = vrot.slane %v6136_v33, 7  ;;  %v6356_v55 = vrot.slane %v6136_v33, 4 }
 0xd6d   :  { %v15309_v30 = vsel %vm6180_vm10, %v6136_v33, %v14943_v16  ;;  %v6447_v36 = vrot.slane %v6136_v33, 1  ;;  %v6374_v31 = vrot.slane %v6136_v33, 5  ;;  %v6005_v29 = vadd.f32 %v5941_v62, %v18645_v46  ;;  %v18649_v62 = vld [vmem:[#allocation147_spill] sm:$0xff] }
 0xd6e   :  { %18644 = vst [vmem:[#allocation162_spill] sm:$0xff] %v15309_v30  ;;  %v15314_v63 = vsel %vm6180_vm10, %v6392_v56, %v14931_v48  ;;  %v15318_v19 = vsel %vm6180_vm10, %v6465_v26, %v14935_v5  ;;  %v15322_v57 = vsel %vm6180_vm10, %v6410_v52, %v18646_v39  ;;  %v15326_v16 = vsel %vm6180_vm10, %v6356_v55, %v18647_v47  ;;  %v18650_v5 = vld [vmem:[#allocation407_spill] sm:$0xff]  ;;  %v15344_v30 = vpop.f32.mrf.mxu3 }
 0xd6f   :  { %v15330_v51 = vsel %vm6180_vm10, %v6447_v36, %v18648_v14  ;;  %v15334_v48 = vsel %vm6180_vm10, %v6374_v31, %v18649_v62  ;;  %v6340_v56 = vrot.slane %v6136_v33, 3  ;;  %v5709_v26 = vadd.f32 %v15051_v35, %v18650_v5  ;;  %v18651_v46 = vld [vmem:[#allocation295_spill] sm:$0xff]  ;;  %v9093_v33 = vld [vmem:[%s16710_s2 + $0x28] sm:$0xff]  ;;  %v18654_v35 = vld [vmem:[#allocation306_spill] sm:$0xff] }
 0xd70   :  { %v6073_v52 = vadd.f32 %v15247_v18, %v6005_v29  ;;  %v5481_v39 = vadd.f32 %v5480_v2, %v18651_v46  ;;  %v2487_v47 = vmax.f32 %v2231_v23, 0.0  ;;  %v18653_v31 = vld [vmem:[#allocation52_spill] sm:$0xff] }
 0xd71   :  { %v15342_v55 = vsel %vm6180_vm10, %v6340_v56, %v14959_v54  ;;  %v2232_v62 = vadd.f32 %v9093_v33, %v18653_v31  ;;  %v18660_v31 = vld [vmem:[#allocation124_spill] sm:$0xff] }
 0xd72   :  { %18652 = vst [vmem:[#allocation358_spill] sm:$0xff] %v15342_v55  ;;  %v6137_v36 = vmax.f32 %v6073_v52, 0.0  ;;  %v5878_v14 = vadd.f32 %v5709_v26, %v5481_v39  ;;  %8847 = vmatmul.msk.f32.gmra.mxu2 %vm2727_vm4, %v2487_v47  ;;  %v18656_v52 = vld [vmem:[#allocation319_spill] sm:$0xff] }
 0xd73   :  { %v5483_v33 = vpop.f32.mrf.mxu2 }
 0xd74   :  { %v5942_v5 = vadd.f32 %v5878_v14, %v18654_v35  ;;  %v6506_v29 = vrot.slane %v6137_v36, 4  ;;  %v6615_v2 = vrot.slane %v6137_v36, 2  ;;  %v6524_v46 = vrot.slane %v6137_v36, 5 }
 0xd75   :  { %v6560_v54 = vrot.slane %v6137_v36, 7  ;;  %v6542_v56 = vrot.slane %v6137_v36, 6  ;;  %v15354_v23 = vsel %vm6180_vm10, %v6137_v36, %v14991_v4  ;;  %v6597_v26 = vrot.slane %v6137_v36, 1 }
 0xd76   :  { %18655 = vst [vmem:[#allocation143_spill] sm:$0xff] %v15354_v23  ;;  %v6006_v39 = vadd.f32 %v5942_v5, %v18656_v52  ;;  %v15359_v55 = vsel %vm6180_vm10, %v6506_v29, %v14975_v20  ;;  %v15363_v14 = vsel %vm6180_vm10, %v6615_v2, %v14979_v21  ;;  %v15367_v47 = vsel %vm6180_vm10, %v6524_v46, %v14983_v53  ;;  %v18662_v5 = vld [vmem:[#allocation441_spill] sm:$0xff]  ;;  %v18663_v21 = vld [vmem:[#allocation408_spill] sm:$0xff]  ;;  %v18665_v23 = vld [vmem:[#allocation350_spill] sm:$0xff] }
 0xd77   :  { %18657 = vst [vmem:[#allocation444_spill] sm:$0xff] %v15363_v14  ;;  %v15371_v4 = vsel %vm6180_vm10, %v6560_v54, %v14968_v22  ;;  %v15375_v35 = vsel %vm6180_vm10, %v6542_v56, %v18660_v31  ;;  %v15379_v20 = vsel %vm6180_vm10, %v6597_v26, %v18662_v5  ;;  %v6490_v29 = vrot.slane %v6137_v36, 3  ;;  %v18664_v46 = vld [vmem:[#allocation297_spill] sm:$0xff]  ;;  %v7407_v26 = vld [vmem:[%s16712_s5 + $0xc8] sm:$0xff] }
 0xd78   :  { %18658 = vst [vmem:[#allocation165_spill] sm:$0xff] %v15367_v47  ;;  %v5712_v2 = vadd.f32 %v15097_v49, %v18663_v21  ;;  %v6074_v53 = vadd.f32 %v15247_v18, %v6006_v39  ;;  %v5484_v52 = vadd.f32 %v5483_v33, %v18664_v46  ;;  %v2488_v54 = vmax.f32 %v2232_v62, 0.0  ;;  %v7391_v36 = vld [vmem:[%s16712_s5 + $0x48] sm:$0xff]  ;;  %v9094_v49 = vld [vmem:[%s16710_s2 + $0x30] sm:$0xff]  ;;  %7540 = vmatpush.msrb.mxu2 %v7407_v26 }
 0xd79   :  { %18659 = vst [vmem:[#allocation362_spill] sm:$0xff] %v15371_v4  ;;  %v15387_v22 = vsel %vm6180_vm10, %v6490_v29, %v18665_v23  ;;  %v18667_v39 = vld [vmem:[#allocation81_spill] sm:$0xff]  ;;  %7520 = vmatpush.msra.mxu1 %v7391_v36  ;;  %v15399_v23 = vpop.f32.mrf.mxu3  ;;  %v18668_v62 = vld [vmem:[#allocation308_spill] sm:$0xff] }
 0xd7a   :  { %18661 = vst [vmem:[#allocation141_spill] sm:$0xff] %v15375_v35  ;;  %v6138_v4 = vmax.f32 %v6074_v53, 0.0  ;;  %v5879_v56 = vadd.f32 %v5712_v2, %v5484_v52  ;;  %v2233_v33 = vadd.f32 %v9094_v49, %v18667_v39  ;;  %8848 = vmatmul.msk.f32.gmra.mxu2 %vm2727_vm4, %v2488_v54  ;;  %v18669_v2 = vld [vmem:[#allocation185_spill] sm:$0xff]  ;;  %v18671_v35 = vld [vmem:[#allocation328_spill] sm:$0xff]  ;;  %v18673_v39 = vld [vmem:[#allocation183_spill] sm:$0xff] }
 0xd7b   :  { %18666 = vst [vmem:[#allocation360_spill] sm:$0xff] %v15387_v22  ;;  %v18672_v26 = vld [vmem:[#allocation148_spill] sm:$0xff]  ;;  %v18675_v54 = vld [vmem:[#allocation178_spill] sm:$0xff]  ;;  %v5486_v47 = vpop.f32.mrf.mxu2 }
 0xd7c   :  { %v5943_v31 = vadd.f32 %v5879_v56, %v18668_v62  ;;  %v6656_v5 = vrot.slane %v6138_v4, 4  ;;  %v6765_v29 = vrot.slane %v6138_v4, 2  ;;  %v6674_v21 = vrot.slane %v6138_v4, 5  ;;  %v18679_v14 = vld [vmem:[#allocation188_spill] sm:$0xff] }
 0xd7d   :  { %v15405_v53 = vsel %vm6180_vm10, %v6138_v4, %v18669_v2  ;;  %v6692_v46 = vrot.slane %v6138_v4, 6  ;;  %v6747_v52 = vrot.slane %v6138_v4, 1  ;;  %v6710_v22 = vrot.slane %v6138_v4, 7  ;;  %v18677_v2 = vld [vmem:[#allocation180_spill] sm:$0xff] }
 0xd7e   :  { %18670 = vst [vmem:[#allocation167_spill] sm:$0xff] %v15405_v53  ;;  %v6007_v49 = vadd.f32 %v5943_v31, %v18671_v35  ;;  %v15410_v36 = vsel %vm6180_vm10, %v6656_v5, %v18672_v26  ;;  %v15414_v56 = vsel %vm6180_vm10, %v6765_v29, %v18673_v39  ;;  %v15418_v62 = vsel %vm6180_vm10, %v6674_v21, %v18675_v54  ;;  %v18680_v31 = vld [vmem:[#allocation181_spill] sm:$0xff]  ;;  %v18682_v54 = vld [vmem:[#allocation299_spill] sm:$0xff] }
 0xd7f   :  { %18674 = vst [vmem:[#allocation145_spill] sm:$0xff] %v15414_v56  ;;  %v15422_v53 = vsel %vm6180_vm10, %v6692_v46, %v18677_v2  ;;  %v15426_v35 = vsel %vm6180_vm10, %v6747_v52, %v18679_v14  ;;  %v15430_v5 = vsel %vm6180_vm10, %v6710_v22, %v18680_v31  ;;  %v6640_v26 = vrot.slane %v6138_v4, 3  ;;  %v18681_v29 = vld [vmem:[#allocation409_spill] sm:$0xff]  ;;  %v18683_v52 = vld [vmem:[#allocation310_spill] sm:$0xff] }
 0xd80   :  { %18676 = vst [vmem:[#allocation363_spill] sm:$0xff] %v15418_v62  ;;  %v5715_v39 = vadd.f32 %v15156_v32, %v18681_v29  ;;  %v6075_v21 = vadd.f32 %v15247_v18, %v6007_v49  ;;  %v5487_v62 = vadd.f32 %v5486_v47, %v18682_v54  ;;  %v2489_v2 = vmax.f32 %v2233_v33, 0.0 }
 0xd81   :  { %18678 = vst [vmem:[#allocation115_spill] sm:$0xff] %v15422_v53  ;;  %v15438_v46 = vsel %vm6180_vm10, %v6640_v26, %v15057_v11  ;;  %v15446_v29 = vpop.f32.mrf.mxu3  ;;  %v18684_v11 = vld [vmem:[#allocation17_spill] sm:$0xff] }
 0xd82   :  { %v6139_v53 = vmax.f32 %v6075_v21, 0.0  ;;  %v5880_v14 = vadd.f32 %v5715_v39, %v5487_v62  ;;  %8849 = vmatmul.msk.f32.gmra.mxu2 %vm2727_vm4, %v2489_v2  ;;  %v18685_v2 = vld [vmem:[#allocation410_spill] sm:$0xff] }
 0xd83   :  { %v5489_v21 = vpop.f32.mrf.mxu2 }
 0xd84   :  { %v5944_v56 = vadd.f32 %v5880_v14, %v18683_v52  ;;  %v6915_v22 = vrot.slane %v6139_v53, 2  ;;  %v6842_v4 = vrot.slane %v6139_v53, 6  ;;  %v15444_v32 = vsel %vm6180_vm10, %v6139_v53, %v15079_v12  ;;  %v18686_v52 = vld [vmem:[#allocation301_spill] sm:$0xff] }
 0xd85   :  { %v6824_v49 = vrot.slane %v6139_v53, 5  ;;  %v6897_v31 = vrot.slane %v6139_v53, 1  ;;  %v6806_v47 = vrot.slane %v6139_v53, 4  ;;  %v6860_v39 = vrot.slane %v6139_v53, 7 }
 0xd86   :  { %v6008_v26 = vadd.f32 %v5944_v56, %v18684_v11  ;;  %v15451_v33 = vsel %vm6180_vm10, %v6915_v22, %v15067_v13  ;;  %v15455_v62 = vsel %vm6180_vm10, %v6842_v4, %v15071_v41  ;;  %v6790_v13 = vrot.slane %v6139_v53, 3  ;;  %v18687_v4 = vld [vmem:[#allocation182_spill] sm:$0xff] }
 0xd87   :  { %v15459_v12 = vsel %vm6180_vm10, %v6824_v49, %v15083_v59  ;;  %v15463_v54 = vsel %vm6180_vm10, %v6897_v31, %v15087_v9  ;;  %v15467_v56 = vsel %vm6180_vm10, %v6806_v47, %v15091_v44  ;;  %v5718_v14 = vadd.f32 %v15213_v37, %v18685_v2  ;;  %v7423_v44 = vld [vmem:[%s16712_s5 + $0x148] sm:$0xff]  ;;  %v18689_v37 = vld [vmem:[#allocation474_spill] sm:$0xff] }
 0xd88   :  { %v6076_v41 = vadd.f32 %v15247_v18, %v6008_v26  ;;  %v5490_v22 = vadd.f32 %v5489_v21, %v18686_v52  ;;  %v15475_v59 = vsel %vm6180_vm10, %v6860_v39, %v15075_v1  ;;  %v15479_v9 = vsel %vm6180_vm10, %v6790_v13, %v18687_v4  ;;  %7560 = vmatpush.msra.mxu3 %v7423_v44  ;;  %v18690_v47 = vld [vmem:[#allocation86_spill] sm:$0xff] }
 0xd89   :  { %18688 = vst [vmem:[#allocation170_spill] sm:$0xff] %v15479_v9  ;;  %v18691_v11 = vmax.f32 %v18690_v47, 0.0  ;;  %v18702_v9 = vld [vmem:[#allocation353_spill] sm:$0xff] }
 0xd8a   :  { %v6140_v49 = vmax.f32 %v6076_v41, 0.0  ;;  %v5881_v31 = vadd.f32 %v5718_v14, %v5490_v22  ;;  %v18693_v41 = vld [vmem:[#allocation56_spill] sm:$0xff]  ;;  %v18694_v22 = vld [vmem:[#allocation190_spill] sm:$0xff] }
 0xd8b   :  { %8850 = vmatmul.msk.f32.gmra.mxu2 %vm2727_vm4, %v18691_v11  ;;  %v5492_v11 = vpop.f32.mrf.mxu2  ;;  %vm6322_vm4 = vcmask 1048448  }
 0xd8c   :  { %v5945_v53 = vadd.f32 %v5881_v31, %v18689_v37  ;;  %v7010_v26 = vrot.slane %v6140_v49, 7  ;;  %v7065_v1 = vrot.slane %v6140_v49, 2  ;;  %v6956_v39 = vrot.slane %v6140_v49, 4  ;;  %v18696_v31 = vld [vmem:[#allocation192_spill] sm:$0xff]  ;;  %v18698_v37 = vld [vmem:[#allocation101_spill] sm:$0xff] }
 0xd8d   :  { %v15490_v21 = vsel %vm6180_vm10, %v6140_v49, %v15130_v34  ;;  %v6974_v13 = vrot.slane %v6140_v49, 5  ;;  %v7047_v2 = vrot.slane %v6140_v49, 1  ;;  %v6992_v14 = vrot.slane %v6140_v49, 6  ;;  %v18700_v34 = vld [vmem:[#allocation355_spill] sm:$0xff] }
 0xd8e   :  { %18692 = vst [vmem:[#allocation129_spill] sm:$0xff] %v15490_v21  ;;  %v6009_v52 = vadd.f32 %v5945_v53, %v18693_v41  ;;  %v15495_v4 = vsel %vm6180_vm10, %v7010_v26, %v18694_v22  ;;  %v15499_v44 = vsel %vm6180_vm10, %v7065_v1, %v18696_v31  ;;  %v15503_v47 = vsel %vm6180_vm10, %v6956_v39, %v18698_v37  ;;  %v18704_v41 = vld [vmem:[#allocation126_spill] sm:$0xff]  ;;  %v18706_v1 = vld [vmem:[#allocation411_spill] sm:$0xff] }
 0xd8f   :  { %18695 = vst [vmem:[#allocation443_spill] sm:$0xff] %v15495_v4  ;;  %v15507_v21 = vsel %vm6180_vm10, %v6974_v13, %v18700_v34  ;;  %v15511_v53 = vsel %vm6180_vm10, %v7047_v2, %v18702_v9  ;;  %v15515_v26 = vsel %vm6180_vm10, %v6992_v14, %v18704_v41  ;;  %v6940_v22 = vrot.slane %v6140_v49, 3  ;;  %v18707_v37 = vld [vmem:[#allocation303_spill] sm:$0xff]  ;;  %v18708_v34 = vld [vmem:[#allocation314_spill] sm:$0xff]  ;;  %v18710_v41 = vld [vmem:[#allocation317_spill] sm:$0xff] }
 0xd90   :  { %18697 = vst [vmem:[#allocation146_spill] sm:$0xff] %v15499_v44  ;;  %v5721_v31 = vadd.f32 %v15293_v58, %v18706_v1  ;;  %v15519_v44 = vpop.f32.mrf.mxu3  ;;  %v6077_v39 = vadd.f32 %v15247_v18, %v6009_v52 }
 0xd91   :  { %18699 = vst [vmem:[#allocation446_spill] sm:$0xff] %v15503_v47  ;;  %v5493_v47 = vadd.f32 %v5492_v11, %v18707_v37  ;;  %v15525_v13 = vsel %vm6180_vm10, %v6940_v22, %v15150_v17 }
 0xd92   :  { %18701 = vst [vmem:[#allocation173_spill] sm:$0xff] %v15507_v21  ;;  %v6141_v9 = vmax.f32 %v6077_v39, 0.0  ;;  %v18709_v21 = vld [vmem:[#allocation478_spill] sm:$0xff] }
 0xd93   :  { %18703 = vst [vmem:[#allocation365_spill] sm:$0xff] %v15511_v53  ;;  %v5882_v2 = vadd.f32 %v5721_v31, %v5493_v47  ;;  %v5100_v14 = vadd.f32 %v18709_v21, %v18708_v34  ;;  %v18711_v53 = vld [vmem:[#allocation33_spill] sm:$0xff]  ;;  %v5495_v31 = vpop.f32.mrf.mxu2  ;;  %v18712_v39 = vld [vmem:[#allocation442_spill] sm:$0xff]  ;;  %v18715_v34 = vld [vmem:[#allocation80_spill] sm:$0xff] }
 0xd94   :  { %18705 = vst [vmem:[#allocation150_spill] sm:$0xff] %v15515_v26  ;;  %v7142_v26 = vrot.slane %v6141_v9, 6  ;;  %v7106_v4 = vrot.slane %v6141_v9, 4  ;;  %v7124_v58 = vrot.slane %v6141_v9, 5  ;;  %v7160_v1 = vrot.slane %v6141_v9, 7 }
 0xd95   :  { %v5946_v49 = vadd.f32 %v5882_v2, %v18710_v41  ;;  %v15532_v52 = vsel %vm6180_vm10, %v6141_v9, %v15178_v50  ;;  %v7215_v11 = vrot.slane %v6141_v9, 2  ;;  %v7197_v37 = vrot.slane %v6141_v9, 1 }
 0xd96   :  { %v15537_v47 = vsel %vm6180_vm10, %v7142_v26, %v15166_v7  ;;  %v15541_v21 = vsel %vm6180_vm10, %v7106_v4, %v15170_v15  ;;  %v15545_v22 = vsel %vm6180_vm10, %v7124_v58, %v15174_v6  ;;  %v15549_v50 = vsel %vm6180_vm10, %v7160_v1, %v15161_v43  ;;  %v18713_v15 = vld [vmem:[#allocation318_spill] sm:$0xff] }
 0xd97   :  { %v6010_v17 = vadd.f32 %v5946_v49, %v18711_v53  ;;  %v15553_v53 = vsel %vm6180_vm10, %v7215_v11, %v18712_v39  ;;  %v15557_v7 = vsel %vm6180_vm10, %v7197_v37, %v15186_v24  ;;  %v7090_v26 = vrot.slane %v6141_v9, 3  ;;  %v18714_v4 = vld [vmem:[#allocation418_spill] sm:$0xff]  ;;  %v18716_v49 = vld [vmem:[#allocation305_spill] sm:$0xff]  ;;  %v7406_v9 = vld [vmem:[%s16712_s5 + $0xc0] sm:$0xff] }
 0xd98   :  { %v4888_v2 = vadd.f32 %v18714_v4, %v18713_v15  ;;  %v5724_v6 = vadd.f32 %v15344_v30, %v18715_v34  ;;  %v5496_v43 = vadd.f32 %v5495_v31, %v18716_v49  ;;  %v15569_v11 = vpop.f32.mrf.mxu3  ;;  %v7390_v30 = vld [vmem:[%s16712_s5 + $0x40] sm:$0xff]  ;;  %7541 = vmatpush.msrb.mxu2 %v7406_v9  ;;  %v18719_v49 = vld [vmem:[#allocation356_spill] sm:$0xff]  ;;  %v18722_v9 = vld [vmem:[#allocation357_spill] sm:$0xff] }
 0xd99   :  { %v6078_v41 = vadd.f32 %v15247_v18, %v6010_v17  ;;  %v15567_v58 = vsel %vm6180_vm10, %v7090_v26, %v15196_v27  ;;  %7521 = vmatpush.msra.mxu1 %v7390_v30 }
 0xd9a   :  { %v5819_v1 = vadd.f32 %v5100_v14, %v4888_v2  ;;  %v5883_v37 = vadd.f32 %v5724_v6, %v5496_v43  ;;  %v18718_v2 = vld [vmem:[#allocation3_spill] sm:$0xff] }
 0xd9b   :  { %v6142_v24 = vmax.f32 %v6078_v41, 0.0 }
 0xd9c   :  { %v5947_v17 = vadd.f32 %v5883_v37, %v5819_v1  ;;  %v5498_v1 = vpop.f32.mrf.mxu2  ;;  %v18720_v37 = vld [vmem:[#allocation70_spill] sm:$0xff] }
 0xd9d   :  { %v7256_v31 = vrot.slane %v6142_v24, 4  ;;  %v7274_v39 = vrot.slane %v6142_v24, 5  ;;  %v7292_v27 = vrot.slane %v6142_v24, 6  ;;  %v7365_v26 = vrot.slane %v6142_v24, 2 }
 0xd9e   :  { %v15579_v14 = vsel %vm6180_vm10, %v6142_v24, %v15234_v25  ;;  %v7347_v15 = vrot.slane %v6142_v24, 1  ;;  %v7310_v4 = vrot.slane %v6142_v24, 7  ;;  %v6011_v34 = vadd.f32 %v5947_v17, %v18718_v2  ;;  %v18723_v17 = vld [vmem:[#allocation161_spill] sm:$0xff]  ;;  %v18726_v2 = vld [vmem:[#allocation307_spill] sm:$0xff] }
 0xd9f   :  { %18717 = vst [vmem:[#allocation153_spill] sm:$0xff] %v15579_v14  ;;  %v15584_v6 = vsel %vm6180_vm10, %v7256_v31, %v15218_v0  ;;  %v15588_v41 = vsel %vm6180_vm10, %v7274_v39, %v15222_v38  ;;  %v15592_v43 = vsel %vm6180_vm10, %v7292_v27, %v18719_v49  ;;  %v15596_v25 = vsel %vm6180_vm10, %v7365_v26, %v18720_v37  ;;  %v18725_v38 = vld [vmem:[#allocation83_spill] sm:$0xff] }
 0xda0   :  { %18721 = vst [vmem:[#allocation351_spill] sm:$0xff] %v15596_v25  ;;  %v15600_v30 = vsel %vm6180_vm10, %v7347_v15, %v18722_v9  ;;  %v15604_v0 = vsel %vm6180_vm10, %v7310_v4, %v18723_v17  ;;  %v7240_v31 = vrot.slane %v6142_v24, 3  ;;  %v5727_v39 = vadd.f32 %v15399_v23, %v18725_v38  ;;  %v15614_v15 = vpop.f32.mrf.mxu3  ;;  %v18727_v9 = vld [vmem:[#allocation54_spill] sm:$0xff]  ;;  %v18728_v38 = vld [vmem:[#allocation4_spill] sm:$0xff] }
 0xda1   :  { %18724 = vst [vmem:[#allocation368_spill] sm:$0xff] %v15604_v0  ;;  %v6079_v27 = vadd.f32 %v15247_v18, %v6011_v34  ;;  %v5499_v49 = vadd.f32 %v5498_v1, %v18726_v2 }
 0xda2   :  { %v15612_v26 = vsel %vm6180_vm10, %v7240_v31, %v15253_v40 }
 0xda3   :  { %v6143_v37 = vmax.f32 %v6079_v27, 0.0  ;;  %v5884_v14 = vadd.f32 %v5727_v39, %v5499_v49 }
 0xda4   :  { %v5501_v27 = vpop.f32.mrf.mxu2 }
 0xda5   :  { %v5948_v4 = vadd.f32 %v5884_v14, %v18727_v9  ;;  %v6316_v17 = vrot.slane %v6143_v37, 1  ;;  %v6220_v24 = vrot.slane %v6143_v37, 4  ;;  %v6201_v0 = vrot.slane %v6143_v37, 3 }
 0xda6   :  { %v6258_v25 = vrot.slane %v6143_v37, 6  ;;  %v15619_v23 = vsel %vm6183_vm11, %v6143_v37, %v15283_v28  ;;  %v6239_v34 = vrot.slane %v6143_v37, 5  ;;  %v6277_v1 = vrot.slane %v6143_v37, 7 }
 0xda7   :  { %v6012_v40 = vadd.f32 %v5948_v4, %v18728_v38  ;;  %v15624_v31 = vsel %vm6183_vm11, %v6316_v17, %v15267_v10  ;;  %v15628_v39 = vsel %vm6183_vm11, %v6220_v24, %v15271_v60  ;;  %v15632_v14 = vsel %vm6183_vm11, %v6201_v0, %v15275_v8  ;;  %v18729_v60 = vld [vmem:[#allocation412_spill] sm:$0xff]  ;;  %v18730_v0 = vld [vmem:[#allocation309_spill] sm:$0xff] }
 0xda8   :  { %v15636_v28 = vsel %vm6183_vm11, %v6258_v25, %v15279_v42  ;;  %v15640_v2 = vsel %vm6183_vm11, %v6239_v34, %v15287_v45  ;;  %v15644_v10 = vsel %vm6183_vm11, %v6277_v1, %v15262_v3  ;;  %v6182_v49 = vrot.slane %v6143_v37, 2  ;;  %v7422_v45 = vld [vmem:[%s16712_s5 + $0x140] sm:$0xff]  ;;  %v18731_v3 = vld [vmem:[#allocation10_spill] sm:$0xff] }
 0xda9   :  { %v5730_v9 = vadd.f32 %v15446_v29, %v18729_v60  ;;  %v6080_v8 = vadd.f32 %v15247_v18, %v6012_v40  ;;  %v5502_v4 = vadd.f32 %v5501_v27, %v18730_v0  ;;  %7561 = vmatpush.msra.mxu3 %v7422_v45  ;;  %v15662_v27 = vpop.f32.mrf.mxu3 }
 0xdaa   :  { %v15652_v42 = vsel %vm6183_vm11, %v6182_v49, %v15299_v61  ;;  %v18733_v49 = vld [vmem:[#allocation5_spill] sm:$0xff] }
 0xdab   :  { %v6144_v25 = vmax.f32 %v6080_v8, 0.0  ;;  %v5885_v17 = vadd.f32 %v5730_v9, %v5502_v4 }
 0xdac   :  { %v5504_v4 = vpop.f32.mrf.mxu2 }
 0xdad   :  { %v5949_v37 = vadd.f32 %v5885_v17, %v18731_v3  ;;  %v6394_v24 = vrot.slane %v6144_v25, 5  ;;  %v6467_v34 = vrot.slane %v6144_v25, 1  ;;  %v6412_v29 = vrot.slane %v6144_v25, 6  ;;  %v18734_v17 = vld [vmem:[#allocation162_spill] sm:$0xff] }
 0xdae   :  { %v6358_v1 = vrot.slane %v6144_v25, 3  ;;  %v6430_v38 = vrot.slane %v6144_v25, 7  ;;  %v15660_v40 = vsel %vm6183_vm11, %v6144_v25, %v15330_v51  ;;  %v6376_v61 = vrot.slane %v6144_v25, 4 }
 0xdaf   :  { %18732 = vst [vmem:[#allocation176_spill] sm:$0xff] %v15660_v40  ;;  %v6013_v60 = vadd.f32 %v5949_v37, %v18733_v49  ;;  %v15667_v9 = vsel %vm6183_vm11, %v6394_v24, %v15314_v63  ;;  %v15671_v8 = vsel %vm6183_vm11, %v6467_v34, %v15318_v19  ;;  %v15675_v0 = vsel %vm6183_vm11, %v6412_v29, %v15322_v57  ;;  %v18737_v19 = vld [vmem:[#allocation414_spill] sm:$0xff]  ;;  %v18738_v24 = vld [vmem:[#allocation311_spill] sm:$0xff] }
 0xdb0   :  { %v15679_v51 = vsel %vm6183_vm11, %v6358_v1, %v15326_v16  ;;  %v15683_v45 = vsel %vm6183_vm11, %v6430_v38, %v18734_v17  ;;  %v15687_v63 = vsel %vm6183_vm11, %v6376_v61, %v15334_v48  ;;  %v6342_v3 = vrot.slane %v6144_v25, 2  ;;  %v18739_v29 = vld [vmem:[#allocation358_spill] sm:$0xff]  ;;  %v18740_v38 = vld [vmem:[#allocation483_spill] sm:$0xff] }
 0xdb1   :  { %18735 = vst [vmem:[#allocation163_spill] sm:$0xff] %v15683_v45  ;;  %v5733_v37 = vadd.f32 %v15519_v44, %v18737_v19  ;;  %v6081_v57 = vadd.f32 %v15247_v18, %v6013_v60  ;;  %v5505_v34 = vadd.f32 %v5504_v4, %v18738_v24  ;;  %v18742_v60 = vld [vmem:[#allocation6_spill] sm:$0xff]  ;;  %v18743_v19 = vld [vmem:[#allocation444_spill] sm:$0xff] }
 0xdb2   :  { %18736 = vst [vmem:[#allocation359_spill] sm:$0xff] %v15687_v63  ;;  %v15695_v16 = vsel %vm6183_vm11, %v6342_v3, %v18739_v29  ;;  %v18745_v29 = vld [vmem:[#allocation362_spill] sm:$0xff] }
 0xdb3   :  { %v6145_v1 = vmax.f32 %v6081_v57, 0.0  ;;  %v5886_v49 = vadd.f32 %v5733_v37, %v5505_v34  ;;  %v18744_v57 = vld [vmem:[#allocation165_spill] sm:$0xff] }
 0xdb4   :  { %v5507_v34 = vpop.f32.mrf.mxu2 }
 0xdb5   :  { %v5950_v17 = vadd.f32 %v5886_v49, %v18740_v38  ;;  %v6508_v40 = vrot.slane %v6145_v1, 3  ;;  %v6617_v45 = vrot.slane %v6145_v1, 1  ;;  %v6526_v48 = vrot.slane %v6145_v1, 4 }
 0xdb6   :  { %v6562_v61 = vrot.slane %v6145_v1, 6  ;;  %v6544_v25 = vrot.slane %v6145_v1, 5  ;;  %v6580_v63 = vrot.slane %v6145_v1, 7  ;;  %v15700_v44 = vsel %vm6183_vm11, %v6145_v1, %v15379_v20  ;;  %v18746_v20 = vld [vmem:[#allocation141_spill] sm:$0xff] }
 0xdb7   :  { %18741 = vst [vmem:[#allocation219_spill] sm:$0xff] %v15700_v44  ;;  %v6014_v4 = vadd.f32 %v5950_v17, %v18742_v60  ;;  %v15705_v3 = vsel %vm6183_vm11, %v6508_v40, %v15359_v55  ;;  %v15709_v37 = vsel %vm6183_vm11, %v6617_v45, %v18743_v19  ;;  %v15713_v24 = vsel %vm6183_vm11, %v6526_v48, %v18744_v57  ;;  %v18748_v17 = vld [vmem:[#allocation143_spill] sm:$0xff]  ;;  %v18750_v45 = vld [vmem:[#allocation416_spill] sm:$0xff]  ;;  %v15729_v19 = vpop.f32.mrf.mxu3  ;;  %v18751_v57 = vld [vmem:[#allocation313_spill] sm:$0xff] }
 0xdb8   :  { %v15717_v49 = vsel %vm6183_vm11, %v6562_v61, %v18745_v29  ;;  %v15721_v38 = vsel %vm6183_vm11, %v6544_v25, %v18746_v20  ;;  %v15725_v55 = vsel %vm6183_vm11, %v6580_v63, %v18748_v17  ;;  %v6492_v40 = vrot.slane %v6145_v1, 2  ;;  %v18752_v61 = vld [vmem:[#allocation360_spill] sm:$0xff]  ;;  %v7405_v63 = vld [vmem:[%s16712_s5 + $0xb8] sm:$0xff]  ;;  %v18754_v1 = vld [vmem:[#allocation57_spill] sm:$0xff] }
 0xdb9   :  { %18747 = vst [vmem:[#allocation186_spill] sm:$0xff] %v15721_v38  ;;  %v5736_v60 = vadd.f32 %v15569_v11, %v18750_v45  ;;  %v6082_v48 = vadd.f32 %v15247_v18, %v6014_v4  ;;  %v5508_v44 = vadd.f32 %v5507_v34, %v18751_v57  ;;  %v7389_v11 = vld [vmem:[%s16712_s5 + $0x38] sm:$0xff]  ;;  %7542 = vmatpush.msrb.mxu2 %v7405_v63  ;;  %v18757_v63 = vld [vmem:[#allocation145_spill] sm:$0xff]  ;;  %v18760_v38 = vld [vmem:[#allocation167_spill] sm:$0xff] }
 0xdba   :  { %18749 = vst [vmem:[#allocation354_spill] sm:$0xff] %v15725_v55  ;;  %v15735_v29 = vsel %vm6183_vm11, %v6492_v40, %v18752_v61  ;;  %7522 = vmatpush.msra.mxu1 %v7389_v11 }
 0xdbb   :  { %18753 = vst [vmem:[#allocation371_spill] sm:$0xff] %v15735_v29  ;;  %v6146_v25 = vmax.f32 %v6082_v48, 0.0  ;;  %v5887_v20 = vadd.f32 %v5736_v60, %v5508_v44  ;;  %v18756_v48 = vld [vmem:[#allocation7_spill] sm:$0xff] }
 0xdbc   :  { %v5510_v55 = vpop.f32.mrf.mxu2 }
 0xdbd   :  { %v5951_v4 = vadd.f32 %v5887_v20, %v18754_v1  ;;  %v6658_v17 = vrot.slane %v6146_v25, 3  ;;  %v6767_v34 = vrot.slane %v6146_v25, 1  ;;  %v6676_v45 = vrot.slane %v6146_v25, 4  ;;  %v18758_v20 = vld [vmem:[#allocation363_spill] sm:$0xff] }
 0xdbe   :  { %v6730_v57 = vrot.slane %v6146_v25, 7  ;;  %v6694_v40 = vrot.slane %v6146_v25, 5  ;;  %v15746_v44 = vsel %vm6183_vm11, %v6146_v25, %v15426_v35  ;;  %v6712_v60 = vrot.slane %v6146_v25, 6 }
 0xdbf   :  { %18755 = vst [vmem:[#allocation207_spill] sm:$0xff] %v15746_v44  ;;  %v6015_v61 = vadd.f32 %v5951_v4, %v18756_v48  ;;  %v15751_v29 = vsel %vm6183_vm11, %v6658_v17, %v15410_v36  ;;  %v15755_v11 = vsel %vm6183_vm11, %v6767_v34, %v18757_v63  ;;  %v15759_v1 = vsel %vm6183_vm11, %v6676_v45, %v18758_v20  ;;  %v18762_v44 = vld [vmem:[#allocation115_spill] sm:$0xff] }
 0xdc0   :  { %18759 = vst [vmem:[#allocation154_spill] sm:$0xff] %v15759_v1  ;;  %v15763_v35 = vsel %vm6183_vm11, %v6730_v57, %v18760_v38  ;;  %v15767_v4 = vsel %vm6183_vm11, %v6694_v40, %v18762_v44  ;;  %v15771_v36 = vsel %vm6183_vm11, %v6712_v60, %v15430_v5  ;;  %v6642_v17 = vrot.slane %v6146_v25, 2  ;;  %v18765_v34 = vld [vmem:[#allocation419_spill] sm:$0xff]  ;;  %v5123_v57 = vpop.f32.mrf.mxu1 }
 0xdc1   :  { %18761 = vst [vmem:[#allocation237_spill] sm:$0xff] %v15763_v35  ;;  %v5739_v48 = vadd.f32 %v15614_v15, %v18765_v34  ;;  %v6083_v45 = vadd.f32 %v15247_v18, %v6015_v61  ;;  %v18766_v63 = vld [vmem:[#allocation315_spill] sm:$0xff]  ;;  %v15781_v35 = vpop.f32.mrf.mxu3  ;;  %v18769_v61 = vld [vmem:[#allocation8_spill] sm:$0xff] }
 0xdc2   :  { %18763 = vst [vmem:[#allocation361_spill] sm:$0xff] %v15767_v4  ;;  %v5511_v20 = vadd.f32 %v5510_v55, %v18766_v63  ;;  %v15779_v38 = vsel %vm6183_vm11, %v6642_v17, %v15438_v46  ;;  %v18767_v4 = vld [vmem:[#allocation324_spill] sm:$0xff] }
 0xdc3   :  { %18764 = vst [vmem:[#allocation223_spill] sm:$0xff] %v15771_v36  ;;  %v6147_v40 = vmax.f32 %v6083_v45, 0.0 }
 0xdc4   :  { %v5888_v44 = vadd.f32 %v5739_v48, %v5511_v20  ;;  %v5513_v48 = vpop.f32.mrf.mxu2  ;;  %v18771_v20 = vld [vmem:[#allocation421_spill] sm:$0xff] }
 0xdc5   :  { %v6917_v60 = vrot.slane %v6147_v40, 1  ;;  %v6844_v25 = vrot.slane %v6147_v40, 5  ;;  %v6880_v36 = vrot.slane %v6147_v40, 7  ;;  %v6826_v1 = vrot.slane %v6147_v40, 4 }
 0xdc6   :  { %v5952_v5 = vadd.f32 %v5888_v44, %v18767_v4  ;;  %v15786_v15 = vsel %vm6183_vm11, %v6147_v40, %v15463_v54  ;;  %v6808_v55 = vrot.slane %v6147_v40, 3  ;;  %v6862_v4 = vrot.slane %v6147_v40, 6 }
 0xdc7   :  { %18768 = vst [vmem:[#allocation187_spill] sm:$0xff] %v15786_v15  ;;  %v15791_v46 = vsel %vm6183_vm11, %v6917_v60, %v15451_v33  ;;  %v15795_v17 = vsel %vm6183_vm11, %v6844_v25, %v15455_v62  ;;  %v15799_v45 = vsel %vm6183_vm11, %v6880_v36, %v15444_v32  ;;  %v15803_v54 = vsel %vm6183_vm11, %v6826_v1, %v15459_v12  ;;  %v18774_v36 = vld [vmem:[#allocation170_spill] sm:$0xff]  ;;  %v18786_v15 = vld [vmem:[#allocation129_spill] sm:$0xff] }
 0xdc8   :  { %v6016_v34 = vadd.f32 %v5952_v5, %v18769_v61  ;;  %v15807_v63 = vsel %vm6183_vm11, %v6808_v55, %v15467_v56  ;;  %v6792_v33 = vrot.slane %v6147_v40, 2  ;;  %v5742_v44 = vadd.f32 %v15662_v27, %v18771_v20  ;;  %v18772_v5 = vld [vmem:[#allocation53_spill] sm:$0xff]  ;;  %v7421_v56 = vld [vmem:[%s16712_s5 + $0x138] sm:$0xff]  ;;  %v5126_v27 = vpop.f32.mrf.mxu1  ;;  %v18776_v55 = vld [vmem:[#allocation24_spill] sm:$0xff] }
 0xdc9   :  { %18770 = vst [vmem:[#allocation149_spill] sm:$0xff] %v15807_v63  ;;  %v5514_v60 = vadd.f32 %v5513_v48, %v18772_v5  ;;  %v15815_v32 = vsel %vm6183_vm11, %v6862_v4, %v15475_v59  ;;  %7562 = vmatpush.msra.mxu3 %v7421_v56  ;;  %v15824_v40 = vpop.f32.mrf.mxu3  ;;  %v18777_v5 = vld [vmem:[#allocation365_spill] sm:$0xff] }
 0xdca   :  { %v6084_v62 = vadd.f32 %v15247_v18, %v6016_v34  ;;  %18773 = vst [vmem:[#allocation373_spill] sm:$0xff] %v15815_v32  ;;  %v15819_v12 = vsel %vm6183_vm11, %v6792_v33, %v18774_v36  ;;  %v18780_v36 = vld [vmem:[#allocation443_spill] sm:$0xff] }
 0xdcb   :  { %18775 = vst [vmem:[#allocation209_spill] sm:$0xff] %v15819_v12  ;;  %v5889_v25 = vadd.f32 %v5742_v44, %v5514_v60  ;;  %v18782_v12 = vld [vmem:[#allocation146_spill] sm:$0xff] }
 0xdcc   :  { %v6148_v1 = vmax.f32 %v6084_v62, 0.0  ;;  %v18779_v62 = vld [vmem:[#allocation9_spill] sm:$0xff] }
 0xdcd   :  { %v5953_v61 = vadd.f32 %v5889_v25, %v18776_v55  ;;  %v18784_v25 = vld [vmem:[#allocation446_spill] sm:$0xff]  ;;  %v5516_v63 = vpop.f32.mrf.mxu2 }
 0xdce   :  { %v7012_v34 = vrot.slane %v6148_v1, 6  ;;  %v7067_v48 = vrot.slane %v6148_v1, 1  ;;  %v6958_v59 = vrot.slane %v6148_v1, 3  ;;  %v7030_v4 = vrot.slane %v6148_v1, 7 }
 0xdcf   :  { %v6976_v20 = vrot.slane %v6148_v1, 4  ;;  %v15829_v33 = vsel %vm6183_vm11, %v6148_v1, %v18777_v5  ;;  %v6994_v44 = vrot.slane %v6148_v1, 5  ;;  %v6017_v60 = vadd.f32 %v5953_v61, %v18779_v62  ;;  %v18790_v62 = vld [vmem:[#allocation150_spill] sm:$0xff] }
 0xdd0   :  { %18778 = vst [vmem:[#allocation155_spill] sm:$0xff] %v15829_v33  ;;  %v15834_v56 = vsel %vm6183_vm11, %v7012_v34, %v18780_v36  ;;  %v15838_v32 = vsel %vm6183_vm11, %v7067_v48, %v18782_v12  ;;  %v15842_v55 = vsel %vm6183_vm11, %v6958_v59, %v18784_v25  ;;  %v15846_v5 = vsel %vm6183_vm11, %v7030_v4, %v18786_v15  ;;  %v18788_v33 = vld [vmem:[#allocation173_spill] sm:$0xff]  ;;  %v18792_v12 = vld [vmem:[#allocation422_spill] sm:$0xff] }
 0xdd1   :  { %18781 = vst [vmem:[#allocation227_spill] sm:$0xff] %v15834_v56  ;;  %v15850_v61 = vsel %vm6183_vm11, %v6976_v20, %v18788_v33  ;;  %v15854_v34 = vsel %vm6183_vm11, %v6994_v44, %v18790_v62  ;;  %v6942_v36 = vrot.slane %v6148_v1, 2  ;;  %v5745_v48 = vadd.f32 %v15729_v19, %v18792_v12  ;;  %v18793_v25 = vld [vmem:[#allocation46_spill] sm:$0xff]  ;;  %v18794_v20 = vld [vmem:[#allocation333_spill] sm:$0xff]  ;;  %v5753_v12 = vpop.f32.mrf.mxu3 }
 0xdd2   :  { %18783 = vst [vmem:[#allocation195_spill] sm:$0xff] %v15838_v32  ;;  %v6085_v59 = vadd.f32 %v15247_v18, %v6017_v60  ;;  %v5124_v33 = vadd.f32 %v5123_v57, %v18794_v20  ;;  %v18799_v20 = vld [vmem:[#allocation423_spill] sm:$0xff] }
 0xdd3   :  { %18785 = vst [vmem:[#allocation166_spill] sm:$0xff] %v15842_v55  ;;  %v5517_v55 = vadd.f32 %v5516_v63, %v18793_v25  ;;  %v15862_v15 = vsel %vm6183_vm11, %v6942_v36, %v15525_v13  ;;  %v5129_v63 = vpop.f32.mrf.mxu1  ;;  %v18796_v13 = vld [vmem:[#allocation316_spill] sm:$0xff] }
 0xdd4   :  { %18787 = vst [vmem:[#allocation151_spill] sm:$0xff] %v15846_v5  ;;  %v6149_v4 = vmax.f32 %v6085_v59, 0.0  ;;  %v18798_v59 = vld [vmem:[#allocation55_spill] sm:$0xff] }
 0xdd5   :  { %18789 = vst [vmem:[#allocation112_spill] sm:$0xff] %v15850_v61  ;;  %v5890_v5 = vadd.f32 %v5745_v48, %v5517_v55  ;;  %v18795_v61 = vld [vmem:[#allocation15_spill] sm:$0xff] }
 0xdd6   :  { %18791 = vst [vmem:[#allocation374_spill] sm:$0xff] %v15854_v34  ;;  %v7144_v44 = vrot.slane %v6149_v4, 5  ;;  %v7108_v62 = vrot.slane %v6149_v4, 3  ;;  %v7126_v1 = vrot.slane %v6149_v4, 4  ;;  %v7162_v34 = vrot.slane %v6149_v4, 6 }
 0xdd7   :  { %v5954_v56 = vadd.f32 %v5890_v5, %v18795_v61  ;;  %v7180_v32 = vrot.slane %v6149_v4, 7  ;;  %v7217_v19 = vrot.slane %v6149_v4, 1  ;;  %v15868_v60 = vsel %vm6183_vm11, %v6149_v4, %v15557_v7  ;;  %v5519_v61 = vpop.f32.mrf.mxu2 }
 0xdd8   :  { %v15873_v55 = vsel %vm6183_vm11, %v7144_v44, %v15537_v47  ;;  %v15877_v57 = vsel %vm6183_vm11, %v7108_v62, %v15541_v21  ;;  %v15881_v5 = vsel %vm6183_vm11, %v7126_v1, %v15545_v22  ;;  %v15885_v7 = vsel %vm6183_vm11, %v7162_v34, %v15549_v50  ;;  %v18797_v21 = vld [vmem:[#allocation91_spill] sm:$0xff] }
 0xdd9   :  { %v6018_v36 = vadd.f32 %v5954_v56, %v18796_v13  ;;  %v15889_v56 = vsel %vm6183_vm11, %v7180_v32, %v15532_v52  ;;  %v15893_v47 = vsel %vm6183_vm11, %v7217_v19, %v15553_v53  ;;  %v7092_v48 = vrot.slane %v6149_v4, 2  ;;  %v18800_v62 = vld [vmem:[#allocation51_spill] sm:$0xff]  ;;  %v7404_v53 = vld [vmem:[%s16712_s5 + $0xb0] sm:$0xff] }
 0xdda   :  { %v4912_v25 = vadd.f32 %v18798_v59, %v18797_v21  ;;  %v5748_v22 = vadd.f32 %v15781_v35, %v18799_v20  ;;  %v5520_v50 = vadd.f32 %v5519_v61, %v18800_v62  ;;  %v7388_v4 = vld [vmem:[%s16712_s5 + $0x30] sm:$0xff]  ;;  %v18801_v35 = vld [vmem:[#allocation332_spill] sm:$0xff]  ;;  %7543 = vmatpush.msrb.mxu2 %v7404_v53 }
 0xddb   :  { %v6086_v44 = vadd.f32 %v15247_v18, %v6018_v36  ;;  %v15903_v34 = vsel %vm6183_vm11, %v7092_v48, %v15567_v58  ;;  %v5127_v19 = vadd.f32 %v5126_v27, %v18801_v35  ;;  %7523 = vmatpush.msra.mxu1 %v7388_v4  ;;  %v18807_v53 = vld [vmem:[#allocation368_spill] sm:$0xff] }
 0xddc   :  { %v5827_v52 = vadd.f32 %v5124_v33, %v4912_v25  ;;  %v5891_v1 = vadd.f32 %v5748_v22, %v5520_v50  ;;  %v18803_v25 = vld [vmem:[#allocation25_spill] sm:$0xff]  ;;  %v18804_v50 = vld [vmem:[#allocation351_spill] sm:$0xff]  ;;  %v18810_v35 = vld [vmem:[#allocation320_spill] sm:$0xff] }
 0xddd   :  { %v6150_v32 = vmax.f32 %v6086_v44, 0.0 }
 0xdde   :  { %v5955_v13 = vadd.f32 %v5891_v1, %v5827_v52  ;;  %v18805_v52 = vld [vmem:[#allocation153_spill] sm:$0xff] }
 0xddf   :  { %v7258_v36 = vrot.slane %v6150_v32, 3  ;;  %v7276_v61 = vrot.slane %v6150_v32, 4  ;;  %v7294_v58 = vrot.slane %v6150_v32, 5  ;;  %v7367_v48 = vrot.slane %v6150_v32, 1  ;;  %v5522_v62 = vpop.f32.mrf.mxu2 }
 0xde0   :  { %v7330_v33 = vrot.slane %v6150_v32, 7  ;;  %v15914_v21 = vsel %vm6183_vm11, %v6150_v32, %v15600_v30  ;;  %v7312_v59 = vrot.slane %v6150_v32, 6  ;;  %v6019_v20 = vadd.f32 %v5955_v13, %v18803_v25  ;;  %v18812_v25 = vld [vmem:[#allocation11_spill] sm:$0xff] }
 0xde1   :  { %18802 = vst [vmem:[#allocation210_spill] sm:$0xff] %v15914_v21  ;;  %v15919_v22 = vsel %vm6183_vm11, %v7258_v36, %v15584_v6  ;;  %v15923_v27 = vsel %vm6183_vm11, %v7276_v61, %v15588_v41  ;;  %v15927_v44 = vsel %vm6183_vm11, %v7294_v58, %v15592_v43  ;;  %v15931_v30 = vsel %vm6183_vm11, %v7367_v48, %v18804_v50  ;;  %v18809_v41 = vld [vmem:[#allocation34_spill] sm:$0xff]  ;;  %v5132_v36 = vpop.f32.mrf.mxu1  ;;  %v18811_v43 = vld [vmem:[#allocation425_spill] sm:$0xff]  ;;  %v5756_v58 = vpop.f32.mrf.mxu3 }
 0xde2   :  { %v15935_v1 = vsel %vm6183_vm11, %v7330_v33, %v18805_v52  ;;  %v15939_v6 = vsel %vm6183_vm11, %v7312_v59, %v18807_v53  ;;  %v7242_v4 = vrot.slane %v6150_v32, 2  ;;  %v4915_v13 = vadd.f32 %v18810_v35, %v18809_v41  ;;  %v18813_v53 = vld [vmem:[#allocation35_spill] sm:$0xff]  ;;  %v18815_v35 = vld [vmem:[#allocation334_spill] sm:$0xff] }
 0xde3   :  { %18806 = vst [vmem:[#allocation156_spill] sm:$0xff] %v15935_v1  ;;  %v5751_v61 = vadd.f32 %v15824_v40, %v18811_v43  ;;  %v6087_v48 = vadd.f32 %v15247_v18, %v6019_v20  ;;  %v5523_v50 = vadd.f32 %v5522_v62, %v18812_v25  ;;  %v5130_v21 = vadd.f32 %v5129_v63, %v18815_v35  ;;  %v18816_v1 = vld [vmem:[#allocation426_spill] sm:$0xff] }
 0xde4   :  { %18808 = vst [vmem:[#allocation168_spill] sm:$0xff] %v15939_v6  ;;  %v15949_v33 = vsel %vm6183_vm11, %v7242_v4, %v15612_v26  ;;  %v5828_v59 = vadd.f32 %v5127_v19, %v4915_v13  ;;  %v18814_v6 = vld [vmem:[#allocation322_spill] sm:$0xff]  ;;  %v5754_v40 = vadd.f32 %v5753_v12, %v18816_v1 }
 0xde5   :  { %v6151_v52 = vmax.f32 %v6087_v48, 0.0  ;;  %v5892_v32 = vadd.f32 %v5751_v61, %v5523_v50  ;;  %v4918_v41 = vadd.f32 %v18814_v6, %v18813_v53  ;;  %v18817_v61 = vld [vmem:[#allocation26_spill] sm:$0xff] }
 0xde7   :  { %v5956_v43 = vadd.f32 %v5892_v32, %v5828_v59  ;;  %v6318_v20 = vsel %vm6186_vm12, %v6151_v52, %v15624_v31  ;;  %v6222_v62 = vrot.slane %v6151_v52, 3  ;;  %v6203_v25 = vrot.slane %v6151_v52, 2  ;;  %v5525_v48 = vpop.f32.mrf.mxu2 }
 0xde8   :  { %6319 = vrot.lane.b32.xlu1 %v6318_v20, %s9097_s8  ;;  %v6260_v26 = vrot.slane %v6151_v52, 5  ;;  %v6298_v19 = vrot.slane %v6151_v52, 7  ;;  %v6241_v4 = vrot.slane %v6151_v52, 4  ;;  %v6279_v13 = vrot.slane %v6151_v52, 6 }
 0xde9   :  { %v6020_v6 = vadd.f32 %v5956_v43, %v18817_v61  ;;  %v6223_v63 = vsel %vm6186_vm12, %v6222_v62, %v15628_v39  ;;  %v6204_v12 = vsel %vm6186_vm12, %v6203_v25, %v15632_v14  ;;  %v6185_v1 = vrot.slane %v6151_v52, 1  ;;  %v18818_v14 = vld [vmem:[#allocation12_spill] sm:$0xff]  ;;  %v5135_v35 = vpop.f32.mrf.mxu1  ;;  %v5759_v43 = vpop.f32.mrf.mxu3  ;;  %v18820_v25 = vld [vmem:[#allocation327_spill] sm:$0xff] }
 0xdea   :  { %6224 = vrot.lane.b32.xlu0 %v6223_v63, %s9098_s1  ;;  %6205 = vrot.lane.b32.xlu2 %v6204_v12, %s9099_s9  ;;  %v6261_v31 = vsel %vm6186_vm12, %v6260_v26, %v15636_v28  ;;  %v6299_v50 = vsel %vm6186_vm12, %v6298_v19, %v15619_v23  ;;  %v6242_v39 = vsel %vm6186_vm12, %v6241_v4, %v15640_v2  ;;  %v7420_v2 = vld [vmem:[%s16712_s5 + $0x130] sm:$0xff]  ;;  %v18819_v62 = vld [vmem:[#allocation36_spill] sm:$0xff] }
 0xdeb   :  { %v6088_v59 = vadd.f32 %v15247_v18, %v6020_v6  ;;  %v5526_v52 = vadd.f32 %v5525_v48, %v18818_v14  ;;  %v15975_v32 = vsel %vm6186_vm12, %v6279_v13, %v15644_v10  ;;  %v6187_v53 = vsel %vm6186_vm12, %v6185_v1, %v15652_v42  ;;  %v18821_v19 = vld [vmem:[#allocation337_spill] sm:$0xff]  ;;  %v18822_v4 = vld [vmem:[#allocation48_spill] sm:$0xff]  ;;  %7563 = vmatpush.msra.mxu3 %v7420_v2  ;;  %v18823_v1 = vld [vmem:[#allocation27_spill] sm:$0xff] }
 0xdec   :  { %6190 = vst.msk [vmem:[#allocation2] sm:$0xff] %vm6189_vm13, %v6187_v53  ;;  %v5829_v28 = vadd.f32 %v5130_v21, %v4918_v41  ;;  %v4921_v26 = vadd.f32 %v18820_v25, %v18819_v62  ;;  %v5133_v10 = vadd.f32 %v5132_v36, %v18821_v19  ;;  %v5757_v13 = vadd.f32 %v5756_v58, %v18822_v4  ;;  %v18828_v25 = vld [vmem:[#allocation37_spill] sm:$0xff] }
 0xded   :  { %v6152_v23 = vmax.f32 %v6088_v59, 0.0  ;;  %v5893_v20 = vadd.f32 %v5754_v40, %v5526_v52  ;;  %v18829_v19 = vld [vmem:[#allocation329_spill] sm:$0xff] }
 0xdee   :  { %v4924_v4 = vadd.f32 %v18829_v19, %v18828_v25  ;;  %v7403_v19 = vld [vmem:[%s16712_s5 + $0xa8] sm:$0xff] }
 0xdef   :  { %v5957_v42 = vadd.f32 %v5893_v20, %v5829_v28  ;;  %v6396_v61 = vrot.slane %v6152_v23, 4  ;;  %v6469_v21 = vsel %vm6186_vm12, %v6152_v23, %v15671_v8  ;;  %v6414_v41 = vrot.slane %v6152_v23, 5  ;;  %v5528_v14 = vpop.f32.mrf.mxu2  ;;  %v18826_v28 = vld [vmem:[#allocation13_spill] sm:$0xff]  ;;  %7544 = vmatpush.msrb.mxu2 %v7403_v19 }
 0xdf0   :  { %6262 = vrot.lane.b32.xlu1 %v6261_v31, %s9100_s0  ;;  %v6360_v40 = vrot.slane %v6152_v23, 2  ;;  %v6432_v6 = vrot.slane %v6152_v23, 6  ;;  %v6450_v63 = vrot.slane %v6152_v23, 7  ;;  %v6378_v12 = vrot.slane %v6152_v23, 3  ;;  %v18824_v31 = vld [vmem:[#allocation163_spill] sm:$0xff]  ;;  %v18847_v19 = vld [vmem:[#allocation89_spill] sm:$0xff] }
 0xdf1   :  { %v6021_v48 = vadd.f32 %v5957_v42, %v18823_v1  ;;  %v6397_v36 = vsel %vm6186_vm12, %v6396_v61, %v15667_v9  ;;  %v15995_v58 = vsel %vm6186_vm12, %v6414_v41, %v15675_v0  ;;  %v6344_v59 = vrot.slane %v6152_v23, 1  ;;  %v18825_v9 = vld [vmem:[#allocation176_spill] sm:$0xff] }
 0xdf2   :  { %6300 = vrot.lane.b32.xlu0 %v6299_v50, %s9101_s12  ;;  %6243 = vrot.lane.b32.xlu2 %v6242_v39, %s9102_s13  ;;  %v16001_v8 = vsel %vm6186_vm12, %v6360_v40, %v15679_v51  ;;  %v16005_v52 = vsel %vm6186_vm12, %v6432_v6, %v18824_v31  ;;  %v16009_v0 = vsel %vm6186_vm12, %v6450_v63, %v18825_v9  ;;  %v18827_v50 = vld [vmem:[#allocation359_spill] sm:$0xff]  ;;  %v18830_v42 = vld [vmem:[#allocation340_spill] sm:$0xff]  ;;  %v5138_v40 = vpop.f32.mrf.mxu1  ;;  %v5762_v6 = vpop.f32.mrf.mxu3  ;;  %v18833_v9 = vld [vmem:[#allocation186_spill] sm:$0xff] }
 0xdf3   :  { %v6089_v53 = vadd.f32 %v15247_v18, %v6021_v48  ;;  %v5529_v23 = vadd.f32 %v5528_v14, %v18826_v28  ;;  %v16015_v20 = vsel %vm6186_vm12, %v6378_v12, %v18827_v50  ;;  %v6345_v51 = vsel %vm6186_vm12, %v6344_v59, %v15695_v16  ;;  %v18831_v18 = vld [vmem:[#allocation427_spill] sm:$0xff]  ;;  %v18832_v59 = vld [vmem:[#allocation28_spill] sm:$0xff] }
 0xdf4   :  { %6347 = vst.msk [vmem:[#allocation2 + $0x8] sm:$0xff] %vm6189_vm13, %v6345_v51  ;;  %v5830_v39 = vadd.f32 %v5133_v10, %v4921_v26  ;;  %v5136_v61 = vadd.f32 %v5135_v35, %v18830_v42  ;;  %v5760_v41 = vadd.f32 %v5759_v43, %v18831_v18  ;;  %v18836_v50 = vld [vmem:[#allocation219_spill] sm:$0xff]  ;;  %v7387_v42 = vld [vmem:[%s16712_s5 + $0x28] sm:$0xff] }
 0xdf5   :  { %v6153_v2 = vmax.f32 %v6089_v53, 0.0  ;;  %v5894_v62 = vadd.f32 %v5757_v13, %v5529_v23  ;;  %v18834_v53 = vld [vmem:[#allocation354_spill] sm:$0xff]  ;;  %v18837_v51 = vld [vmem:[#allocation371_spill] sm:$0xff]  ;;  %7524 = vmatpush.msra.mxu1 %v7387_v42 }
 0xdf6   :  { %v18838_v18 = vld [vmem:[#allocation39_spill] sm:$0xff] }
 0xdf7   :  { %v5958_v63 = vadd.f32 %v5894_v62, %v5830_v39  ;;  %v6510_v12 = vrot.slane %v6153_v2, 2  ;;  %v16026_v1 = vsel %vm6186_vm12, %v6153_v2, %v15709_v37  ;;  %v6528_v16 = vrot.slane %v6153_v2, 3  ;;  %v5531_v37 = vpop.f32.mrf.mxu2  ;;  %v18848_v42 = vld [vmem:[#allocation223_spill] sm:$0xff] }
 0xdf8   :  { %6398 = vrot.lane.b32.xlu1 %v6397_v36, %s9102_s13  ;;  %v6564_v26 = vrot.slane %v6153_v2, 5  ;;  %v6546_v10 = vrot.slane %v6153_v2, 4  ;;  %v6582_v13 = vrot.slane %v6153_v2, 6  ;;  %v6600_v48 = vrot.slane %v6153_v2, 7 }
 0xdf9   :  { %v6022_v14 = vadd.f32 %v5958_v63, %v18832_v59  ;;  %v16032_v35 = vsel %vm6186_vm12, %v6510_v12, %v15705_v3  ;;  %v16036_v43 = vsel %vm6186_vm12, %v6528_v16, %v15713_v24  ;;  %v6494_v31 = vrot.slane %v6153_v2, 1  ;;  %v18839_v63 = vld [vmem:[#allocation330_spill] sm:$0xff] }
 0xdfa   :  { %6470 = vrot.lane.b32.xlu0 %v6469_v21, %s9097_s8  ;;  %6281 = vrot.lane.b32.xlu2 %v15975_v32, %s9103_s14  ;;  %v16043_v36 = vsel %vm6186_vm12, %v6564_v26, %v15717_v49  ;;  %v16047_v3 = vsel %vm6186_vm12, %v6546_v10, %v18833_v9  ;;  %v16051_v24 = vsel %vm6186_vm12, %v6582_v13, %v18834_v53  ;;  %v16056_v21 = vld [vmem:[%s16711_s4] ss:$0 sm:$0xff]  ;;  %v18835_v32 = vld [vmem:[#allocation88_spill] sm:$0xff]  ;;  %v18840_v16 = vld [vmem:[#allocation342_spill] sm:$0xff]  ;;  %v5141_v9 = vpop.f32.mrf.mxu1 }
 0xdfb   :  { %v6090_v28 = vadd.f32 %v16056_v21, %v6022_v14  ;;  %v5532_v23 = vadd.f32 %v5531_v37, %v18835_v32  ;;  %v16062_v49 = vsel %vm6186_vm12, %v6600_v48, %v18836_v50  ;;  %v6495_v39 = vsel %vm6186_vm12, %v6494_v31, %v18837_v51  ;;  %v18841_v10 = vld [vmem:[#allocation321_spill] sm:$0xff]  ;;  %v18843_v32 = vld [vmem:[#allocation154_spill] sm:$0xff] }
 0xdfc   :  { %6497 = vst.msk [vmem:[#allocation2 + $0x10] sm:$0xff] %vm6189_vm13, %v6495_v39  ;;  %v5831_v2 = vadd.f32 %v5136_v61, %v4924_v4  ;;  %v4927_v12 = vadd.f32 %v18839_v63, %v18838_v18  ;;  %v5139_v26 = vadd.f32 %v5138_v40, %v18840_v16  ;;  %v5763_v13 = vadd.f32 %v5762_v6, %v18841_v10  ;;  %v5765_v40 = vpop.f32.mrf.mxu3  ;;  %v18842_v53 = vld [vmem:[#allocation29_spill] sm:$0xff] }
 0xdfd   :  { %v6154_v62 = vmax.f32 %v6090_v28, 0.0  ;;  %v5895_v25 = vadd.f32 %v5760_v41, %v5532_v23  ;;  %v18844_v51 = vld [vmem:[#allocation237_spill] sm:$0xff] }
 0xdfe   :  { %v18845_v39 = vld [vmem:[#allocation361_spill] sm:$0xff]  ;;  %v5832_v16 = vadd.f32 %v5139_v26, %v4927_v12 }
 0xdff   :  { %v5959_v4 = vadd.f32 %v5895_v25, %v5831_v2  ;;  %v6660_v61 = vrot.slane %v6154_v62, 2  ;;  %v16079_v41 = vsel %vm6186_vm12, %v6154_v62, %v15755_v11  ;;  %v6678_v48 = vrot.slane %v6154_v62, 3  ;;  %v5534_v50 = vpop.f32.mrf.mxu2 }
 0xe00   :  { %6416 = vrot.lane.b32.xlu1 %v15995_v58, %s9100_s0  ;;  %v6732_v59 = vrot.slane %v6154_v62, 6  ;;  %v6696_v14 = vrot.slane %v6154_v62, 4  ;;  %v6750_v31 = vrot.slane %v6154_v62, 7  ;;  %v6714_v37 = vrot.slane %v6154_v62, 5  ;;  %v7419_v58 = vld [vmem:[%s16712_s5 + $0x128] sm:$0xff] }
 0xe01   :  { %v6023_v6 = vadd.f32 %v5959_v4, %v18842_v53  ;;  %v16086_v28 = vsel %vm6186_vm12, %v6660_v61, %v15751_v29  ;;  %v16090_v11 = vsel %vm6186_vm12, %v6678_v48, %v18843_v32  ;;  %v6644_v23 = vrot.slane %v6154_v62, 1  ;;  %v18846_v62 = vld [vmem:[#allocation207_spill] sm:$0xff]  ;;  %7564 = vmatpush.msra.mxu3 %v7419_v58  ;;  %v18849_v61 = vld [vmem:[#allocation40_spill] sm:$0xff] }
 0xe02   :  { %6362 = vrot.lane.b32.xlu0 %v16001_v8, %s9099_s9  ;;  %6434 = vrot.lane.b32.xlu2 %v16005_v52, %s9103_s14  ;;  %v16101_v29 = vsel %vm6186_vm12, %v6732_v59, %v18844_v51  ;;  %v16105_v2 = vsel %vm6186_vm12, %v6696_v14, %v18845_v39  ;;  %v16109_v25 = vsel %vm6186_vm12, %v6750_v31, %v18846_v62  ;;  %v18850_v48 = vld [vmem:[#allocation331_spill] sm:$0xff]  ;;  %v18851_v14 = vld [vmem:[#allocation344_spill] sm:$0xff] }
 0xe03   :  { %v6091_v8 = vadd.f32 %v16056_v21, %v6023_v6  ;;  %v5535_v52 = vadd.f32 %v5534_v50, %v18847_v19  ;;  %v16115_v18 = vsel %vm6186_vm12, %v6714_v37, %v18848_v42  ;;  %v6645_v63 = vsel %vm6186_vm12, %v6644_v23, %v15779_v38  ;;  %v18852_v53 = vld [vmem:[#allocation323_spill] sm:$0xff]  ;;  %v18853_v23 = vld [vmem:[#allocation30_spill] sm:$0xff]  ;;  %v5144_v19 = vpop.f32.mrf.mxu1 }
 0xe04   :  { %6647 = vst.msk [vmem:[#allocation2 + $0x18] sm:$0xff] %vm6189_vm13, %v6645_v63  ;;  %v4930_v59 = vadd.f32 %v18850_v48, %v18849_v61  ;;  %v5142_v31 = vadd.f32 %v5141_v9, %v18851_v14  ;;  %v5766_v6 = vadd.f32 %v5765_v40, %v18852_v53  ;;  %v18854_v62 = vld [vmem:[#allocation187_spill] sm:$0xff]  ;;  %v18859_v14 = vld [vmem:[#allocation42_spill] sm:$0xff] }
 0xe05   :  { %v6155_v10 = vmax.f32 %v6091_v8, 0.0  ;;  %v5896_v4 = vadd.f32 %v5763_v13, %v5535_v52  ;;  %v18855_v8 = vld [vmem:[#allocation149_spill] sm:$0xff]  ;;  %v5768_v52 = vpop.f32.mrf.mxu3  ;;  %v18860_v53 = vld [vmem:[#allocation431_spill] sm:$0xff] }
 0xe07   :  { %v5960_v32 = vadd.f32 %v5896_v4, %v5832_v16  ;;  %v16126_v37 = vsel %vm6186_vm12, %v6155_v10, %v15791_v46  ;;  %v6846_v50 = vrot.slane %v6155_v10, 4  ;;  %v6882_v58 = vrot.slane %v6155_v10, 6  ;;  %v5537_v39 = vpop.f32.mrf.mxu2  ;;  %v18857_v16 = vld [vmem:[#allocation373_spill] sm:$0xff] }
 0xe08   :  { %6452 = vrot.lane.b32.xlu1 %v16009_v0, %s9101_s12  ;;  %v6828_v38 = vrot.slane %v6155_v10, 3  ;;  %v6900_v12 = vrot.slane %v6155_v10, 7  ;;  %v6810_v26 = vrot.slane %v6155_v10, 2  ;;  %v6864_v13 = vrot.slane %v6155_v10, 5 }
 0xe09   :  { %v6024_v51 = vadd.f32 %v5960_v32, %v18853_v23  ;;  %v16133_v9 = vsel %vm6186_vm12, %v6846_v50, %v15795_v17  ;;  %v16137_v40 = vsel %vm6186_vm12, %v6882_v58, %v15799_v45  ;;  %v6794_v46 = vrot.slane %v6155_v10, 1  ;;  %v18861_v50 = vld [vmem:[#allocation73_spill] sm:$0xff] }
 0xe0a   :  { %6380 = vrot.lane.b32.xlu0 %v16015_v20, %s9098_s1  ;;  %6512 = vrot.lane.b32.xlu2 %v16032_v35, %s9099_s9  ;;  %v16145_v0 = vsel %vm6186_vm12, %v6828_v38, %v15803_v54  ;;  %v16149_v17 = vsel %vm6186_vm12, %v6900_v12, %v18854_v62  ;;  %v16153_v45 = vsel %vm6186_vm12, %v6810_v26, %v18855_v8  ;;  %v18856_v20 = vld [vmem:[#allocation90_spill] sm:$0xff]  ;;  %v18858_v54 = vld [vmem:[#allocation209_spill] sm:$0xff]  ;;  %v18864_v62 = vld [vmem:[#allocation31_spill] sm:$0xff] }
 0xe0b   :  { %v6092_v42 = vadd.f32 %v16056_v21, %v6024_v51  ;;  %v5538_v63 = vadd.f32 %v5537_v39, %v18856_v20  ;;  %v16159_v35 = vsel %vm6186_vm12, %v6864_v13, %v18857_v16  ;;  %v6795_v10 = vsel %vm6186_vm12, %v6794_v46, %v18858_v54  ;;  %v18862_v38 = vld [vmem:[#allocation325_spill] sm:$0xff]  ;;  %v18863_v51 = vld [vmem:[#allocation195_spill] sm:$0xff] }
 0xe0c   :  { %6797 = vst.msk [vmem:[#allocation2 + $0x20] sm:$0xff] %vm6189_vm13, %v6795_v10  ;;  %v5833_v4 = vadd.f32 %v5142_v31, %v4930_v59  ;;  %v4933_v32 = vadd.f32 %v18860_v53, %v18859_v14  ;;  %v5145_v58 = vadd.f32 %v5144_v19, %v18861_v50  ;;  %v5769_v12 = vadd.f32 %v5768_v52, %v18862_v38  ;;  %v18866_v52 = vld [vmem:[#allocation166_spill] sm:$0xff]  ;;  %v7386_v54 = vld [vmem:[%s16712_s5 + $0x20] sm:$0xff]  ;;  %v18870_v53 = vld [vmem:[#allocation96_spill] sm:$0xff] }
 0xe0d   :  { %v6156_v61 = vmax.f32 %v6092_v42, 0.0  ;;  %v5897_v48 = vadd.f32 %v5766_v6, %v5538_v63  ;;  %v18865_v42 = vld [vmem:[#allocation227_spill] sm:$0xff]  ;;  %7525 = vmatpush.msra.mxu1 %v7386_v54  ;;  %v18871_v38 = vld [vmem:[#allocation374_spill] sm:$0xff] }
 0xe0e   :  { %v18867_v10 = vld [vmem:[#allocation151_spill] sm:$0xff] }
 0xe0f   :  { %v5961_v26 = vadd.f32 %v5897_v48, %v5833_v4  ;;  %v7014_v23 = vrot.slane %v6156_v61, 5  ;;  %v16170_v13 = vsel %vm6186_vm12, %v6156_v61, %v18863_v51  ;;  %v6960_v39 = vrot.slane %v6156_v61, 2  ;;  %v5540_v16 = vpop.f32.mrf.mxu2 }
 0xe10   :  { %6620 = vrot.lane.b32.xlu1 %v16026_v1, %s9097_s8  ;;  %v7032_v59 = vrot.slane %v6156_v61, 6  ;;  %v6978_v31 = vrot.slane %v6156_v61, 3  ;;  %v7050_v6 = vrot.slane %v6156_v61, 7  ;;  %v6996_v46 = vrot.slane %v6156_v61, 4  ;;  %v7402_v1 = vld [vmem:[%s16712_s5 + $0xa0] sm:$0xff] }
 0xe11   :  { %v6025_v8 = vadd.f32 %v5961_v26, %v18864_v62  ;;  %v16177_v19 = vsel %vm6186_vm12, %v7014_v23, %v18865_v42  ;;  %v16181_v20 = vsel %vm6186_vm12, %v6960_v39, %v18866_v52  ;;  %v6944_v63 = vrot.slane %v6156_v61, 1  ;;  %v18868_v61 = vld [vmem:[#allocation112_spill] sm:$0xff]  ;;  %7545 = vmatpush.msrb.mxu2 %v7402_v1 }
 0xe12   :  { %6530 = vrot.lane.b32.xlu0 %v16036_v43, %s9098_s1  ;;  %6566 = vrot.lane.b32.xlu2 %v16043_v36, %s9100_s0  ;;  %v16195_v4 = vsel %vm6186_vm12, %v7032_v59, %v18867_v10  ;;  %v16199_v48 = vsel %vm6186_vm12, %v6978_v31, %v18868_v61  ;;  %v18869_v43 = vld [vmem:[#allocation155_spill] sm:$0xff]  ;;  %v5541_v50 = vadd.f32 %v5540_v16, %v18870_v53  ;;  %v18874_v53 = vld [vmem:[#allocation210_spill] sm:$0xff] }
 0xe13   :  { %v16203_v14 = vsel %vm6186_vm12, %v7050_v6, %v18869_v43  ;;  %v6093_v36 = vadd.f32 %v16056_v21, %v6025_v8  ;;  %v16209_v26 = vsel %vm6186_vm12, %v6996_v46, %v18871_v38  ;;  %v6945_v23 = vsel %vm6186_vm12, %v6944_v63, %v15862_v15  ;;  %v18872_v15 = vld [vmem:[#allocation60_spill] sm:$0xff] }
 0xe14   :  { %v5834_v51 = vadd.f32 %v5145_v58, %v4933_v32  ;;  %v5898_v59 = vadd.f32 %v5769_v12, %v5541_v50  ;;  %6947 = vst.msk [vmem:[#allocation2 + $0x28] sm:$0xff] %vm6189_vm13, %v6945_v23 }
 0xe15   :  { %v6157_v39 = vmax.f32 %v6093_v36, 0.0 }
 0xe16   :  { %v5962_v31 = vadd.f32 %v5898_v59, %v5834_v51  ;;  %v7415_v59 = vld [vmem:[%s16712_s5 + $0x108] sm:$0xff] }
 0xe17   :  { %v7146_v6 = vrot.slane %v6157_v39, 4  ;;  %v7110_v62 = vrot.slane %v6157_v39, 2  ;;  %v7128_v8 = vrot.slane %v6157_v39, 3  ;;  %v7164_v42 = vrot.slane %v6157_v39, 5 }
 0xe18   :  { %6548 = vrot.lane.b32.xlu1 %v16047_v3, %s9102_s13  ;;  %v7182_v52 = vrot.slane %v6157_v39, 6  ;;  %v16218_v46 = vsel %vm6186_vm12, %v6157_v39, %v15893_v47  ;;  %v7200_v16 = vrot.slane %v6157_v39, 7  ;;  %v6026_v32 = vadd.f32 %v5962_v31, %v18872_v15 }
 0xe19   :  { %v7147_v58 = vsel %vm6186_vm12, %v7146_v6, %v15873_v55  ;;  %v16225_v12 = vsel %vm6186_vm12, %v7110_v62, %v15877_v57  ;;  %v16229_v63 = vsel %vm6186_vm12, %v7128_v8, %v15881_v5  ;;  %v16237_v47 = vsel %vm6186_vm12, %v7164_v42, %v15885_v7  ;;  %v7414_v62 = vld [vmem:[%s16712_s5 + $0x100] sm:$0xff]  ;;  %v7445_v8 = vld [vmem:[%s16712_s5 + $0x1f8] sm:$0xff]  ;;  %v7444_v42 = vld [vmem:[%s16712_s5 + $0x1f0] sm:$0xff] }
 0xe1a   :  { %6584 = vrot.lane.b32.xlu0 %v16051_v24, %s9103_s14  ;;  %6602 = vrot.lane.b32.xlu2 %v16062_v49, %s9101_s12  ;;  %v16241_v55 = vsel %vm6186_vm12, %v7182_v52, %v15889_v56  ;;  %v16245_v57 = vsel %vm6186_vm12, %v7200_v16, %v15868_v60  ;;  %v7094_v5 = vrot.slane %v6157_v39, 1  ;;  %v6094_v3 = vadd.f32 %v16056_v21, %v6026_v32  ;;  %v7443_v16 = vld [vmem:[%s16712_s5 + $0x1e8] sm:$0xff] }
 0xe1c   :  { %v7095_v24 = vsel %vm6186_vm12, %v7094_v5, %v15903_v34  ;;  %v6158_v1 = vmax.f32 %v6094_v3, 0.0 }
 0xe1d   :  { %7097 = vst.msk [vmem:[#allocation2 + $0x30] sm:$0xff] %vm6189_vm13, %v7095_v24  ;;  %v7438_v24 = vld [vmem:[%s16712_s5 + $0x1c0] sm:$0xff] }
 0xe1e   :  { %v7260_v49 = vrot.slane %v6158_v1, 2  ;;  %v7278_v7 = vrot.slane %v6158_v1, 3  ;;  %v7296_v54 = vrot.slane %v6158_v1, 4  ;;  %v16253_v56 = vsel %vm6186_vm12, %v6158_v1, %v15931_v30  ;;  %v18873_v30 = vld [vmem:[#allocation156_spill] sm:$0xff] }
 0xe1f   :  { %v7332_v60 = vrot.slane %v6158_v1, 6  ;;  %v7350_v10 = vrot.slane %v6158_v1, 7  ;;  %v7314_v61 = vrot.slane %v6158_v1, 5  ;;  %v7244_v21 = vrot.slane %v6158_v1, 1  ;;  %v7459_v1 = vld [vmem:[%s16712_s5 + $0x268] sm:$0xff] }
 0xe20   :  { %6662 = vrot.lane.b32.xlu1 %v16086_v28, %s9099_s9  ;;  %v7261_v34 = vsel %vm6186_vm12, %v7260_v49, %v15919_v22  ;;  %v7279_v43 = vsel %vm6186_vm12, %v7278_v7, %v15923_v27  ;;  %v7297_v36 = vsel %vm6186_vm12, %v7296_v54, %v15927_v44  ;;  %v18875_v22 = vld [vmem:[#allocation168_spill] sm:$0xff]  ;;  %v7437_v49 = vld [vmem:[%s16712_s5 + $0x1b8] sm:$0xff]  ;;  %v7458_v7 = vld [vmem:[%s16712_s5 + $0x260] sm:$0xff] }
 0xe21   :  { %v16269_v28 = vsel %vm6186_vm12, %v7332_v60, %v18873_v30  ;;  %v16273_v50 = vsel %vm6186_vm12, %v7350_v10, %v18874_v53  ;;  %v16277_v27 = vsel %vm6186_vm12, %v7314_v61, %v18875_v22  ;;  %v7245_v44 = vsel %vm6186_vm12, %v7244_v21, %v15949_v33  ;;  %v7401_v33 = vld [vmem:[%s16712_s5 + $0x98] sm:$0xff]  ;;  %v7436_v54 = vld [vmem:[%s16712_s5 + $0x1b0] sm:$0xff]  ;;  %v7455_v30 = vld [vmem:[%s16712_s5 + $0x248] sm:$0xff] }
 0xe22   :  { %6770 = vrot.lane.b32.xlu0 %v16079_v41, %s9097_s8  ;;  %6920 = vrot.lane.b32.xlu2 %v16126_v37, %s9097_s8  ;;  %7247 = vst.msk [vmem:[#allocation2 + $0x38] sm:$0xff] %vm6189_vm13, %v7245_v44  ;;  %v7418_v41 = vld [vmem:[%s16712_s5 + $0x120] sm:$0xff] }
 0xe23   :  { %7565 = vmatpush.msra.mxu3 %v7418_v41  ;;  %7546 = vmatpush.msrb.mxu2 %v7401_v33  ;;  %v7454_v53 = vld [vmem:[%s16712_s5 + $0x240] sm:$0xff]  ;;  %v7431_v33 = vld [vmem:[%s16712_s5 + $0x188] sm:$0xff] }
 0xe28   :  { %6680 = vrot.lane.b32.xlu1 %v16090_v11, %s9098_s1  ;;  %v7385_v11 = vld [vmem:[%s16712_s5 + $0x18] sm:$0xff] }
 0xe29   :  { %7526 = vmatpush.msra.mxu1 %v7385_v11  ;;  %v7452_v11 = vld [vmem:[%s16712_s5 + $0x230] sm:$0xff] }
 0xe2a   :  { %6734 = vrot.lane.b32.xlu0 %v16101_v29, %s9103_s14  ;;  %6848 = vrot.lane.b32.xlu2 %v16133_v9, %s9102_s13  ;;  %v7382_v9 = vld [vmem:[%s16712_s5] sm:$0xff] }
 0xe30   :  { %6698 = vrot.lane.b32.xlu1 %v16105_v2, %s9102_s13  ;;  %v7417_v2 = vld [vmem:[%s16712_s5 + $0x118] sm:$0xff] }
 0xe31   :  { %7566 = vmatpush.msra.mxu3 %v7417_v2  ;;  %v7430_v2 = vld [vmem:[%s16712_s5 + $0x180] sm:$0xff] }
 0xe32   :  { %6752 = vrot.lane.b32.xlu0 %v16109_v25, %s9101_s12  ;;  %6884 = vrot.lane.b32.xlu2 %v16137_v40, %s9103_s14  ;;  %v7384_v25 = vld [vmem:[%s16712_s5 + $0x10] sm:$0xff] }
 0xe33   :  { %7527 = vmatpush.msra.mxu1 %v7384_v25  ;;  %v7400_v40 = vld [vmem:[%s16712_s5 + $0x90] sm:$0xff] }
 0xe34   :  { %7547 = vmatpush.msrb.mxu2 %v7400_v40  ;;  %v7476_v40 = vld [vmem:[%s16712_s5 + $0x2f0] sm:$0xff] }
 0xe38   :  { %6716 = vrot.lane.b32.xlu1 %v16115_v18, %s9100_s0  ;;  %v7383_v18 = vld [vmem:[%s16712_s5 + $0x8] sm:$0xff] }
 0xe39   :  { %7528 = vmatpush.msra.mxu1 %v7383_v18  ;;  %v7451_v18 = vld [vmem:[%s16712_s5 + $0x228] sm:$0xff] }
 0xe3a   :  { %6830 = vrot.lane.b32.xlu0 %v16145_v0, %s9098_s1  ;;  %6902 = vrot.lane.b32.xlu2 %v16149_v17, %s9101_s12 }
 0xe3b   :  { %7529 = vmatpush.msra.mxu1 %v7382_v9  ;;  %v7477_v9 = vld [vmem:[%s16712_s5 + $0x2f8] sm:$0xff] }
 0xe3d   :  { %7574 = vmatpush.msrb.mxu1 %v7445_v8 }
 0xe3f   :  { %7575 = vmatpush.msrb.mxu1 %v7444_v42  ;;  %v7467_v42 = vld [vmem:[%s16712_s5 + $0x2a8] sm:$0xff] }
 0xe40   :  { %6812 = vrot.lane.b32.xlu1 %v16153_v45, %s9099_s9 }
 0xe41   :  { %7576 = vmatpush.msrb.mxu1 %v7443_v16  ;;  %v7509_v16 = vld [vmem:[%s16712_s5 + $0x3f8] sm:$0xff] }
 0xe42   :  { %6866 = vrot.lane.b32.xlu0 %v16159_v35, %s9100_s0  ;;  %7016 = vrot.lane.b32.xlu2 %v16177_v19, %s9100_s0 }
 0xe44   :  { %v6206_v29 = vpop.permute.xlu2 %6205 }
 0xe45   :  { %6209 = vst.msk [vmem:[#allocation2] sm:$0xff] %vm6208_vm14, %v6206_v29 }
 0xe48   :  { %7070 = vrot.lane.b32.xlu1 %v16170_v13, %s9097_s8 }
 0xe4a   :  { %6962 = vrot.lane.b32.xlu0 %v16181_v20, %s9099_s9  ;;  %7148 = vrot.lane.b32.xlu2 %v7147_v58, %s9102_s13  ;;  %v7442_v58 = vld [vmem:[%s16712_s5 + $0x1e0] sm:$0xff] }
 0xe4b   :  { %7577 = vmatpush.msrb.mxu1 %v7442_v58  ;;  %v7465_v58 = vld [vmem:[%s16712_s5 + $0x298] sm:$0xff] }
 0xe4c   :  { %v6244_v37 = vpop.permute.xlu2 %6243 }
 0xe50   :  { %7034 = vrot.lane.b32.xlu1 %v16195_v4, %s9103_s14  ;;  %v7416_v4 = vld [vmem:[%s16712_s5 + $0x110] sm:$0xff] }
 0xe51   :  { %7567 = vmatpush.msra.mxu3 %v7416_v4  ;;  %v7473_v4 = vld [vmem:[%s16712_s5 + $0x2d8] sm:$0xff] }
 0xe52   :  { %6980 = vrot.lane.b32.xlu0 %v16199_v48, %s9098_s1  ;;  %7262 = vrot.lane.b32.xlu2 %v7261_v34, %s9099_s9  ;;  %v7399_v48 = vld [vmem:[%s16712_s5 + $0x88] sm:$0xff] }
 0xe53   :  { %7548 = vmatpush.msrb.mxu2 %v7399_v48  ;;  %7568 = vmatpush.msra.mxu3 %v7415_v59  ;;  %v7435_v34 = vld [vmem:[%s16712_s5 + $0x1a8] sm:$0xff]  ;;  %v7469_v59 = vld [vmem:[%s16712_s5 + $0x2b8] sm:$0xff] }
 0xe54   :  { %v6282_v0 = vpop.permute.xlu2 %6281 }
 0xe55   :  { %7569 = vmatpush.msra.mxu3 %v7414_v62 }
 0xe57   :  { %7614 = vmatpush.msrb.mxu3 %v7477_v9  ;;  %v7496_v9 = vld [vmem:[%s16712_s5 + $0x390] sm:$0xff] }
 0xe58   :  { %7052 = vrot.lane.b32.xlu1 %v16203_v14, %s9101_s12  ;;  %v7398_v14 = vld [vmem:[%s16712_s5 + $0x80] sm:$0xff] }
 0xe59   :  { %7549 = vmatpush.msrb.mxu2 %v7398_v14  ;;  %7615 = vmatpush.msrb.mxu3 %v7476_v40  ;;  %v7446_v14 = vld [vmem:[%s16712_s5 + $0x200] sm:$0xff] }
 0xe5a   :  { %v6320_v17 = vpop.permute.xlu1 %6319  ;;  %6998 = vrot.lane.b32.xlu0 %v16209_v26, %s9102_s13  ;;  %7280 = vrot.lane.b32.xlu2 %v7279_v43, %s9098_s1  ;;  %v7456_v43 = vld [vmem:[%s16712_s5 + $0x250] sm:$0xff]  ;;  %v7482_v40 = vld [vmem:[%s16712_s5 + $0x320] sm:$0xff] }
 0xe5c   :  { %v6225_v45 = vpop.permute.xlu0 %6224  ;;  %v16346_v35 = vpop.permute.xlu2 %6434 }
 0xe5d   :  { %6228 = vst.msk [vmem:[#allocation2] sm:$0xff] %vm6227_vm15, %v6225_v45  ;;  %v7449_v45 = vld [vmem:[%s16712_s5 + $0x218] sm:$0xff] }
 0xe5e   :  { %6247 = vst.msk [vmem:[#allocation2] sm:$0xff] %vm6246_vm0, %v6244_v37  ;;  %v7450_v37 = vld [vmem:[%s16712_s5 + $0x220] sm:$0xff] }
 0xe60   :  { %7112 = vrot.lane.b32.xlu1 %v16225_v12, %s9099_s9  ;;  %v7461_v12 = vld [vmem:[%s16712_s5 + $0x278] sm:$0xff] }
 0xe61   :  { %7594 = vmatpush.msra.mxu2 %v7461_v12 }
 0xe62   :  { %v6263_v13 = vpop.permute.xlu1 %6262  ;;  %7130 = vrot.lane.b32.xlu0 %v16229_v63, %s9098_s1  ;;  %7298 = vrot.lane.b32.xlu2 %v7297_v36, %s9102_s13  ;;  %v7440_v63 = vld [vmem:[%s16712_s5 + $0x1d0] sm:$0xff]  ;;  %v7434_v36 = vld [vmem:[%s16712_s5 + $0x1a0] sm:$0xff] }
 0xe63   :  { %6266 = vst.msk [vmem:[#allocation2] sm:$0xff] %vm6265_vm1, %v6263_v13  ;;  %v7475_v13 = vld [vmem:[%s16712_s5 + $0x2e8] sm:$0xff] }
 0xe64   :  { %v6301_v19 = vpop.permute.xlu0 %6300  ;;  %6285 = vst.msk [vmem:[#allocation2] sm:$0xff] %vm6284_vm2, %v6282_v0  ;;  %v6513_v20 = vpop.permute.xlu2 %6512  ;;  %7616 = vmatpush.msrb.mxu3 %v7475_v13 }
 0xe65   :  { %6304 = vst.msk [vmem:[#allocation2] sm:$0xff] %vm6303_vm3, %v6301_v19  ;;  %v7474_v19 = vld [vmem:[%s16712_s5 + $0x2e0] sm:$0xff] }
 0xe66   :  { %6323 = vst.msk [vmem:[#allocation2] sm:$0xff] %vm6322_vm4, %v6320_v17  ;;  %7617 = vmatpush.msrb.mxu3 %v7474_v19  ;;  %v7480_v19 = vld [vmem:[%s16712_s5 + $0x310] sm:$0xff] }
 0xe67   :  { %6515 = vst.msk [vmem:[#allocation2 + $0x10] sm:$0xff] %vm6208_vm14, %v6513_v20  ;;  %v7447_v20 = vld [vmem:[%s16712_s5 + $0x208] sm:$0xff] }
 0xe68   :  { %7166 = vrot.lane.b32.xlu1 %v16237_v47, %s9100_s0  ;;  %7618 = vmatpush.msrb.mxu3 %v7473_v4  ;;  %v7479_v4 = vld [vmem:[%s16712_s5 + $0x308] sm:$0xff] }
 0xe6a   :  { %v6399_v38 = vpop.permute.xlu1 %6398  ;;  %7370 = vrot.lane.b32.xlu0 %v16253_v56, %s9097_s8  ;;  %7334 = vrot.lane.b32.xlu2 %v16269_v28, %s9103_s14  ;;  %v7457_v56 = vld [vmem:[%s16712_s5 + $0x258] sm:$0xff] }
 0xe6b   :  { %v7433_v28 = vld [vmem:[%s16712_s5 + $0x198] sm:$0xff] }
 0xe6c   :  { %v6471_v26 = vpop.permute.xlu0 %6470  ;;  %v16375_v23 = vpop.permute.xlu2 %6566 }
 0xe6d   :  { %v7374_v51 = vld [vmem:[#allocation2] sm:$0xff] }
 0xe6e   :  { %7530 = vmatmul.f32.vlgmr.msra.gmra.mxu1 %v7374_v51  ;;  %v7471_v51 = vld [vmem:[%s16712_s5 + $0x2c8] sm:$0xff] }
 0xe70   :  { %7352 = vrot.lane.b32.xlu1 %v16273_v50, %s9101_s12  ;;  %v7432_v50 = vld [vmem:[%s16712_s5 + $0x190] sm:$0xff] }
 0xe72   :  { %v6417_v39 = vpop.permute.xlu1 %6416  ;;  %7316 = vrot.lane.b32.xlu0 %v16277_v27, %s9100_s0  ;;  %7184 = vrot.lane.b32.xlu2 %v16241_v55, %s9103_s14  ;;  %v7439_v55 = vld [vmem:[%s16712_s5 + $0x1c8] sm:$0xff]  ;;  %v7453_v27 = vld [vmem:[%s16712_s5 + $0x238] sm:$0xff] }
 0xe74   :  { %v6363_v31 = vpop.permute.xlu0 %6362  ;;  %v6603_v6 = vpop.permute.xlu2 %6602 }
 0xe75   :  { %6365 = vst.msk [vmem:[#allocation2 + $0x8] sm:$0xff] %vm6208_vm14, %v6363_v31 }
 0xe78   :  { %7220 = vrot.lane.b32.xlu1 %v16218_v46, %s9097_s8  ;;  %v7441_v46 = vld [vmem:[%s16712_s5 + $0x1d8] sm:$0xff] }
 0xe79   :  { %7578 = vmatpush.msrb.mxu1 %v7441_v46  ;;  %v7508_v46 = vld [vmem:[%s16712_s5 + $0x3f0] sm:$0xff] }
 0xe7a   :  { %v6453_v52 = vpop.permute.xlu1 %6452  ;;  %7202 = vrot.lane.b32.xlu0 %v16245_v57, %s9101_s12  ;;  %v7460_v57 = vld [vmem:[%s16712_s5 + $0x270] sm:$0xff] }
 0xe7b   :  { %7579 = vmatpush.msrb.mxu1 %v7440_v63  ;;  %7595 = vmatpush.msra.mxu2 %v7460_v57  ;;  %v7507_v57 = vld [vmem:[%s16712_s5 + $0x3e8] sm:$0xff] }
 0xe7c   :  { %v6381_v15 = vpop.permute.xlu0 %6380  ;;  %v16403_v32 = vpop.permute.xlu2 %6920 }
 0xe7d   :  { %6383 = vst.msk [vmem:[#allocation2 + $0x8] sm:$0xff] %vm6227_vm15, %v6381_v15  ;;  %7580 = vmatpush.msrb.mxu1 %v7439_v55  ;;  %7596 = vmatpush.msra.mxu2 %v7459_v1  ;;  %v7464_v55 = vld [vmem:[%s16712_s5 + $0x290] sm:$0xff]  ;;  %v7462_v1 = vld [vmem:[%s16712_s5 + $0x280] sm:$0xff] }
 0xe7e   :  { %6401 = vst.msk [vmem:[#allocation2 + $0x8] sm:$0xff] %vm6246_vm0, %v6399_v38  ;;  %v7472_v38 = vld [vmem:[%s16712_s5 + $0x2d0] sm:$0xff] }
 0xe7f   :  { %6419 = vst.msk [vmem:[#allocation2 + $0x8] sm:$0xff] %vm6265_vm1, %v6417_v39  ;;  %7581 = vmatpush.msrb.mxu1 %v7438_v24  ;;  %7597 = vmatpush.msra.mxu2 %v7458_v7  ;;  %v7470_v39 = vld [vmem:[%s16712_s5 + $0x2c0] sm:$0xff]  ;;  %v7505_v7 = vld [vmem:[%s16712_s5 + $0x3d8] sm:$0xff] }
 0xe80   :  { %6437 = vst.msk [vmem:[#allocation2 + $0x8] sm:$0xff] %vm6284_vm2, %v16346_v35  ;;  %v7448_v35 = vld [vmem:[%s16712_s5 + $0x210] sm:$0xff]  ;;  %7619 = vmatpush.msrb.mxu3 %v7472_v38  ;;  %v7506_v24 = vld [vmem:[%s16712_s5 + $0x3e0] sm:$0xff] }
 0xe81   :  { %6455 = vst.msk [vmem:[#allocation2 + $0x8] sm:$0xff] %vm6303_vm3, %v6453_v52  ;;  %7582 = vmatpush.msrb.mxu1 %v7437_v49  ;;  %7598 = vmatpush.msra.mxu2 %v7457_v56  ;;  %v7466_v52 = vld [vmem:[%s16712_s5 + $0x2a0] sm:$0xff]  ;;  %v7492_v49 = vld [vmem:[%s16712_s5 + $0x370] sm:$0xff] }
 0xe82   :  { %6473 = vst.msk [vmem:[#allocation2 + $0x8] sm:$0xff] %vm6322_vm4, %v6471_v26  ;;  %v6621_v47 = vpop.permute.xlu1 %6620  ;;  %7620 = vmatpush.msrb.mxu3 %v7471_v51 }
 0xe83   :  { %7583 = vmatpush.msrb.mxu1 %v7436_v54  ;;  %7599 = vmatpush.msra.mxu2 %v7456_v43  ;;  %v7502_v43 = vld [vmem:[%s16712_s5 + $0x3c0] sm:$0xff] }
 0xe84   :  { %v6531_v5 = vpop.permute.xlu0 %6530  ;;  %v16430_v3 = vpop.permute.xlu2 %6848  ;;  %7621 = vmatpush.msrb.mxu3 %v7470_v39 }
 0xe85   :  { %6533 = vst.msk [vmem:[#allocation2 + $0x10] sm:$0xff] %vm6227_vm15, %v6531_v5  ;;  %7584 = vmatpush.msrb.mxu1 %v7435_v34  ;;  %7600 = vmatpush.msra.mxu2 %v7455_v30  ;;  %v7493_v5 = vld [vmem:[%s16712_s5 + $0x378] sm:$0xff]  ;;  %v7488_v30 = vld [vmem:[%s16712_s5 + $0x350] sm:$0xff] }
 0xe86   :  { %7622 = vmatpush.msrb.mxu3 %v7469_v59  ;;  %v7489_v34 = vld [vmem:[%s16712_s5 + $0x358] sm:$0xff] }
 0xe87   :  { %7585 = vmatpush.msrb.mxu1 %v7434_v36  ;;  %7601 = vmatpush.msra.mxu2 %v7454_v53 }
 0xe89   :  { %v7375_v60 = vld [vmem:[#allocation2 + $0x8] sm:$0xff]  ;;  %7586 = vmatpush.msrb.mxu1 %v7433_v28  ;;  %7602 = vmatpush.msra.mxu2 %v7453_v27  ;;  %v7501_v28 = vld [vmem:[%s16712_s5 + $0x3b8] sm:$0xff] }
 0xe8a   :  { %v6549_v10 = vpop.permute.xlu1 %6548  ;;  %7550 = vmatmul.f32.vlgmr.msrb.gmra.mxu2 %v7375_v60  ;;  %v7491_v60 = vld [vmem:[%s16712_s5 + $0x368] sm:$0xff] }
 0xe8b   :  { %6551 = vst.msk [vmem:[#allocation2 + $0x10] sm:$0xff] %vm6246_vm0, %v6549_v10  ;;  %7587 = vmatpush.msrb.mxu1 %v7432_v50  ;;  %7603 = vmatpush.msra.mxu2 %v7452_v11  ;;  %v7504_v10 = vld [vmem:[%s16712_s5 + $0x3d0] sm:$0xff]  ;;  %v7487_v50 = vld [vmem:[%s16712_s5 + $0x348] sm:$0xff]  ;;  %v7498_v11 = vld [vmem:[%s16712_s5 + $0x3a0] sm:$0xff] }
 0xe8c   :  { %6569 = vst.msk [vmem:[#allocation2 + $0x10] sm:$0xff] %vm6265_vm1, %v16375_v23  ;;  %v6585_v61 = vpop.permute.xlu0 %6584  ;;  %v16454_v21 = vpop.permute.xlu2 %6884 }
 0xe8d   :  { %6587 = vst.msk [vmem:[#allocation2 + $0x10] sm:$0xff] %vm6284_vm2, %v6585_v61  ;;  %7588 = vmatpush.msrb.mxu1 %v7431_v33  ;;  %7604 = vmatpush.msra.mxu2 %v7451_v18  ;;  %v7490_v61 = vld [vmem:[%s16712_s5 + $0x360] sm:$0xff]  ;;  %v7485_v33 = vld [vmem:[%s16712_s5 + $0x338] sm:$0xff] }
 0xe8e   :  { %6605 = vst.msk [vmem:[#allocation2 + $0x10] sm:$0xff] %vm6303_vm3, %v6603_v6  ;;  %v7468_v6 = vld [vmem:[%s16712_s5 + $0x2b0] sm:$0xff] }
 0xe8f   :  { %6623 = vst.msk [vmem:[#allocation2 + $0x10] sm:$0xff] %vm6322_vm4, %v6621_v47  ;;  %7589 = vmatpush.msrb.mxu1 %v7430_v2  ;;  %7605 = vmatpush.msra.mxu2 %v7450_v37  ;;  %v7484_v2 = vld [vmem:[%s16712_s5 + $0x330] sm:$0xff]  ;;  %v7483_v37 = vld [vmem:[%s16712_s5 + $0x328] sm:$0xff] }
 0xe90   :  { %7623 = vmatpush.msrb.mxu3 %v7468_v6 }
 0xe91   :  { %7606 = vmatpush.msra.mxu2 %v7449_v45  ;;  %7634 = vmatpush.msra.mxu1 %v7493_v5  ;;  %v7481_v45 = vld [vmem:[%s16712_s5 + $0x318] sm:$0xff] }
 0xe92   :  { %v6663_v22 = vpop.permute.xlu1 %6662  ;;  %7624 = vmatpush.msrb.mxu3 %v7467_v42  ;;  %v9058_v42 = vld [vmem:[%s16713_s6] ss:$0 sm:$0xff] }
 0xe93   :  { %6665 = vst.msk [vmem:[#allocation2 + $0x18] sm:$0xff] %vm6208_vm14, %v6663_v22  ;;  %7607 = vmatpush.msra.mxu2 %v7448_v35  ;;  %7635 = vmatpush.msra.mxu1 %v7492_v49  ;;  %v7500_v22 = vld [vmem:[%s16712_s5 + $0x3b0] sm:$0xff] }
 0xe94   :  { %v6771_v44 = vpop.permute.xlu0 %6770  ;;  %v16484_v41 = vpop.permute.xlu2 %6902  ;;  %7625 = vmatpush.msrb.mxu3 %v7466_v52 }
 0xe95   :  { %7608 = vmatpush.msra.mxu2 %v7447_v20  ;;  %7636 = vmatpush.msra.mxu1 %v7491_v60 }
 0xe96   :  { %v7376_v29 = vld [vmem:[#allocation2 + $0x10] sm:$0xff]  ;;  %7626 = vmatpush.msrb.mxu3 %v7465_v58 }
 0xe97   :  { %7570 = vmatmul.f32.vlgmr.msra.gmra.mxu3 %v7376_v29  ;;  %7609 = vmatpush.msra.mxu2 %v7446_v14 }
 0xe98   :  { %7627 = vmatpush.msrb.mxu3 %v7464_v55  ;;  %7637 = vmatpush.msra.mxu1 %v7490_v61 }
 0xe99   :  { %7654 = vmatpush.msrb.mxu2 %v7509_v16 }
 0xe9a   :  { %v6681_v25 = vpop.permute.xlu1 %6680  ;;  %7638 = vmatpush.msra.mxu1 %v7489_v34 }
 0xe9b   :  { %6683 = vst.msk [vmem:[#allocation2 + $0x18] sm:$0xff] %vm6227_vm15, %v6681_v25  ;;  %7655 = vmatpush.msrb.mxu2 %v7508_v46  ;;  %v7497_v25 = vld [vmem:[%s16712_s5 + $0x398] sm:$0xff] }
 0xe9c   :  { %v6735_v0 = vpop.permute.xlu0 %6734  ;;  %v16508_v17 = vpop.permute.xlu2 %7016  ;;  %7639 = vmatpush.msra.mxu1 %v7488_v30 }
 0xe9d   :  { %7656 = vmatpush.msrb.mxu2 %v7507_v57 }
 0xe9e   :  { %7640 = vmatpush.msra.mxu1 %v7487_v50 }
 0xe9f   :  { %7657 = vmatpush.msrb.mxu2 %v7506_v24 }
 0xea1   :  { %7658 = vmatpush.msrb.mxu2 %v7505_v7 }
 0xea2   :  { %v6699_v48 = vpop.permute.xlu1 %6698 }
 0xea3   :  { %6701 = vst.msk [vmem:[#allocation2 + $0x18] sm:$0xff] %vm6246_vm0, %v6699_v48  ;;  %7659 = vmatpush.msrb.mxu2 %v7504_v10  ;;  %v7478_v48 = vld [vmem:[%s16712_s5 + $0x300] sm:$0xff] }
 0xea4   :  { %v6753_v26 = vpop.permute.xlu0 %6752  ;;  %v16535_v23 = vpop.permute.xlu2 %7148 }
 0xeaa   :  { %v6717_v31 = vpop.permute.xlu1 %6716 }
 0xeab   :  { %6719 = vst.msk [vmem:[#allocation2 + $0x18] sm:$0xff] %vm6265_vm1, %v6717_v31 }
 0xeac   :  { %6737 = vst.msk [vmem:[#allocation2 + $0x18] sm:$0xff] %vm6284_vm2, %v6735_v0  ;;  %v6831_v62 = vpop.permute.xlu0 %6830  ;;  %v7263_v8 = vpop.permute.xlu2 %7262  ;;  %v7495_v0 = vld [vmem:[%s16712_s5 + $0x388] sm:$0xff] }
 0xead   :  { %6755 = vst.msk [vmem:[#allocation2 + $0x18] sm:$0xff] %vm6303_vm3, %v6753_v26 }
 0xeae   :  { %6773 = vst.msk [vmem:[#allocation2 + $0x18] sm:$0xff] %vm6322_vm4, %v6771_v44  ;;  %v7486_v44 = vld [vmem:[%s16712_s5 + $0x340] sm:$0xff] }
 0xeaf   :  { %7265 = vst.msk [vmem:[#allocation2 + $0x38] sm:$0xff] %vm6208_vm14, %v7263_v8  ;;  %7641 = vmatpush.msra.mxu1 %v7486_v44 }
 0xeb1   :  { %7642 = vmatpush.msra.mxu1 %v7485_v33 }
 0xeb2   :  { %v6813_v15 = vpop.permute.xlu1 %6812 }
 0xeb3   :  { %6815 = vst.msk [vmem:[#allocation2 + $0x20] sm:$0xff] %vm6208_vm14, %v6813_v15  ;;  %7643 = vmatpush.msra.mxu1 %v7484_v2 }
 0xeb4   :  { %6833 = vst.msk [vmem:[#allocation2 + $0x20] sm:$0xff] %vm6227_vm15, %v6831_v62  ;;  %v6867_v12 = vpop.permute.xlu0 %6866  ;;  %v7281_v63 = vpop.permute.xlu2 %7280 }
 0xeb5   :  { %6851 = vst.msk [vmem:[#allocation2 + $0x20] sm:$0xff] %vm6246_vm0, %v16430_v3  ;;  %v7377_v47 = vld [vmem:[#allocation2 + $0x18] sm:$0xff]  ;;  %v7463_v3 = vld [vmem:[%s16712_s5 + $0x288] sm:$0xff]  ;;  %7644 = vmatpush.msra.mxu1 %v7483_v37 }
 0xeb6   :  { %6869 = vst.msk [vmem:[#allocation2 + $0x20] sm:$0xff] %vm6265_vm1, %v6867_v12  ;;  %7590 = vmatmul.f32.vlgmr.msrb.gmra.mxu1 %v7377_v47  ;;  %7628 = vmatpush.msrb.mxu3 %v7463_v3 }
 0xeb7   :  { %6887 = vst.msk [vmem:[#allocation2 + $0x20] sm:$0xff] %vm6284_vm2, %v16454_v21  ;;  %v7503_v21 = vld [vmem:[%s16712_s5 + $0x3c8] sm:$0xff]  ;;  %7645 = vmatpush.msra.mxu1 %v7482_v40 }
 0xeb8   :  { %6905 = vst.msk [vmem:[#allocation2 + $0x20] sm:$0xff] %vm6303_vm3, %v16484_v41  ;;  %7629 = vmatpush.msrb.mxu3 %v7462_v1  ;;  %7660 = vmatpush.msrb.mxu2 %v7503_v21  ;;  %v7499_v41 = vld [vmem:[%s16712_s5 + $0x3a8] sm:$0xff] }
 0xeb9   :  { %6923 = vst.msk [vmem:[#allocation2 + $0x20] sm:$0xff] %vm6322_vm4, %v16403_v32  ;;  %7646 = vmatpush.msra.mxu1 %v7481_v45 }
 0xeba   :  { %7283 = vst.msk [vmem:[#allocation2 + $0x38] sm:$0xff] %vm6227_vm15, %v7281_v63  ;;  %v7071_v54 = vpop.permute.xlu1 %7070  ;;  %7661 = vmatpush.msrb.mxu2 %v7502_v43 }
 0xebb   :  { %7647 = vmatpush.msra.mxu1 %v7480_v19 }
 0xebc   :  { %v6963_v32 = vpop.permute.xlu0 %6962  ;;  %v7299_v56 = vpop.permute.xlu2 %7298  ;;  %7662 = vmatpush.msrb.mxu2 %v7501_v28 }
 0xebd   :  { %6965 = vst.msk [vmem:[#allocation2 + $0x28] sm:$0xff] %vm6208_vm14, %v6963_v32  ;;  %7648 = vmatpush.msra.mxu1 %v7479_v4 }
 0xebe   :  { %7301 = vst.msk [vmem:[#allocation2 + $0x38] sm:$0xff] %vm6246_vm0, %v7299_v56  ;;  %7663 = vmatpush.msrb.mxu2 %v7500_v22 }
 0xebf   :  { %7649 = vmatpush.msra.mxu1 %v7478_v48 }
 0xec0   :  { %v7378_v36 = vld [vmem:[#allocation2 + $0x20] sm:$0xff]  ;;  %7664 = vmatpush.msrb.mxu2 %v7499_v41 }
 0xec1   :  { %7610 = vmatmul.f32.vlgmr.msra.gmra.mxu2 %v7378_v36 }
 0xec2   :  { %v7035_v53 = vpop.permute.xlu1 %7034  ;;  %7665 = vmatpush.msrb.mxu2 %v7498_v11 }
 0xec4   :  { %v6981_v27 = vpop.permute.xlu0 %6980  ;;  %7666 = vmatpush.msrb.mxu2 %v7497_v25  ;;  %v7335_v35 = vpop.permute.xlu2 %7334 }
 0xec5   :  { %6983 = vst.msk [vmem:[#allocation2 + $0x28] sm:$0xff] %vm6227_vm15, %v6981_v27 }
 0xec6   :  { %7667 = vmatpush.msrb.mxu2 %v7496_v9 }
 0xec8   :  { %7668 = vmatpush.msrb.mxu2 %v7495_v0 }
 0xeca   :  { %v7053_v29 = vpop.permute.xlu1 %7052 }
 0xecc   :  { %v6999_v18 = vpop.permute.xlu0 %6998  ;;  %v7185_v26 = vpop.permute.xlu2 %7184 }
 0xecd   :  { %7001 = vst.msk [vmem:[#allocation2 + $0x28] sm:$0xff] %vm6246_vm0, %v6999_v18 }
 0xece   :  { %7019 = vst.msk [vmem:[#allocation2 + $0x28] sm:$0xff] %vm6265_vm1, %v16508_v17  ;;  %v7494_v17 = vld [vmem:[%s16712_s5 + $0x380] sm:$0xff] }
 0xecf   :  { %7037 = vst.msk [vmem:[#allocation2 + $0x28] sm:$0xff] %vm6284_vm2, %v7035_v53  ;;  %7669 = vmatpush.msrb.mxu2 %v7494_v17 }
 0xed0   :  { %7055 = vst.msk [vmem:[#allocation2 + $0x28] sm:$0xff] %vm6303_vm3, %v7053_v29 }
 0xed1   :  { %7073 = vst.msk [vmem:[#allocation2 + $0x28] sm:$0xff] %vm6322_vm4, %v7071_v54 }
 0xed2   :  { %v7113_v13 = vpop.permute.xlu1 %7112 }
 0xed3   :  { %7115 = vst.msk [vmem:[#allocation2 + $0x30] sm:$0xff] %vm6208_vm14, %v7113_v13 }
 0xed4   :  { %v7131_v20 = vpop.permute.xlu0 %7130 }
 0xed5   :  { %7133 = vst.msk [vmem:[#allocation2 + $0x30] sm:$0xff] %vm6227_vm15, %v7131_v20 }
 0xed6   :  { %7151 = vst.msk [vmem:[#allocation2 + $0x30] sm:$0xff] %vm6246_vm0, %v16535_v23 }
 0xed8   :  { %v7379_v14 = vld [vmem:[#allocation2 + $0x28] sm:$0xff] }
 0xed9   :  { %7630 = vmatmul.f32.vlgmr.msrb.gmra.mxu3 %v7379_v14 }
 0xeda   :  { %v7167_v38 = vpop.permute.xlu1 %7166 }
 0xedb   :  { %7169 = vst.msk [vmem:[#allocation2 + $0x30] sm:$0xff] %vm6265_vm1, %v7167_v38 }
 0xedc   :  { %7187 = vst.msk [vmem:[#allocation2 + $0x30] sm:$0xff] %vm6284_vm2, %v7185_v26  ;;  %v7371_v51 = vpop.permute.xlu0 %7370 }
 0xee2   :  { %v7353_v39 = vpop.permute.xlu1 %7352 }
 0xee4   :  { %v7317_v59 = vpop.permute.xlu0 %7316 }
 0xee5   :  { %7319 = vst.msk [vmem:[#allocation2 + $0x38] sm:$0xff] %vm6265_vm1, %v7317_v59 }
 0xee6   :  { %7337 = vst.msk [vmem:[#allocation2 + $0x38] sm:$0xff] %vm6284_vm2, %v7335_v35 }
 0xee7   :  { %7355 = vst.msk [vmem:[#allocation2 + $0x38] sm:$0xff] %vm6303_vm3, %v7353_v39 }
 0xee8   :  { %7373 = vst.msk [vmem:[#allocation2 + $0x38] sm:$0xff] %vm6322_vm4, %v7371_v51 }
 0xeea   :  { %v7221_v31 = vpop.permute.xlu1 %7220 }
 0xeeb   :  { %v7531_v8 = vpop.f32.mrf.mxu1 }
 0xeec   :  { %v7203_v23 = vpop.permute.xlu0 %7202  ;;  %v7532_v15 = vadd.f32 %v9058_v42, %v7531_v8 }
 0xeed   :  { %7205 = vst.msk [vmem:[#allocation2 + $0x30] sm:$0xff] %vm6303_vm3, %v7203_v23 }
 0xeee   :  { %7223 = vst.msk [vmem:[#allocation2 + $0x30] sm:$0xff] %vm6322_vm4, %v7221_v31 }
 0xeef   :  { %v7381_v6 = vld [vmem:[#allocation2 + $0x38] sm:$0xff] }
 0xef0   :  { %7670 = vmatmul.f32.vlgmr.msrb.gmra.mxu2 %v7381_v6 }
 0xef5   :  { %v7380_v62 = vld [vmem:[#allocation2 + $0x30] sm:$0xff] }
 0xef6   :  { %7650 = vmatmul.f32.vlgmr.msra.gmra.mxu1 %v7380_v62 }
 0xf0d   :  { %v7551_v52 = vpop.f32.mrf.mxu2 }
 0xf0e   :  { %v7552_v58 = vadd.f32 %v7551_v52, %v7532_v15 }
 0xf1a   :  { %v7571_v16 = vpop.f32.mrf.mxu3 }
 0xf1b   :  { %v7572_v12 = vadd.f32 %v7571_v16, %v7552_v58 }
 0xf33   :  { %v7591_v46 = vpop.f32.mrf.mxu1 }
 0xf34   :  { %v7592_v47 = vadd.f32 %v7591_v46, %v7572_v12 }
 0xf44   :  { %v7611_v63 = vpop.f32.mrf.mxu2 }
 0xf45   :  { %v7612_v57 = vadd.f32 %v7611_v63, %v7592_v47 }
 0xf5c   :  { %v7631_v55 = vpop.f32.mrf.mxu3 }
 0xf5d   :  { %v7632_v5 = vadd.f32 %v7631_v55, %v7612_v57 }
 0xf73   :  { %v7651_v3 = vpop.f32.mrf.mxu1  ;;  %v7671_v1 = vpop.f32.mrf.mxu2 }
 0xf74   :  { %v7652_v24 = vadd.f32 %v7651_v3, %v7632_v5 }
 0xf76   :  { %v7672_v49 = vadd.f32 %v7671_v1, %v7652_v24 }
 0xf78   :  { %7674 = vst [vmem:[%s16714_s7] sm:$0xff] %v7672_v49 }

</bundles_post_ra>
